<compile_context>
chip_gen: v7x
topology: tpu7x:2x2x1
jax: 0.10.0
libtpu: 0.0.40
codegen_flags: <defaults>
</compile_context>

<pallas_src>
import functools
import math

import jax
import jax.numpy as jnp
from jax.experimental import pallas as pl
from jax.experimental.pallas import tpu as pltpu


# ----------------------------------------------------------------------------
# Pallas kernels
# ----------------------------------------------------------------------------
def _conv_kernel(relu, has_res, x_ref, w_ref, b_ref, *rest):
    """One matmul per conv: y = x @ w (fp32 acc) + bias [ReLU] [+ residual]."""
    if has_res:
        res_ref, o_ref = rest
    else:
        (o_ref,) = rest
    y = jnp.dot(x_ref[...], w_ref[...], preferred_element_type=jnp.float32)
    y = y + b_ref[...]
    if relu:
        y = jnp.maximum(y, 0.0)
    if has_res:
        # residual is added AFTER the activation (matches x = conv(x); x + r)
        y = y + res_ref[...].astype(jnp.float32)
    o_ref[...] = y.astype(o_ref.dtype)


def _add_kernel(a_ref, b_ref, o_ref):
    o_ref[...] = a_ref[...] + b_ref[...]


def _pick_tile_m(m):
    """Largest power-of-two row tile (<=512) dividing M, else full M."""
    for t in (512, 256, 128, 64, 32, 16, 8):
        if m % t == 0:
            return t
    return m


def _matmul_bias_act(x2d, w2d, bias, relu, residual=None,
                     out_dtype=jnp.bfloat16):
    """x2d: (M, Kc), w2d: (Kc, Cout), bias: (Cout,), residual: (M, Cout)."""
    m, kc = x2d.shape
    cout = w2d.shape[-1]
    x2d = x2d.astype(jnp.bfloat16)
    w2d = w2d.astype(jnp.bfloat16)
    bias2 = bias.reshape(1, cout).astype(jnp.float32)

    tm = _pick_tile_m(m)
    grid = (m // tm,)

    in_specs = [
        pl.BlockSpec((tm, kc), lambda i: (i, 0)),       # activation tile
        pl.BlockSpec((kc, cout), lambda i: (0, 0)),     # weight (resident)
        pl.BlockSpec((1, cout), lambda i: (0, 0)),      # bias (resident)
    ]
    args = [x2d, w2d, bias2]
    has_res = residual is not None
    if has_res:
        in_specs.append(pl.BlockSpec((tm, cout), lambda i: (i, 0)))
        args.append(residual.reshape(m, cout).astype(jnp.bfloat16))

    kernel = functools.partial(_conv_kernel, relu, has_res)
    return pl.pallas_call(
        kernel,
        out_shape=jax.ShapeDtypeStruct((m, cout), out_dtype),
        grid_spec=pltpu.PrefetchScalarGridSpec(
            num_scalar_prefetch=0,
            grid=grid,
            in_specs=in_specs,
            out_specs=pl.BlockSpec((tm, cout), lambda i: (i, 0)),
        ),
        compiler_params=pltpu.CompilerParams(
            dimension_semantics=("parallel",)),
    )(*args)


def pallas_add(a, b):
    """Elementwise residual add on NHWC tensors (tiled, pipelined)."""
    n, h, w, c = a.shape
    m = n * h * w
    tm = _pick_tile_m(m)
    out = pl.pallas_call(
        _add_kernel,
        out_shape=jax.ShapeDtypeStruct((m, c), a.dtype),
        grid=(m // tm,),
        in_specs=[pl.BlockSpec((tm, c), lambda i: (i, 0)),
                  pl.BlockSpec((tm, c), lambda i: (i, 0))],
        out_specs=pl.BlockSpec((tm, c), lambda i: (i, 0)),
        compiler_params=pltpu.CompilerParams(
            dimension_semantics=("parallel",)),
    )(a.reshape(m, c), b.reshape(m, c))
    return out.reshape(n, h, w, c)


# ----------------------------------------------------------------------------
# Conv wrappers (glue: padding / tap extraction / reshapes in plain JAX)
# ----------------------------------------------------------------------------
def _im2col(x, kh, kw, stride, padding):
    """NHWC -> (M, kh*kw*Cin) taps, column order (dh, dw, cin)."""
    n, h, w, c = x.shape
    if padding > 0:
        x = jnp.pad(x, ((0, 0), (padding, padding), (padding, padding), (0, 0)))
    hp, wp = h + 2 * padding, w + 2 * padding
    ho = (hp - kh) // stride + 1
    wo = (wp - kw) // stride + 1
    m = n * ho * wo
    if kh == 1 and kw == 1 and stride == 1:
        return x.reshape(m, c), (n, ho, wo)
    cols = []
    for dh in range(kh):
        for dw in range(kw):
            patch = x[:, dh: dh + stride * (ho - 1) + 1: stride,
                      dw: dw + stride * (wo - 1) + 1: stride, :]
            cols.append(patch.reshape(m, c))
    return jnp.concatenate(cols, axis=-1), (n, ho, wo)


def conv2d_bias_act(x, w, bias, stride=1, padding=0, relu=True, residual=None):
    """x: (N,H,W,Cin) bf16, w: (kh,kw,Cin,Cout) with BN scale already folded."""
    kh, kw, cin, cout = w.shape
    taps, (n, ho, wo) = _im2col(x, kh, kw, stride, padding)
    w2d = w.reshape(kh * kw * cin, cout)
    out = _matmul_bias_act(taps, w2d, bias, relu, residual)
    return out.reshape(n, ho, wo, cout)


def conv_transpose2x2(x, q):
    """ConvTranspose2d(k=2, s=2, p=0). x: (N,H,W,Cin), w: (Cin,Cout,2,2)."""
    n, h, w, cin = x.shape
    wt, bias = q['w'], q['bias']
    cout = wt.shape[1]
    # each of the 4 sub-pixel positions is an independent 1x1 conv
    w2d = jnp.transpose(wt, (0, 2, 3, 1)).reshape(cin, 4 * cout)  # (cin,[di,dj,c])
    b4 = jnp.tile(bias, 4)
    y = _matmul_bias_act(x.reshape(n * h * w, cin), w2d, b4, relu=False)
    y = y.reshape(n, h, w, 2, 2, cout)
    y = jnp.transpose(y, (0, 1, 3, 2, 4, 5)).reshape(n, 2 * h, 2 * w, cout)
    return y


# ----------------------------------------------------------------------------
# Parameter construction (deterministic, synthetic; BN folded into weights)
# ----------------------------------------------------------------------------
def make_basic_conv_params(key, cin, cout, ksize):
    kw_key, g_key, b_key = jax.random.split(key, 3)
    fan_in = ksize * ksize * cin
    w = jax.random.normal(kw_key, (ksize, ksize, cin, cout),
                          jnp.float32) / math.sqrt(fan_in)
    gamma = jax.random.uniform(g_key, (cout,), jnp.float32, 0.5, 1.5)
    beta = jax.random.normal(b_key, (cout,), jnp.float32) * 0.1
    eps = 1e-5
    # BN eval mode: running_mean=0, running_var=1 -> scale folded into weights
    scale = gamma / jnp.sqrt(1.0 + eps)
    return dict(w=w * scale[None, None, None, :], bias=beta)


def make_plain_conv_params(key, cin, cout, ksize):
    kw_key, b_key = jax.random.split(key, 2)
    fan_in = ksize * ksize * cin
    w = jax.random.normal(kw_key, (ksize, ksize, cin, cout),
                          jnp.float32) / math.sqrt(fan_in)
    bias = jax.random.normal(b_key, (cout,), jnp.float32) * 0.1
    return dict(w=w, bias=bias)


def make_deconv_params(key, cin, cout):
    kw_key, b_key = jax.random.split(key, 2)
    w = jax.random.normal(kw_key, (cin, cout, 2, 2),
                          jnp.float32) / math.sqrt(4 * cin)
    bias = jax.random.normal(b_key, (cout,), jnp.float32) * 0.1
    return dict(w=w, bias=bias)


def init_params(key, in_channels=16):
    bc = in_channels
    basic = [
        ('conv1', 3, bc, 1), ('conv2', bc, bc, 3), ('conv3', bc, bc * 2, 3),
        ('conv4', bc * 2, bc * 2, 3), ('conv5', bc * 2, bc * 4, 3),
        ('conv6', bc * 4, bc * 4, 3), ('conv7', bc * 4, bc * 4, 3),
        ('conv8', bc * 4, bc * 4, 3), ('conv9', bc * 4, bc * 4, 3),
        ('conv10', bc * 4, bc * 4, 3), ('conv11', bc * 4, bc * 4, 3),
        ('conv12', bc * 4, bc * 4, 3),
        ('branch1', bc * 4, bc * 8, 3), ('branch2', bc * 8, bc * 8, 3),
        ('branch3', bc * 8, bc * 8, 3), ('branch4', bc * 8, bc * 8, 3),
        ('branch5', bc * 8, bc * 8, 3), ('branch6', bc * 8, bc * 16, 3),
        ('branch7', bc * 16, bc * 16, 3), ('branch8', bc * 16, bc * 16, 3),
        ('downconv1', bc * 4, bc * 8, 3), ('downconv2', bc * 4, bc * 8, 3),
        ('downconv3', bc * 8, bc * 16, 3),
    ]
    keys = jax.random.split(key, len(basic) + 6)
    params = {}
    for i, (nm, cin, cout, ks) in enumerate(basic):
        params[nm] = make_basic_conv_params(keys[i], cin, cout, ks)
    k = len(basic)
    params['convUP1'] = make_plain_conv_params(keys[k], 32, 128, 1); k += 1
    params['convUP2'] = make_plain_conv_params(keys[k], 64, 128, 1); k += 1
    params['up0'] = make_deconv_params(keys[k], 128, 64); k += 1
    params['up1'] = make_deconv_params(keys[k], 256, 128); k += 1
    params['up2'] = make_deconv_params(keys[k], 128, 128); k += 1
    params['up3'] = make_deconv_params(keys[k], 128, 128); k += 1
    return params


# ----------------------------------------------------------------------------
# Forward pass (mirrors vgg_hrnet.forward; residual adds fused where safe)
# ----------------------------------------------------------------------------
def vgg_hrnet_forward(x_nchw, p):
    x = jnp.transpose(x_nchw, (0, 2, 3, 1)).astype(jnp.bfloat16)  # NCHW -> NHWC

    def bcv(name, xin, stride, padding, relu=True, residual=None):
        q = p[name]
        return conv2d_bias_act(xin, q['w'], q['bias'], stride=stride,
                               padding=padding, relu=relu, residual=residual)

    x = bcv('conv1', x, 1, 0)
    x = bcv('conv2', x, 2, 1)
    x = bcv('conv3', x, 1, 1)
    x = bcv('conv4', x, 2, 1)
    x_c4 = x                       # saved: convUP1(x_c4) is computed at the end
    x = bcv('conv5', x, 1, 1)
    x = bcv('conv6', x, 1, 1)
    x = bcv('conv7', x, 2, 1)
    x = bcv('conv8', x, 1, 1)
    x = bcv('conv9', x, 1, 1)
    x1 = bcv('downconv1', x, 2, 1)
    x = bcv('conv10', x, 1, 1)
    x = bcv('conv11', x, 1, 1)
    x1_1 = bcv('downconv2', x, 2, 1)
    x2 = bcv('branch1', x, 2, 1)
    x2 = bcv('branch2', x2, 1, 1)
    x3 = pallas_add(x2, x1)                       # x2 reused later -> keep add
    x3 = bcv('branch3', x3, 1, 1)
    x3 = bcv('branch4', x3, 1, 1)
    up0 = conv_transpose2x2(x3, p['up0'])
    s0 = pallas_add(up0, x)                       # x reused -> keep add
    x_out0 = bcv('conv12', s0, 1, 1)
    x4 = bcv('downconv3', x3, 2, 1)
    x5 = pallas_add(x1_1, x3)                     # x3 reused -> keep add
    x6 = bcv('branch6', x2, 2, 1)
    x6 = bcv('branch7', x6, 1, 1, residual=x4)    # fused: x4 + x6
    x_out2 = bcv('branch8', x6, 1, 1)
    up1_res = conv_transpose2x2(x_out2, p['up1'])
    x_s1 = bcv('branch5', x5, 1, 1, residual=up1_res)   # x_out1 + up1(x_out2)
    up2_res = conv_transpose2x2(x_s1, p['up2'])
    x_s2 = bcv('convUP2', x_out0, 1, 0, relu=False,
               residual=up2_res)                         # convUP2(x_out0)+up2(x_s1)
    up3_res = conv_transpose2x2(x_s2, p['up3'])
    x_out = bcv('convUP1', x_c4, 1, 0, relu=False,
                residual=up3_res)                        # convUP1(conv4 out)+up3(x_s2)
    return jnp.transpose(x_out.astype(jnp.float32), (0, 3, 1, 2))  # NHWC -> NCHW


if __name__ == "__main__":
    key = jax.random.PRNGKey(0)
    pkey, xkey = jax.random.split(key)
    # base_channel must be 16 for the hard-coded up/convUP layer sizes to match
    params = init_params(pkey, in_channels=16)
    x = jax.random.normal(xkey, (2, 3, 32, 32), jnp.float32)  # NCHW like PyTorch

    fwd = jax.jit(lambda xi: vgg_hrnet_forward(xi, params))
    out = fwd(x)
    jax.block_until_ready(out)
    assert out.shape == (2, 128, 8, 8), out.shape
    assert jnp.all(jnp.isfinite(out))
    print("KERNEL_OK")
</pallas_src>

<mosaic_0001>
module attributes {stable_mosaic.version = 11 : i64} {
  func.func @_conv_kernel(%arg0: i32, %arg1: memref<512x3xbf16, #tpu.memory_space<vmem>>, %arg2: memref<3x16xbf16, #tpu.memory_space<vmem>>, %arg3: memref<1x16xf32, #tpu.memory_space<vmem>>, %arg4: memref<512x16xbf16, #tpu.memory_space<vmem>>) attributes {dimension_semantics = [#tpu.dimension_semantics<parallel>], iteration_bounds = array<i64: 4>, scalar_prefetch = 0 : i64, scratch_operands = 0 : i64, tpu.core_type = #tpu.core_type<tc>, window_params = [{transform_indices = @transform_0, window_bounds = array<i64: 512, 3>}, {pipeline_mode = #tpu.pipeline_mode<synchronous>, transform_indices = @transform_1, window_bounds = array<i64: 3, 16>}, {pipeline_mode = #tpu.pipeline_mode<synchronous>, transform_indices = @transform_2, window_bounds = array<i64: 1, 16>}, {transform_indices = @transform_3, window_bounds = array<i64: 512, 16>}]} {
    %c0 = arith.constant 0 : index
    %c0_0 = arith.constant 0 : index
    %0 = vector.load %arg1[%c0, %c0_0] : memref<512x3xbf16, #tpu.memory_space<vmem>>, vector<512x3xbf16>
    %c0_1 = arith.constant 0 : index
    %c0_2 = arith.constant 0 : index
    %1 = vector.load %arg2[%c0_1, %c0_2] : memref<3x16xbf16, #tpu.memory_space<vmem>>, vector<3x16xbf16>
    %cst = arith.constant dense<0.000000e+00> : vector<512x16xf32>
    %2 = tpu.matmul %0, %1, %cst {dimension_numbers = #tpu.dot_dimension_numbers<[1], [0], [0], [1], [0, 0, 1, 1], [], []>} : vector<512x3xbf16>, vector<3x16xbf16>, vector<512x16xf32> -> vector<512x16xf32>
    %c0_3 = arith.constant 0 : index
    %c0_4 = arith.constant 0 : index
    %3 = vector.load %arg3[%c0_3, %c0_4] : memref<1x16xf32, #tpu.memory_space<vmem>>, vector<1x16xf32>
    %4 = vector.broadcast %3 : vector<1x16xf32> to vector<512x16xf32>
    %5 = arith.addf %2, %4 : vector<512x16xf32>
    %cst_5 = arith.constant 0.000000e+00 : f32
    %6 = vector.broadcast %cst_5 : f32 to vector<512x16xf32>
    %7 = arith.maximumf %5, %6 : vector<512x16xf32>
    %8 = arith.truncf %7 : vector<512x16xf32> to vector<512x16xbf16>
    %c0_6 = arith.constant 0 : index
    %c0_7 = arith.constant 0 : index
    %9 = vector.load %arg4[%c0_6, %c0_7] : memref<512x16xbf16, #tpu.memory_space<vmem>>, vector<512x16xbf16>
    tpu.vector_store %arg4[%c0_6, %c0_7], %8 {strides = array<i32>} : memref<512x16xbf16, #tpu.memory_space<vmem>>, vector<512x16xbf16>,
    return
  }
  func.func @transform_0(%arg0: i32) -> (i32, i32) {
    %c0_i32 = arith.constant 0 : i32
    %c0_i32_0 = arith.constant 0 : i32
    return %arg0, %c0_i32 : i32, i32
  }
  func.func @transform_1(%arg0: i32) -> (i32, i32) {
    %c0_i32 = arith.constant 0 : i32
    %c0_i32_0 = arith.constant 0 : i32
    %c0_i32_1 = arith.constant 0 : i32
    return %c0_i32, %c0_i32_0 : i32, i32
  }
  func.func @transform_2(%arg0: i32) -> (i32, i32) {
    %c0_i32 = arith.constant 0 : i32
    %c0_i32_0 = arith.constant 0 : i32
    %c0_i32_1 = arith.constant 0 : i32
    return %c0_i32, %c0_i32_0 : i32, i32
  }
  func.func @transform_3(%arg0: i32) -> (i32, i32) {
    %c0_i32 = arith.constant 0 : i32
    %c0_i32_0 = arith.constant 0 : i32
    return %arg0, %c0_i32 : i32, i32
  }
}

module attributes {stable_mosaic.version = 11 : i64} {
  func.func @_conv_kernel(%arg0: i32, %arg1: memref<512x144xbf16, #tpu.memory_space<vmem>>, %arg2: memref<144x16xbf16, #tpu.memory_space<vmem>>, %arg3: memref<1x16xf32, #tpu.memory_space<vmem>>, %arg4: memref<512x16xbf16, #tpu.memory_space<vmem>>) attributes {dimension_semantics = [#tpu.dimension_semantics<parallel>], iteration_bounds = array<i64: 1>, scalar_prefetch = 0 : i64, scratch_operands = 0 : i64, tpu.core_type = #tpu.core_type<tc>, window_params = [{transform_indices = @transform_0, window_bounds = array<i64: 512, 144>}, {pipeline_mode = #tpu.pipeline_mode<synchronous>, transform_indices = @transform_1, window_bounds = array<i64: 144, 16>}, {pipeline_mode = #tpu.pipeline_mode<synchronous>, transform_indices = @transform_2, window_bounds = array<i64: 1, 16>}, {transform_indices = @transform_3, window_bounds = array<i64: 512, 16>}]} {
    %c0 = arith.constant 0 : index
    %c0_0 = arith.constant 0 : index
    %0 = vector.load %arg1[%c0, %c0_0] : memref<512x144xbf16, #tpu.memory_space<vmem>>, vector<512x144xbf16>
    %c0_1 = arith.constant 0 : index
    %c0_2 = arith.constant 0 : index
    %1 = vector.load %arg2[%c0_1, %c0_2] : memref<144x16xbf16, #tpu.memory_space<vmem>>, vector<144x16xbf16>
    %cst = arith.constant dense<0.000000e+00> : vector<512x16xf32>
    %2 = tpu.matmul %0, %1, %cst {dimension_numbers = #tpu.dot_dimension_numbers<[1], [0], [0], [1], [0, 0, 1, 1], [], []>} : vector<512x144xbf16>, vector<144x16xbf16>, vector<512x16xf32> -> vector<512x16xf32>
    %c0_3 = arith.constant 0 : index
    %c0_4 = arith.constant 0 : index
    %3 = vector.load %arg3[%c0_3, %c0_4] : memref<1x16xf32, #tpu.memory_space<vmem>>, vector<1x16xf32>
    %4 = vector.broadcast %3 : vector<1x16xf32> to vector<512x16xf32>
    %5 = arith.addf %2, %4 : vector<512x16xf32>
    %cst_5 = arith.constant 0.000000e+00 : f32
    %6 = vector.broadcast %cst_5 : f32 to vector<512x16xf32>
    %7 = arith.maximumf %5, %6 : vector<512x16xf32>
    %8 = arith.truncf %7 : vector<512x16xf32> to vector<512x16xbf16>
    %c0_6 = arith.constant 0 : index
    %c0_7 = arith.constant 0 : index
    %9 = vector.load %arg4[%c0_6, %c0_7] : memref<512x16xbf16, #tpu.memory_space<vmem>>, vector<512x16xbf16>
    tpu.vector_store %arg4[%c0_6, %c0_7], %8 {strides = array<i32>} : memref<512x16xbf16, #tpu.memory_space<vmem>>, vector<512x16xbf16>,
    return
  }
  func.func @transform_0(%arg0: i32) -> (i32, i32) {
    %c0_i32 = arith.constant 0 : i32
    %c0_i32_0 = arith.constant 0 : i32
    return %arg0, %c0_i32 : i32, i32
  }
  func.func @transform_1(%arg0: i32) -> (i32, i32) {
    %c0_i32 = arith.constant 0 : i32
    %c0_i32_0 = arith.constant 0 : i32
    %c0_i32_1 = arith.constant 0 : i32
    return %c0_i32, %c0_i32_0 : i32, i32
  }
  func.func @transform_2(%arg0: i32) -> (i32, i32) {
    %c0_i32 = arith.constant 0 : i32
    %c0_i32_0 = arith.constant 0 : i32
    %c0_i32_1 = arith.constant 0 : i32
    return %c0_i32, %c0_i32_0 : i32, i32
  }
  func.func @transform_3(%arg0: i32) -> (i32, i32) {
    %c0_i32 = arith.constant 0 : i32
    %c0_i32_0 = arith.constant 0 : i32
    return %arg0, %c0_i32 : i32, i32
  }
}

module attributes {stable_mosaic.version = 11 : i64} {
  func.func @_conv_kernel(%arg0: i32, %arg1: memref<512x144xbf16, #tpu.memory_space<vmem>>, %arg2: memref<144x32xbf16, #tpu.memory_space<vmem>>, %arg3: memref<1x32xf32, #tpu.memory_space<vmem>>, %arg4: memref<512x32xbf16, #tpu.memory_space<vmem>>) attributes {dimension_semantics = [#tpu.dimension_semantics<parallel>], iteration_bounds = array<i64: 1>, scalar_prefetch = 0 : i64, scratch_operands = 0 : i64, tpu.core_type = #tpu.core_type<tc>, window_params = [{transform_indices = @transform_0, window_bounds = array<i64: 512, 144>}, {pipeline_mode = #tpu.pipeline_mode<synchronous>, transform_indices = @transform_1, window_bounds = array<i64: 144, 32>}, {pipeline_mode = #tpu.pipeline_mode<synchronous>, transform_indices = @transform_2, window_bounds = array<i64: 1, 32>}, {transform_indices = @transform_3, window_bounds = array<i64: 512, 32>}]} {
    %c0 = arith.constant 0 : index
    %c0_0 = arith.constant 0 : index
    %0 = vector.load %arg1[%c0, %c0_0] : memref<512x144xbf16, #tpu.memory_space<vmem>>, vector<512x144xbf16>
    %c0_1 = arith.constant 0 : index
    %c0_2 = arith.constant 0 : index
    %1 = vector.load %arg2[%c0_1, %c0_2] : memref<144x32xbf16, #tpu.memory_space<vmem>>, vector<144x32xbf16>
    %cst = arith.constant dense<0.000000e+00> : vector<512x32xf32>
    %2 = tpu.matmul %0, %1, %cst {dimension_numbers = #tpu.dot_dimension_numbers<[1], [0], [0], [1], [0, 0, 1, 1], [], []>} : vector<512x144xbf16>, vector<144x32xbf16>, vector<512x32xf32> -> vector<512x32xf32>
    %c0_3 = arith.constant 0 : index
    %c0_4 = arith.constant 0 : index
    %3 = vector.load %arg3[%c0_3, %c0_4] : memref<1x32xf32, #tpu.memory_space<vmem>>, vector<1x32xf32>
    %4 = vector.broadcast %3 : vector<1x32xf32> to vector<512x32xf32>
    %5 = arith.addf %2, %4 : vector<512x32xf32>
    %cst_5 = arith.constant 0.000000e+00 : f32
    %6 = vector.broadcast %cst_5 : f32 to vector<512x32xf32>
    %7 = arith.maximumf %5, %6 : vector<512x32xf32>
    %8 = arith.truncf %7 : vector<512x32xf32> to vector<512x32xbf16>
    %c0_6 = arith.constant 0 : index
    %c0_7 = arith.constant 0 : index
    %9 = vector.load %arg4[%c0_6, %c0_7] : memref<512x32xbf16, #tpu.memory_space<vmem>>, vector<512x32xbf16>
    tpu.vector_store %arg4[%c0_6, %c0_7], %8 {strides = array<i32>} : memref<512x32xbf16, #tpu.memory_space<vmem>>, vector<512x32xbf16>,
    return
  }
  func.func @transform_0(%arg0: i32) -> (i32, i32) {
    %c0_i32 = arith.constant 0 : i32
    %c0_i32_0 = arith.constant 0 : i32
    return %arg0, %c0_i32 : i32, i32
  }
  func.func @transform_1(%arg0: i32) -> (i32, i32) {
    %c0_i32 = arith.constant 0 : i32
    %c0_i32_0 = arith.constant 0 : i32
    %c0_i32_1 = arith.constant 0 : i32
    return %c0_i32, %c0_i32_0 : i32, i32
  }
  func.func @transform_2(%arg0: i32) -> (i32, i32) {
    %c0_i32 = arith.constant 0 : i32
    %c0_i32_0 = arith.constant 0 : i32
    %c0_i32_1 = arith.constant 0 : i32
    return %c0_i32, %c0_i32_0 : i32, i32
  }
  func.func @transform_3(%arg0: i32) -> (i32, i32) {
    %c0_i32 = arith.constant 0 : i32
    %c0_i32_0 = arith.constant 0 : i32
    return %arg0, %c0_i32 : i32, i32
  }
}

module attributes {stable_mosaic.version = 11 : i64} {
  func.func @_conv_kernel(%arg0: i32, %arg1: memref<128x288xbf16, #tpu.memory_space<vmem>>, %arg2: memref<288x32xbf16, #tpu.memory_space<vmem>>, %arg3: memref<1x32xf32, #tpu.memory_space<vmem>>, %arg4: memref<128x32xbf16, #tpu.memory_space<vmem>>) attributes {dimension_semantics = [#tpu.dimension_semantics<parallel>], iteration_bounds = array<i64: 1>, scalar_prefetch = 0 : i64, scratch_operands = 0 : i64, tpu.core_type = #tpu.core_type<tc>, window_params = [{transform_indices = @transform_0, window_bounds = array<i64: 128, 288>}, {pipeline_mode = #tpu.pipeline_mode<synchronous>, transform_indices = @transform_1, window_bounds = array<i64: 288, 32>}, {pipeline_mode = #tpu.pipeline_mode<synchronous>, transform_indices = @transform_2, window_bounds = array<i64: 1, 32>}, {transform_indices = @transform_3, window_bounds = array<i64: 128, 32>}]} {
    %c0 = arith.constant 0 : index
    %c0_0 = arith.constant 0 : index
    %0 = vector.load %arg1[%c0, %c0_0] : memref<128x288xbf16, #tpu.memory_space<vmem>>, vector<128x288xbf16>
    %c0_1 = arith.constant 0 : index
    %c0_2 = arith.constant 0 : index
    %1 = vector.load %arg2[%c0_1, %c0_2] : memref<288x32xbf16, #tpu.memory_space<vmem>>, vector<288x32xbf16>
    %cst = arith.constant dense<0.000000e+00> : vector<128x32xf32>
    %2 = tpu.matmul %0, %1, %cst {dimension_numbers = #tpu.dot_dimension_numbers<[1], [0], [0], [1], [0, 0, 1, 1], [], []>} : vector<128x288xbf16>, vector<288x32xbf16>, vector<128x32xf32> -> vector<128x32xf32>
    %c0_3 = arith.constant 0 : index
    %c0_4 = arith.constant 0 : index
    %3 = vector.load %arg3[%c0_3, %c0_4] : memref<1x32xf32, #tpu.memory_space<vmem>>, vector<1x32xf32>
    %4 = vector.broadcast %3 : vector<1x32xf32> to vector<128x32xf32>
    %5 = arith.addf %2, %4 : vector<128x32xf32>
    %cst_5 = arith.constant 0.000000e+00 : f32
    %6 = vector.broadcast %cst_5 : f32 to vector<128x32xf32>
    %7 = arith.maximumf %5, %6 : vector<128x32xf32>
    %8 = arith.truncf %7 : vector<128x32xf32> to vector<128x32xbf16>
    %c0_6 = arith.constant 0 : index
    %c0_7 = arith.constant 0 : index
    %9 = vector.load %arg4[%c0_6, %c0_7] : memref<128x32xbf16, #tpu.memory_space<vmem>>, vector<128x32xbf16>
    tpu.vector_store %arg4[%c0_6, %c0_7], %8 {strides = array<i32>} : memref<128x32xbf16, #tpu.memory_space<vmem>>, vector<128x32xbf16>,
    return
  }
  func.func @transform_0(%arg0: i32) -> (i32, i32) {
    %c0_i32 = arith.constant 0 : i32
    %c0_i32_0 = arith.constant 0 : i32
    return %arg0, %c0_i32 : i32, i32
  }
  func.func @transform_1(%arg0: i32) -> (i32, i32) {
    %c0_i32 = arith.constant 0 : i32
    %c0_i32_0 = arith.constant 0 : i32
    %c0_i32_1 = arith.constant 0 : i32
    return %c0_i32, %c0_i32_0 : i32, i32
  }
  func.func @transform_2(%arg0: i32) -> (i32, i32) {
    %c0_i32 = arith.constant 0 : i32
    %c0_i32_0 = arith.constant 0 : i32
    %c0_i32_1 = arith.constant 0 : i32
    return %c0_i32, %c0_i32_0 : i32, i32
  }
  func.func @transform_3(%arg0: i32) -> (i32, i32) {
    %c0_i32 = arith.constant 0 : i32
    %c0_i32_0 = arith.constant 0 : i32
    return %arg0, %c0_i32 : i32, i32
  }
}

module attributes {stable_mosaic.version = 11 : i64} {
  func.func @_conv_kernel(%arg0: i32, %arg1: memref<128x288xbf16, #tpu.memory_space<vmem>>, %arg2: memref<288x64xbf16, #tpu.memory_space<vmem>>, %arg3: memref<1x64xf32, #tpu.memory_space<vmem>>, %arg4: memref<128x64xbf16, #tpu.memory_space<vmem>>) attributes {dimension_semantics = [#tpu.dimension_semantics<parallel>], iteration_bounds = array<i64: 1>, scalar_prefetch = 0 : i64, scratch_operands = 0 : i64, tpu.core_type = #tpu.core_type<tc>, window_params = [{transform_indices = @transform_0, window_bounds = array<i64: 128, 288>}, {pipeline_mode = #tpu.pipeline_mode<synchronous>, transform_indices = @transform_1, window_bounds = array<i64: 288, 64>}, {pipeline_mode = #tpu.pipeline_mode<synchronous>, transform_indices = @transform_2, window_bounds = array<i64: 1, 64>}, {transform_indices = @transform_3, window_bounds = array<i64: 128, 64>}]} {
    %c0 = arith.constant 0 : index
    %c0_0 = arith.constant 0 : index
    %0 = vector.load %arg1[%c0, %c0_0] : memref<128x288xbf16, #tpu.memory_space<vmem>>, vector<128x288xbf16>
    %c0_1 = arith.constant 0 : index
    %c0_2 = arith.constant 0 : index
    %1 = vector.load %arg2[%c0_1, %c0_2] : memref<288x64xbf16, #tpu.memory_space<vmem>>, vector<288x64xbf16>
    %cst = arith.constant dense<0.000000e+00> : vector<128x64xf32>
    %2 = tpu.matmul %0, %1, %cst {dimension_numbers = #tpu.dot_dimension_numbers<[1], [0], [0], [1], [0, 0, 1, 1], [], []>} : vector<128x288xbf16>, vector<288x64xbf16>, vector<128x64xf32> -> vector<128x64xf32>
    %c0_3 = arith.constant 0 : index
    %c0_4 = arith.constant 0 : index
    %3 = vector.load %arg3[%c0_3, %c0_4] : memref<1x64xf32, #tpu.memory_space<vmem>>, vector<1x64xf32>
    %4 = vector.broadcast %3 : vector<1x64xf32> to vector<128x64xf32>
    %5 = arith.addf %2, %4 : vector<128x64xf32>
    %cst_5 = arith.constant 0.000000e+00 : f32
    %6 = vector.broadcast %cst_5 : f32 to vector<128x64xf32>
    %7 = arith.maximumf %5, %6 : vector<128x64xf32>
    %8 = arith.truncf %7 : vector<128x64xf32> to vector<128x64xbf16>
    %c0_6 = arith.constant 0 : index
    %c0_7 = arith.constant 0 : index
    %9 = vector.load %arg4[%c0_6, %c0_7] : memref<128x64xbf16, #tpu.memory_space<vmem>>, vector<128x64xbf16>
    tpu.vector_store %arg4[%c0_6, %c0_7], %8 {strides = array<i32>} : memref<128x64xbf16, #tpu.memory_space<vmem>>, vector<128x64xbf16>,
    return
  }
  func.func @transform_0(%arg0: i32) -> (i32, i32) {
    %c0_i32 = arith.constant 0 : i32
    %c0_i32_0 = arith.constant 0 : i32
    return %arg0, %c0_i32 : i32, i32
  }
  func.func @transform_1(%arg0: i32) -> (i32, i32) {
    %c0_i32 = arith.constant 0 : i32
    %c0_i32_0 = arith.constant 0 : i32
    %c0_i32_1 = arith.constant 0 : i32
    return %c0_i32, %c0_i32_0 : i32, i32
  }
  func.func @transform_2(%arg0: i32) -> (i32, i32) {
    %c0_i32 = arith.constant 0 : i32
    %c0_i32_0 = arith.constant 0 : i32
    %c0_i32_1 = arith.constant 0 : i32
    return %c0_i32, %c0_i32_0 : i32, i32
  }
  func.func @transform_3(%arg0: i32) -> (i32, i32) {
    %c0_i32 = arith.constant 0 : i32
    %c0_i32_0 = arith.constant 0 : i32
    return %arg0, %c0_i32 : i32, i32
  }
}

module attributes {stable_mosaic.version = 11 : i64} {
  func.func @_conv_kernel(%arg0: i32, %arg1: memref<128x576xbf16, #tpu.memory_space<vmem>>, %arg2: memref<576x64xbf16, #tpu.memory_space<vmem>>, %arg3: memref<1x64xf32, #tpu.memory_space<vmem>>, %arg4: memref<128x64xbf16, #tpu.memory_space<vmem>>) attributes {dimension_semantics = [#tpu.dimension_semantics<parallel>], iteration_bounds = array<i64: 1>, scalar_prefetch = 0 : i64, scratch_operands = 0 : i64, tpu.core_type = #tpu.core_type<tc>, window_params = [{transform_indices = @transform_0, window_bounds = array<i64: 128, 576>}, {pipeline_mode = #tpu.pipeline_mode<synchronous>, transform_indices = @transform_1, window_bounds = array<i64: 576, 64>}, {pipeline_mode = #tpu.pipeline_mode<synchronous>, transform_indices = @transform_2, window_bounds = array<i64: 1, 64>}, {transform_indices = @transform_3, window_bounds = array<i64: 128, 64>}]} {
    %c0 = arith.constant 0 : index
    %c0_0 = arith.constant 0 : index
    %0 = vector.load %arg1[%c0, %c0_0] : memref<128x576xbf16, #tpu.memory_space<vmem>>, vector<128x576xbf16>
    %c0_1 = arith.constant 0 : index
    %c0_2 = arith.constant 0 : index
    %1 = vector.load %arg2[%c0_1, %c0_2] : memref<576x64xbf16, #tpu.memory_space<vmem>>, vector<576x64xbf16>
    %cst = arith.constant dense<0.000000e+00> : vector<128x64xf32>
    %2 = tpu.matmul %0, %1, %cst {dimension_numbers = #tpu.dot_dimension_numbers<[1], [0], [0], [1], [0, 0, 1, 1], [], []>} : vector<128x576xbf16>, vector<576x64xbf16>, vector<128x64xf32> -> vector<128x64xf32>
    %c0_3 = arith.constant 0 : index
    %c0_4 = arith.constant 0 : index
    %3 = vector.load %arg3[%c0_3, %c0_4] : memref<1x64xf32, #tpu.memory_space<vmem>>, vector<1x64xf32>
    %4 = vector.broadcast %3 : vector<1x64xf32> to vector<128x64xf32>
    %5 = arith.addf %2, %4 : vector<128x64xf32>
    %cst_5 = arith.constant 0.000000e+00 : f32
    %6 = vector.broadcast %cst_5 : f32 to vector<128x64xf32>
    %7 = arith.maximumf %5, %6 : vector<128x64xf32>
    %8 = arith.truncf %7 : vector<128x64xf32> to vector<128x64xbf16>
    %c0_6 = arith.constant 0 : index
    %c0_7 = arith.constant 0 : index
    %9 = vector.load %arg4[%c0_6, %c0_7] : memref<128x64xbf16, #tpu.memory_space<vmem>>, vector<128x64xbf16>
    tpu.vector_store %arg4[%c0_6, %c0_7], %8 {strides = array<i32>} : memref<128x64xbf16, #tpu.memory_space<vmem>>, vector<128x64xbf16>,
    return
  }
  func.func @transform_0(%arg0: i32) -> (i32, i32) {
    %c0_i32 = arith.constant 0 : i32
    %c0_i32_0 = arith.constant 0 : i32
    return %arg0, %c0_i32 : i32, i32
  }
  func.func @transform_1(%arg0: i32) -> (i32, i32) {
    %c0_i32 = arith.constant 0 : i32
    %c0_i32_0 = arith.constant 0 : i32
    %c0_i32_1 = arith.constant 0 : i32
    return %c0_i32, %c0_i32_0 : i32, i32
  }
  func.func @transform_2(%arg0: i32) -> (i32, i32) {
    %c0_i32 = arith.constant 0 : i32
    %c0_i32_0 = arith.constant 0 : i32
    %c0_i32_1 = arith.constant 0 : i32
    return %c0_i32, %c0_i32_0 : i32, i32
  }
  func.func @transform_3(%arg0: i32) -> (i32, i32) {
    %c0_i32 = arith.constant 0 : i32
    %c0_i32_0 = arith.constant 0 : i32
    return %arg0, %c0_i32 : i32, i32
  }
}

module attributes {stable_mosaic.version = 11 : i64} {
  func.func @_conv_kernel(%arg0: i32, %arg1: memref<8x576xbf16, #tpu.memory_space<vmem>>, %arg2: memref<576x128xbf16, #tpu.memory_space<vmem>>, %arg3: memref<1x128xf32, #tpu.memory_space<vmem>>, %arg4: memref<8x128xbf16, #tpu.memory_space<vmem>>) attributes {dimension_semantics = [#tpu.dimension_semantics<parallel>], iteration_bounds = array<i64: 1>, scalar_prefetch = 0 : i64, scratch_operands = 0 : i64, tpu.core_type = #tpu.core_type<tc>, window_params = [{transform_indices = @transform_0, window_bounds = array<i64: 8, 576>}, {pipeline_mode = #tpu.pipeline_mode<synchronous>, transform_indices = @transform_1, window_bounds = array<i64: 576, 128>}, {pipeline_mode = #tpu.pipeline_mode<synchronous>, transform_indices = @transform_2, window_bounds = array<i64: 1, 128>}, {transform_indices = @transform_3, window_bounds = array<i64: 8, 128>}]} {
    %c0 = arith.constant 0 : index
    %c0_0 = arith.constant 0 : index
    %0 = vector.load %arg1[%c0, %c0_0] : memref<8x576xbf16, #tpu.memory_space<vmem>>, vector<8x576xbf16>
    %c0_1 = arith.constant 0 : index
    %c0_2 = arith.constant 0 : index
    %1 = vector.load %arg2[%c0_1, %c0_2] : memref<576x128xbf16, #tpu.memory_space<vmem>>, vector<576x128xbf16>
    %cst = arith.constant dense<0.000000e+00> : vector<8x128xf32>
    %2 = tpu.matmul %0, %1, %cst {dimension_numbers = #tpu.dot_dimension_numbers<[1], [0], [0], [1], [0, 0, 1, 1], [], []>} : vector<8x576xbf16>, vector<576x128xbf16>, vector<8x128xf32> -> vector<8x128xf32>
    %c0_3 = arith.constant 0 : index
    %c0_4 = arith.constant 0 : index
    %3 = vector.load %arg3[%c0_3, %c0_4] : memref<1x128xf32, #tpu.memory_space<vmem>>, vector<1x128xf32>
    %4 = vector.broadcast %3 : vector<1x128xf32> to vector<8x128xf32>
    %5 = arith.addf %2, %4 : vector<8x128xf32>
    %cst_5 = arith.constant 0.000000e+00 : f32
    %6 = vector.broadcast %cst_5 : f32 to vector<8x128xf32>
    %7 = arith.maximumf %5, %6 : vector<8x128xf32>
    %8 = arith.truncf %7 : vector<8x128xf32> to vector<8x128xbf16>
    %c0_6 = arith.constant 0 : index
    %c0_7 = arith.constant 0 : index
    %9 = vector.load %arg4[%c0_6, %c0_7] : memref<8x128xbf16, #tpu.memory_space<vmem>>, vector<8x128xbf16>
    tpu.vector_store %arg4[%c0_6, %c0_7], %8 {strides = array<i32>} : memref<8x128xbf16, #tpu.memory_space<vmem>>, vector<8x128xbf16>,
    return
  }
  func.func @transform_0(%arg0: i32) -> (i32, i32) {
    %c0_i32 = arith.constant 0 : i32
    %c0_i32_0 = arith.constant 0 : i32
    return %arg0, %c0_i32 : i32, i32
  }
  func.func @transform_1(%arg0: i32) -> (i32, i32) {
    %c0_i32 = arith.constant 0 : i32
    %c0_i32_0 = arith.constant 0 : i32
    %c0_i32_1 = arith.constant 0 : i32
    return %c0_i32, %c0_i32_0 : i32, i32
  }
  func.func @transform_2(%arg0: i32) -> (i32, i32) {
    %c0_i32 = arith.constant 0 : i32
    %c0_i32_0 = arith.constant 0 : i32
    %c0_i32_1 = arith.constant 0 : i32
    return %c0_i32, %c0_i32_0 : i32, i32
  }
  func.func @transform_3(%arg0: i32) -> (i32, i32) {
    %c0_i32 = arith.constant 0 : i32
    %c0_i32_0 = arith.constant 0 : i32
    return %arg0, %c0_i32 : i32, i32
  }
}

module attributes {stable_mosaic.version = 11 : i64} {
  func.func @_conv_kernel(%arg0: i32, %arg1: memref<32x576xbf16, #tpu.memory_space<vmem>>, %arg2: memref<576x64xbf16, #tpu.memory_space<vmem>>, %arg3: memref<1x64xf32, #tpu.memory_space<vmem>>, %arg4: memref<32x64xbf16, #tpu.memory_space<vmem>>) attributes {dimension_semantics = [#tpu.dimension_semantics<parallel>], iteration_bounds = array<i64: 1>, scalar_prefetch = 0 : i64, scratch_operands = 0 : i64, tpu.core_type = #tpu.core_type<tc>, window_params = [{transform_indices = @transform_0, window_bounds = array<i64: 32, 576>}, {pipeline_mode = #tpu.pipeline_mode<synchronous>, transform_indices = @transform_1, window_bounds = array<i64: 576, 64>}, {pipeline_mode = #tpu.pipeline_mode<synchronous>, transform_indices = @transform_2, window_bounds = array<i64: 1, 64>}, {transform_indices = @transform_3, window_bounds = array<i64: 32, 64>}]} {
    %c0 = arith.constant 0 : index
    %c0_0 = arith.constant 0 : index
    %0 = vector.load %arg1[%c0, %c0_0] : memref<32x576xbf16, #tpu.memory_space<vmem>>, vector<32x576xbf16>
    %c0_1 = arith.constant 0 : index
    %c0_2 = arith.constant 0 : index
    %1 = vector.load %arg2[%c0_1, %c0_2] : memref<576x64xbf16, #tpu.memory_space<vmem>>, vector<576x64xbf16>
    %cst = arith.constant dense<0.000000e+00> : vector<32x64xf32>
    %2 = tpu.matmul %0, %1, %cst {dimension_numbers = #tpu.dot_dimension_numbers<[1], [0], [0], [1], [0, 0, 1, 1], [], []>} : vector<32x576xbf16>, vector<576x64xbf16>, vector<32x64xf32> -> vector<32x64xf32>
    %c0_3 = arith.constant 0 : index
    %c0_4 = arith.constant 0 : index
    %3 = vector.load %arg3[%c0_3, %c0_4] : memref<1x64xf32, #tpu.memory_space<vmem>>, vector<1x64xf32>
    %4 = vector.broadcast %3 : vector<1x64xf32> to vector<32x64xf32>
    %5 = arith.addf %2, %4 : vector<32x64xf32>
    %cst_5 = arith.constant 0.000000e+00 : f32
    %6 = vector.broadcast %cst_5 : f32 to vector<32x64xf32>
    %7 = arith.maximumf %5, %6 : vector<32x64xf32>
    %8 = arith.truncf %7 : vector<32x64xf32> to vector<32x64xbf16>
    %c0_6 = arith.constant 0 : index
    %c0_7 = arith.constant 0 : index
    %9 = vector.load %arg4[%c0_6, %c0_7] : memref<32x64xbf16, #tpu.memory_space<vmem>>, vector<32x64xbf16>
    tpu.vector_store %arg4[%c0_6, %c0_7], %8 {strides = array<i32>} : memref<32x64xbf16, #tpu.memory_space<vmem>>, vector<32x64xbf16>,
    return
  }
  func.func @transform_0(%arg0: i32) -> (i32, i32) {
    %c0_i32 = arith.constant 0 : i32
    %c0_i32_0 = arith.constant 0 : i32
    return %arg0, %c0_i32 : i32, i32
  }
  func.func @transform_1(%arg0: i32) -> (i32, i32) {
    %c0_i32 = arith.constant 0 : i32
    %c0_i32_0 = arith.constant 0 : i32
    %c0_i32_1 = arith.constant 0 : i32
    return %c0_i32, %c0_i32_0 : i32, i32
  }
  func.func @transform_2(%arg0: i32) -> (i32, i32) {
    %c0_i32 = arith.constant 0 : i32
    %c0_i32_0 = arith.constant 0 : i32
    %c0_i32_1 = arith.constant 0 : i32
    return %c0_i32, %c0_i32_0 : i32, i32
  }
  func.func @transform_3(%arg0: i32) -> (i32, i32) {
    %c0_i32 = arith.constant 0 : i32
    %c0_i32_0 = arith.constant 0 : i32
    return %arg0, %c0_i32 : i32, i32
  }
}

module attributes {stable_mosaic.version = 11 : i64} {
  func.func @_add_kernel(%arg0: i32, %arg1: memref<8x128xbf16, #tpu.memory_space<vmem>>, %arg2: memref<8x128xbf16, #tpu.memory_space<vmem>>, %arg3: memref<8x128xbf16, #tpu.memory_space<vmem>>) attributes {dimension_semantics = [#tpu.dimension_semantics<parallel>], iteration_bounds = array<i64: 1>, scalar_prefetch = 0 : i64, scratch_operands = 0 : i64, tpu.core_type = #tpu.core_type<tc>, window_params = [{transform_indices = @transform_0, window_bounds = array<i64: 8, 128>}, {transform_indices = @transform_1, window_bounds = array<i64: 8, 128>}, {transform_indices = @transform_2, window_bounds = array<i64: 8, 128>}]} {
    %c0 = arith.constant 0 : index
    %c0_0 = arith.constant 0 : index
    %0 = vector.load %arg1[%c0, %c0_0] : memref<8x128xbf16, #tpu.memory_space<vmem>>, vector<8x128xbf16>
    %c0_1 = arith.constant 0 : index
    %c0_2 = arith.constant 0 : index
    %1 = vector.load %arg2[%c0_1, %c0_2] : memref<8x128xbf16, #tpu.memory_space<vmem>>, vector<8x128xbf16>
    %2 = arith.addf %0, %1 : vector<8x128xbf16>
    %c0_3 = arith.constant 0 : index
    %c0_4 = arith.constant 0 : index
    %3 = vector.load %arg3[%c0_3, %c0_4] : memref<8x128xbf16, #tpu.memory_space<vmem>>, vector<8x128xbf16>
    tpu.vector_store %arg3[%c0_3, %c0_4], %2 {strides = array<i32>} : memref<8x128xbf16, #tpu.memory_space<vmem>>, vector<8x128xbf16>,
    return
  }
  func.func @transform_0(%arg0: i32) -> (i32, i32) {
    %c0_i32 = arith.constant 0 : i32
    %c0_i32_0 = arith.constant 0 : i32
    return %arg0, %c0_i32 : i32, i32
  }
  func.func @transform_1(%arg0: i32) -> (i32, i32) {
    %c0_i32 = arith.constant 0 : i32
    %c0_i32_0 = arith.constant 0 : i32
    return %arg0, %c0_i32 : i32, i32
  }
  func.func @transform_2(%arg0: i32) -> (i32, i32) {
    %c0_i32 = arith.constant 0 : i32
    %c0_i32_0 = arith.constant 0 : i32
    return %arg0, %c0_i32 : i32, i32
  }
}

module attributes {stable_mosaic.version = 11 : i64} {
  func.func @_conv_kernel(%arg0: i32, %arg1: memref<8x1152xbf16, #tpu.memory_space<vmem>>, %arg2: memref<1152x128xbf16, #tpu.memory_space<vmem>>, %arg3: memref<1x128xf32, #tpu.memory_space<vmem>>, %arg4: memref<8x128xbf16, #tpu.memory_space<vmem>>) attributes {dimension_semantics = [#tpu.dimension_semantics<parallel>], iteration_bounds = array<i64: 1>, scalar_prefetch = 0 : i64, scratch_operands = 0 : i64, tpu.core_type = #tpu.core_type<tc>, window_params = [{transform_indices = @transform_0, window_bounds = array<i64: 8, 1152>}, {pipeline_mode = #tpu.pipeline_mode<synchronous>, transform_indices = @transform_1, window_bounds = array<i64: 1152, 128>}, {pipeline_mode = #tpu.pipeline_mode<synchronous>, transform_indices = @transform_2, window_bounds = array<i64: 1, 128>}, {transform_indices = @transform_3, window_bounds = array<i64: 8, 128>}]} {
    %c0 = arith.constant 0 : index
    %c0_0 = arith.constant 0 : index
    %0 = vector.load %arg1[%c0, %c0_0] : memref<8x1152xbf16, #tpu.memory_space<vmem>>, vector<8x1152xbf16>
    %c0_1 = arith.constant 0 : index
    %c0_2 = arith.constant 0 : index
    %1 = vector.load %arg2[%c0_1, %c0_2] : memref<1152x128xbf16, #tpu.memory_space<vmem>>, vector<1152x128xbf16>
    %cst = arith.constant dense<0.000000e+00> : vector<8x128xf32>
    %2 = tpu.matmul %0, %1, %cst {dimension_numbers = #tpu.dot_dimension_numbers<[1], [0], [0], [1], [0, 0, 1, 1], [], []>} : vector<8x1152xbf16>, vector<1152x128xbf16>, vector<8x128xf32> -> vector<8x128xf32>
    %c0_3 = arith.constant 0 : index
    %c0_4 = arith.constant 0 : index
    %3 = vector.load %arg3[%c0_3, %c0_4] : memref<1x128xf32, #tpu.memory_space<vmem>>, vector<1x128xf32>
    %4 = vector.broadcast %3 : vector<1x128xf32> to vector<8x128xf32>
    %5 = arith.addf %2, %4 : vector<8x128xf32>
    %cst_5 = arith.constant 0.000000e+00 : f32
    %6 = vector.broadcast %cst_5 : f32 to vector<8x128xf32>
    %7 = arith.maximumf %5, %6 : vector<8x128xf32>
    %8 = arith.truncf %7 : vector<8x128xf32> to vector<8x128xbf16>
    %c0_6 = arith.constant 0 : index
    %c0_7 = arith.constant 0 : index
    %9 = vector.load %arg4[%c0_6, %c0_7] : memref<8x128xbf16, #tpu.memory_space<vmem>>, vector<8x128xbf16>
    tpu.vector_store %arg4[%c0_6, %c0_7], %8 {strides = array<i32>} : memref<8x128xbf16, #tpu.memory_space<vmem>>, vector<8x128xbf16>,
    return
  }
  func.func @transform_0(%arg0: i32) -> (i32, i32) {
    %c0_i32 = arith.constant 0 : i32
    %c0_i32_0 = arith.constant 0 : i32
    return %arg0, %c0_i32 : i32, i32
  }
  func.func @transform_1(%arg0: i32) -> (i32, i32) {
    %c0_i32 = arith.constant 0 : i32
    %c0_i32_0 = arith.constant 0 : i32
    %c0_i32_1 = arith.constant 0 : i32
    return %c0_i32, %c0_i32_0 : i32, i32
  }
  func.func @transform_2(%arg0: i32) -> (i32, i32) {
    %c0_i32 = arith.constant 0 : i32
    %c0_i32_0 = arith.constant 0 : i32
    %c0_i32_1 = arith.constant 0 : i32
    return %c0_i32, %c0_i32_0 : i32, i32
  }
  func.func @transform_3(%arg0: i32) -> (i32, i32) {
    %c0_i32 = arith.constant 0 : i32
    %c0_i32_0 = arith.constant 0 : i32
    return %arg0, %c0_i32 : i32, i32
  }
}

module attributes {stable_mosaic.version = 11 : i64} {
  func.func @_conv_kernel(%arg0: i32, %arg1: memref<2x1152xbf16, #tpu.memory_space<vmem>>, %arg2: memref<1152x256xbf16, #tpu.memory_space<vmem>>, %arg3: memref<1x256xf32, #tpu.memory_space<vmem>>, %arg4: memref<2x256xbf16, #tpu.memory_space<vmem>>) attributes {dimension_semantics = [#tpu.dimension_semantics<parallel>], iteration_bounds = array<i64: 1>, scalar_prefetch = 0 : i64, scratch_operands = 0 : i64, tpu.core_type = #tpu.core_type<tc>, window_params = [{transform_indices = @transform_0, window_bounds = array<i64: 2, 1152>}, {pipeline_mode = #tpu.pipeline_mode<synchronous>, transform_indices = @transform_1, window_bounds = array<i64: 1152, 256>}, {pipeline_mode = #tpu.pipeline_mode<synchronous>, transform_indices = @transform_2, window_bounds = array<i64: 1, 256>}, {transform_indices = @transform_3, window_bounds = array<i64: 2, 256>}]} {
    %c0 = arith.constant 0 : index
    %c0_0 = arith.constant 0 : index
    %0 = vector.load %arg1[%c0, %c0_0] : memref<2x1152xbf16, #tpu.memory_space<vmem>>, vector<2x1152xbf16>
    %c0_1 = arith.constant 0 : index
    %c0_2 = arith.constant 0 : index
    %1 = vector.load %arg2[%c0_1, %c0_2] : memref<1152x256xbf16, #tpu.memory_space<vmem>>, vector<1152x256xbf16>
    %cst = arith.constant dense<0.000000e+00> : vector<2x256xf32>
    %2 = tpu.matmul %0, %1, %cst {dimension_numbers = #tpu.dot_dimension_numbers<[1], [0], [0], [1], [0, 0, 1, 1], [], []>} : vector<2x1152xbf16>, vector<1152x256xbf16>, vector<2x256xf32> -> vector<2x256xf32>
    %c0_3 = arith.constant 0 : index
    %c0_4 = arith.constant 0 : index
    %3 = vector.load %arg3[%c0_3, %c0_4] : memref<1x256xf32, #tpu.memory_space<vmem>>, vector<1x256xf32>
    %4 = vector.broadcast %3 : vector<1x256xf32> to vector<2x256xf32>
    %5 = arith.addf %2, %4 : vector<2x256xf32>
    %cst_5 = arith.constant 0.000000e+00 : f32
    %6 = vector.broadcast %cst_5 : f32 to vector<2x256xf32>
    %7 = arith.maximumf %5, %6 : vector<2x256xf32>
    %8 = arith.truncf %7 : vector<2x256xf32> to vector<2x256xbf16>
    %c0_6 = arith.constant 0 : index
    %c0_7 = arith.constant 0 : index
    %9 = vector.load %arg4[%c0_6, %c0_7] : memref<2x256xbf16, #tpu.memory_space<vmem>>, vector<2x256xbf16>
    tpu.vector_store %arg4[%c0_6, %c0_7], %8 {strides = array<i32>} : memref<2x256xbf16, #tpu.memory_space<vmem>>, vector<2x256xbf16>,
    return
  }
  func.func @transform_0(%arg0: i32) -> (i32, i32) {
    %c0_i32 = arith.constant 0 : i32
    %c0_i32_0 = arith.constant 0 : i32
    return %arg0, %c0_i32 : i32, i32
  }
  func.func @transform_1(%arg0: i32) -> (i32, i32) {
    %c0_i32 = arith.constant 0 : i32
    %c0_i32_0 = arith.constant 0 : i32
    %c0_i32_1 = arith.constant 0 : i32
    return %c0_i32, %c0_i32_0 : i32, i32
  }
  func.func @transform_2(%arg0: i32) -> (i32, i32) {
    %c0_i32 = arith.constant 0 : i32
    %c0_i32_0 = arith.constant 0 : i32
    %c0_i32_1 = arith.constant 0 : i32
    return %c0_i32, %c0_i32_0 : i32, i32
  }
  func.func @transform_3(%arg0: i32) -> (i32, i32) {
    %c0_i32 = arith.constant 0 : i32
    %c0_i32_0 = arith.constant 0 : i32
    return %arg0, %c0_i32 : i32, i32
  }
}

module attributes {stable_mosaic.version = 11 : i64} {
  func.func @_conv_kernel(%arg0: i32, %arg1: memref<2x2304xbf16, #tpu.memory_space<vmem>>, %arg2: memref<2304x256xbf16, #tpu.memory_space<vmem>>, %arg3: memref<1x256xf32, #tpu.memory_space<vmem>>, %arg4: memref<2x256xbf16, #tpu.memory_space<vmem>>, %arg5: memref<2x256xbf16, #tpu.memory_space<vmem>>) attributes {dimension_semantics = [#tpu.dimension_semantics<parallel>], iteration_bounds = array<i64: 1>, scalar_prefetch = 0 : i64, scratch_operands = 0 : i64, tpu.core_type = #tpu.core_type<tc>, window_params = [{transform_indices = @transform_0, window_bounds = array<i64: 2, 2304>}, {pipeline_mode = #tpu.pipeline_mode<synchronous>, transform_indices = @transform_1, window_bounds = array<i64: 2304, 256>}, {pipeline_mode = #tpu.pipeline_mode<synchronous>, transform_indices = @transform_2, window_bounds = array<i64: 1, 256>}, {transform_indices = @transform_3, window_bounds = array<i64: 2, 256>}, {transform_indices = @transform_4, window_bounds = array<i64: 2, 256>}]} {
    %c0 = arith.constant 0 : index
    %c0_0 = arith.constant 0 : index
    %0 = vector.load %arg1[%c0, %c0_0] : memref<2x2304xbf16, #tpu.memory_space<vmem>>, vector<2x2304xbf16>
    %c0_1 = arith.constant 0 : index
    %c0_2 = arith.constant 0 : index
    %1 = vector.load %arg2[%c0_1, %c0_2] : memref<2304x256xbf16, #tpu.memory_space<vmem>>, vector<2304x256xbf16>
    %cst = arith.constant dense<0.000000e+00> : vector<2x256xf32>
    %2 = tpu.matmul %0, %1, %cst {dimension_numbers = #tpu.dot_dimension_numbers<[1], [0], [0], [1], [0, 0, 1, 1], [], []>} : vector<2x2304xbf16>, vector<2304x256xbf16>, vector<2x256xf32> -> vector<2x256xf32>
    %c0_3 = arith.constant 0 : index
    %c0_4 = arith.constant 0 : index
    %3 = vector.load %arg3[%c0_3, %c0_4] : memref<1x256xf32, #tpu.memory_space<vmem>>, vector<1x256xf32>
    %4 = vector.broadcast %3 : vector<1x256xf32> to vector<2x256xf32>
    %5 = arith.addf %2, %4 : vector<2x256xf32>
    %cst_5 = arith.constant 0.000000e+00 : f32
    %6 = vector.broadcast %cst_5 : f32 to vector<2x256xf32>
    %7 = arith.maximumf %5, %6 : vector<2x256xf32>
    %c0_6 = arith.constant 0 : index
    %c0_7 = arith.constant 0 : index
    %8 = vector.load %arg4[%c0_6, %c0_7] : memref<2x256xbf16, #tpu.memory_space<vmem>>, vector<2x256xbf16>
    %9 = arith.extf %8 : vector<2x256xbf16> to vector<2x256xf32>
    %10 = arith.addf %7, %9 : vector<2x256xf32>
    %11 = arith.truncf %10 : vector<2x256xf32> to vector<2x256xbf16>
    %c0_8 = arith.constant 0 : index
    %c0_9 = arith.constant 0 : index
    %12 = vector.load %arg5[%c0_8, %c0_9] : memref<2x256xbf16, #tpu.memory_space<vmem>>, vector<2x256xbf16>
    tpu.vector_store %arg5[%c0_8, %c0_9], %11 {strides = array<i32>} : memref<2x256xbf16, #tpu.memory_space<vmem>>, vector<2x256xbf16>,
    return
  }
  func.func @transform_0(%arg0: i32) -> (i32, i32) {
    %c0_i32 = arith.constant 0 : i32
    %c0_i32_0 = arith.constant 0 : i32
    return %arg0, %c0_i32 : i32, i32
  }
  func.func @transform_1(%arg0: i32) -> (i32, i32) {
    %c0_i32 = arith.constant 0 : i32
    %c0_i32_0 = arith.constant 0 : i32
    %c0_i32_1 = arith.constant 0 : i32
    return %c0_i32, %c0_i32_0 : i32, i32
  }
  func.func @transform_2(%arg0: i32) -> (i32, i32) {
    %c0_i32 = arith.constant 0 : i32
    %c0_i32_0 = arith.constant 0 : i32
    %c0_i32_1 = arith.constant 0 : i32
    return %c0_i32, %c0_i32_0 : i32, i32
  }
  func.func @transform_3(%arg0: i32) -> (i32, i32) {
    %c0_i32 = arith.constant 0 : i32
    %c0_i32_0 = arith.constant 0 : i32
    return %arg0, %c0_i32 : i32, i32
  }
  func.func @transform_4(%arg0: i32) -> (i32, i32) {
    %c0_i32 = arith.constant 0 : i32
    %c0_i32_0 = arith.constant 0 : i32
    return %arg0, %c0_i32 : i32, i32
  }
}

module attributes {stable_mosaic.version = 11 : i64} {
  func.func @_conv_kernel(%arg0: i32, %arg1: memref<2x2304xbf16, #tpu.memory_space<vmem>>, %arg2: memref<2304x256xbf16, #tpu.memory_space<vmem>>, %arg3: memref<1x256xf32, #tpu.memory_space<vmem>>, %arg4: memref<2x256xbf16, #tpu.memory_space<vmem>>) attributes {dimension_semantics = [#tpu.dimension_semantics<parallel>], iteration_bounds = array<i64: 1>, scalar_prefetch = 0 : i64, scratch_operands = 0 : i64, tpu.core_type = #tpu.core_type<tc>, window_params = [{transform_indices = @transform_0, window_bounds = array<i64: 2, 2304>}, {pipeline_mode = #tpu.pipeline_mode<synchronous>, transform_indices = @transform_1, window_bounds = array<i64: 2304, 256>}, {pipeline_mode = #tpu.pipeline_mode<synchronous>, transform_indices = @transform_2, window_bounds = array<i64: 1, 256>}, {transform_indices = @transform_3, window_bounds = array<i64: 2, 256>}]} {
    %c0 = arith.constant 0 : index
    %c0_0 = arith.constant 0 : index
    %0 = vector.load %arg1[%c0, %c0_0] : memref<2x2304xbf16, #tpu.memory_space<vmem>>, vector<2x2304xbf16>
    %c0_1 = arith.constant 0 : index
    %c0_2 = arith.constant 0 : index
    %1 = vector.load %arg2[%c0_1, %c0_2] : memref<2304x256xbf16, #tpu.memory_space<vmem>>, vector<2304x256xbf16>
    %cst = arith.constant dense<0.000000e+00> : vector<2x256xf32>
    %2 = tpu.matmul %0, %1, %cst {dimension_numbers = #tpu.dot_dimension_numbers<[1], [0], [0], [1], [0, 0, 1, 1], [], []>} : vector<2x2304xbf16>, vector<2304x256xbf16>, vector<2x256xf32> -> vector<2x256xf32>
    %c0_3 = arith.constant 0 : index
    %c0_4 = arith.constant 0 : index
    %3 = vector.load %arg3[%c0_3, %c0_4] : memref<1x256xf32, #tpu.memory_space<vmem>>, vector<1x256xf32>
    %4 = vector.broadcast %3 : vector<1x256xf32> to vector<2x256xf32>
    %5 = arith.addf %2, %4 : vector<2x256xf32>
    %cst_5 = arith.constant 0.000000e+00 : f32
    %6 = vector.broadcast %cst_5 : f32 to vector<2x256xf32>
    %7 = arith.maximumf %5, %6 : vector<2x256xf32>
    %8 = arith.truncf %7 : vector<2x256xf32> to vector<2x256xbf16>
    %c0_6 = arith.constant 0 : index
    %c0_7 = arith.constant 0 : index
    %9 = vector.load %arg4[%c0_6, %c0_7] : memref<2x256xbf16, #tpu.memory_space<vmem>>, vector<2x256xbf16>
    tpu.vector_store %arg4[%c0_6, %c0_7], %8 {strides = array<i32>} : memref<2x256xbf16, #tpu.memory_space<vmem>>, vector<2x256xbf16>,
    return
  }
  func.func @transform_0(%arg0: i32) -> (i32, i32) {
    %c0_i32 = arith.constant 0 : i32
    %c0_i32_0 = arith.constant 0 : i32
    return %arg0, %c0_i32 : i32, i32
  }
  func.func @transform_1(%arg0: i32) -> (i32, i32) {
    %c0_i32 = arith.constant 0 : i32
    %c0_i32_0 = arith.constant 0 : i32
    %c0_i32_1 = arith.constant 0 : i32
    return %c0_i32, %c0_i32_0 : i32, i32
  }
  func.func @transform_2(%arg0: i32) -> (i32, i32) {
    %c0_i32 = arith.constant 0 : i32
    %c0_i32_0 = arith.constant 0 : i32
    %c0_i32_1 = arith.constant 0 : i32
    return %c0_i32, %c0_i32_0 : i32, i32
  }
  func.func @transform_3(%arg0: i32) -> (i32, i32) {
    %c0_i32 = arith.constant 0 : i32
    %c0_i32_0 = arith.constant 0 : i32
    return %arg0, %c0_i32 : i32, i32
  }
}

module attributes {stable_mosaic.version = 11 : i64} {
  func.func @_conv_kernel(%arg0: i32, %arg1: memref<2x256xbf16, #tpu.memory_space<vmem>>, %arg2: memref<256x512xbf16, #tpu.memory_space<vmem>>, %arg3: memref<1x512xf32, #tpu.memory_space<vmem>>, %arg4: memref<2x512xbf16, #tpu.memory_space<vmem>>) attributes {dimension_semantics = [#tpu.dimension_semantics<parallel>], iteration_bounds = array<i64: 1>, scalar_prefetch = 0 : i64, scratch_operands = 0 : i64, tpu.core_type = #tpu.core_type<tc>, window_params = [{transform_indices = @transform_0, window_bounds = array<i64: 2, 256>}, {pipeline_mode = #tpu.pipeline_mode<synchronous>, transform_indices = @transform_1, window_bounds = array<i64: 256, 512>}, {pipeline_mode = #tpu.pipeline_mode<synchronous>, transform_indices = @transform_2, window_bounds = array<i64: 1, 512>}, {transform_indices = @transform_3, window_bounds = array<i64: 2, 512>}]} {
    %c0 = arith.constant 0 : index
    %c0_0 = arith.constant 0 : index
    %0 = vector.load %arg1[%c0, %c0_0] : memref<2x256xbf16, #tpu.memory_space<vmem>>, vector<2x256xbf16>
    %c0_1 = arith.constant 0 : index
    %c0_2 = arith.constant 0 : index
    %1 = vector.load %arg2[%c0_1, %c0_2] : memref<256x512xbf16, #tpu.memory_space<vmem>>, vector<256x512xbf16>
    %cst = arith.constant dense<0.000000e+00> : vector<2x512xf32>
    %2 = tpu.matmul %0, %1, %cst {dimension_numbers = #tpu.dot_dimension_numbers<[1], [0], [0], [1], [0, 0, 1, 1], [], []>} : vector<2x256xbf16>, vector<256x512xbf16>, vector<2x512xf32> -> vector<2x512xf32>
    %c0_3 = arith.constant 0 : index
    %c0_4 = arith.constant 0 : index
    %3 = vector.load %arg3[%c0_3, %c0_4] : memref<1x512xf32, #tpu.memory_space<vmem>>, vector<1x512xf32>
    %4 = vector.broadcast %3 : vector<1x512xf32> to vector<2x512xf32>
    %5 = arith.addf %2, %4 : vector<2x512xf32>
    %6 = arith.truncf %5 : vector<2x512xf32> to vector<2x512xbf16>
    %c0_5 = arith.constant 0 : index
    %c0_6 = arith.constant 0 : index
    %7 = vector.load %arg4[%c0_5, %c0_6] : memref<2x512xbf16, #tpu.memory_space<vmem>>, vector<2x512xbf16>
    tpu.vector_store %arg4[%c0_5, %c0_6], %6 {strides = array<i32>} : memref<2x512xbf16, #tpu.memory_space<vmem>>, vector<2x512xbf16>,
    return
  }
  func.func @transform_0(%arg0: i32) -> (i32, i32) {
    %c0_i32 = arith.constant 0 : i32
    %c0_i32_0 = arith.constant 0 : i32
    return %arg0, %c0_i32 : i32, i32
  }
  func.func @transform_1(%arg0: i32) -> (i32, i32) {
    %c0_i32 = arith.constant 0 : i32
    %c0_i32_0 = arith.constant 0 : i32
    %c0_i32_1 = arith.constant 0 : i32
    return %c0_i32, %c0_i32_0 : i32, i32
  }
  func.func @transform_2(%arg0: i32) -> (i32, i32) {
    %c0_i32 = arith.constant 0 : i32
    %c0_i32_0 = arith.constant 0 : i32
    %c0_i32_1 = arith.constant 0 : i32
    return %c0_i32, %c0_i32_0 : i32, i32
  }
  func.func @transform_3(%arg0: i32) -> (i32, i32) {
    %c0_i32 = arith.constant 0 : i32
    %c0_i32_0 = arith.constant 0 : i32
    return %arg0, %c0_i32 : i32, i32
  }
}

module attributes {stable_mosaic.version = 11 : i64} {
  func.func @_conv_kernel(%arg0: i32, %arg1: memref<8x1152xbf16, #tpu.memory_space<vmem>>, %arg2: memref<1152x128xbf16, #tpu.memory_space<vmem>>, %arg3: memref<1x128xf32, #tpu.memory_space<vmem>>, %arg4: memref<8x128xbf16, #tpu.memory_space<vmem>>, %arg5: memref<8x128xbf16, #tpu.memory_space<vmem>>) attributes {dimension_semantics = [#tpu.dimension_semantics<parallel>], iteration_bounds = array<i64: 1>, scalar_prefetch = 0 : i64, scratch_operands = 0 : i64, tpu.core_type = #tpu.core_type<tc>, window_params = [{transform_indices = @transform_0, window_bounds = array<i64: 8, 1152>}, {pipeline_mode = #tpu.pipeline_mode<synchronous>, transform_indices = @transform_1, window_bounds = array<i64: 1152, 128>}, {pipeline_mode = #tpu.pipeline_mode<synchronous>, transform_indices = @transform_2, window_bounds = array<i64: 1, 128>}, {transform_indices = @transform_3, window_bounds = array<i64: 8, 128>}, {transform_indices = @transform_4, window_bounds = array<i64: 8, 128>}]} {
    %c0 = arith.constant 0 : index
    %c0_0 = arith.constant 0 : index
    %0 = vector.load %arg1[%c0, %c0_0] : memref<8x1152xbf16, #tpu.memory_space<vmem>>, vector<8x1152xbf16>
    %c0_1 = arith.constant 0 : index
    %c0_2 = arith.constant 0 : index
    %1 = vector.load %arg2[%c0_1, %c0_2] : memref<1152x128xbf16, #tpu.memory_space<vmem>>, vector<1152x128xbf16>
    %cst = arith.constant dense<0.000000e+00> : vector<8x128xf32>
    %2 = tpu.matmul %0, %1, %cst {dimension_numbers = #tpu.dot_dimension_numbers<[1], [0], [0], [1], [0, 0, 1, 1], [], []>} : vector<8x1152xbf16>, vector<1152x128xbf16>, vector<8x128xf32> -> vector<8x128xf32>
    %c0_3 = arith.constant 0 : index
    %c0_4 = arith.constant 0 : index
    %3 = vector.load %arg3[%c0_3, %c0_4] : memref<1x128xf32, #tpu.memory_space<vmem>>, vector<1x128xf32>
    %4 = vector.broadcast %3 : vector<1x128xf32> to vector<8x128xf32>
    %5 = arith.addf %2, %4 : vector<8x128xf32>
    %cst_5 = arith.constant 0.000000e+00 : f32
    %6 = vector.broadcast %cst_5 : f32 to vector<8x128xf32>
    %7 = arith.maximumf %5, %6 : vector<8x128xf32>
    %c0_6 = arith.constant 0 : index
    %c0_7 = arith.constant 0 : index
    %8 = vector.load %arg4[%c0_6, %c0_7] : memref<8x128xbf16, #tpu.memory_space<vmem>>, vector<8x128xbf16>
    %9 = arith.extf %8 : vector<8x128xbf16> to vector<8x128xf32>
    %10 = arith.addf %7, %9 : vector<8x128xf32>
    %11 = arith.truncf %10 : vector<8x128xf32> to vector<8x128xbf16>
    %c0_8 = arith.constant 0 : index
    %c0_9 = arith.constant 0 : index
    %12 = vector.load %arg5[%c0_8, %c0_9] : memref<8x128xbf16, #tpu.memory_space<vmem>>, vector<8x128xbf16>
    tpu.vector_store %arg5[%c0_8, %c0_9], %11 {strides = array<i32>} : memref<8x128xbf16, #tpu.memory_space<vmem>>, vector<8x128xbf16>,
    return
  }
  func.func @transform_0(%arg0: i32) -> (i32, i32) {
    %c0_i32 = arith.constant 0 : i32
    %c0_i32_0 = arith.constant 0 : i32
    return %arg0, %c0_i32 : i32, i32
  }
  func.func @transform_1(%arg0: i32) -> (i32, i32) {
    %c0_i32 = arith.constant 0 : i32
    %c0_i32_0 = arith.constant 0 : i32
    %c0_i32_1 = arith.constant 0 : i32
    return %c0_i32, %c0_i32_0 : i32, i32
  }
  func.func @transform_2(%arg0: i32) -> (i32, i32) {
    %c0_i32 = arith.constant 0 : i32
    %c0_i32_0 = arith.constant 0 : i32
    %c0_i32_1 = arith.constant 0 : i32
    return %c0_i32, %c0_i32_0 : i32, i32
  }
  func.func @transform_3(%arg0: i32) -> (i32, i32) {
    %c0_i32 = arith.constant 0 : i32
    %c0_i32_0 = arith.constant 0 : i32
    return %arg0, %c0_i32 : i32, i32
  }
  func.func @transform_4(%arg0: i32) -> (i32, i32) {
    %c0_i32 = arith.constant 0 : i32
    %c0_i32_0 = arith.constant 0 : i32
    return %arg0, %c0_i32 : i32, i32
  }
}

module attributes {stable_mosaic.version = 11 : i64} {
  func.func @_conv_kernel(%arg0: i32, %arg1: memref<8x128xbf16, #tpu.memory_space<vmem>>, %arg2: memref<128x512xbf16, #tpu.memory_space<vmem>>, %arg3: memref<1x512xf32, #tpu.memory_space<vmem>>, %arg4: memref<8x512xbf16, #tpu.memory_space<vmem>>) attributes {dimension_semantics = [#tpu.dimension_semantics<parallel>], iteration_bounds = array<i64: 1>, scalar_prefetch = 0 : i64, scratch_operands = 0 : i64, tpu.core_type = #tpu.core_type<tc>, window_params = [{transform_indices = @transform_0, window_bounds = array<i64: 8, 128>}, {pipeline_mode = #tpu.pipeline_mode<synchronous>, transform_indices = @transform_1, window_bounds = array<i64: 128, 512>}, {pipeline_mode = #tpu.pipeline_mode<synchronous>, transform_indices = @transform_2, window_bounds = array<i64: 1, 512>}, {transform_indices = @transform_3, window_bounds = array<i64: 8, 512>}]} {
    %c0 = arith.constant 0 : index
    %c0_0 = arith.constant 0 : index
    %0 = vector.load %arg1[%c0, %c0_0] : memref<8x128xbf16, #tpu.memory_space<vmem>>, vector<8x128xbf16>
    %c0_1 = arith.constant 0 : index
    %c0_2 = arith.constant 0 : index
    %1 = vector.load %arg2[%c0_1, %c0_2] : memref<128x512xbf16, #tpu.memory_space<vmem>>, vector<128x512xbf16>
    %cst = arith.constant dense<0.000000e+00> : vector<8x512xf32>
    %2 = tpu.matmul %0, %1, %cst {dimension_numbers = #tpu.dot_dimension_numbers<[1], [0], [0], [1], [0, 0, 1, 1], [], []>} : vector<8x128xbf16>, vector<128x512xbf16>, vector<8x512xf32> -> vector<8x512xf32>
    %c0_3 = arith.constant 0 : index
    %c0_4 = arith.constant 0 : index
    %3 = vector.load %arg3[%c0_3, %c0_4] : memref<1x512xf32, #tpu.memory_space<vmem>>, vector<1x512xf32>
    %4 = vector.broadcast %3 : vector<1x512xf32> to vector<8x512xf32>
    %5 = arith.addf %2, %4 : vector<8x512xf32>
    %6 = arith.truncf %5 : vector<8x512xf32> to vector<8x512xbf16>
    %c0_5 = arith.constant 0 : index
    %c0_6 = arith.constant 0 : index
    %7 = vector.load %arg4[%c0_5, %c0_6] : memref<8x512xbf16, #tpu.memory_space<vmem>>, vector<8x512xbf16>
    tpu.vector_store %arg4[%c0_5, %c0_6], %6 {strides = array<i32>} : memref<8x512xbf16, #tpu.memory_space<vmem>>, vector<8x512xbf16>,
    return
  }
  func.func @transform_0(%arg0: i32) -> (i32, i32) {
    %c0_i32 = arith.constant 0 : i32
    %c0_i32_0 = arith.constant 0 : i32
    return %arg0, %c0_i32 : i32, i32
  }
  func.func @transform_1(%arg0: i32) -> (i32, i32) {
    %c0_i32 = arith.constant 0 : i32
    %c0_i32_0 = arith.constant 0 : i32
    %c0_i32_1 = arith.constant 0 : i32
    return %c0_i32, %c0_i32_0 : i32, i32
  }
  func.func @transform_2(%arg0: i32) -> (i32, i32) {
    %c0_i32 = arith.constant 0 : i32
    %c0_i32_0 = arith.constant 0 : i32
    %c0_i32_1 = arith.constant 0 : i32
    return %c0_i32, %c0_i32_0 : i32, i32
  }
  func.func @transform_3(%arg0: i32) -> (i32, i32) {
    %c0_i32 = arith.constant 0 : i32
    %c0_i32_0 = arith.constant 0 : i32
    return %arg0, %c0_i32 : i32, i32
  }
}

module attributes {stable_mosaic.version = 11 : i64} {
  func.func @_conv_kernel(%arg0: i32, %arg1: memref<8x128xbf16, #tpu.memory_space<vmem>>, %arg2: memref<128x256xbf16, #tpu.memory_space<vmem>>, %arg3: memref<1x256xf32, #tpu.memory_space<vmem>>, %arg4: memref<8x256xbf16, #tpu.memory_space<vmem>>) attributes {dimension_semantics = [#tpu.dimension_semantics<parallel>], iteration_bounds = array<i64: 1>, scalar_prefetch = 0 : i64, scratch_operands = 0 : i64, tpu.core_type = #tpu.core_type<tc>, window_params = [{transform_indices = @transform_0, window_bounds = array<i64: 8, 128>}, {pipeline_mode = #tpu.pipeline_mode<synchronous>, transform_indices = @transform_1, window_bounds = array<i64: 128, 256>}, {pipeline_mode = #tpu.pipeline_mode<synchronous>, transform_indices = @transform_2, window_bounds = array<i64: 1, 256>}, {transform_indices = @transform_3, window_bounds = array<i64: 8, 256>}]} {
    %c0 = arith.constant 0 : index
    %c0_0 = arith.constant 0 : index
    %0 = vector.load %arg1[%c0, %c0_0] : memref<8x128xbf16, #tpu.memory_space<vmem>>, vector<8x128xbf16>
    %c0_1 = arith.constant 0 : index
    %c0_2 = arith.constant 0 : index
    %1 = vector.load %arg2[%c0_1, %c0_2] : memref<128x256xbf16, #tpu.memory_space<vmem>>, vector<128x256xbf16>
    %cst = arith.constant dense<0.000000e+00> : vector<8x256xf32>
    %2 = tpu.matmul %0, %1, %cst {dimension_numbers = #tpu.dot_dimension_numbers<[1], [0], [0], [1], [0, 0, 1, 1], [], []>} : vector<8x128xbf16>, vector<128x256xbf16>, vector<8x256xf32> -> vector<8x256xf32>
    %c0_3 = arith.constant 0 : index
    %c0_4 = arith.constant 0 : index
    %3 = vector.load %arg3[%c0_3, %c0_4] : memref<1x256xf32, #tpu.memory_space<vmem>>, vector<1x256xf32>
    %4 = vector.broadcast %3 : vector<1x256xf32> to vector<8x256xf32>
    %5 = arith.addf %2, %4 : vector<8x256xf32>
    %6 = arith.truncf %5 : vector<8x256xf32> to vector<8x256xbf16>
    %c0_5 = arith.constant 0 : index
    %c0_6 = arith.constant 0 : index
    %7 = vector.load %arg4[%c0_5, %c0_6] : memref<8x256xbf16, #tpu.memory_space<vmem>>, vector<8x256xbf16>
    tpu.vector_store %arg4[%c0_5, %c0_6], %6 {strides = array<i32>} : memref<8x256xbf16, #tpu.memory_space<vmem>>, vector<8x256xbf16>,
    return
  }
  func.func @transform_0(%arg0: i32) -> (i32, i32) {
    %c0_i32 = arith.constant 0 : i32
    %c0_i32_0 = arith.constant 0 : i32
    return %arg0, %c0_i32 : i32, i32
  }
  func.func @transform_1(%arg0: i32) -> (i32, i32) {
    %c0_i32 = arith.constant 0 : i32
    %c0_i32_0 = arith.constant 0 : i32
    %c0_i32_1 = arith.constant 0 : i32
    return %c0_i32, %c0_i32_0 : i32, i32
  }
  func.func @transform_2(%arg0: i32) -> (i32, i32) {
    %c0_i32 = arith.constant 0 : i32
    %c0_i32_0 = arith.constant 0 : i32
    %c0_i32_1 = arith.constant 0 : i32
    return %c0_i32, %c0_i32_0 : i32, i32
  }
  func.func @transform_3(%arg0: i32) -> (i32, i32) {
    %c0_i32 = arith.constant 0 : i32
    %c0_i32_0 = arith.constant 0 : i32
    return %arg0, %c0_i32 : i32, i32
  }
}

module attributes {stable_mosaic.version = 11 : i64} {
  func.func @_conv_kernel(%arg0: i32, %arg1: memref<32x64xbf16, #tpu.memory_space<vmem>>, %arg2: memref<64x128xbf16, #tpu.memory_space<vmem>>, %arg3: memref<1x128xf32, #tpu.memory_space<vmem>>, %arg4: memref<32x128xbf16, #tpu.memory_space<vmem>>, %arg5: memref<32x128xbf16, #tpu.memory_space<vmem>>) attributes {dimension_semantics = [#tpu.dimension_semantics<parallel>], iteration_bounds = array<i64: 1>, scalar_prefetch = 0 : i64, scratch_operands = 0 : i64, tpu.core_type = #tpu.core_type<tc>, window_params = [{transform_indices = @transform_0, window_bounds = array<i64: 32, 64>}, {pipeline_mode = #tpu.pipeline_mode<synchronous>, transform_indices = @transform_1, window_bounds = array<i64: 64, 128>}, {pipeline_mode = #tpu.pipeline_mode<synchronous>, transform_indices = @transform_2, window_bounds = array<i64: 1, 128>}, {transform_indices = @transform_3, window_bounds = array<i64: 32, 128>}, {transform_indices = @transform_4, window_bounds = array<i64: 32, 128>}]} {
    %c0 = arith.constant 0 : index
    %c0_0 = arith.constant 0 : index
    %0 = vector.load %arg1[%c0, %c0_0] : memref<32x64xbf16, #tpu.memory_space<vmem>>, vector<32x64xbf16>
    %c0_1 = arith.constant 0 : index
    %c0_2 = arith.constant 0 : index
    %1 = vector.load %arg2[%c0_1, %c0_2] : memref<64x128xbf16, #tpu.memory_space<vmem>>, vector<64x128xbf16>
    %cst = arith.constant dense<0.000000e+00> : vector<32x128xf32>
    %2 = tpu.matmul %0, %1, %cst {dimension_numbers = #tpu.dot_dimension_numbers<[1], [0], [0], [1], [0, 0, 1, 1], [], []>} : vector<32x64xbf16>, vector<64x128xbf16>, vector<32x128xf32> -> vector<32x128xf32>
    %c0_3 = arith.constant 0 : index
    %c0_4 = arith.constant 0 : index
    %3 = vector.load %arg3[%c0_3, %c0_4] : memref<1x128xf32, #tpu.memory_space<vmem>>, vector<1x128xf32>
    %4 = vector.broadcast %3 : vector<1x128xf32> to vector<32x128xf32>
    %5 = arith.addf %2, %4 : vector<32x128xf32>
    %c0_5 = arith.constant 0 : index
    %c0_6 = arith.constant 0 : index
    %6 = vector.load %arg4[%c0_5, %c0_6] : memref<32x128xbf16, #tpu.memory_space<vmem>>, vector<32x128xbf16>
    %7 = arith.extf %6 : vector<32x128xbf16> to vector<32x128xf32>
    %8 = arith.addf %5, %7 : vector<32x128xf32>
    %9 = arith.truncf %8 : vector<32x128xf32> to vector<32x128xbf16>
    %c0_7 = arith.constant 0 : index
    %c0_8 = arith.constant 0 : index
    %10 = vector.load %arg5[%c0_7, %c0_8] : memref<32x128xbf16, #tpu.memory_space<vmem>>, vector<32x128xbf16>
    tpu.vector_store %arg5[%c0_7, %c0_8], %9 {strides = array<i32>} : memref<32x128xbf16, #tpu.memory_space<vmem>>, vector<32x128xbf16>,
    return
  }
  func.func @transform_0(%arg0: i32) -> (i32, i32) {
    %c0_i32 = arith.constant 0 : i32
    %c0_i32_0 = arith.constant 0 : i32
    return %arg0, %c0_i32 : i32, i32
  }
  func.func @transform_1(%arg0: i32) -> (i32, i32) {
    %c0_i32 = arith.constant 0 : i32
    %c0_i32_0 = arith.constant 0 : i32
    %c0_i32_1 = arith.constant 0 : i32
    return %c0_i32, %c0_i32_0 : i32, i32
  }
  func.func @transform_2(%arg0: i32) -> (i32, i32) {
    %c0_i32 = arith.constant 0 : i32
    %c0_i32_0 = arith.constant 0 : i32
    %c0_i32_1 = arith.constant 0 : i32
    return %c0_i32, %c0_i32_0 : i32, i32
  }
  func.func @transform_3(%arg0: i32) -> (i32, i32) {
    %c0_i32 = arith.constant 0 : i32
    %c0_i32_0 = arith.constant 0 : i32
    return %arg0, %c0_i32 : i32, i32
  }
  func.func @transform_4(%arg0: i32) -> (i32, i32) {
    %c0_i32 = arith.constant 0 : i32
    %c0_i32_0 = arith.constant 0 : i32
    return %arg0, %c0_i32 : i32, i32
  }
}

module attributes {stable_mosaic.version = 11 : i64} {
  func.func @_add_kernel(%arg0: i32, %arg1: memref<32x64xbf16, #tpu.memory_space<vmem>>, %arg2: memref<32x64xbf16, #tpu.memory_space<vmem>>, %arg3: memref<32x64xbf16, #tpu.memory_space<vmem>>) attributes {dimension_semantics = [#tpu.dimension_semantics<parallel>], iteration_bounds = array<i64: 1>, scalar_prefetch = 0 : i64, scratch_operands = 0 : i64, tpu.core_type = #tpu.core_type<tc>, window_params = [{transform_indices = @transform_0, window_bounds = array<i64: 32, 64>}, {transform_indices = @transform_1, window_bounds = array<i64: 32, 64>}, {transform_indices = @transform_2, window_bounds = array<i64: 32, 64>}]} {
    %c0 = arith.constant 0 : index
    %c0_0 = arith.constant 0 : index
    %0 = vector.load %arg1[%c0, %c0_0] : memref<32x64xbf16, #tpu.memory_space<vmem>>, vector<32x64xbf16>
    %c0_1 = arith.constant 0 : index
    %c0_2 = arith.constant 0 : index
    %1 = vector.load %arg2[%c0_1, %c0_2] : memref<32x64xbf16, #tpu.memory_space<vmem>>, vector<32x64xbf16>
    %2 = arith.addf %0, %1 : vector<32x64xbf16>
    %c0_3 = arith.constant 0 : index
    %c0_4 = arith.constant 0 : index
    %3 = vector.load %arg3[%c0_3, %c0_4] : memref<32x64xbf16, #tpu.memory_space<vmem>>, vector<32x64xbf16>
    tpu.vector_store %arg3[%c0_3, %c0_4], %2 {strides = array<i32>} : memref<32x64xbf16, #tpu.memory_space<vmem>>, vector<32x64xbf16>,
    return
  }
  func.func @transform_0(%arg0: i32) -> (i32, i32) {
    %c0_i32 = arith.constant 0 : i32
    %c0_i32_0 = arith.constant 0 : i32
    return %arg0, %c0_i32 : i32, i32
  }
  func.func @transform_1(%arg0: i32) -> (i32, i32) {
    %c0_i32 = arith.constant 0 : i32
    %c0_i32_0 = arith.constant 0 : i32
    return %arg0, %c0_i32 : i32, i32
  }
  func.func @transform_2(%arg0: i32) -> (i32, i32) {
    %c0_i32 = arith.constant 0 : i32
    %c0_i32_0 = arith.constant 0 : i32
    return %arg0, %c0_i32 : i32, i32
  }
}

module attributes {stable_mosaic.version = 11 : i64} {
  func.func @_conv_kernel(%arg0: i32, %arg1: memref<32x128xbf16, #tpu.memory_space<vmem>>, %arg2: memref<128x512xbf16, #tpu.memory_space<vmem>>, %arg3: memref<1x512xf32, #tpu.memory_space<vmem>>, %arg4: memref<32x512xbf16, #tpu.memory_space<vmem>>) attributes {dimension_semantics = [#tpu.dimension_semantics<parallel>], iteration_bounds = array<i64: 1>, scalar_prefetch = 0 : i64, scratch_operands = 0 : i64, tpu.core_type = #tpu.core_type<tc>, window_params = [{transform_indices = @transform_0, window_bounds = array<i64: 32, 128>}, {pipeline_mode = #tpu.pipeline_mode<synchronous>, transform_indices = @transform_1, window_bounds = array<i64: 128, 512>}, {pipeline_mode = #tpu.pipeline_mode<synchronous>, transform_indices = @transform_2, window_bounds = array<i64: 1, 512>}, {transform_indices = @transform_3, window_bounds = array<i64: 32, 512>}]} {
    %c0 = arith.constant 0 : index
    %c0_0 = arith.constant 0 : index
    %0 = vector.load %arg1[%c0, %c0_0] : memref<32x128xbf16, #tpu.memory_space<vmem>>, vector<32x128xbf16>
    %c0_1 = arith.constant 0 : index
    %c0_2 = arith.constant 0 : index
    %1 = vector.load %arg2[%c0_1, %c0_2] : memref<128x512xbf16, #tpu.memory_space<vmem>>, vector<128x512xbf16>
    %cst = arith.constant dense<0.000000e+00> : vector<32x512xf32>
    %2 = tpu.matmul %0, %1, %cst {dimension_numbers = #tpu.dot_dimension_numbers<[1], [0], [0], [1], [0, 0, 1, 1], [], []>} : vector<32x128xbf16>, vector<128x512xbf16>, vector<32x512xf32> -> vector<32x512xf32>
    %c0_3 = arith.constant 0 : index
    %c0_4 = arith.constant 0 : index
    %3 = vector.load %arg3[%c0_3, %c0_4] : memref<1x512xf32, #tpu.memory_space<vmem>>, vector<1x512xf32>
    %4 = vector.broadcast %3 : vector<1x512xf32> to vector<32x512xf32>
    %5 = arith.addf %2, %4 : vector<32x512xf32>
    %6 = arith.truncf %5 : vector<32x512xf32> to vector<32x512xbf16>
    %c0_5 = arith.constant 0 : index
    %c0_6 = arith.constant 0 : index
    %7 = vector.load %arg4[%c0_5, %c0_6] : memref<32x512xbf16, #tpu.memory_space<vmem>>, vector<32x512xbf16>
    tpu.vector_store %arg4[%c0_5, %c0_6], %6 {strides = array<i32>} : memref<32x512xbf16, #tpu.memory_space<vmem>>, vector<32x512xbf16>,
    return
  }
  func.func @transform_0(%arg0: i32) -> (i32, i32) {
    %c0_i32 = arith.constant 0 : i32
    %c0_i32_0 = arith.constant 0 : i32
    return %arg0, %c0_i32 : i32, i32
  }
  func.func @transform_1(%arg0: i32) -> (i32, i32) {
    %c0_i32 = arith.constant 0 : i32
    %c0_i32_0 = arith.constant 0 : i32
    %c0_i32_1 = arith.constant 0 : i32
    return %c0_i32, %c0_i32_0 : i32, i32
  }
  func.func @transform_2(%arg0: i32) -> (i32, i32) {
    %c0_i32 = arith.constant 0 : i32
    %c0_i32_0 = arith.constant 0 : i32
    %c0_i32_1 = arith.constant 0 : i32
    return %c0_i32, %c0_i32_0 : i32, i32
  }
  func.func @transform_3(%arg0: i32) -> (i32, i32) {
    %c0_i32 = arith.constant 0 : i32
    %c0_i32_0 = arith.constant 0 : i32
    return %arg0, %c0_i32 : i32, i32
  }
}

module attributes {stable_mosaic.version = 11 : i64} {
  func.func @_conv_kernel(%arg0: i32, %arg1: memref<128x32xbf16, #tpu.memory_space<vmem>>, %arg2: memref<32x128xbf16, #tpu.memory_space<vmem>>, %arg3: memref<1x128xf32, #tpu.memory_space<vmem>>, %arg4: memref<128x128xbf16, #tpu.memory_space<vmem>>, %arg5: memref<128x128xbf16, #tpu.memory_space<vmem>>) attributes {dimension_semantics = [#tpu.dimension_semantics<parallel>], iteration_bounds = array<i64: 1>, scalar_prefetch = 0 : i64, scratch_operands = 0 : i64, tpu.core_type = #tpu.core_type<tc>, window_params = [{transform_indices = @transform_0, window_bounds = array<i64: 128, 32>}, {pipeline_mode = #tpu.pipeline_mode<synchronous>, transform_indices = @transform_1, window_bounds = array<i64: 32, 128>}, {pipeline_mode = #tpu.pipeline_mode<synchronous>, transform_indices = @transform_2, window_bounds = array<i64: 1, 128>}, {transform_indices = @transform_3, window_bounds = array<i64: 128, 128>}, {transform_indices = @transform_4, window_bounds = array<i64: 128, 128>}]} {
    %c0 = arith.constant 0 : index
    %c0_0 = arith.constant 0 : index
    %0 = vector.load %arg1[%c0, %c0_0] : memref<128x32xbf16, #tpu.memory_space<vmem>>, vector<128x32xbf16>
    %c0_1 = arith.constant 0 : index
    %c0_2 = arith.constant 0 : index
    %1 = vector.load %arg2[%c0_1, %c0_2] : memref<32x128xbf16, #tpu.memory_space<vmem>>, vector<32x128xbf16>
    %cst = arith.constant dense<0.000000e+00> : vector<128x128xf32>
    %2 = tpu.matmul %0, %1, %cst {dimension_numbers = #tpu.dot_dimension_numbers<[1], [0], [0], [1], [0, 0, 1, 1], [], []>} : vector<128x32xbf16>, vector<32x128xbf16>, vector<128x128xf32> -> vector<128x128xf32>
    %c0_3 = arith.constant 0 : index
    %c0_4 = arith.constant 0 : index
    %3 = vector.load %arg3[%c0_3, %c0_4] : memref<1x128xf32, #tpu.memory_space<vmem>>, vector<1x128xf32>
    %4 = vector.broadcast %3 : vector<1x128xf32> to vector<128x128xf32>
    %5 = arith.addf %2, %4 : vector<128x128xf32>
    %c0_5 = arith.constant 0 : index
    %c0_6 = arith.constant 0 : index
    %6 = vector.load %arg4[%c0_5, %c0_6] : memref<128x128xbf16, #tpu.memory_space<vmem>>, vector<128x128xbf16>
    %7 = arith.extf %6 : vector<128x128xbf16> to vector<128x128xf32>
    %8 = arith.addf %5, %7 : vector<128x128xf32>
    %9 = arith.truncf %8 : vector<128x128xf32> to vector<128x128xbf16>
    %c0_7 = arith.constant 0 : index
    %c0_8 = arith.constant 0 : index
    %10 = vector.load %arg5[%c0_7, %c0_8] : memref<128x128xbf16, #tpu.memory_space<vmem>>, vector<128x128xbf16>
    tpu.vector_store %arg5[%c0_7, %c0_8], %9 {strides = array<i32>} : memref<128x128xbf16, #tpu.memory_space<vmem>>, vector<128x128xbf16>,
    return
  }
  func.func @transform_0(%arg0: i32) -> (i32, i32) {
    %c0_i32 = arith.constant 0 : i32
    %c0_i32_0 = arith.constant 0 : i32
    return %arg0, %c0_i32 : i32, i32
  }
  func.func @transform_1(%arg0: i32) -> (i32, i32) {
    %c0_i32 = arith.constant 0 : i32
    %c0_i32_0 = arith.constant 0 : i32
    %c0_i32_1 = arith.constant 0 : i32
    return %c0_i32, %c0_i32_0 : i32, i32
  }
  func.func @transform_2(%arg0: i32) -> (i32, i32) {
    %c0_i32 = arith.constant 0 : i32
    %c0_i32_0 = arith.constant 0 : i32
    %c0_i32_1 = arith.constant 0 : i32
    return %c0_i32, %c0_i32_0 : i32, i32
  }
  func.func @transform_3(%arg0: i32) -> (i32, i32) {
    %c0_i32 = arith.constant 0 : i32
    %c0_i32_0 = arith.constant 0 : i32
    return %arg0, %c0_i32 : i32, i32
  }
  func.func @transform_4(%arg0: i32) -> (i32, i32) {
    %c0_i32 = arith.constant 0 : i32
    %c0_i32_0 = arith.constant 0 : i32
    return %arg0, %c0_i32 : i32, i32
  }
}

</mosaic_0001>

<bundles_post_ra>
// kernel: _lambda_.32
= control target key start
LH: loop header
LB: loop body
LE: loop exit
PB: predicated region body
PF: predicated region fallthrough
CT: control target
= control target key end

     0   :  { %8 = vsyncpa [#allocation3], 0  ;;  %s2121_s0 = inlined_call_operand.vmem [shape: bf16[2048,3], index: 0, kind: input, shape index: {}]   ;;  %s2122_s1 = inlined_call_operand.hbm [shape: bf16[3,16], index: 1, kind: input, shape index: {}]   ;;  %s2123_s2 = inlined_call_operand.hbm [shape: f32[1,16], index: 2, kind: input, shape index: {}]   ;;  %s2124_s3 = inlined_call_operand.vmem [shape: bf16[2048,16], index: 3, kind: output, shape index: {}]  }
   0x1   :  { %9 = vsyncpa [#allocation5], 0  ;;  %s1755_s12 = smov 0  }
   0x2 LB: > { %s1289_s13 = sadd.s32 4294967295, %s1730_s12   ;;  %p1291_p0 = scmp.ge.s32.totalorder %s1730_s12, 1  ;;  %s1730_s12 = sphi %s1755_s12, %s15_s12  }
   0x3   : > { %p114_p1 = scmp.lt.s32.totalorder %s1730_s12, 5  ;;  %p1765_p2 = scmp.eq.s32.totalorder %s1289_s13, 0 }
   0x4   : > { %s1732_s16 = smov [#allocation2]   ;;  %s1733_s18 = smov [#allocation4]  }
   0x5   : > { %s2128_s14 = scalar_select %p1765_p2, 1, 0 }
   0x6   : > { %p1769_p3 = pnand %p1291_p0, %p114_p1  ;;  %s127_s17 = sshll.u32 %s1732_s16, 4  ;;  %s128_s17 = int_to_ptr.vmem [resolvable:$true] %s127_s17 }
   0x7   : > { %s138_s19 = sshll.u32 %s1733_s18, 4  ;;  %s1660_s23 = scalar_lea.hbm %s2122_s1, 32  ;;  %s1781_s19 = int_to_ptr.vmem [resolvable:$true] %s138_s19 }
   0x8   : > { %s2129_s15 = scalar_select %p1769_p3, 1, 0 }
   0x9   : > { %p1606_p4 = pneg %p1769_p3  ;;  %p1661_p6 = scmp.ne.s32.totalorder %s2122_s1, %s1660_s23 }
   0xa   : > { %p1667_p10 = scmp.lt.u32.totalorder %s1660_s23, %s2122_s1 }
   0xb   : > { %p1777_p5 = pnand %p1765_p2, %p1606_p4 }
   0xd   : > { %p1662_p7 = pneg %p1777_p5 }
   0xf   : > { %p1663_p8 = pnand %p1662_p7, %p1661_p6 }
  0x11   : > { %p1664_p9 = pneg %p1663_p8 }
  0x13   : > { %p1669_p11 = pnand %p1667_p10, %p1664_p9 }
  0x15   : > { %1672 = shalt.err (!%p1669_p11)
}
  0x16   : > { %s1673_s28 = scalar_lea.vmem %s128_s17, 32  ;;  %p1681_p1 = scmp.lt.s32.totalorder %s128_s17, %s128_s17 }
  0x17   : > { %p1674_p12 = scmp.ne.s32.totalorder %s128_s17, %s1673_s28  ;;  %p1682_p4 = scmp.lt.s32.totalorder %s1673_s28, %s1673_s28 }
  0x19   : > { %p1676_p13 = pnand %p1674_p12, %p1662_p7  ;;  %p1683_p2 = por %p1682_p4, %p1681_p1 }
  0x1b   : > { %p1677_p0 = pneg %p1676_p13 }
  0x1d   : > { %p1684_p3 = pnand %p1683_p2, %p1677_p0 }
  0x1f   : > { %1687 = shalt.err (!%p1684_p3)
}
  0x20   : > { %1609 = dma.hbm_to_vmem [thread:$0]  (!%p1777_p5), %s2122_s1, 32, %s128_s17, [#allocation3]  }
  0x21   : > { %s1688_s6 = scalar_lea.hbm %s2123_s2, 16 }
  0x22   : > { %p1689_p6 = scmp.ne.s32.totalorder %s2123_s2, %s1688_s6  ;;  %p1695_p3 = scmp.lt.u32.totalorder %s1688_s6, %s2123_s2 }
  0x24   : > { %p1691_p8 = pnand %p1689_p6, %p1662_p7 }
  0x26   : > { %p1692_p2 = pneg %p1691_p8 }
  0x28   : > { %p1697_p9 = pnand %p1695_p3, %p1692_p2 }
  0x2a   : > { %1700 = shalt.err (!%p1697_p9)
}
  0x2b   : > { %s1701_s11 = scalar_lea.vmem %s1781_s19, 16  ;;  %s1708_s16 = scalar_lea.vmem %s1781_s19, 32 }
  0x2c   : > { %p1702_p10 = scmp.ne.s32.totalorder %s1781_s19, %s1701_s11  ;;  %p1709_p13 = scmp.lt.s32.totalorder %s1781_s19, %s1781_s19 }
  0x2d   : > { %p1710_p0 = scmp.lt.s32.totalorder %s1708_s16, %s1701_s11 }
  0x2e   : > { %p1704_p11 = pnand %p1702_p10, %p1662_p7 }
  0x2f   : > { %p1711_p1 = por %p1710_p0, %p1709_p13 }
  0x30   : > { %p1705_p12 = pneg %p1704_p11 }
  0x32   : > { %p1712_p4 = pnand %p1711_p1, %p1705_p12 }
  0x34   : > { %1715 = shalt.err (!%p1712_p4)
}
  0x35   : > { %1612 = dma.hbm_to_vmem [thread:$0]  (!%p1777_p5), %s2123_s2, 16, %s1781_s19, [#allocation5]  }
  0x36   : > { %p2131_p6 = scmp.ne.s32.totalorder %s2129_s15, 0 }
  0x37   : > { %p2132_p7 = scmp.ne.s32.totalorder (!%p2131_p6), %s2128_s14, 0 }
  0x38   : > { %160 = sbr.rel (%p2131_p6) target bundleno = 353 (0x161), region = 32 }
  0x3f   : > { %1721 = dma.done.wait (%p2132_p7), [#allocation3], 32  }
  0x40   : > { %1723 = vsyncadd (%p2132_p7), [#allocation3], 4294967264 }
  0x41   : > { %1725 = dma.done.wait (%p2132_p7), [#allocation5], 16  }
  0x42   : > { %1727 = vsyncadd (%p2132_p7), [#allocation5], 4294967280  ;;  %vm530_vm0 = vcmask 1040384   ;;  %s1298_s20 = sshll.u32 %s1289_s13, 6  ;;  %vm531_vm1 = vcmask 1041408   ;;  %v1734_v0 = vmov 65535  }
  0x43   : > { %p189_p5 = scmp.lt.s32.totalorder %s1298_s20, 255  ;;  %v532_v1 = vsel %vm530_vm0, 4294967295, %v1734_v0  ;;  %v265_v3 = vld [vmem:[#allocation2] sm:$0x3]  ;;  %vm433_vm2 = vcmask 23552   ;;  %vm1146_vm3 = vcmask 125952  }
  0x44   : > { %v533_v2 = vsel %vm531_vm1, %v532_v1, 0  ;;  %v1917_v37 = vld [vmem:[#allocation4] ss:$0 sm:$0xff] }
  0x45   : > { %s2134_s20 = smov (!%p189_p5, %s1298_s20), 255  ;;  %v535_v4 = vand.u32 %v533_v2, %v265_v3 }
  0x46   : > { %s1299_s15 = sshll.u32 %s2134_s20, 2 }
  0x47   : > { %s1851_s14 = scalar_lea.vmem %s2121_s0, %s1299_s15  ;;  %1530 = vmatprep.subr.bf16.mxu0 %v535_v4  ;;  %1596 = vmatprep.subr.bf16.mxu1 %v535_v4  ;;  %s1930_s23 = scalar_lea.vmem %s2124_s3, %s1299_s15 }
  0x48   : > { %v1628_v5 = vld [vmem:[%s1851_s14] sm:$0xff]   ;;  %v1630_v7 = vld [vmem:[%s1851_s14 + $0x8] sm:$0xff]   ;;  %1531 = vmatpush3.bf16.msra.mxu0 %v535_v4  ;;  %1597 = vmatpush3.bf16.msra.mxu1 %v535_v4  ;;  %v1632_v9 = vld [vmem:[%s1851_s14 + $0x10] sm:$0xff]  }
  0x49   : > { %v1629_v6 = vld [vmem:[%s1851_s14 + $0x80] sm:$0xff]   ;;  %v1631_v8 = vld [vmem:[%s1851_s14 + $0x88] sm:$0xff]   ;;  %1532 = vmatprep.mubr.msk.bf16.mxu0 %vm433_vm2, %v1628_v5  ;;  %v1633_v10 = vld [vmem:[%s1851_s14 + $0x90] sm:$0xff]  }
  0x4a   : > { %1564 = vmatprep.mubr.msk.bf16.mxu1 %vm433_vm2, %v1629_v6  ;;  %v1634_v11 = vld [vmem:[%s1851_s14 + $0x18] sm:$0xff]   ;;  %v1636_v13 = vld [vmem:[%s1851_s14 + $0x20] sm:$0xff]   ;;  %v1638_v15 = vld [vmem:[%s1851_s14 + $0x28] sm:$0xff]  }
  0x4b   : > { %1533 = vmatmul.mubr.msk.bf16.vlgmr.msra.gmra.mrb[0].mxu0 %vm433_vm2, %v1630_v7  ;;  %1565 = vmatmul.mubr.msk.bf16.vlgmr.msra.gmra.mrb[0].mxu1 %vm433_vm2, %v1631_v8  ;;  %v1635_v12 = vld [vmem:[%s1851_s14 + $0x98] sm:$0xff]   ;;  %v1637_v14 = vld [vmem:[%s1851_s14 + $0xa0] sm:$0xff]   ;;  %v1639_v16 = vld [vmem:[%s1851_s14 + $0xa8] sm:$0xff]  }
  0x4c   : > { %1536 = vmatprep.mubr.msk.bf16.mxu0 %vm433_vm2, %v1632_v9  ;;  %1568 = vmatprep.mubr.msk.bf16.mxu1 %vm433_vm2, %v1633_v10  ;;  %v1640_v17 = vld [vmem:[%s1851_s14 + $0x30] sm:$0xff]   ;;  %v1642_v19 = vld [vmem:[%s1851_s14 + $0x38] sm:$0xff]   ;;  %v1644_v21 = vld [vmem:[%s1851_s14 + $0x40] sm:$0xff]  }
  0x4d   : > { %v1641_v18 = vld [vmem:[%s1851_s14 + $0xb0] sm:$0xff]   ;;  %v1643_v20 = vld [vmem:[%s1851_s14 + $0xb8] sm:$0xff]   ;;  %v1645_v22 = vld [vmem:[%s1851_s14 + $0xc0] sm:$0xff]  }
  0x4e   : > { %v1646_v23 = vld [vmem:[%s1851_s14 + $0x48] sm:$0xff]   ;;  %v1648_v25 = vld [vmem:[%s1851_s14 + $0x50] sm:$0xff]   ;;  %v1650_v27 = vld [vmem:[%s1851_s14 + $0x58] sm:$0xff]  }
  0x4f   : > { %v1647_v24 = vld [vmem:[%s1851_s14 + $0xc8] sm:$0xff]   ;;  %v1649_v26 = vld [vmem:[%s1851_s14 + $0xd0] sm:$0xff]   ;;  %v1651_v28 = vld [vmem:[%s1851_s14 + $0xd8] sm:$0xff]  }
  0x50   : > { %v1652_v29 = vld [vmem:[%s1851_s14 + $0x60] sm:$0xff]   ;;  %v1654_v31 = vld [vmem:[%s1851_s14 + $0x68] sm:$0xff]   ;;  %v1656_v33 = vld [vmem:[%s1851_s14 + $0x70] sm:$0xff]  }
  0x51   : > { %v1653_v30 = vld [vmem:[%s1851_s14 + $0xe0] sm:$0xff]   ;;  %v1655_v32 = vld [vmem:[%s1851_s14 + $0xe8] sm:$0xff]   ;;  %v1657_v34 = vld [vmem:[%s1851_s14 + $0xf0] sm:$0xff]  }
  0x52   : > { %v1658_v35 = vld [vmem:[%s1851_s14 + $0x78] sm:$0xff]  }
  0x53   : > { %1537 = vmatmul.mubr.msk.bf16.gmra.mrb[4].mxu0 %vm433_vm2, %v1634_v11  ;;  %1569 = vmatmul.mubr.msk.bf16.gmra.mrb[4].mxu1 %vm433_vm2, %v1635_v12  ;;  %v1659_v36 = vld [vmem:[%s1851_s14 + $0xf8] sm:$0xff]  }
  0x54   : > { %1540 = vmatprep.mubr.msk.bf16.mxu0 %vm433_vm2, %v1636_v13  ;;  %1572 = vmatprep.mubr.msk.bf16.mxu1 %vm433_vm2, %v1637_v14 }
  0x5b   : > { %1541 = vmatmul.mubr.msk.bf16.gmra.mrb[8].mxu0 %vm433_vm2, %v1638_v15  ;;  %1573 = vmatmul.mubr.msk.bf16.gmra.mrb[8].mxu1 %vm433_vm2, %v1639_v16 }
  0x5c   : > { %1544 = vmatprep.mubr.msk.bf16.mxu0 %vm433_vm2, %v1640_v17  ;;  %1576 = vmatprep.mubr.msk.bf16.mxu1 %vm433_vm2, %v1641_v18 }
  0x63   : > { %1545 = vmatmul.mubr.msk.bf16.gmra.mrb[12].mxu0 %vm433_vm2, %v1642_v19  ;;  %1577 = vmatmul.mubr.msk.bf16.gmra.mrb[12].mxu1 %vm433_vm2, %v1643_v20 }
  0x64   : > { %1548 = vmatprep.mubr.msk.bf16.mxu0 %vm433_vm2, %v1644_v21  ;;  %1580 = vmatprep.mubr.msk.bf16.mxu1 %vm433_vm2, %v1645_v22 }
  0x6b   : > { %1549 = vmatmul.mubr.msk.bf16.gmra.mrb[16].mxu0 %vm433_vm2, %v1646_v23  ;;  %1581 = vmatmul.mubr.msk.bf16.gmra.mrb[16].mxu1 %vm433_vm2, %v1647_v24 }
  0x6c   : > { %1552 = vmatprep.mubr.msk.bf16.mxu0 %vm433_vm2, %v1648_v25  ;;  %1584 = vmatprep.mubr.msk.bf16.mxu1 %vm433_vm2, %v1649_v26 }
  0x73   : > { %1553 = vmatmul.mubr.msk.bf16.gmra.mrb[20].mxu0 %vm433_vm2, %v1650_v27  ;;  %1585 = vmatmul.mubr.msk.bf16.gmra.mrb[20].mxu1 %vm433_vm2, %v1651_v28 }
  0x74   : > { %1556 = vmatprep.mubr.msk.bf16.mxu0 %vm433_vm2, %v1652_v29  ;;  %1588 = vmatprep.mubr.msk.bf16.mxu1 %vm433_vm2, %v1653_v30 }
  0x7b   : > { %1557 = vmatmul.mubr.msk.bf16.gmra.mrb[24].mxu0 %vm433_vm2, %v1654_v31  ;;  %1589 = vmatmul.mubr.msk.bf16.gmra.mrb[24].mxu1 %vm433_vm2, %v1655_v32 }
  0x7c   : > { %1560 = vmatprep.mubr.msk.bf16.mxu0 %vm433_vm2, %v1656_v33  ;;  %1592 = vmatprep.mubr.msk.bf16.mxu1 %vm433_vm2, %v1657_v34 }
  0x83   : > { %1561 = vmatmul.mubr.msk.bf16.gmra.mrb[28].mxu0 %vm433_vm2, %v1658_v35  ;;  %1593 = vmatmul.mubr.msk.bf16.gmra.mrb[28].mxu1 %vm433_vm2, %v1659_v36 }
 0x11e   : > { %v1534_v38 = vpop.f32.mrb[0].mxu0  ;;  %v1566_v39 = vpop.f32.mrb[0].mxu1 }
 0x11f   : > { %v580_v40 = vadd.f32 %v1534_v38, %v1917_v37  ;;  %v708_v41 = vadd.f32 %v1566_v39, %v1917_v37  ;;  %v571_v42 = vpop.f32.mrb[1].mxu0  ;;  %v699_v43 = vpop.f32.mrb[1].mxu1 }
 0x120   : > { %v572_v44 = vadd.f32 %v1917_v37, %v571_v42  ;;  %v700_v45 = vadd.f32 %v1917_v37, %v699_v43  ;;  %v1535_v46 = vpop.f32.mrb[2].mxu0  ;;  %v1567_v47 = vpop.f32.mrb[2].mxu1 }
 0x121   : > { %v828_v48 = vmax.f32 %v580_v40, 0.0  ;;  %v860_v49 = vmax.f32 %v708_v41, 0.0  ;;  %v583_v50 = vadd.f32 %v1535_v46, %v1917_v37  ;;  %v711_v51 = vadd.f32 %v1567_v47, %v1917_v37  ;;  %v574_v52 = vpop.f32.mrb[3].mxu0  ;;  %v702_v53 = vpop.f32.mrb[3].mxu1 }
 0x122   : > { %v826_v54 = vmax.f32 %v572_v44, 0.0  ;;  %v858_v55 = vmax.f32 %v700_v45, 0.0  ;;  %v575_v56 = vadd.f32 %v1917_v37, %v574_v52  ;;  %v703_v57 = vadd.f32 %v1917_v37, %v702_v53 }
 0x123   : > { %v1435_v58 = vpack.c.bf16 %v828_v48, %v828_v48  ;;  %v1467_v59 = vpack.c.bf16 %v860_v49, %v860_v49  ;;  %v829_v60 = vmax.f32 %v583_v50, 0.0  ;;  %v861_v61 = vmax.f32 %v711_v51, 0.0 }
 0x124   : > { %v1433_v62 = vpack.c.bf16 %v826_v54, %v826_v54  ;;  %v1465_v63 = vpack.c.bf16 %v858_v55, %v858_v55  ;;  %v827_v0 = vmax.f32 %v575_v56, 0.0  ;;  %v859_v1 = vmax.f32 %v703_v57, 0.0 }
 0x125   : > { %1149 = vst.msk [vmem:[%s1930_s23 + $0x8] sm:$0xf] %vm1146_vm3, %v1435_v58  ;;  %1181 = vst.msk [vmem:[%s1930_s23 + $0x88] sm:$0xf] %vm1146_vm3, %v1467_v59  ;;  %v1436_v2 = vpack.c.bf16 %v829_v60, %v829_v60  ;;  %v1468_v3 = vpack.c.bf16 %v861_v61, %v861_v61 }
 0x126   : > { %1147 = vst.msk [vmem:[%s1930_s23] sm:$0xf] %vm1146_vm3, %v1433_v62  ;;  %1179 = vst.msk [vmem:[%s1930_s23 + $0x80] sm:$0xf] %vm1146_vm3, %v1465_v63  ;;  %v1434_v4 = vpack.c.bf16 %v827_v0, %v827_v0  ;;  %v1466_v5 = vpack.c.bf16 %v859_v1, %v859_v1  ;;  %v1538_v6 = vpop.f32.mrb[4].mxu0  ;;  %v1570_v7 = vpop.f32.mrb[4].mxu1 }
 0x127   : > { %1150 = vst.msk [vmem:[%s1930_s23 + $0xc] sm:$0xf] %vm1146_vm3, %v1436_v2  ;;  %1182 = vst.msk [vmem:[%s1930_s23 + $0x8c] sm:$0xf] %vm1146_vm3, %v1468_v3  ;;  %v596_v8 = vadd.f32 %v1538_v6, %v1917_v37  ;;  %v724_v9 = vadd.f32 %v1570_v7, %v1917_v37  ;;  %v587_v10 = vpop.f32.mrb[5].mxu0  ;;  %v715_v11 = vpop.f32.mrb[5].mxu1 }
 0x128   : > { %1148 = vst.msk [vmem:[%s1930_s23 + $0x4] sm:$0xf] %vm1146_vm3, %v1434_v4  ;;  %1180 = vst.msk [vmem:[%s1930_s23 + $0x84] sm:$0xf] %vm1146_vm3, %v1466_v5  ;;  %v588_v12 = vadd.f32 %v1917_v37, %v587_v10  ;;  %v716_v13 = vadd.f32 %v1917_v37, %v715_v11  ;;  %v1539_v14 = vpop.f32.mrb[6].mxu0  ;;  %v1571_v15 = vpop.f32.mrb[6].mxu1 }
 0x129   : > { %v832_v16 = vmax.f32 %v596_v8, 0.0  ;;  %v864_v17 = vmax.f32 %v724_v9, 0.0  ;;  %v599_v18 = vadd.f32 %v1539_v14, %v1917_v37  ;;  %v727_v19 = vadd.f32 %v1571_v15, %v1917_v37  ;;  %v590_v20 = vpop.f32.mrb[7].mxu0  ;;  %v718_v21 = vpop.f32.mrb[7].mxu1 }
 0x12a   : > { %v830_v22 = vmax.f32 %v588_v12, 0.0  ;;  %v862_v23 = vmax.f32 %v716_v13, 0.0  ;;  %v591_v24 = vadd.f32 %v1917_v37, %v590_v20  ;;  %v719_v25 = vadd.f32 %v1917_v37, %v718_v21 }
 0x12b   : > { %v1439_v26 = vpack.c.bf16 %v832_v16, %v832_v16  ;;  %v1471_v27 = vpack.c.bf16 %v864_v17, %v864_v17  ;;  %v833_v28 = vmax.f32 %v599_v18, 0.0  ;;  %v865_v29 = vmax.f32 %v727_v19, 0.0 }
 0x12c   : > { %v1437_v30 = vpack.c.bf16 %v830_v22, %v830_v22  ;;  %v1469_v31 = vpack.c.bf16 %v862_v23, %v862_v23  ;;  %v831_v32 = vmax.f32 %v591_v24, 0.0  ;;  %v863_v33 = vmax.f32 %v719_v25, 0.0 }
 0x12d   : > { %1153 = vst.msk [vmem:[%s1930_s23 + $0x18] sm:$0xf] %vm1146_vm3, %v1439_v26  ;;  %1185 = vst.msk [vmem:[%s1930_s23 + $0x98] sm:$0xf] %vm1146_vm3, %v1471_v27  ;;  %v1440_v34 = vpack.c.bf16 %v833_v28, %v833_v28  ;;  %v1472_v35 = vpack.c.bf16 %v865_v29, %v865_v29 }
 0x12e   : > { %1151 = vst.msk [vmem:[%s1930_s23 + $0x10] sm:$0xf] %vm1146_vm3, %v1437_v30  ;;  %1183 = vst.msk [vmem:[%s1930_s23 + $0x90] sm:$0xf] %vm1146_vm3, %v1469_v31  ;;  %v1438_v36 = vpack.c.bf16 %v831_v32, %v831_v32  ;;  %v1470_v38 = vpack.c.bf16 %v863_v33, %v863_v33  ;;  %v1542_v39 = vpop.f32.mrb[8].mxu0  ;;  %v1574_v40 = vpop.f32.mrb[8].mxu1 }
 0x12f   : > { %1154 = vst.msk [vmem:[%s1930_s23 + $0x1c] sm:$0xf] %vm1146_vm3, %v1440_v34  ;;  %1186 = vst.msk [vmem:[%s1930_s23 + $0x9c] sm:$0xf] %vm1146_vm3, %v1472_v35  ;;  %v612_v41 = vadd.f32 %v1542_v39, %v1917_v37  ;;  %v740_v42 = vadd.f32 %v1574_v40, %v1917_v37  ;;  %v603_v43 = vpop.f32.mrb[9].mxu0  ;;  %v731_v44 = vpop.f32.mrb[9].mxu1 }
 0x130   : > { %1152 = vst.msk [vmem:[%s1930_s23 + $0x14] sm:$0xf] %vm1146_vm3, %v1438_v36  ;;  %1184 = vst.msk [vmem:[%s1930_s23 + $0x94] sm:$0xf] %vm1146_vm3, %v1470_v38  ;;  %v604_v45 = vadd.f32 %v1917_v37, %v603_v43  ;;  %v732_v46 = vadd.f32 %v1917_v37, %v731_v44  ;;  %v1543_v47 = vpop.f32.mrb[10].mxu0  ;;  %v1575_v48 = vpop.f32.mrb[10].mxu1 }
 0x131   : > { %v836_v49 = vmax.f32 %v612_v41, 0.0  ;;  %v868_v50 = vmax.f32 %v740_v42, 0.0  ;;  %v615_v51 = vadd.f32 %v1543_v47, %v1917_v37  ;;  %v743_v52 = vadd.f32 %v1575_v48, %v1917_v37  ;;  %v606_v53 = vpop.f32.mrb[11].mxu0  ;;  %v734_v54 = vpop.f32.mrb[11].mxu1 }
 0x132   : > { %v834_v55 = vmax.f32 %v604_v45, 0.0  ;;  %v866_v56 = vmax.f32 %v732_v46, 0.0  ;;  %v607_v57 = vadd.f32 %v1917_v37, %v606_v53  ;;  %v735_v58 = vadd.f32 %v1917_v37, %v734_v54 }
 0x133   : > { %v1443_v59 = vpack.c.bf16 %v836_v49, %v836_v49  ;;  %v1475_v60 = vpack.c.bf16 %v868_v50, %v868_v50  ;;  %v837_v61 = vmax.f32 %v615_v51, 0.0  ;;  %v869_v62 = vmax.f32 %v743_v52, 0.0 }
 0x134   : > { %v1441_v63 = vpack.c.bf16 %v834_v55, %v834_v55  ;;  %v1473_v0 = vpack.c.bf16 %v866_v56, %v866_v56  ;;  %v835_v1 = vmax.f32 %v607_v57, 0.0  ;;  %v867_v2 = vmax.f32 %v735_v58, 0.0 }
 0x135   : > { %1157 = vst.msk [vmem:[%s1930_s23 + $0x28] sm:$0xf] %vm1146_vm3, %v1443_v59  ;;  %1189 = vst.msk [vmem:[%s1930_s23 + $0xa8] sm:$0xf] %vm1146_vm3, %v1475_v60  ;;  %v1444_v3 = vpack.c.bf16 %v837_v61, %v837_v61  ;;  %v1476_v4 = vpack.c.bf16 %v869_v62, %v869_v62 }
 0x136   : > { %1155 = vst.msk [vmem:[%s1930_s23 + $0x20] sm:$0xf] %vm1146_vm3, %v1441_v63  ;;  %1187 = vst.msk [vmem:[%s1930_s23 + $0xa0] sm:$0xf] %vm1146_vm3, %v1473_v0  ;;  %v1442_v5 = vpack.c.bf16 %v835_v1, %v835_v1  ;;  %v1474_v6 = vpack.c.bf16 %v867_v2, %v867_v2  ;;  %v1546_v7 = vpop.f32.mrb[12].mxu0  ;;  %v1578_v8 = vpop.f32.mrb[12].mxu1 }
 0x137   : > { %1158 = vst.msk [vmem:[%s1930_s23 + $0x2c] sm:$0xf] %vm1146_vm3, %v1444_v3  ;;  %1190 = vst.msk [vmem:[%s1930_s23 + $0xac] sm:$0xf] %vm1146_vm3, %v1476_v4  ;;  %v628_v9 = vadd.f32 %v1546_v7, %v1917_v37  ;;  %v756_v10 = vadd.f32 %v1578_v8, %v1917_v37  ;;  %v619_v11 = vpop.f32.mrb[13].mxu0  ;;  %v747_v12 = vpop.f32.mrb[13].mxu1 }
 0x138   : > { %1156 = vst.msk [vmem:[%s1930_s23 + $0x24] sm:$0xf] %vm1146_vm3, %v1442_v5  ;;  %1188 = vst.msk [vmem:[%s1930_s23 + $0xa4] sm:$0xf] %vm1146_vm3, %v1474_v6  ;;  %v620_v13 = vadd.f32 %v1917_v37, %v619_v11  ;;  %v748_v14 = vadd.f32 %v1917_v37, %v747_v12  ;;  %v1547_v15 = vpop.f32.mrb[14].mxu0  ;;  %v1579_v16 = vpop.f32.mrb[14].mxu1 }
 0x139   : > { %v840_v17 = vmax.f32 %v628_v9, 0.0  ;;  %v872_v18 = vmax.f32 %v756_v10, 0.0  ;;  %v631_v19 = vadd.f32 %v1547_v15, %v1917_v37  ;;  %v759_v20 = vadd.f32 %v1579_v16, %v1917_v37  ;;  %v622_v21 = vpop.f32.mrb[15].mxu0  ;;  %v750_v22 = vpop.f32.mrb[15].mxu1 }
 0x13a   : > { %v838_v23 = vmax.f32 %v620_v13, 0.0  ;;  %v870_v24 = vmax.f32 %v748_v14, 0.0  ;;  %v623_v25 = vadd.f32 %v1917_v37, %v622_v21  ;;  %v751_v26 = vadd.f32 %v1917_v37, %v750_v22 }
 0x13b   : > { %v1447_v27 = vpack.c.bf16 %v840_v17, %v840_v17  ;;  %v1479_v28 = vpack.c.bf16 %v872_v18, %v872_v18  ;;  %v841_v29 = vmax.f32 %v631_v19, 0.0  ;;  %v873_v30 = vmax.f32 %v759_v20, 0.0 }
 0x13c   : > { %v1445_v31 = vpack.c.bf16 %v838_v23, %v838_v23  ;;  %v1477_v32 = vpack.c.bf16 %v870_v24, %v870_v24  ;;  %v839_v33 = vmax.f32 %v623_v25, 0.0  ;;  %v871_v34 = vmax.f32 %v751_v26, 0.0 }
 0x13d   : > { %1161 = vst.msk [vmem:[%s1930_s23 + $0x38] sm:$0xf] %vm1146_vm3, %v1447_v27  ;;  %1193 = vst.msk [vmem:[%s1930_s23 + $0xb8] sm:$0xf] %vm1146_vm3, %v1479_v28  ;;  %v1448_v35 = vpack.c.bf16 %v841_v29, %v841_v29  ;;  %v1480_v36 = vpack.c.bf16 %v873_v30, %v873_v30 }
 0x13e   : > { %1159 = vst.msk [vmem:[%s1930_s23 + $0x30] sm:$0xf] %vm1146_vm3, %v1445_v31  ;;  %1191 = vst.msk [vmem:[%s1930_s23 + $0xb0] sm:$0xf] %vm1146_vm3, %v1477_v32  ;;  %v1446_v38 = vpack.c.bf16 %v839_v33, %v839_v33  ;;  %v1478_v39 = vpack.c.bf16 %v871_v34, %v871_v34  ;;  %v1550_v40 = vpop.f32.mrb[16].mxu0  ;;  %v1582_v41 = vpop.f32.mrb[16].mxu1 }
 0x13f   : > { %1162 = vst.msk [vmem:[%s1930_s23 + $0x3c] sm:$0xf] %vm1146_vm3, %v1448_v35  ;;  %1194 = vst.msk [vmem:[%s1930_s23 + $0xbc] sm:$0xf] %vm1146_vm3, %v1480_v36  ;;  %v644_v42 = vadd.f32 %v1550_v40, %v1917_v37  ;;  %v772_v43 = vadd.f32 %v1582_v41, %v1917_v37  ;;  %v635_v44 = vpop.f32.mrb[17].mxu0  ;;  %v763_v45 = vpop.f32.mrb[17].mxu1 }
 0x140   : > { %1160 = vst.msk [vmem:[%s1930_s23 + $0x34] sm:$0xf] %vm1146_vm3, %v1446_v38  ;;  %1192 = vst.msk [vmem:[%s1930_s23 + $0xb4] sm:$0xf] %vm1146_vm3, %v1478_v39  ;;  %v636_v46 = vadd.f32 %v1917_v37, %v635_v44  ;;  %v764_v47 = vadd.f32 %v1917_v37, %v763_v45  ;;  %v1551_v48 = vpop.f32.mrb[18].mxu0  ;;  %v1583_v49 = vpop.f32.mrb[18].mxu1 }
 0x141   : > { %v844_v50 = vmax.f32 %v644_v42, 0.0  ;;  %v876_v51 = vmax.f32 %v772_v43, 0.0  ;;  %v647_v52 = vadd.f32 %v1551_v48, %v1917_v37  ;;  %v775_v53 = vadd.f32 %v1583_v49, %v1917_v37  ;;  %v638_v54 = vpop.f32.mrb[19].mxu0  ;;  %v766_v55 = vpop.f32.mrb[19].mxu1 }
 0x142   : > { %v842_v56 = vmax.f32 %v636_v46, 0.0  ;;  %v874_v57 = vmax.f32 %v764_v47, 0.0  ;;  %v639_v58 = vadd.f32 %v1917_v37, %v638_v54  ;;  %v767_v59 = vadd.f32 %v1917_v37, %v766_v55 }
 0x143   : > { %v1451_v60 = vpack.c.bf16 %v844_v50, %v844_v50  ;;  %v1483_v61 = vpack.c.bf16 %v876_v51, %v876_v51  ;;  %v845_v62 = vmax.f32 %v647_v52, 0.0  ;;  %v877_v63 = vmax.f32 %v775_v53, 0.0 }
 0x144   : > { %v1449_v0 = vpack.c.bf16 %v842_v56, %v842_v56  ;;  %v1481_v1 = vpack.c.bf16 %v874_v57, %v874_v57  ;;  %v843_v2 = vmax.f32 %v639_v58, 0.0  ;;  %v875_v3 = vmax.f32 %v767_v59, 0.0 }
 0x145   : > { %1165 = vst.msk [vmem:[%s1930_s23 + $0x48] sm:$0xf] %vm1146_vm3, %v1451_v60  ;;  %1197 = vst.msk [vmem:[%s1930_s23 + $0xc8] sm:$0xf] %vm1146_vm3, %v1483_v61  ;;  %v1452_v4 = vpack.c.bf16 %v845_v62, %v845_v62  ;;  %v1484_v5 = vpack.c.bf16 %v877_v63, %v877_v63 }
 0x146   : > { %1163 = vst.msk [vmem:[%s1930_s23 + $0x40] sm:$0xf] %vm1146_vm3, %v1449_v0  ;;  %1195 = vst.msk [vmem:[%s1930_s23 + $0xc0] sm:$0xf] %vm1146_vm3, %v1481_v1  ;;  %v1450_v6 = vpack.c.bf16 %v843_v2, %v843_v2  ;;  %v1482_v7 = vpack.c.bf16 %v875_v3, %v875_v3  ;;  %v1554_v8 = vpop.f32.mrb[20].mxu0  ;;  %v1586_v9 = vpop.f32.mrb[20].mxu1 }
 0x147   : > { %1166 = vst.msk [vmem:[%s1930_s23 + $0x4c] sm:$0xf] %vm1146_vm3, %v1452_v4  ;;  %1198 = vst.msk [vmem:[%s1930_s23 + $0xcc] sm:$0xf] %vm1146_vm3, %v1484_v5  ;;  %v660_v10 = vadd.f32 %v1554_v8, %v1917_v37  ;;  %v788_v11 = vadd.f32 %v1586_v9, %v1917_v37  ;;  %v651_v12 = vpop.f32.mrb[21].mxu0  ;;  %v779_v13 = vpop.f32.mrb[21].mxu1 }
 0x148   : > { %1164 = vst.msk [vmem:[%s1930_s23 + $0x44] sm:$0xf] %vm1146_vm3, %v1450_v6  ;;  %1196 = vst.msk [vmem:[%s1930_s23 + $0xc4] sm:$0xf] %vm1146_vm3, %v1482_v7  ;;  %v652_v14 = vadd.f32 %v1917_v37, %v651_v12  ;;  %v780_v15 = vadd.f32 %v1917_v37, %v779_v13  ;;  %v1555_v16 = vpop.f32.mrb[22].mxu0  ;;  %v1587_v17 = vpop.f32.mrb[22].mxu1 }
 0x149   : > { %v848_v18 = vmax.f32 %v660_v10, 0.0  ;;  %v880_v19 = vmax.f32 %v788_v11, 0.0  ;;  %v663_v20 = vadd.f32 %v1555_v16, %v1917_v37  ;;  %v791_v21 = vadd.f32 %v1587_v17, %v1917_v37  ;;  %v654_v22 = vpop.f32.mrb[23].mxu0  ;;  %v782_v23 = vpop.f32.mrb[23].mxu1 }
 0x14a   : > { %v846_v24 = vmax.f32 %v652_v14, 0.0  ;;  %v878_v25 = vmax.f32 %v780_v15, 0.0  ;;  %v655_v26 = vadd.f32 %v1917_v37, %v654_v22  ;;  %v783_v27 = vadd.f32 %v1917_v37, %v782_v23 }
 0x14b   : > { %v1455_v28 = vpack.c.bf16 %v848_v18, %v848_v18  ;;  %v1487_v29 = vpack.c.bf16 %v880_v19, %v880_v19  ;;  %v849_v30 = vmax.f32 %v663_v20, 0.0  ;;  %v881_v31 = vmax.f32 %v791_v21, 0.0 }
 0x14c   : > { %v1453_v32 = vpack.c.bf16 %v846_v24, %v846_v24  ;;  %v1485_v33 = vpack.c.bf16 %v878_v25, %v878_v25  ;;  %v847_v34 = vmax.f32 %v655_v26, 0.0  ;;  %v879_v35 = vmax.f32 %v783_v27, 0.0 }
 0x14d   : > { %1169 = vst.msk [vmem:[%s1930_s23 + $0x58] sm:$0xf] %vm1146_vm3, %v1455_v28  ;;  %1201 = vst.msk [vmem:[%s1930_s23 + $0xd8] sm:$0xf] %vm1146_vm3, %v1487_v29  ;;  %v1456_v36 = vpack.c.bf16 %v849_v30, %v849_v30  ;;  %v1488_v38 = vpack.c.bf16 %v881_v31, %v881_v31 }
 0x14e   : > { %1167 = vst.msk [vmem:[%s1930_s23 + $0x50] sm:$0xf] %vm1146_vm3, %v1453_v32  ;;  %1199 = vst.msk [vmem:[%s1930_s23 + $0xd0] sm:$0xf] %vm1146_vm3, %v1485_v33  ;;  %v1454_v39 = vpack.c.bf16 %v847_v34, %v847_v34  ;;  %v1486_v40 = vpack.c.bf16 %v879_v35, %v879_v35  ;;  %v1558_v41 = vpop.f32.mrb[24].mxu0  ;;  %v1590_v42 = vpop.f32.mrb[24].mxu1 }
 0x14f   : > { %1170 = vst.msk [vmem:[%s1930_s23 + $0x5c] sm:$0xf] %vm1146_vm3, %v1456_v36  ;;  %1202 = vst.msk [vmem:[%s1930_s23 + $0xdc] sm:$0xf] %vm1146_vm3, %v1488_v38  ;;  %v676_v43 = vadd.f32 %v1558_v41, %v1917_v37  ;;  %v804_v44 = vadd.f32 %v1590_v42, %v1917_v37  ;;  %v667_v45 = vpop.f32.mrb[25].mxu0  ;;  %v795_v46 = vpop.f32.mrb[25].mxu1 }
 0x150   : > { %1168 = vst.msk [vmem:[%s1930_s23 + $0x54] sm:$0xf] %vm1146_vm3, %v1454_v39  ;;  %1200 = vst.msk [vmem:[%s1930_s23 + $0xd4] sm:$0xf] %vm1146_vm3, %v1486_v40  ;;  %v668_v47 = vadd.f32 %v1917_v37, %v667_v45  ;;  %v796_v48 = vadd.f32 %v1917_v37, %v795_v46  ;;  %v1559_v49 = vpop.f32.mrb[26].mxu0  ;;  %v1591_v50 = vpop.f32.mrb[26].mxu1 }
 0x151   : > { %v852_v51 = vmax.f32 %v676_v43, 0.0  ;;  %v884_v52 = vmax.f32 %v804_v44, 0.0  ;;  %v679_v53 = vadd.f32 %v1559_v49, %v1917_v37  ;;  %v807_v54 = vadd.f32 %v1591_v50, %v1917_v37  ;;  %v670_v55 = vpop.f32.mrb[27].mxu0  ;;  %v798_v56 = vpop.f32.mrb[27].mxu1 }
 0x152   : > { %v850_v57 = vmax.f32 %v668_v47, 0.0  ;;  %v882_v58 = vmax.f32 %v796_v48, 0.0  ;;  %v671_v59 = vadd.f32 %v1917_v37, %v670_v55  ;;  %v799_v60 = vadd.f32 %v1917_v37, %v798_v56 }
 0x153   : > { %v1459_v61 = vpack.c.bf16 %v852_v51, %v852_v51  ;;  %v1491_v62 = vpack.c.bf16 %v884_v52, %v884_v52  ;;  %v853_v63 = vmax.f32 %v679_v53, 0.0  ;;  %v885_v0 = vmax.f32 %v807_v54, 0.0 }
 0x154   : > { %v1457_v1 = vpack.c.bf16 %v850_v57, %v850_v57  ;;  %v1489_v2 = vpack.c.bf16 %v882_v58, %v882_v58  ;;  %v851_v3 = vmax.f32 %v671_v59, 0.0  ;;  %v883_v4 = vmax.f32 %v799_v60, 0.0 }
 0x155   : > { %1173 = vst.msk [vmem:[%s1930_s23 + $0x68] sm:$0xf] %vm1146_vm3, %v1459_v61  ;;  %1205 = vst.msk [vmem:[%s1930_s23 + $0xe8] sm:$0xf] %vm1146_vm3, %v1491_v62  ;;  %v1460_v5 = vpack.c.bf16 %v853_v63, %v853_v63  ;;  %v1492_v6 = vpack.c.bf16 %v885_v0, %v885_v0 }
 0x156   : > { %1171 = vst.msk [vmem:[%s1930_s23 + $0x60] sm:$0xf] %vm1146_vm3, %v1457_v1  ;;  %1203 = vst.msk [vmem:[%s1930_s23 + $0xe0] sm:$0xf] %vm1146_vm3, %v1489_v2  ;;  %v1458_v7 = vpack.c.bf16 %v851_v3, %v851_v3  ;;  %v1490_v8 = vpack.c.bf16 %v883_v4, %v883_v4  ;;  %v1562_v9 = vpop.f32.mrb[28].mxu0  ;;  %v1594_v10 = vpop.f32.mrb[28].mxu1 }
 0x157   : > { %1174 = vst.msk [vmem:[%s1930_s23 + $0x6c] sm:$0xf] %vm1146_vm3, %v1460_v5  ;;  %1206 = vst.msk [vmem:[%s1930_s23 + $0xec] sm:$0xf] %vm1146_vm3, %v1492_v6  ;;  %v692_v11 = vadd.f32 %v1562_v9, %v1917_v37  ;;  %v820_v12 = vadd.f32 %v1594_v10, %v1917_v37  ;;  %v683_v13 = vpop.f32.mrb[29].mxu0  ;;  %v811_v14 = vpop.f32.mrb[29].mxu1 }
 0x158   : > { %1172 = vst.msk [vmem:[%s1930_s23 + $0x64] sm:$0xf] %vm1146_vm3, %v1458_v7  ;;  %1204 = vst.msk [vmem:[%s1930_s23 + $0xe4] sm:$0xf] %vm1146_vm3, %v1490_v8  ;;  %v684_v15 = vadd.f32 %v1917_v37, %v683_v13  ;;  %v812_v16 = vadd.f32 %v1917_v37, %v811_v14  ;;  %v1563_v17 = vpop.f32.mrb[30].mxu0  ;;  %v1595_v18 = vpop.f32.mrb[30].mxu1 }
 0x159   : > { %v856_v19 = vmax.f32 %v692_v11, 0.0  ;;  %v888_v20 = vmax.f32 %v820_v12, 0.0  ;;  %v695_v21 = vadd.f32 %v1563_v17, %v1917_v37  ;;  %v823_v22 = vadd.f32 %v1595_v18, %v1917_v37  ;;  %v686_v23 = vpop.f32.mrb[31].mxu0  ;;  %v814_v24 = vpop.f32.mrb[31].mxu1 }
 0x15a   : > { %v854_v25 = vmax.f32 %v684_v15, 0.0  ;;  %v886_v26 = vmax.f32 %v812_v16, 0.0  ;;  %v687_v27 = vadd.f32 %v1917_v37, %v686_v23  ;;  %v815_v28 = vadd.f32 %v1917_v37, %v814_v24 }
 0x15b   : > { %v1463_v29 = vpack.c.bf16 %v856_v19, %v856_v19  ;;  %v1495_v30 = vpack.c.bf16 %v888_v20, %v888_v20  ;;  %v857_v31 = vmax.f32 %v695_v21, 0.0  ;;  %v889_v32 = vmax.f32 %v823_v22, 0.0 }
 0x15c   : > { %v1461_v33 = vpack.c.bf16 %v854_v25, %v854_v25  ;;  %v1493_v34 = vpack.c.bf16 %v886_v26, %v886_v26  ;;  %v855_v35 = vmax.f32 %v687_v27, 0.0  ;;  %v887_v36 = vmax.f32 %v815_v28, 0.0 }
 0x15d   : > { %1177 = vst.msk [vmem:[%s1930_s23 + $0x78] sm:$0xf] %vm1146_vm3, %v1463_v29  ;;  %1209 = vst.msk [vmem:[%s1930_s23 + $0xf8] sm:$0xf] %vm1146_vm3, %v1495_v30  ;;  %v1464_v38 = vpack.c.bf16 %v857_v31, %v857_v31  ;;  %v1496_v39 = vpack.c.bf16 %v889_v32, %v889_v32 }
 0x15e   : > { %1175 = vst.msk [vmem:[%s1930_s23 + $0x70] sm:$0xf] %vm1146_vm3, %v1461_v33  ;;  %1207 = vst.msk [vmem:[%s1930_s23 + $0xf0] sm:$0xf] %vm1146_vm3, %v1493_v34  ;;  %v1462_v37 = vpack.c.bf16 %v855_v35, %v855_v35  ;;  %v1494_v40 = vpack.c.bf16 %v887_v36, %v887_v36 }
 0x15f   : > { %1178 = vst.msk [vmem:[%s1930_s23 + $0x7c] sm:$0xf] %vm1146_vm3, %v1464_v38  ;;  %1210 = vst.msk [vmem:[%s1930_s23 + $0xfc] sm:$0xf] %vm1146_vm3, %v1496_v39 }
 0x160   : > { %1176 = vst.msk [vmem:[%s1930_s23 + $0x74] sm:$0xf] %vm1146_vm3, %v1462_v37  ;;  %1208 = vst.msk [vmem:[%s1930_s23 + $0xf4] sm:$0xf] %vm1146_vm3, %v1494_v40 }
 0x161 PF: > { %s15_s12 = sadd.s32 1, %s1730_s12  }
 0x162   : > { %p12_p8 = scmp.ge.s32.totalorder %s15_s12, 6  }
 0x164   :  { %14 = sbr.rel (!%p12_p8) target bundleno = 2 (0x2), region = 71 }
 0x16b   :  { %1233 = vsyncpa [#allocation3], 1 }
 0x16c   :  { %1235 = vsyncpa [#allocation3 + $0x1], 1 }
 0x16d   :  { %1236 = vsyncpa [#allocation5], 1 }

// kernel: _lambda_.33
= control target key start
LH: loop header
LB: loop body
LE: loop exit
PB: predicated region body
PF: predicated region fallthrough
CT: control target
= control target key end

     0   :  { %v1579_v0 = vmov 0   ;;  %vm446_vm0 = vcmask 130048   ;;  %vm1152_vm1 = vcmask 125952   ;;  %s2176_s1 = inlined_call_operand.vmem [shape: bf16[144,16], index: 1, kind: input, shape index: {}]   ;;  %s2177_s0 = inlined_call_operand.vmem [shape: bf16[512,144], index: 0, kind: input, shape index: {}]   ;;  %s2178_s2 = inlined_call_operand.vmem [shape: f32[1,16], index: 2, kind: input, shape index: {}]   ;;  %s2179_s3 = inlined_call_operand.vmem [shape: bf16[512,16], index: 3, kind: output, shape index: {}]  }
   0x1   :  { %543 = vmatprep.subr.bf16.mxu0 %v1579_v0  ;;  %1455 = vmatprep.subr.bf16.mxu1 %v1579_v0  ;;  %v1474_v1 = vld [vmem:[%s2176_s1] sm:$0xff]   ;;  %v1475_v2 = vld [vmem:[%s2176_s1 + $0x8] sm:$0xff]   ;;  %v1476_v3 = vld [vmem:[%s2176_s1 + $0x10] sm:$0xff]  }
   0x2   :  { %544 = vmatpush1.bf16.msra.mxu0 %v1474_v1  ;;  %1464 = vmatpush1.bf16.msra.mxu1 %v1474_v1  ;;  %v1477_v4 = vld [vmem:[%s2176_s1 + $0x18] sm:$0xff]   ;;  %v1485_v5 = vld [vmem:[%s2177_s0 + $0x4] ss:$8 sps:$4 sm:$0xff]   ;;  %v1480_v9 = vld [vmem:[%s2176_s1 + $0x30] sm:$0xff]  }
   0x3   :  { %545 = vmatprep.subr.bf16.mxu0 %v1579_v0  ;;  %1456 = vmatprep.subr.bf16.mxu1 %v1579_v0  ;;  %v1488_v6 = vld [vmem:[%s2177_s0 + $0x104] ss:$8 sps:$4 sm:$0xff]   ;;  %v1481_v10 = vld [vmem:[%s2176_s1 + $0x38] sm:$0xff]   ;;  %v1483_v12 = vld [vmem:[%s2177_s0] ss:$8 sps:$4 sm:$0xff]  }
   0x4   :  { %1295 = vmatprep.mubr.msk.bf16.mxu0 %vm446_vm0, %v1485_v5  ;;  %1311 = vmatprep.mubr.msk.bf16.mxu1 %vm446_vm0, %v1488_v6  ;;  %v1478_v7 = vld [vmem:[%s2176_s1 + $0x20] sm:$0xff]   ;;  %v1479_v8 = vld [vmem:[%s2176_s1 + $0x28] sm:$0xff]   ;;  %v1489_v14 = vld [vmem:[%s2177_s0 + $0x14] ss:$8 sps:$4 sm:$0xff]  }
   0x5   :  { %v1482_v11 = vld [vmem:[%s2176_s1 + $0x40] sm:$0xff]   ;;  %v1491_v15 = vld [vmem:[%s2177_s0 + $0x114] ss:$8 sps:$4 sm:$0xff]   ;;  %v1493_v16 = vld [vmem:[%s2177_s0 + $0x10] ss:$8 sps:$4 sm:$0xff]  }
   0x6   :  { %546 = vmatpush1.bf16.msra.mxu0 %v1475_v2  ;;  %1465 = vmatpush1.bf16.msra.mxu1 %v1475_v2  ;;  %v1486_v13 = vld [vmem:[%s2177_s0 + $0x100] ss:$8 sps:$4 sm:$0xff]   ;;  %v1494_v17 = vld [vmem:[%s2177_s0 + $0x110] ss:$8 sps:$4 sm:$0xff]   ;;  %v1495_v18 = vld [vmem:[%s2177_s0 + $0x24] ss:$8 sps:$4 sm:$0xff]  }
   0x7   :  { %547 = vmatprep.subr.bf16.mxu0 %v1579_v0  ;;  %1457 = vmatprep.subr.bf16.mxu1 %v1579_v0  ;;  %v1497_v19 = vld [vmem:[%s2177_s0 + $0x124] ss:$8 sps:$4 sm:$0xff]   ;;  %v1499_v20 = vld [vmem:[%s2177_s0 + $0x20] ss:$8 sps:$4 sm:$0xff]   ;;  %v1501_v22 = vld [vmem:[%s2177_s0 + $0x34] ss:$8 sps:$4 sm:$0xff]  }
   0x8   :  { %v1500_v21 = vld [vmem:[%s2177_s0 + $0x120] ss:$8 sps:$4 sm:$0xff]   ;;  %v1503_v23 = vld [vmem:[%s2177_s0 + $0x134] ss:$8 sps:$4 sm:$0xff]   ;;  %v1505_v24 = vld [vmem:[%s2177_s0 + $0x30] ss:$8 sps:$4 sm:$0xff]  }
   0x9   :  { %v1506_v25 = vld [vmem:[%s2177_s0 + $0x130] ss:$8 sps:$4 sm:$0xff]   ;;  %v1507_v26 = vld [vmem:[%s2177_s0 + $0x44] ss:$8 sps:$4 sm:$0xff]   ;;  %v1511_v28 = vld [vmem:[%s2177_s0 + $0x40] ss:$8 sps:$4 sm:$0xff]  }
   0xa   :  { %548 = vmatpush1.bf16.msra.mxu0 %v1476_v3  ;;  %1466 = vmatpush1.bf16.msra.mxu1 %v1476_v3  ;;  %v1509_v27 = vld [vmem:[%s2177_s0 + $0x144] ss:$8 sps:$4 sm:$0xff]   ;;  %v1512_v29 = vld [vmem:[%s2177_s0 + $0x140] ss:$8 sps:$4 sm:$0xff]   ;;  %v1513_v30 = vld [vmem:[%s2177_s0 + $0x54] ss:$8 sps:$4 sm:$0xff]  }
   0xb   :  { %549 = vmatprep.subr.bf16.mxu0 %v1579_v0  ;;  %1458 = vmatprep.subr.bf16.mxu1 %v1579_v0  ;;  %v1515_v31 = vld [vmem:[%s2177_s0 + $0x154] ss:$8 sps:$4 sm:$0xff]   ;;  %v1517_v32 = vld [vmem:[%s2177_s0 + $0x50] ss:$8 sps:$4 sm:$0xff]   ;;  %v1519_v34 = vld [vmem:[%s2177_s0 + $0x64] ss:$8 sps:$4 sm:$0xff]  }
   0xc   :  { %v1518_v33 = vld [vmem:[%s2177_s0 + $0x150] ss:$8 sps:$4 sm:$0xff]   ;;  %v1521_v35 = vld [vmem:[%s2177_s0 + $0x164] ss:$8 sps:$4 sm:$0xff]   ;;  %v1523_v36 = vld [vmem:[%s2177_s0 + $0x60] ss:$8 sps:$4 sm:$0xff]  }
   0xd   :  { %v1524_v37 = vld [vmem:[%s2177_s0 + $0x160] ss:$8 sps:$4 sm:$0xff]   ;;  %v1525_v38 = vld [vmem:[%s2177_s0 + $0x74] ss:$8 sps:$4 sm:$0xff]   ;;  %v1529_v40 = vld [vmem:[%s2177_s0 + $0x70] ss:$8 sps:$4 sm:$0xff]  }
   0xe   :  { %550 = vmatpush1.bf16.msra.mxu0 %v1477_v4  ;;  %1467 = vmatpush1.bf16.msra.mxu1 %v1477_v4  ;;  %v1527_v39 = vld [vmem:[%s2177_s0 + $0x174] ss:$8 sps:$4 sm:$0xff]   ;;  %v1530_v41 = vld [vmem:[%s2177_s0 + $0x170] ss:$8 sps:$4 sm:$0xff]   ;;  %v1531_v42 = vld [vmem:[%s2177_s0 + $0x84] ss:$8 sps:$4 sm:$0xff]  }
   0xf   :  { %551 = vmatprep.subr.bf16.mxu0 %v1579_v0  ;;  %1459 = vmatprep.subr.bf16.mxu1 %v1579_v0  ;;  %v1533_v43 = vld [vmem:[%s2177_s0 + $0x184] ss:$8 sps:$4 sm:$0xff]   ;;  %v1535_v44 = vld [vmem:[%s2177_s0 + $0x80] ss:$8 sps:$4 sm:$0xff]   ;;  %v1537_v46 = vld [vmem:[%s2177_s0 + $0x94] ss:$8 sps:$4 sm:$0xff]  }
  0x10   :  { %v1536_v45 = vld [vmem:[%s2177_s0 + $0x180] ss:$8 sps:$4 sm:$0xff]   ;;  %v1539_v47 = vld [vmem:[%s2177_s0 + $0x194] ss:$8 sps:$4 sm:$0xff]   ;;  %v1541_v48 = vld [vmem:[%s2177_s0 + $0x90] ss:$8 sps:$4 sm:$0xff]  }
  0x11   :  { %v1542_v49 = vld [vmem:[%s2177_s0 + $0x190] ss:$8 sps:$4 sm:$0xff]   ;;  %v1543_v50 = vld [vmem:[%s2177_s0 + $0xa4] ss:$8 sps:$4 sm:$0xff]   ;;  %v1547_v52 = vld [vmem:[%s2177_s0 + $0xa0] ss:$8 sps:$4 sm:$0xff]  }
  0x12   :  { %552 = vmatpush1.bf16.msra.mxu0 %v1478_v7  ;;  %1468 = vmatpush1.bf16.msra.mxu1 %v1478_v7  ;;  %v1545_v51 = vld [vmem:[%s2177_s0 + $0x1a4] ss:$8 sps:$4 sm:$0xff]   ;;  %v1548_v53 = vld [vmem:[%s2177_s0 + $0x1a0] ss:$8 sps:$4 sm:$0xff]   ;;  %v1549_v54 = vld [vmem:[%s2177_s0 + $0xb4] ss:$8 sps:$4 sm:$0xff]  }
  0x13   :  { %553 = vmatprep.subr.bf16.mxu0 %v1579_v0  ;;  %1460 = vmatprep.subr.bf16.mxu1 %v1579_v0  ;;  %v1551_v55 = vld [vmem:[%s2177_s0 + $0x1b4] ss:$8 sps:$4 sm:$0xff]   ;;  %v1553_v56 = vld [vmem:[%s2177_s0 + $0xb0] ss:$8 sps:$4 sm:$0xff]   ;;  %v1555_v58 = vld [vmem:[%s2177_s0 + $0xc4] ss:$8 sps:$4 sm:$0xff]  }
  0x14   :  { %v1554_v57 = vld [vmem:[%s2177_s0 + $0x1b0] ss:$8 sps:$4 sm:$0xff]   ;;  %v1557_v59 = vld [vmem:[%s2177_s0 + $0x1c4] ss:$8 sps:$4 sm:$0xff]   ;;  %v1559_v60 = vld [vmem:[%s2177_s0 + $0xc0] ss:$8 sps:$4 sm:$0xff]  }
  0x15   :  { %v1560_v61 = vld [vmem:[%s2177_s0 + $0x1c0] ss:$8 sps:$4 sm:$0xff]   ;;  %v1561_v62 = vld [vmem:[%s2177_s0 + $0xd4] ss:$8 sps:$4 sm:$0xff]   ;;  %v1566_v1 = vld [vmem:[%s2177_s0 + $0x1d0] ss:$8 sps:$4 sm:$0xff]  }
  0x16   :  { %554 = vmatpush1.bf16.msra.mxu0 %v1479_v8  ;;  %1469 = vmatpush1.bf16.msra.mxu1 %v1479_v8  ;;  %v1563_v63 = vld [vmem:[%s2177_s0 + $0x1d4] ss:$8 sps:$4 sm:$0xff]   ;;  %v1567_v2 = vld [vmem:[%s2177_s0 + $0xe4] ss:$8 sps:$4 sm:$0xff]   ;;  %v1571_v4 = vld [vmem:[%s2177_s0 + $0xe0] ss:$8 sps:$4 sm:$0xff]  }
  0x17   :  { %555 = vmatprep.subr.bf16.mxu0 %v1579_v0  ;;  %1461 = vmatprep.subr.bf16.mxu1 %v1579_v0  ;;  %v1569_v3 = vld [vmem:[%s2177_s0 + $0x1e4] ss:$8 sps:$4 sm:$0xff]   ;;  %v1572_v5 = vld [vmem:[%s2177_s0 + $0x1e0] ss:$8 sps:$4 sm:$0xff]   ;;  %v1573_v6 = vld [vmem:[%s2177_s0 + $0xf4] ss:$8 sps:$4 sm:$0xff]  }
  0x18   :  { %v1575_v7 = vld [vmem:[%s2177_s0 + $0x1f4] ss:$8 sps:$4 sm:$0xff]   ;;  %v1577_v8 = vld [vmem:[%s2177_s0 + $0xf0] ss:$8 sps:$4 sm:$0xff]  }
  0x1a   :  { %556 = vmatpush1.bf16.msra.mxu0 %v1480_v9  ;;  %1470 = vmatpush1.bf16.msra.mxu1 %v1480_v9  ;;  %v1578_v9 = vld [vmem:[%s2177_s0 + $0x1f0] ss:$8 sps:$4 sm:$0xff]  }
  0x1b   :  { %557 = vmatprep.subr.bf16.mxu0 %v1579_v0  ;;  %1462 = vmatprep.subr.bf16.mxu1 %v1579_v0 }
  0x1e   :  { %558 = vmatpush1.bf16.msra.mxu0 %v1481_v10  ;;  %1471 = vmatpush1.bf16.msra.mxu1 %v1481_v10  ;;  %v1854_v10 = vld [vmem:[%s2178_s2] ss:$0 sm:$0xff] }
  0x1f   :  { %559 = vmatprep.subr.bf16.mxu0 %v1579_v0  ;;  %1463 = vmatprep.subr.bf16.mxu1 %v1579_v0  ;;  %v1565_v0 = vld [vmem:[%s2177_s0 + $0xd0] ss:$8 sps:$4 sm:$0xff]  }
  0x22   :  { %560 = vmatpush1.bf16.msra.mxu0 %v1482_v11  ;;  %1472 = vmatpush1.bf16.msra.mxu1 %v1482_v11 }
  0x25   :  { %576 = vmatmul.mubr.bf16.vlgmr.msra.gmra.mrb[0].mxu0 %v1483_v12  ;;  %704 = vmatmul.mubr.bf16.vlgmr.msra.gmra.mrb[0].mxu1 %v1486_v13 }
  0x26   :  { %1296 = vmatprep.mubr.msk.bf16.mxu0 %vm446_vm0, %v1489_v14  ;;  %1312 = vmatprep.mubr.msk.bf16.mxu1 %vm446_vm0, %v1491_v15 }
  0x2d   :  { %584 = vmatmul.mubr.bf16.gmra.mrb[4].mxu0 %v1493_v16  ;;  %712 = vmatmul.mubr.bf16.gmra.mrb[4].mxu1 %v1494_v17 }
  0x2e   :  { %1297 = vmatprep.mubr.msk.bf16.mxu0 %vm446_vm0, %v1495_v18  ;;  %1313 = vmatprep.mubr.msk.bf16.mxu1 %vm446_vm0, %v1497_v19 }
  0x35   :  { %592 = vmatmul.mubr.bf16.gmra.mrb[8].mxu0 %v1499_v20  ;;  %720 = vmatmul.mubr.bf16.gmra.mrb[8].mxu1 %v1500_v21 }
  0x36   :  { %1298 = vmatprep.mubr.msk.bf16.mxu0 %vm446_vm0, %v1501_v22  ;;  %1314 = vmatprep.mubr.msk.bf16.mxu1 %vm446_vm0, %v1503_v23 }
  0x3d   :  { %600 = vmatmul.mubr.bf16.gmra.mrb[12].mxu0 %v1505_v24  ;;  %728 = vmatmul.mubr.bf16.gmra.mrb[12].mxu1 %v1506_v25 }
  0x3e   :  { %1299 = vmatprep.mubr.msk.bf16.mxu0 %vm446_vm0, %v1507_v26  ;;  %1315 = vmatprep.mubr.msk.bf16.mxu1 %vm446_vm0, %v1509_v27 }
  0x45   :  { %608 = vmatmul.mubr.bf16.gmra.mrb[16].mxu0 %v1511_v28  ;;  %736 = vmatmul.mubr.bf16.gmra.mrb[16].mxu1 %v1512_v29 }
  0x46   :  { %1300 = vmatprep.mubr.msk.bf16.mxu0 %vm446_vm0, %v1513_v30  ;;  %1316 = vmatprep.mubr.msk.bf16.mxu1 %vm446_vm0, %v1515_v31 }
  0x4d   :  { %616 = vmatmul.mubr.bf16.gmra.mrb[20].mxu0 %v1517_v32  ;;  %744 = vmatmul.mubr.bf16.gmra.mrb[20].mxu1 %v1518_v33 }
  0x4e   :  { %1301 = vmatprep.mubr.msk.bf16.mxu0 %vm446_vm0, %v1519_v34  ;;  %1317 = vmatprep.mubr.msk.bf16.mxu1 %vm446_vm0, %v1521_v35 }
  0x55   :  { %624 = vmatmul.mubr.bf16.gmra.mrb[24].mxu0 %v1523_v36  ;;  %752 = vmatmul.mubr.bf16.gmra.mrb[24].mxu1 %v1524_v37 }
  0x56   :  { %1302 = vmatprep.mubr.msk.bf16.mxu0 %vm446_vm0, %v1525_v38  ;;  %1318 = vmatprep.mubr.msk.bf16.mxu1 %vm446_vm0, %v1527_v39 }
  0x5d   :  { %632 = vmatmul.mubr.bf16.gmra.mrb[28].mxu0 %v1529_v40  ;;  %760 = vmatmul.mubr.bf16.gmra.mrb[28].mxu1 %v1530_v41 }
  0x5e   :  { %1303 = vmatprep.mubr.msk.bf16.mxu0 %vm446_vm0, %v1531_v42  ;;  %1319 = vmatprep.mubr.msk.bf16.mxu1 %vm446_vm0, %v1533_v43 }
  0x65   :  { %640 = vmatmul.mubr.bf16.gmra.mrb[32].mxu0 %v1535_v44  ;;  %768 = vmatmul.mubr.bf16.gmra.mrb[32].mxu1 %v1536_v45 }
  0x66   :  { %1304 = vmatprep.mubr.msk.bf16.mxu0 %vm446_vm0, %v1537_v46  ;;  %1320 = vmatprep.mubr.msk.bf16.mxu1 %vm446_vm0, %v1539_v47 }
  0x6d   :  { %648 = vmatmul.mubr.bf16.gmra.mrb[36].mxu0 %v1541_v48  ;;  %776 = vmatmul.mubr.bf16.gmra.mrb[36].mxu1 %v1542_v49 }
  0x6e   :  { %1305 = vmatprep.mubr.msk.bf16.mxu0 %vm446_vm0, %v1543_v50  ;;  %1321 = vmatprep.mubr.msk.bf16.mxu1 %vm446_vm0, %v1545_v51 }
  0x75   :  { %656 = vmatmul.mubr.bf16.gmra.mrb[40].mxu0 %v1547_v52  ;;  %784 = vmatmul.mubr.bf16.gmra.mrb[40].mxu1 %v1548_v53 }
  0x76   :  { %1306 = vmatprep.mubr.msk.bf16.mxu0 %vm446_vm0, %v1549_v54  ;;  %1322 = vmatprep.mubr.msk.bf16.mxu1 %vm446_vm0, %v1551_v55 }
  0x7d   :  { %664 = vmatmul.mubr.bf16.gmra.mrb[44].mxu0 %v1553_v56  ;;  %792 = vmatmul.mubr.bf16.gmra.mrb[44].mxu1 %v1554_v57 }
  0x7e   :  { %1307 = vmatprep.mubr.msk.bf16.mxu0 %vm446_vm0, %v1555_v58  ;;  %1323 = vmatprep.mubr.msk.bf16.mxu1 %vm446_vm0, %v1557_v59 }
  0x85   :  { %672 = vmatmul.mubr.bf16.gmra.mrb[48].mxu0 %v1559_v60  ;;  %800 = vmatmul.mubr.bf16.gmra.mrb[48].mxu1 %v1560_v61 }
  0x86   :  { %1308 = vmatprep.mubr.msk.bf16.mxu0 %vm446_vm0, %v1561_v62  ;;  %1324 = vmatprep.mubr.msk.bf16.mxu1 %vm446_vm0, %v1563_v63 }
  0x8d   :  { %680 = vmatmul.mubr.bf16.gmra.mrb[52].mxu0 %v1565_v0  ;;  %808 = vmatmul.mubr.bf16.gmra.mrb[52].mxu1 %v1566_v1 }
  0x8e   :  { %1309 = vmatprep.mubr.msk.bf16.mxu0 %vm446_vm0, %v1567_v2  ;;  %1325 = vmatprep.mubr.msk.bf16.mxu1 %vm446_vm0, %v1569_v3 }
  0x95   :  { %688 = vmatmul.mubr.bf16.gmra.mrb[56].mxu0 %v1571_v4  ;;  %816 = vmatmul.mubr.bf16.gmra.mrb[56].mxu1 %v1572_v5 }
  0x96   :  { %1310 = vmatprep.mubr.msk.bf16.mxu0 %vm446_vm0, %v1573_v6  ;;  %1326 = vmatprep.mubr.msk.bf16.mxu1 %vm446_vm0, %v1575_v7 }
  0x9d   :  { %696 = vmatmul.mubr.bf16.gmra.mrb[60].mxu0 %v1577_v8  ;;  %824 = vmatmul.mubr.bf16.gmra.mrb[60].mxu1 %v1578_v9 }
  0xf8   :  { %v577_v11 = vpop.f32.mrb[0].mxu0  ;;  %v705_v12 = vpop.f32.mrb[0].mxu1 }
  0xf9   :  { %v578_v13 = vadd.f32 %v1854_v10, %v577_v11  ;;  %v706_v14 = vadd.f32 %v1854_v10, %v705_v12  ;;  %v579_v15 = vpop.f32.mrb[1].mxu0  ;;  %v707_v16 = vpop.f32.mrb[1].mxu1 }
  0xfa   :  { %v580_v17 = vpop.f32.mrb[2].mxu0  ;;  %v708_v18 = vpop.f32.mrb[2].mxu1 }
  0xfb   :  { %v832_v19 = vmax.f32 %v578_v13, 0.0  ;;  %v864_v20 = vmax.f32 %v706_v14, 0.0  ;;  %v581_v21 = vadd.f32 %v1854_v10, %v580_v17  ;;  %v709_v22 = vadd.f32 %v1854_v10, %v708_v18  ;;  %v582_v23 = vpop.f32.mrb[3].mxu0  ;;  %v710_v24 = vpop.f32.mrb[3].mxu1 }
  0xfd   :  { %v1391_v25 = vpack.c.bf16 %v832_v19, %v832_v19  ;;  %v1423_v26 = vpack.c.bf16 %v864_v20, %v864_v20  ;;  %v833_v27 = vmax.f32 %v581_v21, 0.0  ;;  %v865_v28 = vmax.f32 %v709_v22, 0.0 }
  0xff   :  { %1153 = vst.msk [vmem:[%s2179_s3] sm:$0xf] %vm1152_vm1, %v1391_v25  ;;  %1185 = vst.msk [vmem:[%s2179_s3 + $0x80] sm:$0xf] %vm1152_vm1, %v1423_v26  ;;  %v1392_v29 = vpack.c.bf16 %v833_v27, %v833_v27  ;;  %v1424_v30 = vpack.c.bf16 %v865_v28, %v865_v28 }
 0x100   :  { %v585_v31 = vpop.f32.mrb[4].mxu0  ;;  %v713_v32 = vpop.f32.mrb[4].mxu1 }
 0x101   :  { %1154 = vst.msk [vmem:[%s2179_s3 + $0x4] sm:$0xf] %vm1152_vm1, %v1392_v29  ;;  %1186 = vst.msk [vmem:[%s2179_s3 + $0x84] sm:$0xf] %vm1152_vm1, %v1424_v30  ;;  %v586_v33 = vadd.f32 %v1854_v10, %v585_v31  ;;  %v714_v34 = vadd.f32 %v1854_v10, %v713_v32  ;;  %v587_v35 = vpop.f32.mrb[5].mxu0  ;;  %v715_v36 = vpop.f32.mrb[5].mxu1 }
 0x102   :  { %v588_v37 = vpop.f32.mrb[6].mxu0  ;;  %v716_v38 = vpop.f32.mrb[6].mxu1 }
 0x103   :  { %v834_v39 = vmax.f32 %v586_v33, 0.0  ;;  %v866_v40 = vmax.f32 %v714_v34, 0.0  ;;  %v589_v41 = vadd.f32 %v1854_v10, %v588_v37  ;;  %v717_v42 = vadd.f32 %v1854_v10, %v716_v38  ;;  %v590_v43 = vpop.f32.mrb[7].mxu0  ;;  %v718_v44 = vpop.f32.mrb[7].mxu1 }
 0x105   :  { %v1393_v45 = vpack.c.bf16 %v834_v39, %v834_v39  ;;  %v1425_v46 = vpack.c.bf16 %v866_v40, %v866_v40  ;;  %v835_v47 = vmax.f32 %v589_v41, 0.0  ;;  %v867_v48 = vmax.f32 %v717_v42, 0.0 }
 0x107   :  { %1155 = vst.msk [vmem:[%s2179_s3 + $0x8] sm:$0xf] %vm1152_vm1, %v1393_v45  ;;  %1187 = vst.msk [vmem:[%s2179_s3 + $0x88] sm:$0xf] %vm1152_vm1, %v1425_v46  ;;  %v1394_v49 = vpack.c.bf16 %v835_v47, %v835_v47  ;;  %v1426_v50 = vpack.c.bf16 %v867_v48, %v867_v48 }
 0x108   :  { %v593_v51 = vpop.f32.mrb[8].mxu0  ;;  %v721_v52 = vpop.f32.mrb[8].mxu1 }
 0x109   :  { %1156 = vst.msk [vmem:[%s2179_s3 + $0xc] sm:$0xf] %vm1152_vm1, %v1394_v49  ;;  %1188 = vst.msk [vmem:[%s2179_s3 + $0x8c] sm:$0xf] %vm1152_vm1, %v1426_v50  ;;  %v594_v53 = vadd.f32 %v1854_v10, %v593_v51  ;;  %v722_v54 = vadd.f32 %v1854_v10, %v721_v52  ;;  %v595_v55 = vpop.f32.mrb[9].mxu0  ;;  %v723_v56 = vpop.f32.mrb[9].mxu1 }
 0x10a   :  { %v596_v57 = vpop.f32.mrb[10].mxu0  ;;  %v724_v58 = vpop.f32.mrb[10].mxu1 }
 0x10b   :  { %v836_v59 = vmax.f32 %v594_v53, 0.0  ;;  %v868_v60 = vmax.f32 %v722_v54, 0.0  ;;  %v597_v61 = vadd.f32 %v1854_v10, %v596_v57  ;;  %v725_v62 = vadd.f32 %v1854_v10, %v724_v58  ;;  %v598_v63 = vpop.f32.mrb[11].mxu0  ;;  %v726_v0 = vpop.f32.mrb[11].mxu1 }
 0x10d   :  { %v1395_v1 = vpack.c.bf16 %v836_v59, %v836_v59  ;;  %v1427_v2 = vpack.c.bf16 %v868_v60, %v868_v60  ;;  %v837_v3 = vmax.f32 %v597_v61, 0.0  ;;  %v869_v4 = vmax.f32 %v725_v62, 0.0 }
 0x10f   :  { %1157 = vst.msk [vmem:[%s2179_s3 + $0x10] sm:$0xf] %vm1152_vm1, %v1395_v1  ;;  %1189 = vst.msk [vmem:[%s2179_s3 + $0x90] sm:$0xf] %vm1152_vm1, %v1427_v2  ;;  %v1396_v5 = vpack.c.bf16 %v837_v3, %v837_v3  ;;  %v1428_v6 = vpack.c.bf16 %v869_v4, %v869_v4 }
 0x110   :  { %v601_v7 = vpop.f32.mrb[12].mxu0  ;;  %v729_v8 = vpop.f32.mrb[12].mxu1 }
 0x111   :  { %1158 = vst.msk [vmem:[%s2179_s3 + $0x14] sm:$0xf] %vm1152_vm1, %v1396_v5  ;;  %1190 = vst.msk [vmem:[%s2179_s3 + $0x94] sm:$0xf] %vm1152_vm1, %v1428_v6  ;;  %v602_v9 = vadd.f32 %v1854_v10, %v601_v7  ;;  %v730_v11 = vadd.f32 %v1854_v10, %v729_v8  ;;  %v603_v12 = vpop.f32.mrb[13].mxu0  ;;  %v731_v13 = vpop.f32.mrb[13].mxu1 }
 0x112   :  { %v604_v14 = vpop.f32.mrb[14].mxu0  ;;  %v732_v15 = vpop.f32.mrb[14].mxu1 }
 0x113   :  { %v838_v16 = vmax.f32 %v602_v9, 0.0  ;;  %v870_v17 = vmax.f32 %v730_v11, 0.0  ;;  %v605_v18 = vadd.f32 %v1854_v10, %v604_v14  ;;  %v733_v19 = vadd.f32 %v1854_v10, %v732_v15  ;;  %v606_v20 = vpop.f32.mrb[15].mxu0  ;;  %v734_v21 = vpop.f32.mrb[15].mxu1 }
 0x115   :  { %v1397_v22 = vpack.c.bf16 %v838_v16, %v838_v16  ;;  %v1429_v23 = vpack.c.bf16 %v870_v17, %v870_v17  ;;  %v839_v24 = vmax.f32 %v605_v18, 0.0  ;;  %v871_v25 = vmax.f32 %v733_v19, 0.0 }
 0x117   :  { %1159 = vst.msk [vmem:[%s2179_s3 + $0x18] sm:$0xf] %vm1152_vm1, %v1397_v22  ;;  %1191 = vst.msk [vmem:[%s2179_s3 + $0x98] sm:$0xf] %vm1152_vm1, %v1429_v23  ;;  %v1398_v26 = vpack.c.bf16 %v839_v24, %v839_v24  ;;  %v1430_v27 = vpack.c.bf16 %v871_v25, %v871_v25 }
 0x118   :  { %v609_v28 = vpop.f32.mrb[16].mxu0  ;;  %v737_v29 = vpop.f32.mrb[16].mxu1 }
 0x119   :  { %1160 = vst.msk [vmem:[%s2179_s3 + $0x1c] sm:$0xf] %vm1152_vm1, %v1398_v26  ;;  %1192 = vst.msk [vmem:[%s2179_s3 + $0x9c] sm:$0xf] %vm1152_vm1, %v1430_v27  ;;  %v610_v30 = vadd.f32 %v1854_v10, %v609_v28  ;;  %v738_v31 = vadd.f32 %v1854_v10, %v737_v29  ;;  %v611_v32 = vpop.f32.mrb[17].mxu0  ;;  %v739_v33 = vpop.f32.mrb[17].mxu1 }
 0x11a   :  { %v612_v34 = vpop.f32.mrb[18].mxu0  ;;  %v740_v35 = vpop.f32.mrb[18].mxu1 }
 0x11b   :  { %v840_v36 = vmax.f32 %v610_v30, 0.0  ;;  %v872_v37 = vmax.f32 %v738_v31, 0.0  ;;  %v613_v38 = vadd.f32 %v1854_v10, %v612_v34  ;;  %v741_v39 = vadd.f32 %v1854_v10, %v740_v35  ;;  %v614_v40 = vpop.f32.mrb[19].mxu0  ;;  %v742_v41 = vpop.f32.mrb[19].mxu1 }
 0x11d   :  { %v1399_v42 = vpack.c.bf16 %v840_v36, %v840_v36  ;;  %v1431_v43 = vpack.c.bf16 %v872_v37, %v872_v37  ;;  %v841_v44 = vmax.f32 %v613_v38, 0.0  ;;  %v873_v45 = vmax.f32 %v741_v39, 0.0 }
 0x11f   :  { %1161 = vst.msk [vmem:[%s2179_s3 + $0x20] sm:$0xf] %vm1152_vm1, %v1399_v42  ;;  %1193 = vst.msk [vmem:[%s2179_s3 + $0xa0] sm:$0xf] %vm1152_vm1, %v1431_v43  ;;  %v1400_v46 = vpack.c.bf16 %v841_v44, %v841_v44  ;;  %v1432_v47 = vpack.c.bf16 %v873_v45, %v873_v45 }
 0x120   :  { %v617_v48 = vpop.f32.mrb[20].mxu0  ;;  %v745_v49 = vpop.f32.mrb[20].mxu1 }
 0x121   :  { %1162 = vst.msk [vmem:[%s2179_s3 + $0x24] sm:$0xf] %vm1152_vm1, %v1400_v46  ;;  %1194 = vst.msk [vmem:[%s2179_s3 + $0xa4] sm:$0xf] %vm1152_vm1, %v1432_v47  ;;  %v618_v50 = vadd.f32 %v1854_v10, %v617_v48  ;;  %v746_v51 = vadd.f32 %v1854_v10, %v745_v49  ;;  %v619_v52 = vpop.f32.mrb[21].mxu0  ;;  %v747_v53 = vpop.f32.mrb[21].mxu1 }
 0x122   :  { %v620_v54 = vpop.f32.mrb[22].mxu0  ;;  %v748_v55 = vpop.f32.mrb[22].mxu1 }
 0x123   :  { %v842_v56 = vmax.f32 %v618_v50, 0.0  ;;  %v874_v57 = vmax.f32 %v746_v51, 0.0  ;;  %v621_v58 = vadd.f32 %v1854_v10, %v620_v54  ;;  %v749_v59 = vadd.f32 %v1854_v10, %v748_v55  ;;  %v622_v60 = vpop.f32.mrb[23].mxu0  ;;  %v750_v61 = vpop.f32.mrb[23].mxu1 }
 0x125   :  { %v1401_v62 = vpack.c.bf16 %v842_v56, %v842_v56  ;;  %v1433_v63 = vpack.c.bf16 %v874_v57, %v874_v57  ;;  %v843_v0 = vmax.f32 %v621_v58, 0.0  ;;  %v875_v1 = vmax.f32 %v749_v59, 0.0 }
 0x127   :  { %1163 = vst.msk [vmem:[%s2179_s3 + $0x28] sm:$0xf] %vm1152_vm1, %v1401_v62  ;;  %1195 = vst.msk [vmem:[%s2179_s3 + $0xa8] sm:$0xf] %vm1152_vm1, %v1433_v63  ;;  %v1402_v2 = vpack.c.bf16 %v843_v0, %v843_v0  ;;  %v1434_v3 = vpack.c.bf16 %v875_v1, %v875_v1 }
 0x128   :  { %v625_v4 = vpop.f32.mrb[24].mxu0  ;;  %v753_v5 = vpop.f32.mrb[24].mxu1 }
 0x129   :  { %1164 = vst.msk [vmem:[%s2179_s3 + $0x2c] sm:$0xf] %vm1152_vm1, %v1402_v2  ;;  %1196 = vst.msk [vmem:[%s2179_s3 + $0xac] sm:$0xf] %vm1152_vm1, %v1434_v3  ;;  %v626_v6 = vadd.f32 %v1854_v10, %v625_v4  ;;  %v754_v7 = vadd.f32 %v1854_v10, %v753_v5  ;;  %v627_v8 = vpop.f32.mrb[25].mxu0  ;;  %v755_v9 = vpop.f32.mrb[25].mxu1 }
 0x12a   :  { %v628_v11 = vpop.f32.mrb[26].mxu0  ;;  %v756_v12 = vpop.f32.mrb[26].mxu1 }
 0x12b   :  { %v844_v13 = vmax.f32 %v626_v6, 0.0  ;;  %v876_v14 = vmax.f32 %v754_v7, 0.0  ;;  %v629_v15 = vadd.f32 %v1854_v10, %v628_v11  ;;  %v757_v16 = vadd.f32 %v1854_v10, %v756_v12  ;;  %v630_v17 = vpop.f32.mrb[27].mxu0  ;;  %v758_v18 = vpop.f32.mrb[27].mxu1 }
 0x12d   :  { %v1403_v19 = vpack.c.bf16 %v844_v13, %v844_v13  ;;  %v1435_v20 = vpack.c.bf16 %v876_v14, %v876_v14  ;;  %v845_v21 = vmax.f32 %v629_v15, 0.0  ;;  %v877_v22 = vmax.f32 %v757_v16, 0.0 }
 0x12f   :  { %1165 = vst.msk [vmem:[%s2179_s3 + $0x30] sm:$0xf] %vm1152_vm1, %v1403_v19  ;;  %1197 = vst.msk [vmem:[%s2179_s3 + $0xb0] sm:$0xf] %vm1152_vm1, %v1435_v20  ;;  %v1404_v23 = vpack.c.bf16 %v845_v21, %v845_v21  ;;  %v1436_v24 = vpack.c.bf16 %v877_v22, %v877_v22 }
 0x130   :  { %v633_v25 = vpop.f32.mrb[28].mxu0  ;;  %v761_v26 = vpop.f32.mrb[28].mxu1 }
 0x131   :  { %1166 = vst.msk [vmem:[%s2179_s3 + $0x34] sm:$0xf] %vm1152_vm1, %v1404_v23  ;;  %1198 = vst.msk [vmem:[%s2179_s3 + $0xb4] sm:$0xf] %vm1152_vm1, %v1436_v24  ;;  %v634_v27 = vadd.f32 %v1854_v10, %v633_v25  ;;  %v762_v28 = vadd.f32 %v1854_v10, %v761_v26  ;;  %v635_v29 = vpop.f32.mrb[29].mxu0  ;;  %v763_v30 = vpop.f32.mrb[29].mxu1 }
 0x132   :  { %v636_v31 = vpop.f32.mrb[30].mxu0  ;;  %v764_v32 = vpop.f32.mrb[30].mxu1 }
 0x133   :  { %v846_v33 = vmax.f32 %v634_v27, 0.0  ;;  %v878_v34 = vmax.f32 %v762_v28, 0.0  ;;  %v637_v35 = vadd.f32 %v1854_v10, %v636_v31  ;;  %v765_v36 = vadd.f32 %v1854_v10, %v764_v32  ;;  %v638_v37 = vpop.f32.mrb[31].mxu0  ;;  %v766_v38 = vpop.f32.mrb[31].mxu1 }
 0x135   :  { %v1405_v39 = vpack.c.bf16 %v846_v33, %v846_v33  ;;  %v1437_v40 = vpack.c.bf16 %v878_v34, %v878_v34  ;;  %v847_v41 = vmax.f32 %v637_v35, 0.0  ;;  %v879_v42 = vmax.f32 %v765_v36, 0.0 }
 0x137   :  { %1167 = vst.msk [vmem:[%s2179_s3 + $0x38] sm:$0xf] %vm1152_vm1, %v1405_v39  ;;  %1199 = vst.msk [vmem:[%s2179_s3 + $0xb8] sm:$0xf] %vm1152_vm1, %v1437_v40  ;;  %v1406_v43 = vpack.c.bf16 %v847_v41, %v847_v41  ;;  %v1438_v44 = vpack.c.bf16 %v879_v42, %v879_v42 }
 0x138   :  { %v641_v45 = vpop.f32.mrb[32].mxu0  ;;  %v769_v46 = vpop.f32.mrb[32].mxu1 }
 0x139   :  { %1168 = vst.msk [vmem:[%s2179_s3 + $0x3c] sm:$0xf] %vm1152_vm1, %v1406_v43  ;;  %1200 = vst.msk [vmem:[%s2179_s3 + $0xbc] sm:$0xf] %vm1152_vm1, %v1438_v44  ;;  %v642_v47 = vadd.f32 %v1854_v10, %v641_v45  ;;  %v770_v48 = vadd.f32 %v1854_v10, %v769_v46  ;;  %v643_v49 = vpop.f32.mrb[33].mxu0  ;;  %v771_v50 = vpop.f32.mrb[33].mxu1 }
 0x13a   :  { %v644_v51 = vpop.f32.mrb[34].mxu0  ;;  %v772_v52 = vpop.f32.mrb[34].mxu1 }
 0x13b   :  { %v848_v53 = vmax.f32 %v642_v47, 0.0  ;;  %v880_v54 = vmax.f32 %v770_v48, 0.0  ;;  %v645_v55 = vadd.f32 %v1854_v10, %v644_v51  ;;  %v773_v56 = vadd.f32 %v1854_v10, %v772_v52  ;;  %v646_v57 = vpop.f32.mrb[35].mxu0  ;;  %v774_v58 = vpop.f32.mrb[35].mxu1 }
 0x13d   :  { %v1407_v59 = vpack.c.bf16 %v848_v53, %v848_v53  ;;  %v1439_v60 = vpack.c.bf16 %v880_v54, %v880_v54  ;;  %v849_v61 = vmax.f32 %v645_v55, 0.0  ;;  %v881_v62 = vmax.f32 %v773_v56, 0.0 }
 0x13f   :  { %1169 = vst.msk [vmem:[%s2179_s3 + $0x40] sm:$0xf] %vm1152_vm1, %v1407_v59  ;;  %1201 = vst.msk [vmem:[%s2179_s3 + $0xc0] sm:$0xf] %vm1152_vm1, %v1439_v60  ;;  %v1408_v63 = vpack.c.bf16 %v849_v61, %v849_v61  ;;  %v1440_v0 = vpack.c.bf16 %v881_v62, %v881_v62 }
 0x140   :  { %v649_v1 = vpop.f32.mrb[36].mxu0  ;;  %v777_v2 = vpop.f32.mrb[36].mxu1 }
 0x141   :  { %1170 = vst.msk [vmem:[%s2179_s3 + $0x44] sm:$0xf] %vm1152_vm1, %v1408_v63  ;;  %1202 = vst.msk [vmem:[%s2179_s3 + $0xc4] sm:$0xf] %vm1152_vm1, %v1440_v0  ;;  %v650_v3 = vadd.f32 %v1854_v10, %v649_v1  ;;  %v778_v4 = vadd.f32 %v1854_v10, %v777_v2  ;;  %v651_v5 = vpop.f32.mrb[37].mxu0  ;;  %v779_v6 = vpop.f32.mrb[37].mxu1 }
 0x142   :  { %v652_v7 = vpop.f32.mrb[38].mxu0  ;;  %v780_v8 = vpop.f32.mrb[38].mxu1 }
 0x143   :  { %v850_v9 = vmax.f32 %v650_v3, 0.0  ;;  %v882_v11 = vmax.f32 %v778_v4, 0.0  ;;  %v653_v12 = vadd.f32 %v1854_v10, %v652_v7  ;;  %v781_v13 = vadd.f32 %v1854_v10, %v780_v8  ;;  %v654_v14 = vpop.f32.mrb[39].mxu0  ;;  %v782_v15 = vpop.f32.mrb[39].mxu1 }
 0x145   :  { %v1409_v16 = vpack.c.bf16 %v850_v9, %v850_v9  ;;  %v1441_v17 = vpack.c.bf16 %v882_v11, %v882_v11  ;;  %v851_v18 = vmax.f32 %v653_v12, 0.0  ;;  %v883_v19 = vmax.f32 %v781_v13, 0.0 }
 0x147   :  { %1171 = vst.msk [vmem:[%s2179_s3 + $0x48] sm:$0xf] %vm1152_vm1, %v1409_v16  ;;  %1203 = vst.msk [vmem:[%s2179_s3 + $0xc8] sm:$0xf] %vm1152_vm1, %v1441_v17  ;;  %v1410_v20 = vpack.c.bf16 %v851_v18, %v851_v18  ;;  %v1442_v21 = vpack.c.bf16 %v883_v19, %v883_v19 }
 0x148   :  { %v657_v22 = vpop.f32.mrb[40].mxu0  ;;  %v785_v23 = vpop.f32.mrb[40].mxu1 }
 0x149   :  { %1172 = vst.msk [vmem:[%s2179_s3 + $0x4c] sm:$0xf] %vm1152_vm1, %v1410_v20  ;;  %1204 = vst.msk [vmem:[%s2179_s3 + $0xcc] sm:$0xf] %vm1152_vm1, %v1442_v21  ;;  %v658_v24 = vadd.f32 %v1854_v10, %v657_v22  ;;  %v786_v25 = vadd.f32 %v1854_v10, %v785_v23  ;;  %v659_v26 = vpop.f32.mrb[41].mxu0  ;;  %v787_v27 = vpop.f32.mrb[41].mxu1 }
 0x14a   :  { %v660_v28 = vpop.f32.mrb[42].mxu0  ;;  %v788_v29 = vpop.f32.mrb[42].mxu1 }
 0x14b   :  { %v852_v30 = vmax.f32 %v658_v24, 0.0  ;;  %v884_v31 = vmax.f32 %v786_v25, 0.0  ;;  %v661_v32 = vadd.f32 %v1854_v10, %v660_v28  ;;  %v789_v33 = vadd.f32 %v1854_v10, %v788_v29  ;;  %v662_v34 = vpop.f32.mrb[43].mxu0  ;;  %v790_v35 = vpop.f32.mrb[43].mxu1 }
 0x14d   :  { %v1411_v36 = vpack.c.bf16 %v852_v30, %v852_v30  ;;  %v1443_v37 = vpack.c.bf16 %v884_v31, %v884_v31  ;;  %v853_v38 = vmax.f32 %v661_v32, 0.0  ;;  %v885_v39 = vmax.f32 %v789_v33, 0.0 }
 0x14f   :  { %1173 = vst.msk [vmem:[%s2179_s3 + $0x50] sm:$0xf] %vm1152_vm1, %v1411_v36  ;;  %1205 = vst.msk [vmem:[%s2179_s3 + $0xd0] sm:$0xf] %vm1152_vm1, %v1443_v37  ;;  %v1412_v40 = vpack.c.bf16 %v853_v38, %v853_v38  ;;  %v1444_v41 = vpack.c.bf16 %v885_v39, %v885_v39 }
 0x150   :  { %v665_v42 = vpop.f32.mrb[44].mxu0  ;;  %v793_v43 = vpop.f32.mrb[44].mxu1 }
 0x151   :  { %1174 = vst.msk [vmem:[%s2179_s3 + $0x54] sm:$0xf] %vm1152_vm1, %v1412_v40  ;;  %1206 = vst.msk [vmem:[%s2179_s3 + $0xd4] sm:$0xf] %vm1152_vm1, %v1444_v41  ;;  %v666_v44 = vadd.f32 %v1854_v10, %v665_v42  ;;  %v794_v45 = vadd.f32 %v1854_v10, %v793_v43  ;;  %v667_v46 = vpop.f32.mrb[45].mxu0  ;;  %v795_v47 = vpop.f32.mrb[45].mxu1 }
 0x152   :  { %v668_v48 = vpop.f32.mrb[46].mxu0  ;;  %v796_v49 = vpop.f32.mrb[46].mxu1 }
 0x153   :  { %v854_v50 = vmax.f32 %v666_v44, 0.0  ;;  %v886_v51 = vmax.f32 %v794_v45, 0.0  ;;  %v669_v52 = vadd.f32 %v1854_v10, %v668_v48  ;;  %v797_v53 = vadd.f32 %v1854_v10, %v796_v49  ;;  %v670_v54 = vpop.f32.mrb[47].mxu0  ;;  %v798_v55 = vpop.f32.mrb[47].mxu1 }
 0x155   :  { %v1413_v56 = vpack.c.bf16 %v854_v50, %v854_v50  ;;  %v1445_v57 = vpack.c.bf16 %v886_v51, %v886_v51  ;;  %v855_v58 = vmax.f32 %v669_v52, 0.0  ;;  %v887_v59 = vmax.f32 %v797_v53, 0.0 }
 0x157   :  { %1175 = vst.msk [vmem:[%s2179_s3 + $0x58] sm:$0xf] %vm1152_vm1, %v1413_v56  ;;  %1207 = vst.msk [vmem:[%s2179_s3 + $0xd8] sm:$0xf] %vm1152_vm1, %v1445_v57  ;;  %v1414_v60 = vpack.c.bf16 %v855_v58, %v855_v58  ;;  %v1446_v61 = vpack.c.bf16 %v887_v59, %v887_v59 }
 0x158   :  { %v673_v62 = vpop.f32.mrb[48].mxu0  ;;  %v801_v63 = vpop.f32.mrb[48].mxu1 }
 0x159   :  { %1176 = vst.msk [vmem:[%s2179_s3 + $0x5c] sm:$0xf] %vm1152_vm1, %v1414_v60  ;;  %1208 = vst.msk [vmem:[%s2179_s3 + $0xdc] sm:$0xf] %vm1152_vm1, %v1446_v61  ;;  %v674_v0 = vadd.f32 %v1854_v10, %v673_v62  ;;  %v802_v1 = vadd.f32 %v1854_v10, %v801_v63  ;;  %v675_v2 = vpop.f32.mrb[49].mxu0  ;;  %v803_v3 = vpop.f32.mrb[49].mxu1 }
 0x15a   :  { %v676_v4 = vpop.f32.mrb[50].mxu0  ;;  %v804_v5 = vpop.f32.mrb[50].mxu1 }
 0x15b   :  { %v856_v6 = vmax.f32 %v674_v0, 0.0  ;;  %v888_v7 = vmax.f32 %v802_v1, 0.0  ;;  %v677_v8 = vadd.f32 %v1854_v10, %v676_v4  ;;  %v805_v9 = vadd.f32 %v1854_v10, %v804_v5  ;;  %v678_v11 = vpop.f32.mrb[51].mxu0  ;;  %v806_v12 = vpop.f32.mrb[51].mxu1 }
 0x15d   :  { %v1415_v13 = vpack.c.bf16 %v856_v6, %v856_v6  ;;  %v1447_v14 = vpack.c.bf16 %v888_v7, %v888_v7  ;;  %v857_v15 = vmax.f32 %v677_v8, 0.0  ;;  %v889_v16 = vmax.f32 %v805_v9, 0.0 }
 0x15f   :  { %1177 = vst.msk [vmem:[%s2179_s3 + $0x60] sm:$0xf] %vm1152_vm1, %v1415_v13  ;;  %1209 = vst.msk [vmem:[%s2179_s3 + $0xe0] sm:$0xf] %vm1152_vm1, %v1447_v14  ;;  %v1416_v17 = vpack.c.bf16 %v857_v15, %v857_v15  ;;  %v1448_v18 = vpack.c.bf16 %v889_v16, %v889_v16 }
 0x160   :  { %v681_v19 = vpop.f32.mrb[52].mxu0  ;;  %v809_v20 = vpop.f32.mrb[52].mxu1 }
 0x161   :  { %1178 = vst.msk [vmem:[%s2179_s3 + $0x64] sm:$0xf] %vm1152_vm1, %v1416_v17  ;;  %1210 = vst.msk [vmem:[%s2179_s3 + $0xe4] sm:$0xf] %vm1152_vm1, %v1448_v18  ;;  %v682_v21 = vadd.f32 %v1854_v10, %v681_v19  ;;  %v810_v22 = vadd.f32 %v1854_v10, %v809_v20  ;;  %v683_v23 = vpop.f32.mrb[53].mxu0  ;;  %v811_v24 = vpop.f32.mrb[53].mxu1 }
 0x162   :  { %v684_v25 = vpop.f32.mrb[54].mxu0  ;;  %v812_v26 = vpop.f32.mrb[54].mxu1 }
 0x163   :  { %v858_v27 = vmax.f32 %v682_v21, 0.0  ;;  %v890_v28 = vmax.f32 %v810_v22, 0.0  ;;  %v685_v29 = vadd.f32 %v1854_v10, %v684_v25  ;;  %v813_v30 = vadd.f32 %v1854_v10, %v812_v26  ;;  %v686_v31 = vpop.f32.mrb[55].mxu0  ;;  %v814_v32 = vpop.f32.mrb[55].mxu1 }
 0x165   :  { %v1417_v33 = vpack.c.bf16 %v858_v27, %v858_v27  ;;  %v1449_v34 = vpack.c.bf16 %v890_v28, %v890_v28  ;;  %v859_v35 = vmax.f32 %v685_v29, 0.0  ;;  %v891_v36 = vmax.f32 %v813_v30, 0.0 }
 0x167   :  { %1179 = vst.msk [vmem:[%s2179_s3 + $0x68] sm:$0xf] %vm1152_vm1, %v1417_v33  ;;  %1211 = vst.msk [vmem:[%s2179_s3 + $0xe8] sm:$0xf] %vm1152_vm1, %v1449_v34  ;;  %v1418_v37 = vpack.c.bf16 %v859_v35, %v859_v35  ;;  %v1450_v38 = vpack.c.bf16 %v891_v36, %v891_v36 }
 0x168   :  { %v689_v39 = vpop.f32.mrb[56].mxu0  ;;  %v817_v40 = vpop.f32.mrb[56].mxu1 }
 0x169   :  { %1180 = vst.msk [vmem:[%s2179_s3 + $0x6c] sm:$0xf] %vm1152_vm1, %v1418_v37  ;;  %1212 = vst.msk [vmem:[%s2179_s3 + $0xec] sm:$0xf] %vm1152_vm1, %v1450_v38  ;;  %v690_v41 = vadd.f32 %v1854_v10, %v689_v39  ;;  %v818_v42 = vadd.f32 %v1854_v10, %v817_v40  ;;  %v691_v43 = vpop.f32.mrb[57].mxu0  ;;  %v819_v44 = vpop.f32.mrb[57].mxu1 }
 0x16a   :  { %v692_v45 = vpop.f32.mrb[58].mxu0  ;;  %v820_v46 = vpop.f32.mrb[58].mxu1 }
 0x16b   :  { %v860_v47 = vmax.f32 %v690_v41, 0.0  ;;  %v892_v48 = vmax.f32 %v818_v42, 0.0  ;;  %v693_v49 = vadd.f32 %v1854_v10, %v692_v45  ;;  %v821_v50 = vadd.f32 %v1854_v10, %v820_v46  ;;  %v694_v51 = vpop.f32.mrb[59].mxu0  ;;  %v822_v52 = vpop.f32.mrb[59].mxu1 }
 0x16d   :  { %v1419_v53 = vpack.c.bf16 %v860_v47, %v860_v47  ;;  %v1451_v54 = vpack.c.bf16 %v892_v48, %v892_v48  ;;  %v861_v55 = vmax.f32 %v693_v49, 0.0  ;;  %v893_v56 = vmax.f32 %v821_v50, 0.0 }
 0x16f   :  { %1181 = vst.msk [vmem:[%s2179_s3 + $0x70] sm:$0xf] %vm1152_vm1, %v1419_v53  ;;  %1213 = vst.msk [vmem:[%s2179_s3 + $0xf0] sm:$0xf] %vm1152_vm1, %v1451_v54  ;;  %v1420_v57 = vpack.c.bf16 %v861_v55, %v861_v55  ;;  %v1452_v58 = vpack.c.bf16 %v893_v56, %v893_v56 }
 0x170   :  { %v697_v59 = vpop.f32.mrb[60].mxu0  ;;  %v825_v60 = vpop.f32.mrb[60].mxu1 }
 0x171   :  { %1182 = vst.msk [vmem:[%s2179_s3 + $0x74] sm:$0xf] %vm1152_vm1, %v1420_v57  ;;  %1214 = vst.msk [vmem:[%s2179_s3 + $0xf4] sm:$0xf] %vm1152_vm1, %v1452_v58  ;;  %v698_v61 = vadd.f32 %v1854_v10, %v697_v59  ;;  %v826_v62 = vadd.f32 %v1854_v10, %v825_v60  ;;  %v699_v63 = vpop.f32.mrb[61].mxu0  ;;  %v827_v0 = vpop.f32.mrb[61].mxu1 }
 0x172   :  { %v700_v1 = vpop.f32.mrb[62].mxu0  ;;  %v828_v2 = vpop.f32.mrb[62].mxu1 }
 0x173   :  { %v862_v3 = vmax.f32 %v698_v61, 0.0  ;;  %v894_v4 = vmax.f32 %v826_v62, 0.0  ;;  %v701_v5 = vadd.f32 %v1854_v10, %v700_v1  ;;  %v829_v6 = vadd.f32 %v1854_v10, %v828_v2  ;;  %v702_v7 = vpop.f32.mrb[63].mxu0  ;;  %v830_v8 = vpop.f32.mrb[63].mxu1 }
 0x175   :  { %v1421_v9 = vpack.c.bf16 %v862_v3, %v862_v3  ;;  %v1453_v11 = vpack.c.bf16 %v894_v4, %v894_v4  ;;  %v863_v12 = vmax.f32 %v701_v5, 0.0  ;;  %v895_v13 = vmax.f32 %v829_v6, 0.0 }
 0x177   :  { %1183 = vst.msk [vmem:[%s2179_s3 + $0x78] sm:$0xf] %vm1152_vm1, %v1421_v9  ;;  %1215 = vst.msk [vmem:[%s2179_s3 + $0xf8] sm:$0xf] %vm1152_vm1, %v1453_v11  ;;  %v1422_v14 = vpack.c.bf16 %v863_v12, %v863_v12  ;;  %v1454_v15 = vpack.c.bf16 %v895_v13, %v895_v13 }
 0x179   :  { %1184 = vst.msk [vmem:[%s2179_s3 + $0x7c] sm:$0xf] %vm1152_vm1, %v1422_v14  ;;  %1216 = vst.msk [vmem:[%s2179_s3 + $0xfc] sm:$0xf] %vm1152_vm1, %v1454_v15 }

// kernel: _lambda_.34
= control target key start
LH: loop header
LB: loop body
LE: loop exit
PB: predicated region body
PF: predicated region fallthrough
CT: control target
= control target key end

     0   :  { %v1579_v0 = vmov 0   ;;  %vm446_vm0 = vcmask 130048   ;;  %vm1152_vm1 = vcmask 257024   ;;  %s2176_s1 = inlined_call_operand.vmem [shape: bf16[144,32], index: 1, kind: input, shape index: {}]   ;;  %s2177_s0 = inlined_call_operand.vmem [shape: bf16[512,144], index: 0, kind: input, shape index: {}]   ;;  %s2178_s2 = inlined_call_operand.vmem [shape: f32[1,32], index: 2, kind: input, shape index: {}]   ;;  %s2179_s3 = inlined_call_operand.vmem [shape: bf16[512,32], index: 3, kind: output, shape index: {}]  }
   0x1   :  { %543 = vmatprep.subr.bf16.mxu0 %v1579_v0  ;;  %1455 = vmatprep.subr.bf16.mxu1 %v1579_v0  ;;  %v1474_v1 = vld [vmem:[%s2176_s1] sm:$0xff]   ;;  %v1475_v2 = vld [vmem:[%s2176_s1 + $0x8] sm:$0xff]   ;;  %v1476_v3 = vld [vmem:[%s2176_s1 + $0x10] sm:$0xff]  }
   0x2   :  { %544 = vmatpush1.bf16.msra.mxu0 %v1474_v1  ;;  %1464 = vmatpush1.bf16.msra.mxu1 %v1474_v1  ;;  %v1477_v4 = vld [vmem:[%s2176_s1 + $0x18] sm:$0xff]   ;;  %v1485_v5 = vld [vmem:[%s2177_s0 + $0x4] ss:$8 sps:$4 sm:$0xff]   ;;  %v1480_v9 = vld [vmem:[%s2176_s1 + $0x30] sm:$0xff]  }
   0x3   :  { %545 = vmatprep.subr.bf16.mxu0 %v1579_v0  ;;  %1456 = vmatprep.subr.bf16.mxu1 %v1579_v0  ;;  %v1488_v6 = vld [vmem:[%s2177_s0 + $0x104] ss:$8 sps:$4 sm:$0xff]   ;;  %v1481_v10 = vld [vmem:[%s2176_s1 + $0x38] sm:$0xff]   ;;  %v1483_v12 = vld [vmem:[%s2177_s0] ss:$8 sps:$4 sm:$0xff]  }
   0x4   :  { %1295 = vmatprep.mubr.msk.bf16.mxu0 %vm446_vm0, %v1485_v5  ;;  %1311 = vmatprep.mubr.msk.bf16.mxu1 %vm446_vm0, %v1488_v6  ;;  %v1478_v7 = vld [vmem:[%s2176_s1 + $0x20] sm:$0xff]   ;;  %v1479_v8 = vld [vmem:[%s2176_s1 + $0x28] sm:$0xff]   ;;  %v1489_v14 = vld [vmem:[%s2177_s0 + $0x14] ss:$8 sps:$4 sm:$0xff]  }
   0x5   :  { %v1482_v11 = vld [vmem:[%s2176_s1 + $0x40] sm:$0xff]   ;;  %v1491_v15 = vld [vmem:[%s2177_s0 + $0x114] ss:$8 sps:$4 sm:$0xff]   ;;  %v1493_v16 = vld [vmem:[%s2177_s0 + $0x10] ss:$8 sps:$4 sm:$0xff]  }
   0x6   :  { %546 = vmatpush1.bf16.msra.mxu0 %v1475_v2  ;;  %1465 = vmatpush1.bf16.msra.mxu1 %v1475_v2  ;;  %v1486_v13 = vld [vmem:[%s2177_s0 + $0x100] ss:$8 sps:$4 sm:$0xff]   ;;  %v1494_v17 = vld [vmem:[%s2177_s0 + $0x110] ss:$8 sps:$4 sm:$0xff]   ;;  %v1495_v18 = vld [vmem:[%s2177_s0 + $0x24] ss:$8 sps:$4 sm:$0xff]  }
   0x7   :  { %547 = vmatprep.subr.bf16.mxu0 %v1579_v0  ;;  %1457 = vmatprep.subr.bf16.mxu1 %v1579_v0  ;;  %v1497_v19 = vld [vmem:[%s2177_s0 + $0x124] ss:$8 sps:$4 sm:$0xff]   ;;  %v1499_v20 = vld [vmem:[%s2177_s0 + $0x20] ss:$8 sps:$4 sm:$0xff]   ;;  %v1501_v22 = vld [vmem:[%s2177_s0 + $0x34] ss:$8 sps:$4 sm:$0xff]  }
   0x8   :  { %v1500_v21 = vld [vmem:[%s2177_s0 + $0x120] ss:$8 sps:$4 sm:$0xff]   ;;  %v1503_v23 = vld [vmem:[%s2177_s0 + $0x134] ss:$8 sps:$4 sm:$0xff]   ;;  %v1505_v24 = vld [vmem:[%s2177_s0 + $0x30] ss:$8 sps:$4 sm:$0xff]  }
   0x9   :  { %v1506_v25 = vld [vmem:[%s2177_s0 + $0x130] ss:$8 sps:$4 sm:$0xff]   ;;  %v1507_v26 = vld [vmem:[%s2177_s0 + $0x44] ss:$8 sps:$4 sm:$0xff]   ;;  %v1511_v28 = vld [vmem:[%s2177_s0 + $0x40] ss:$8 sps:$4 sm:$0xff]  }
   0xa   :  { %548 = vmatpush1.bf16.msra.mxu0 %v1476_v3  ;;  %1466 = vmatpush1.bf16.msra.mxu1 %v1476_v3  ;;  %v1509_v27 = vld [vmem:[%s2177_s0 + $0x144] ss:$8 sps:$4 sm:$0xff]   ;;  %v1512_v29 = vld [vmem:[%s2177_s0 + $0x140] ss:$8 sps:$4 sm:$0xff]   ;;  %v1513_v30 = vld [vmem:[%s2177_s0 + $0x54] ss:$8 sps:$4 sm:$0xff]  }
   0xb   :  { %549 = vmatprep.subr.bf16.mxu0 %v1579_v0  ;;  %1458 = vmatprep.subr.bf16.mxu1 %v1579_v0  ;;  %v1515_v31 = vld [vmem:[%s2177_s0 + $0x154] ss:$8 sps:$4 sm:$0xff]   ;;  %v1517_v32 = vld [vmem:[%s2177_s0 + $0x50] ss:$8 sps:$4 sm:$0xff]   ;;  %v1519_v34 = vld [vmem:[%s2177_s0 + $0x64] ss:$8 sps:$4 sm:$0xff]  }
   0xc   :  { %v1518_v33 = vld [vmem:[%s2177_s0 + $0x150] ss:$8 sps:$4 sm:$0xff]   ;;  %v1521_v35 = vld [vmem:[%s2177_s0 + $0x164] ss:$8 sps:$4 sm:$0xff]   ;;  %v1523_v36 = vld [vmem:[%s2177_s0 + $0x60] ss:$8 sps:$4 sm:$0xff]  }
   0xd   :  { %v1524_v37 = vld [vmem:[%s2177_s0 + $0x160] ss:$8 sps:$4 sm:$0xff]   ;;  %v1525_v38 = vld [vmem:[%s2177_s0 + $0x74] ss:$8 sps:$4 sm:$0xff]   ;;  %v1529_v40 = vld [vmem:[%s2177_s0 + $0x70] ss:$8 sps:$4 sm:$0xff]  }
   0xe   :  { %550 = vmatpush1.bf16.msra.mxu0 %v1477_v4  ;;  %1467 = vmatpush1.bf16.msra.mxu1 %v1477_v4  ;;  %v1527_v39 = vld [vmem:[%s2177_s0 + $0x174] ss:$8 sps:$4 sm:$0xff]   ;;  %v1530_v41 = vld [vmem:[%s2177_s0 + $0x170] ss:$8 sps:$4 sm:$0xff]   ;;  %v1531_v42 = vld [vmem:[%s2177_s0 + $0x84] ss:$8 sps:$4 sm:$0xff]  }
   0xf   :  { %551 = vmatprep.subr.bf16.mxu0 %v1579_v0  ;;  %1459 = vmatprep.subr.bf16.mxu1 %v1579_v0  ;;  %v1533_v43 = vld [vmem:[%s2177_s0 + $0x184] ss:$8 sps:$4 sm:$0xff]   ;;  %v1535_v44 = vld [vmem:[%s2177_s0 + $0x80] ss:$8 sps:$4 sm:$0xff]   ;;  %v1537_v46 = vld [vmem:[%s2177_s0 + $0x94] ss:$8 sps:$4 sm:$0xff]  }
  0x10   :  { %v1536_v45 = vld [vmem:[%s2177_s0 + $0x180] ss:$8 sps:$4 sm:$0xff]   ;;  %v1539_v47 = vld [vmem:[%s2177_s0 + $0x194] ss:$8 sps:$4 sm:$0xff]   ;;  %v1541_v48 = vld [vmem:[%s2177_s0 + $0x90] ss:$8 sps:$4 sm:$0xff]  }
  0x11   :  { %v1542_v49 = vld [vmem:[%s2177_s0 + $0x190] ss:$8 sps:$4 sm:$0xff]   ;;  %v1543_v50 = vld [vmem:[%s2177_s0 + $0xa4] ss:$8 sps:$4 sm:$0xff]   ;;  %v1547_v52 = vld [vmem:[%s2177_s0 + $0xa0] ss:$8 sps:$4 sm:$0xff]  }
  0x12   :  { %552 = vmatpush1.bf16.msra.mxu0 %v1478_v7  ;;  %1468 = vmatpush1.bf16.msra.mxu1 %v1478_v7  ;;  %v1545_v51 = vld [vmem:[%s2177_s0 + $0x1a4] ss:$8 sps:$4 sm:$0xff]   ;;  %v1548_v53 = vld [vmem:[%s2177_s0 + $0x1a0] ss:$8 sps:$4 sm:$0xff]   ;;  %v1549_v54 = vld [vmem:[%s2177_s0 + $0xb4] ss:$8 sps:$4 sm:$0xff]  }
  0x13   :  { %553 = vmatprep.subr.bf16.mxu0 %v1579_v0  ;;  %1460 = vmatprep.subr.bf16.mxu1 %v1579_v0  ;;  %v1551_v55 = vld [vmem:[%s2177_s0 + $0x1b4] ss:$8 sps:$4 sm:$0xff]   ;;  %v1553_v56 = vld [vmem:[%s2177_s0 + $0xb0] ss:$8 sps:$4 sm:$0xff]   ;;  %v1555_v58 = vld [vmem:[%s2177_s0 + $0xc4] ss:$8 sps:$4 sm:$0xff]  }
  0x14   :  { %v1554_v57 = vld [vmem:[%s2177_s0 + $0x1b0] ss:$8 sps:$4 sm:$0xff]   ;;  %v1557_v59 = vld [vmem:[%s2177_s0 + $0x1c4] ss:$8 sps:$4 sm:$0xff]   ;;  %v1559_v60 = vld [vmem:[%s2177_s0 + $0xc0] ss:$8 sps:$4 sm:$0xff]  }
  0x15   :  { %v1560_v61 = vld [vmem:[%s2177_s0 + $0x1c0] ss:$8 sps:$4 sm:$0xff]   ;;  %v1561_v62 = vld [vmem:[%s2177_s0 + $0xd4] ss:$8 sps:$4 sm:$0xff]   ;;  %v1566_v1 = vld [vmem:[%s2177_s0 + $0x1d0] ss:$8 sps:$4 sm:$0xff]  }
  0x16   :  { %554 = vmatpush1.bf16.msra.mxu0 %v1479_v8  ;;  %1469 = vmatpush1.bf16.msra.mxu1 %v1479_v8  ;;  %v1563_v63 = vld [vmem:[%s2177_s0 + $0x1d4] ss:$8 sps:$4 sm:$0xff]   ;;  %v1567_v2 = vld [vmem:[%s2177_s0 + $0xe4] ss:$8 sps:$4 sm:$0xff]   ;;  %v1571_v4 = vld [vmem:[%s2177_s0 + $0xe0] ss:$8 sps:$4 sm:$0xff]  }
  0x17   :  { %555 = vmatprep.subr.bf16.mxu0 %v1579_v0  ;;  %1461 = vmatprep.subr.bf16.mxu1 %v1579_v0  ;;  %v1569_v3 = vld [vmem:[%s2177_s0 + $0x1e4] ss:$8 sps:$4 sm:$0xff]   ;;  %v1572_v5 = vld [vmem:[%s2177_s0 + $0x1e0] ss:$8 sps:$4 sm:$0xff]   ;;  %v1573_v6 = vld [vmem:[%s2177_s0 + $0xf4] ss:$8 sps:$4 sm:$0xff]  }
  0x18   :  { %v1575_v7 = vld [vmem:[%s2177_s0 + $0x1f4] ss:$8 sps:$4 sm:$0xff]   ;;  %v1577_v8 = vld [vmem:[%s2177_s0 + $0xf0] ss:$8 sps:$4 sm:$0xff]  }
  0x1a   :  { %556 = vmatpush1.bf16.msra.mxu0 %v1480_v9  ;;  %1470 = vmatpush1.bf16.msra.mxu1 %v1480_v9  ;;  %v1578_v9 = vld [vmem:[%s2177_s0 + $0x1f0] ss:$8 sps:$4 sm:$0xff]  }
  0x1b   :  { %557 = vmatprep.subr.bf16.mxu0 %v1579_v0  ;;  %1462 = vmatprep.subr.bf16.mxu1 %v1579_v0 }
  0x1e   :  { %558 = vmatpush1.bf16.msra.mxu0 %v1481_v10  ;;  %1471 = vmatpush1.bf16.msra.mxu1 %v1481_v10  ;;  %v1854_v10 = vld [vmem:[%s2178_s2] ss:$0 sm:$0xff] }
  0x1f   :  { %559 = vmatprep.subr.bf16.mxu0 %v1579_v0  ;;  %1463 = vmatprep.subr.bf16.mxu1 %v1579_v0  ;;  %v1565_v0 = vld [vmem:[%s2177_s0 + $0xd0] ss:$8 sps:$4 sm:$0xff]  }
  0x22   :  { %560 = vmatpush1.bf16.msra.mxu0 %v1482_v11  ;;  %1472 = vmatpush1.bf16.msra.mxu1 %v1482_v11 }
  0x25   :  { %576 = vmatmul.mubr.bf16.vlgmr.msra.gmra.mrb[0].mxu0 %v1483_v12  ;;  %704 = vmatmul.mubr.bf16.vlgmr.msra.gmra.mrb[0].mxu1 %v1486_v13 }
  0x26   :  { %1296 = vmatprep.mubr.msk.bf16.mxu0 %vm446_vm0, %v1489_v14  ;;  %1312 = vmatprep.mubr.msk.bf16.mxu1 %vm446_vm0, %v1491_v15 }
  0x2d   :  { %584 = vmatmul.mubr.bf16.gmra.mrb[4].mxu0 %v1493_v16  ;;  %712 = vmatmul.mubr.bf16.gmra.mrb[4].mxu1 %v1494_v17 }
  0x2e   :  { %1297 = vmatprep.mubr.msk.bf16.mxu0 %vm446_vm0, %v1495_v18  ;;  %1313 = vmatprep.mubr.msk.bf16.mxu1 %vm446_vm0, %v1497_v19 }
  0x35   :  { %592 = vmatmul.mubr.bf16.gmra.mrb[8].mxu0 %v1499_v20  ;;  %720 = vmatmul.mubr.bf16.gmra.mrb[8].mxu1 %v1500_v21 }
  0x36   :  { %1298 = vmatprep.mubr.msk.bf16.mxu0 %vm446_vm0, %v1501_v22  ;;  %1314 = vmatprep.mubr.msk.bf16.mxu1 %vm446_vm0, %v1503_v23 }
  0x3d   :  { %600 = vmatmul.mubr.bf16.gmra.mrb[12].mxu0 %v1505_v24  ;;  %728 = vmatmul.mubr.bf16.gmra.mrb[12].mxu1 %v1506_v25 }
  0x3e   :  { %1299 = vmatprep.mubr.msk.bf16.mxu0 %vm446_vm0, %v1507_v26  ;;  %1315 = vmatprep.mubr.msk.bf16.mxu1 %vm446_vm0, %v1509_v27 }
  0x45   :  { %608 = vmatmul.mubr.bf16.gmra.mrb[16].mxu0 %v1511_v28  ;;  %736 = vmatmul.mubr.bf16.gmra.mrb[16].mxu1 %v1512_v29 }
  0x46   :  { %1300 = vmatprep.mubr.msk.bf16.mxu0 %vm446_vm0, %v1513_v30  ;;  %1316 = vmatprep.mubr.msk.bf16.mxu1 %vm446_vm0, %v1515_v31 }
  0x4d   :  { %616 = vmatmul.mubr.bf16.gmra.mrb[20].mxu0 %v1517_v32  ;;  %744 = vmatmul.mubr.bf16.gmra.mrb[20].mxu1 %v1518_v33 }
  0x4e   :  { %1301 = vmatprep.mubr.msk.bf16.mxu0 %vm446_vm0, %v1519_v34  ;;  %1317 = vmatprep.mubr.msk.bf16.mxu1 %vm446_vm0, %v1521_v35 }
  0x55   :  { %624 = vmatmul.mubr.bf16.gmra.mrb[24].mxu0 %v1523_v36  ;;  %752 = vmatmul.mubr.bf16.gmra.mrb[24].mxu1 %v1524_v37 }
  0x56   :  { %1302 = vmatprep.mubr.msk.bf16.mxu0 %vm446_vm0, %v1525_v38  ;;  %1318 = vmatprep.mubr.msk.bf16.mxu1 %vm446_vm0, %v1527_v39 }
  0x5d   :  { %632 = vmatmul.mubr.bf16.gmra.mrb[28].mxu0 %v1529_v40  ;;  %760 = vmatmul.mubr.bf16.gmra.mrb[28].mxu1 %v1530_v41 }
  0x5e   :  { %1303 = vmatprep.mubr.msk.bf16.mxu0 %vm446_vm0, %v1531_v42  ;;  %1319 = vmatprep.mubr.msk.bf16.mxu1 %vm446_vm0, %v1533_v43 }
  0x65   :  { %640 = vmatmul.mubr.bf16.gmra.mrb[32].mxu0 %v1535_v44  ;;  %768 = vmatmul.mubr.bf16.gmra.mrb[32].mxu1 %v1536_v45 }
  0x66   :  { %1304 = vmatprep.mubr.msk.bf16.mxu0 %vm446_vm0, %v1537_v46  ;;  %1320 = vmatprep.mubr.msk.bf16.mxu1 %vm446_vm0, %v1539_v47 }
  0x6d   :  { %648 = vmatmul.mubr.bf16.gmra.mrb[36].mxu0 %v1541_v48  ;;  %776 = vmatmul.mubr.bf16.gmra.mrb[36].mxu1 %v1542_v49 }
  0x6e   :  { %1305 = vmatprep.mubr.msk.bf16.mxu0 %vm446_vm0, %v1543_v50  ;;  %1321 = vmatprep.mubr.msk.bf16.mxu1 %vm446_vm0, %v1545_v51 }
  0x75   :  { %656 = vmatmul.mubr.bf16.gmra.mrb[40].mxu0 %v1547_v52  ;;  %784 = vmatmul.mubr.bf16.gmra.mrb[40].mxu1 %v1548_v53 }
  0x76   :  { %1306 = vmatprep.mubr.msk.bf16.mxu0 %vm446_vm0, %v1549_v54  ;;  %1322 = vmatprep.mubr.msk.bf16.mxu1 %vm446_vm0, %v1551_v55 }
  0x7d   :  { %664 = vmatmul.mubr.bf16.gmra.mrb[44].mxu0 %v1553_v56  ;;  %792 = vmatmul.mubr.bf16.gmra.mrb[44].mxu1 %v1554_v57 }
  0x7e   :  { %1307 = vmatprep.mubr.msk.bf16.mxu0 %vm446_vm0, %v1555_v58  ;;  %1323 = vmatprep.mubr.msk.bf16.mxu1 %vm446_vm0, %v1557_v59 }
  0x85   :  { %672 = vmatmul.mubr.bf16.gmra.mrb[48].mxu0 %v1559_v60  ;;  %800 = vmatmul.mubr.bf16.gmra.mrb[48].mxu1 %v1560_v61 }
  0x86   :  { %1308 = vmatprep.mubr.msk.bf16.mxu0 %vm446_vm0, %v1561_v62  ;;  %1324 = vmatprep.mubr.msk.bf16.mxu1 %vm446_vm0, %v1563_v63 }
  0x8d   :  { %680 = vmatmul.mubr.bf16.gmra.mrb[52].mxu0 %v1565_v0  ;;  %808 = vmatmul.mubr.bf16.gmra.mrb[52].mxu1 %v1566_v1 }
  0x8e   :  { %1309 = vmatprep.mubr.msk.bf16.mxu0 %vm446_vm0, %v1567_v2  ;;  %1325 = vmatprep.mubr.msk.bf16.mxu1 %vm446_vm0, %v1569_v3 }
  0x95   :  { %688 = vmatmul.mubr.bf16.gmra.mrb[56].mxu0 %v1571_v4  ;;  %816 = vmatmul.mubr.bf16.gmra.mrb[56].mxu1 %v1572_v5 }
  0x96   :  { %1310 = vmatprep.mubr.msk.bf16.mxu0 %vm446_vm0, %v1573_v6  ;;  %1326 = vmatprep.mubr.msk.bf16.mxu1 %vm446_vm0, %v1575_v7 }
  0x9d   :  { %696 = vmatmul.mubr.bf16.gmra.mrb[60].mxu0 %v1577_v8  ;;  %824 = vmatmul.mubr.bf16.gmra.mrb[60].mxu1 %v1578_v9 }
  0xf8   :  { %v577_v11 = vpop.f32.mrb[0].mxu0  ;;  %v705_v12 = vpop.f32.mrb[0].mxu1 }
  0xf9   :  { %v578_v13 = vadd.f32 %v1854_v10, %v577_v11  ;;  %v706_v14 = vadd.f32 %v1854_v10, %v705_v12  ;;  %v579_v15 = vpop.f32.mrb[1].mxu0  ;;  %v707_v16 = vpop.f32.mrb[1].mxu1 }
  0xfa   :  { %v580_v17 = vpop.f32.mrb[2].mxu0  ;;  %v708_v18 = vpop.f32.mrb[2].mxu1 }
  0xfb   :  { %v832_v19 = vmax.f32 %v578_v13, 0.0  ;;  %v864_v20 = vmax.f32 %v706_v14, 0.0  ;;  %v581_v21 = vadd.f32 %v1854_v10, %v580_v17  ;;  %v709_v22 = vadd.f32 %v1854_v10, %v708_v18  ;;  %v582_v23 = vpop.f32.mrb[3].mxu0  ;;  %v710_v24 = vpop.f32.mrb[3].mxu1 }
  0xfd   :  { %v1391_v25 = vpack.c.bf16 %v832_v19, %v832_v19  ;;  %v1423_v26 = vpack.c.bf16 %v864_v20, %v864_v20  ;;  %v833_v27 = vmax.f32 %v581_v21, 0.0  ;;  %v865_v28 = vmax.f32 %v709_v22, 0.0 }
  0xff   :  { %1153 = vst.msk [vmem:[%s2179_s3] sm:$0xf] %vm1152_vm1, %v1391_v25  ;;  %1185 = vst.msk [vmem:[%s2179_s3 + $0x80] sm:$0xf] %vm1152_vm1, %v1423_v26  ;;  %v1392_v29 = vpack.c.bf16 %v833_v27, %v833_v27  ;;  %v1424_v30 = vpack.c.bf16 %v865_v28, %v865_v28 }
 0x100   :  { %v585_v31 = vpop.f32.mrb[4].mxu0  ;;  %v713_v32 = vpop.f32.mrb[4].mxu1 }
 0x101   :  { %1154 = vst.msk [vmem:[%s2179_s3 + $0x4] sm:$0xf] %vm1152_vm1, %v1392_v29  ;;  %1186 = vst.msk [vmem:[%s2179_s3 + $0x84] sm:$0xf] %vm1152_vm1, %v1424_v30  ;;  %v586_v33 = vadd.f32 %v1854_v10, %v585_v31  ;;  %v714_v34 = vadd.f32 %v1854_v10, %v713_v32  ;;  %v587_v35 = vpop.f32.mrb[5].mxu0  ;;  %v715_v36 = vpop.f32.mrb[5].mxu1 }
 0x102   :  { %v588_v37 = vpop.f32.mrb[6].mxu0  ;;  %v716_v38 = vpop.f32.mrb[6].mxu1 }
 0x103   :  { %v834_v39 = vmax.f32 %v586_v33, 0.0  ;;  %v866_v40 = vmax.f32 %v714_v34, 0.0  ;;  %v589_v41 = vadd.f32 %v1854_v10, %v588_v37  ;;  %v717_v42 = vadd.f32 %v1854_v10, %v716_v38  ;;  %v590_v43 = vpop.f32.mrb[7].mxu0  ;;  %v718_v44 = vpop.f32.mrb[7].mxu1 }
 0x105   :  { %v1393_v45 = vpack.c.bf16 %v834_v39, %v834_v39  ;;  %v1425_v46 = vpack.c.bf16 %v866_v40, %v866_v40  ;;  %v835_v47 = vmax.f32 %v589_v41, 0.0  ;;  %v867_v48 = vmax.f32 %v717_v42, 0.0 }
 0x107   :  { %1155 = vst.msk [vmem:[%s2179_s3 + $0x8] sm:$0xf] %vm1152_vm1, %v1393_v45  ;;  %1187 = vst.msk [vmem:[%s2179_s3 + $0x88] sm:$0xf] %vm1152_vm1, %v1425_v46  ;;  %v1394_v49 = vpack.c.bf16 %v835_v47, %v835_v47  ;;  %v1426_v50 = vpack.c.bf16 %v867_v48, %v867_v48 }
 0x108   :  { %v593_v51 = vpop.f32.mrb[8].mxu0  ;;  %v721_v52 = vpop.f32.mrb[8].mxu1 }
 0x109   :  { %1156 = vst.msk [vmem:[%s2179_s3 + $0xc] sm:$0xf] %vm1152_vm1, %v1394_v49  ;;  %1188 = vst.msk [vmem:[%s2179_s3 + $0x8c] sm:$0xf] %vm1152_vm1, %v1426_v50  ;;  %v594_v53 = vadd.f32 %v1854_v10, %v593_v51  ;;  %v722_v54 = vadd.f32 %v1854_v10, %v721_v52  ;;  %v595_v55 = vpop.f32.mrb[9].mxu0  ;;  %v723_v56 = vpop.f32.mrb[9].mxu1 }
 0x10a   :  { %v596_v57 = vpop.f32.mrb[10].mxu0  ;;  %v724_v58 = vpop.f32.mrb[10].mxu1 }
 0x10b   :  { %v836_v59 = vmax.f32 %v594_v53, 0.0  ;;  %v868_v60 = vmax.f32 %v722_v54, 0.0  ;;  %v597_v61 = vadd.f32 %v1854_v10, %v596_v57  ;;  %v725_v62 = vadd.f32 %v1854_v10, %v724_v58  ;;  %v598_v63 = vpop.f32.mrb[11].mxu0  ;;  %v726_v0 = vpop.f32.mrb[11].mxu1 }
 0x10d   :  { %v1395_v1 = vpack.c.bf16 %v836_v59, %v836_v59  ;;  %v1427_v2 = vpack.c.bf16 %v868_v60, %v868_v60  ;;  %v837_v3 = vmax.f32 %v597_v61, 0.0  ;;  %v869_v4 = vmax.f32 %v725_v62, 0.0 }
 0x10f   :  { %1157 = vst.msk [vmem:[%s2179_s3 + $0x10] sm:$0xf] %vm1152_vm1, %v1395_v1  ;;  %1189 = vst.msk [vmem:[%s2179_s3 + $0x90] sm:$0xf] %vm1152_vm1, %v1427_v2  ;;  %v1396_v5 = vpack.c.bf16 %v837_v3, %v837_v3  ;;  %v1428_v6 = vpack.c.bf16 %v869_v4, %v869_v4 }
 0x110   :  { %v601_v7 = vpop.f32.mrb[12].mxu0  ;;  %v729_v8 = vpop.f32.mrb[12].mxu1 }
 0x111   :  { %1158 = vst.msk [vmem:[%s2179_s3 + $0x14] sm:$0xf] %vm1152_vm1, %v1396_v5  ;;  %1190 = vst.msk [vmem:[%s2179_s3 + $0x94] sm:$0xf] %vm1152_vm1, %v1428_v6  ;;  %v602_v9 = vadd.f32 %v1854_v10, %v601_v7  ;;  %v730_v11 = vadd.f32 %v1854_v10, %v729_v8  ;;  %v603_v12 = vpop.f32.mrb[13].mxu0  ;;  %v731_v13 = vpop.f32.mrb[13].mxu1 }
 0x112   :  { %v604_v14 = vpop.f32.mrb[14].mxu0  ;;  %v732_v15 = vpop.f32.mrb[14].mxu1 }
 0x113   :  { %v838_v16 = vmax.f32 %v602_v9, 0.0  ;;  %v870_v17 = vmax.f32 %v730_v11, 0.0  ;;  %v605_v18 = vadd.f32 %v1854_v10, %v604_v14  ;;  %v733_v19 = vadd.f32 %v1854_v10, %v732_v15  ;;  %v606_v20 = vpop.f32.mrb[15].mxu0  ;;  %v734_v21 = vpop.f32.mrb[15].mxu1 }
 0x115   :  { %v1397_v22 = vpack.c.bf16 %v838_v16, %v838_v16  ;;  %v1429_v23 = vpack.c.bf16 %v870_v17, %v870_v17  ;;  %v839_v24 = vmax.f32 %v605_v18, 0.0  ;;  %v871_v25 = vmax.f32 %v733_v19, 0.0 }
 0x117   :  { %1159 = vst.msk [vmem:[%s2179_s3 + $0x18] sm:$0xf] %vm1152_vm1, %v1397_v22  ;;  %1191 = vst.msk [vmem:[%s2179_s3 + $0x98] sm:$0xf] %vm1152_vm1, %v1429_v23  ;;  %v1398_v26 = vpack.c.bf16 %v839_v24, %v839_v24  ;;  %v1430_v27 = vpack.c.bf16 %v871_v25, %v871_v25 }
 0x118   :  { %v609_v28 = vpop.f32.mrb[16].mxu0  ;;  %v737_v29 = vpop.f32.mrb[16].mxu1 }
 0x119   :  { %1160 = vst.msk [vmem:[%s2179_s3 + $0x1c] sm:$0xf] %vm1152_vm1, %v1398_v26  ;;  %1192 = vst.msk [vmem:[%s2179_s3 + $0x9c] sm:$0xf] %vm1152_vm1, %v1430_v27  ;;  %v610_v30 = vadd.f32 %v1854_v10, %v609_v28  ;;  %v738_v31 = vadd.f32 %v1854_v10, %v737_v29  ;;  %v611_v32 = vpop.f32.mrb[17].mxu0  ;;  %v739_v33 = vpop.f32.mrb[17].mxu1 }
 0x11a   :  { %v612_v34 = vpop.f32.mrb[18].mxu0  ;;  %v740_v35 = vpop.f32.mrb[18].mxu1 }
 0x11b   :  { %v840_v36 = vmax.f32 %v610_v30, 0.0  ;;  %v872_v37 = vmax.f32 %v738_v31, 0.0  ;;  %v613_v38 = vadd.f32 %v1854_v10, %v612_v34  ;;  %v741_v39 = vadd.f32 %v1854_v10, %v740_v35  ;;  %v614_v40 = vpop.f32.mrb[19].mxu0  ;;  %v742_v41 = vpop.f32.mrb[19].mxu1 }
 0x11d   :  { %v1399_v42 = vpack.c.bf16 %v840_v36, %v840_v36  ;;  %v1431_v43 = vpack.c.bf16 %v872_v37, %v872_v37  ;;  %v841_v44 = vmax.f32 %v613_v38, 0.0  ;;  %v873_v45 = vmax.f32 %v741_v39, 0.0 }
 0x11f   :  { %1161 = vst.msk [vmem:[%s2179_s3 + $0x20] sm:$0xf] %vm1152_vm1, %v1399_v42  ;;  %1193 = vst.msk [vmem:[%s2179_s3 + $0xa0] sm:$0xf] %vm1152_vm1, %v1431_v43  ;;  %v1400_v46 = vpack.c.bf16 %v841_v44, %v841_v44  ;;  %v1432_v47 = vpack.c.bf16 %v873_v45, %v873_v45 }
 0x120   :  { %v617_v48 = vpop.f32.mrb[20].mxu0  ;;  %v745_v49 = vpop.f32.mrb[20].mxu1 }
 0x121   :  { %1162 = vst.msk [vmem:[%s2179_s3 + $0x24] sm:$0xf] %vm1152_vm1, %v1400_v46  ;;  %1194 = vst.msk [vmem:[%s2179_s3 + $0xa4] sm:$0xf] %vm1152_vm1, %v1432_v47  ;;  %v618_v50 = vadd.f32 %v1854_v10, %v617_v48  ;;  %v746_v51 = vadd.f32 %v1854_v10, %v745_v49  ;;  %v619_v52 = vpop.f32.mrb[21].mxu0  ;;  %v747_v53 = vpop.f32.mrb[21].mxu1 }
 0x122   :  { %v620_v54 = vpop.f32.mrb[22].mxu0  ;;  %v748_v55 = vpop.f32.mrb[22].mxu1 }
 0x123   :  { %v842_v56 = vmax.f32 %v618_v50, 0.0  ;;  %v874_v57 = vmax.f32 %v746_v51, 0.0  ;;  %v621_v58 = vadd.f32 %v1854_v10, %v620_v54  ;;  %v749_v59 = vadd.f32 %v1854_v10, %v748_v55  ;;  %v622_v60 = vpop.f32.mrb[23].mxu0  ;;  %v750_v61 = vpop.f32.mrb[23].mxu1 }
 0x125   :  { %v1401_v62 = vpack.c.bf16 %v842_v56, %v842_v56  ;;  %v1433_v63 = vpack.c.bf16 %v874_v57, %v874_v57  ;;  %v843_v0 = vmax.f32 %v621_v58, 0.0  ;;  %v875_v1 = vmax.f32 %v749_v59, 0.0 }
 0x127   :  { %1163 = vst.msk [vmem:[%s2179_s3 + $0x28] sm:$0xf] %vm1152_vm1, %v1401_v62  ;;  %1195 = vst.msk [vmem:[%s2179_s3 + $0xa8] sm:$0xf] %vm1152_vm1, %v1433_v63  ;;  %v1402_v2 = vpack.c.bf16 %v843_v0, %v843_v0  ;;  %v1434_v3 = vpack.c.bf16 %v875_v1, %v875_v1 }
 0x128   :  { %v625_v4 = vpop.f32.mrb[24].mxu0  ;;  %v753_v5 = vpop.f32.mrb[24].mxu1 }
 0x129   :  { %1164 = vst.msk [vmem:[%s2179_s3 + $0x2c] sm:$0xf] %vm1152_vm1, %v1402_v2  ;;  %1196 = vst.msk [vmem:[%s2179_s3 + $0xac] sm:$0xf] %vm1152_vm1, %v1434_v3  ;;  %v626_v6 = vadd.f32 %v1854_v10, %v625_v4  ;;  %v754_v7 = vadd.f32 %v1854_v10, %v753_v5  ;;  %v627_v8 = vpop.f32.mrb[25].mxu0  ;;  %v755_v9 = vpop.f32.mrb[25].mxu1 }
 0x12a   :  { %v628_v11 = vpop.f32.mrb[26].mxu0  ;;  %v756_v12 = vpop.f32.mrb[26].mxu1 }
 0x12b   :  { %v844_v13 = vmax.f32 %v626_v6, 0.0  ;;  %v876_v14 = vmax.f32 %v754_v7, 0.0  ;;  %v629_v15 = vadd.f32 %v1854_v10, %v628_v11  ;;  %v757_v16 = vadd.f32 %v1854_v10, %v756_v12  ;;  %v630_v17 = vpop.f32.mrb[27].mxu0  ;;  %v758_v18 = vpop.f32.mrb[27].mxu1 }
 0x12d   :  { %v1403_v19 = vpack.c.bf16 %v844_v13, %v844_v13  ;;  %v1435_v20 = vpack.c.bf16 %v876_v14, %v876_v14  ;;  %v845_v21 = vmax.f32 %v629_v15, 0.0  ;;  %v877_v22 = vmax.f32 %v757_v16, 0.0 }
 0x12f   :  { %1165 = vst.msk [vmem:[%s2179_s3 + $0x30] sm:$0xf] %vm1152_vm1, %v1403_v19  ;;  %1197 = vst.msk [vmem:[%s2179_s3 + $0xb0] sm:$0xf] %vm1152_vm1, %v1435_v20  ;;  %v1404_v23 = vpack.c.bf16 %v845_v21, %v845_v21  ;;  %v1436_v24 = vpack.c.bf16 %v877_v22, %v877_v22 }
 0x130   :  { %v633_v25 = vpop.f32.mrb[28].mxu0  ;;  %v761_v26 = vpop.f32.mrb[28].mxu1 }
 0x131   :  { %1166 = vst.msk [vmem:[%s2179_s3 + $0x34] sm:$0xf] %vm1152_vm1, %v1404_v23  ;;  %1198 = vst.msk [vmem:[%s2179_s3 + $0xb4] sm:$0xf] %vm1152_vm1, %v1436_v24  ;;  %v634_v27 = vadd.f32 %v1854_v10, %v633_v25  ;;  %v762_v28 = vadd.f32 %v1854_v10, %v761_v26  ;;  %v635_v29 = vpop.f32.mrb[29].mxu0  ;;  %v763_v30 = vpop.f32.mrb[29].mxu1 }
 0x132   :  { %v636_v31 = vpop.f32.mrb[30].mxu0  ;;  %v764_v32 = vpop.f32.mrb[30].mxu1 }
 0x133   :  { %v846_v33 = vmax.f32 %v634_v27, 0.0  ;;  %v878_v34 = vmax.f32 %v762_v28, 0.0  ;;  %v637_v35 = vadd.f32 %v1854_v10, %v636_v31  ;;  %v765_v36 = vadd.f32 %v1854_v10, %v764_v32  ;;  %v638_v37 = vpop.f32.mrb[31].mxu0  ;;  %v766_v38 = vpop.f32.mrb[31].mxu1 }
 0x135   :  { %v1405_v39 = vpack.c.bf16 %v846_v33, %v846_v33  ;;  %v1437_v40 = vpack.c.bf16 %v878_v34, %v878_v34  ;;  %v847_v41 = vmax.f32 %v637_v35, 0.0  ;;  %v879_v42 = vmax.f32 %v765_v36, 0.0 }
 0x137   :  { %1167 = vst.msk [vmem:[%s2179_s3 + $0x38] sm:$0xf] %vm1152_vm1, %v1405_v39  ;;  %1199 = vst.msk [vmem:[%s2179_s3 + $0xb8] sm:$0xf] %vm1152_vm1, %v1437_v40  ;;  %v1406_v43 = vpack.c.bf16 %v847_v41, %v847_v41  ;;  %v1438_v44 = vpack.c.bf16 %v879_v42, %v879_v42 }
 0x138   :  { %v641_v45 = vpop.f32.mrb[32].mxu0  ;;  %v769_v46 = vpop.f32.mrb[32].mxu1 }
 0x139   :  { %1168 = vst.msk [vmem:[%s2179_s3 + $0x3c] sm:$0xf] %vm1152_vm1, %v1406_v43  ;;  %1200 = vst.msk [vmem:[%s2179_s3 + $0xbc] sm:$0xf] %vm1152_vm1, %v1438_v44  ;;  %v642_v47 = vadd.f32 %v1854_v10, %v641_v45  ;;  %v770_v48 = vadd.f32 %v1854_v10, %v769_v46  ;;  %v643_v49 = vpop.f32.mrb[33].mxu0  ;;  %v771_v50 = vpop.f32.mrb[33].mxu1 }
 0x13a   :  { %v644_v51 = vpop.f32.mrb[34].mxu0  ;;  %v772_v52 = vpop.f32.mrb[34].mxu1 }
 0x13b   :  { %v848_v53 = vmax.f32 %v642_v47, 0.0  ;;  %v880_v54 = vmax.f32 %v770_v48, 0.0  ;;  %v645_v55 = vadd.f32 %v1854_v10, %v644_v51  ;;  %v773_v56 = vadd.f32 %v1854_v10, %v772_v52  ;;  %v646_v57 = vpop.f32.mrb[35].mxu0  ;;  %v774_v58 = vpop.f32.mrb[35].mxu1 }
 0x13d   :  { %v1407_v59 = vpack.c.bf16 %v848_v53, %v848_v53  ;;  %v1439_v60 = vpack.c.bf16 %v880_v54, %v880_v54  ;;  %v849_v61 = vmax.f32 %v645_v55, 0.0  ;;  %v881_v62 = vmax.f32 %v773_v56, 0.0 }
 0x13f   :  { %1169 = vst.msk [vmem:[%s2179_s3 + $0x40] sm:$0xf] %vm1152_vm1, %v1407_v59  ;;  %1201 = vst.msk [vmem:[%s2179_s3 + $0xc0] sm:$0xf] %vm1152_vm1, %v1439_v60  ;;  %v1408_v63 = vpack.c.bf16 %v849_v61, %v849_v61  ;;  %v1440_v0 = vpack.c.bf16 %v881_v62, %v881_v62 }
 0x140   :  { %v649_v1 = vpop.f32.mrb[36].mxu0  ;;  %v777_v2 = vpop.f32.mrb[36].mxu1 }
 0x141   :  { %1170 = vst.msk [vmem:[%s2179_s3 + $0x44] sm:$0xf] %vm1152_vm1, %v1408_v63  ;;  %1202 = vst.msk [vmem:[%s2179_s3 + $0xc4] sm:$0xf] %vm1152_vm1, %v1440_v0  ;;  %v650_v3 = vadd.f32 %v1854_v10, %v649_v1  ;;  %v778_v4 = vadd.f32 %v1854_v10, %v777_v2  ;;  %v651_v5 = vpop.f32.mrb[37].mxu0  ;;  %v779_v6 = vpop.f32.mrb[37].mxu1 }
 0x142   :  { %v652_v7 = vpop.f32.mrb[38].mxu0  ;;  %v780_v8 = vpop.f32.mrb[38].mxu1 }
 0x143   :  { %v850_v9 = vmax.f32 %v650_v3, 0.0  ;;  %v882_v11 = vmax.f32 %v778_v4, 0.0  ;;  %v653_v12 = vadd.f32 %v1854_v10, %v652_v7  ;;  %v781_v13 = vadd.f32 %v1854_v10, %v780_v8  ;;  %v654_v14 = vpop.f32.mrb[39].mxu0  ;;  %v782_v15 = vpop.f32.mrb[39].mxu1 }
 0x145   :  { %v1409_v16 = vpack.c.bf16 %v850_v9, %v850_v9  ;;  %v1441_v17 = vpack.c.bf16 %v882_v11, %v882_v11  ;;  %v851_v18 = vmax.f32 %v653_v12, 0.0  ;;  %v883_v19 = vmax.f32 %v781_v13, 0.0 }
 0x147   :  { %1171 = vst.msk [vmem:[%s2179_s3 + $0x48] sm:$0xf] %vm1152_vm1, %v1409_v16  ;;  %1203 = vst.msk [vmem:[%s2179_s3 + $0xc8] sm:$0xf] %vm1152_vm1, %v1441_v17  ;;  %v1410_v20 = vpack.c.bf16 %v851_v18, %v851_v18  ;;  %v1442_v21 = vpack.c.bf16 %v883_v19, %v883_v19 }
 0x148   :  { %v657_v22 = vpop.f32.mrb[40].mxu0  ;;  %v785_v23 = vpop.f32.mrb[40].mxu1 }
 0x149   :  { %1172 = vst.msk [vmem:[%s2179_s3 + $0x4c] sm:$0xf] %vm1152_vm1, %v1410_v20  ;;  %1204 = vst.msk [vmem:[%s2179_s3 + $0xcc] sm:$0xf] %vm1152_vm1, %v1442_v21  ;;  %v658_v24 = vadd.f32 %v1854_v10, %v657_v22  ;;  %v786_v25 = vadd.f32 %v1854_v10, %v785_v23  ;;  %v659_v26 = vpop.f32.mrb[41].mxu0  ;;  %v787_v27 = vpop.f32.mrb[41].mxu1 }
 0x14a   :  { %v660_v28 = vpop.f32.mrb[42].mxu0  ;;  %v788_v29 = vpop.f32.mrb[42].mxu1 }
 0x14b   :  { %v852_v30 = vmax.f32 %v658_v24, 0.0  ;;  %v884_v31 = vmax.f32 %v786_v25, 0.0  ;;  %v661_v32 = vadd.f32 %v1854_v10, %v660_v28  ;;  %v789_v33 = vadd.f32 %v1854_v10, %v788_v29  ;;  %v662_v34 = vpop.f32.mrb[43].mxu0  ;;  %v790_v35 = vpop.f32.mrb[43].mxu1 }
 0x14d   :  { %v1411_v36 = vpack.c.bf16 %v852_v30, %v852_v30  ;;  %v1443_v37 = vpack.c.bf16 %v884_v31, %v884_v31  ;;  %v853_v38 = vmax.f32 %v661_v32, 0.0  ;;  %v885_v39 = vmax.f32 %v789_v33, 0.0 }
 0x14f   :  { %1173 = vst.msk [vmem:[%s2179_s3 + $0x50] sm:$0xf] %vm1152_vm1, %v1411_v36  ;;  %1205 = vst.msk [vmem:[%s2179_s3 + $0xd0] sm:$0xf] %vm1152_vm1, %v1443_v37  ;;  %v1412_v40 = vpack.c.bf16 %v853_v38, %v853_v38  ;;  %v1444_v41 = vpack.c.bf16 %v885_v39, %v885_v39 }
 0x150   :  { %v665_v42 = vpop.f32.mrb[44].mxu0  ;;  %v793_v43 = vpop.f32.mrb[44].mxu1 }
 0x151   :  { %1174 = vst.msk [vmem:[%s2179_s3 + $0x54] sm:$0xf] %vm1152_vm1, %v1412_v40  ;;  %1206 = vst.msk [vmem:[%s2179_s3 + $0xd4] sm:$0xf] %vm1152_vm1, %v1444_v41  ;;  %v666_v44 = vadd.f32 %v1854_v10, %v665_v42  ;;  %v794_v45 = vadd.f32 %v1854_v10, %v793_v43  ;;  %v667_v46 = vpop.f32.mrb[45].mxu0  ;;  %v795_v47 = vpop.f32.mrb[45].mxu1 }
 0x152   :  { %v668_v48 = vpop.f32.mrb[46].mxu0  ;;  %v796_v49 = vpop.f32.mrb[46].mxu1 }
 0x153   :  { %v854_v50 = vmax.f32 %v666_v44, 0.0  ;;  %v886_v51 = vmax.f32 %v794_v45, 0.0  ;;  %v669_v52 = vadd.f32 %v1854_v10, %v668_v48  ;;  %v797_v53 = vadd.f32 %v1854_v10, %v796_v49  ;;  %v670_v54 = vpop.f32.mrb[47].mxu0  ;;  %v798_v55 = vpop.f32.mrb[47].mxu1 }
 0x155   :  { %v1413_v56 = vpack.c.bf16 %v854_v50, %v854_v50  ;;  %v1445_v57 = vpack.c.bf16 %v886_v51, %v886_v51  ;;  %v855_v58 = vmax.f32 %v669_v52, 0.0  ;;  %v887_v59 = vmax.f32 %v797_v53, 0.0 }
 0x157   :  { %1175 = vst.msk [vmem:[%s2179_s3 + $0x58] sm:$0xf] %vm1152_vm1, %v1413_v56  ;;  %1207 = vst.msk [vmem:[%s2179_s3 + $0xd8] sm:$0xf] %vm1152_vm1, %v1445_v57  ;;  %v1414_v60 = vpack.c.bf16 %v855_v58, %v855_v58  ;;  %v1446_v61 = vpack.c.bf16 %v887_v59, %v887_v59 }
 0x158   :  { %v673_v62 = vpop.f32.mrb[48].mxu0  ;;  %v801_v63 = vpop.f32.mrb[48].mxu1 }
 0x159   :  { %1176 = vst.msk [vmem:[%s2179_s3 + $0x5c] sm:$0xf] %vm1152_vm1, %v1414_v60  ;;  %1208 = vst.msk [vmem:[%s2179_s3 + $0xdc] sm:$0xf] %vm1152_vm1, %v1446_v61  ;;  %v674_v0 = vadd.f32 %v1854_v10, %v673_v62  ;;  %v802_v1 = vadd.f32 %v1854_v10, %v801_v63  ;;  %v675_v2 = vpop.f32.mrb[49].mxu0  ;;  %v803_v3 = vpop.f32.mrb[49].mxu1 }
 0x15a   :  { %v676_v4 = vpop.f32.mrb[50].mxu0  ;;  %v804_v5 = vpop.f32.mrb[50].mxu1 }
 0x15b   :  { %v856_v6 = vmax.f32 %v674_v0, 0.0  ;;  %v888_v7 = vmax.f32 %v802_v1, 0.0  ;;  %v677_v8 = vadd.f32 %v1854_v10, %v676_v4  ;;  %v805_v9 = vadd.f32 %v1854_v10, %v804_v5  ;;  %v678_v11 = vpop.f32.mrb[51].mxu0  ;;  %v806_v12 = vpop.f32.mrb[51].mxu1 }
 0x15d   :  { %v1415_v13 = vpack.c.bf16 %v856_v6, %v856_v6  ;;  %v1447_v14 = vpack.c.bf16 %v888_v7, %v888_v7  ;;  %v857_v15 = vmax.f32 %v677_v8, 0.0  ;;  %v889_v16 = vmax.f32 %v805_v9, 0.0 }
 0x15f   :  { %1177 = vst.msk [vmem:[%s2179_s3 + $0x60] sm:$0xf] %vm1152_vm1, %v1415_v13  ;;  %1209 = vst.msk [vmem:[%s2179_s3 + $0xe0] sm:$0xf] %vm1152_vm1, %v1447_v14  ;;  %v1416_v17 = vpack.c.bf16 %v857_v15, %v857_v15  ;;  %v1448_v18 = vpack.c.bf16 %v889_v16, %v889_v16 }
 0x160   :  { %v681_v19 = vpop.f32.mrb[52].mxu0  ;;  %v809_v20 = vpop.f32.mrb[52].mxu1 }
 0x161   :  { %1178 = vst.msk [vmem:[%s2179_s3 + $0x64] sm:$0xf] %vm1152_vm1, %v1416_v17  ;;  %1210 = vst.msk [vmem:[%s2179_s3 + $0xe4] sm:$0xf] %vm1152_vm1, %v1448_v18  ;;  %v682_v21 = vadd.f32 %v1854_v10, %v681_v19  ;;  %v810_v22 = vadd.f32 %v1854_v10, %v809_v20  ;;  %v683_v23 = vpop.f32.mrb[53].mxu0  ;;  %v811_v24 = vpop.f32.mrb[53].mxu1 }
 0x162   :  { %v684_v25 = vpop.f32.mrb[54].mxu0  ;;  %v812_v26 = vpop.f32.mrb[54].mxu1 }
 0x163   :  { %v858_v27 = vmax.f32 %v682_v21, 0.0  ;;  %v890_v28 = vmax.f32 %v810_v22, 0.0  ;;  %v685_v29 = vadd.f32 %v1854_v10, %v684_v25  ;;  %v813_v30 = vadd.f32 %v1854_v10, %v812_v26  ;;  %v686_v31 = vpop.f32.mrb[55].mxu0  ;;  %v814_v32 = vpop.f32.mrb[55].mxu1 }
 0x165   :  { %v1417_v33 = vpack.c.bf16 %v858_v27, %v858_v27  ;;  %v1449_v34 = vpack.c.bf16 %v890_v28, %v890_v28  ;;  %v859_v35 = vmax.f32 %v685_v29, 0.0  ;;  %v891_v36 = vmax.f32 %v813_v30, 0.0 }
 0x167   :  { %1179 = vst.msk [vmem:[%s2179_s3 + $0x68] sm:$0xf] %vm1152_vm1, %v1417_v33  ;;  %1211 = vst.msk [vmem:[%s2179_s3 + $0xe8] sm:$0xf] %vm1152_vm1, %v1449_v34  ;;  %v1418_v37 = vpack.c.bf16 %v859_v35, %v859_v35  ;;  %v1450_v38 = vpack.c.bf16 %v891_v36, %v891_v36 }
 0x168   :  { %v689_v39 = vpop.f32.mrb[56].mxu0  ;;  %v817_v40 = vpop.f32.mrb[56].mxu1 }
 0x169   :  { %1180 = vst.msk [vmem:[%s2179_s3 + $0x6c] sm:$0xf] %vm1152_vm1, %v1418_v37  ;;  %1212 = vst.msk [vmem:[%s2179_s3 + $0xec] sm:$0xf] %vm1152_vm1, %v1450_v38  ;;  %v690_v41 = vadd.f32 %v1854_v10, %v689_v39  ;;  %v818_v42 = vadd.f32 %v1854_v10, %v817_v40  ;;  %v691_v43 = vpop.f32.mrb[57].mxu0  ;;  %v819_v44 = vpop.f32.mrb[57].mxu1 }
 0x16a   :  { %v692_v45 = vpop.f32.mrb[58].mxu0  ;;  %v820_v46 = vpop.f32.mrb[58].mxu1 }
 0x16b   :  { %v860_v47 = vmax.f32 %v690_v41, 0.0  ;;  %v892_v48 = vmax.f32 %v818_v42, 0.0  ;;  %v693_v49 = vadd.f32 %v1854_v10, %v692_v45  ;;  %v821_v50 = vadd.f32 %v1854_v10, %v820_v46  ;;  %v694_v51 = vpop.f32.mrb[59].mxu0  ;;  %v822_v52 = vpop.f32.mrb[59].mxu1 }
 0x16d   :  { %v1419_v53 = vpack.c.bf16 %v860_v47, %v860_v47  ;;  %v1451_v54 = vpack.c.bf16 %v892_v48, %v892_v48  ;;  %v861_v55 = vmax.f32 %v693_v49, 0.0  ;;  %v893_v56 = vmax.f32 %v821_v50, 0.0 }
 0x16f   :  { %1181 = vst.msk [vmem:[%s2179_s3 + $0x70] sm:$0xf] %vm1152_vm1, %v1419_v53  ;;  %1213 = vst.msk [vmem:[%s2179_s3 + $0xf0] sm:$0xf] %vm1152_vm1, %v1451_v54  ;;  %v1420_v57 = vpack.c.bf16 %v861_v55, %v861_v55  ;;  %v1452_v58 = vpack.c.bf16 %v893_v56, %v893_v56 }
 0x170   :  { %v697_v59 = vpop.f32.mrb[60].mxu0  ;;  %v825_v60 = vpop.f32.mrb[60].mxu1 }
 0x171   :  { %1182 = vst.msk [vmem:[%s2179_s3 + $0x74] sm:$0xf] %vm1152_vm1, %v1420_v57  ;;  %1214 = vst.msk [vmem:[%s2179_s3 + $0xf4] sm:$0xf] %vm1152_vm1, %v1452_v58  ;;  %v698_v61 = vadd.f32 %v1854_v10, %v697_v59  ;;  %v826_v62 = vadd.f32 %v1854_v10, %v825_v60  ;;  %v699_v63 = vpop.f32.mrb[61].mxu0  ;;  %v827_v0 = vpop.f32.mrb[61].mxu1 }
 0x172   :  { %v700_v1 = vpop.f32.mrb[62].mxu0  ;;  %v828_v2 = vpop.f32.mrb[62].mxu1 }
 0x173   :  { %v862_v3 = vmax.f32 %v698_v61, 0.0  ;;  %v894_v4 = vmax.f32 %v826_v62, 0.0  ;;  %v701_v5 = vadd.f32 %v1854_v10, %v700_v1  ;;  %v829_v6 = vadd.f32 %v1854_v10, %v828_v2  ;;  %v702_v7 = vpop.f32.mrb[63].mxu0  ;;  %v830_v8 = vpop.f32.mrb[63].mxu1 }
 0x175   :  { %v1421_v9 = vpack.c.bf16 %v862_v3, %v862_v3  ;;  %v1453_v11 = vpack.c.bf16 %v894_v4, %v894_v4  ;;  %v863_v12 = vmax.f32 %v701_v5, 0.0  ;;  %v895_v13 = vmax.f32 %v829_v6, 0.0 }
 0x177   :  { %1183 = vst.msk [vmem:[%s2179_s3 + $0x78] sm:$0xf] %vm1152_vm1, %v1421_v9  ;;  %1215 = vst.msk [vmem:[%s2179_s3 + $0xf8] sm:$0xf] %vm1152_vm1, %v1453_v11  ;;  %v1422_v14 = vpack.c.bf16 %v863_v12, %v863_v12  ;;  %v1454_v15 = vpack.c.bf16 %v895_v13, %v895_v13 }
 0x179   :  { %1184 = vst.msk [vmem:[%s2179_s3 + $0x7c] sm:$0xf] %vm1152_vm1, %v1422_v14  ;;  %1216 = vst.msk [vmem:[%s2179_s3 + $0xfc] sm:$0xf] %vm1152_vm1, %v1454_v15 }

// kernel: _lambda_.35
= control target key start
LH: loop header
LB: loop body
LE: loop exit
PB: predicated region body
PF: predicated region fallthrough
CT: control target
= control target key end

     0   :  { %vm318_vm0 = vcmask 261120   ;;  %vm617_vm1 = vcmask 257024   ;;  %s1132_s1 = inlined_call_operand.vmem [shape: bf16[288,32], index: 1, kind: input, shape index: {}]   ;;  %s1133_s0 = inlined_call_operand.vmem [shape: bf16[128,288], index: 0, kind: input, shape index: {}]   ;;  %s1134_s2 = inlined_call_operand.vmem [shape: f32[1,32], index: 2, kind: input, shape index: {}]   ;;  %s1135_s3 = inlined_call_operand.vmem [shape: bf16[128,32], index: 3, kind: output, shape index: {}]  }
   0x1   :  { %v831_v0 = vld [vmem:[%s1132_s1 + $0x40] sm:$0xff]   ;;  %v833_v2 = vld [vmem:[%s1132_s1 + $0x48] sm:$0xff]   ;;  %v835_v4 = vld [vmem:[%s1132_s1 + $0x50] sm:$0xff]  }
   0x2   :  { %v832_v1 = vld [vmem:[%s1132_s1] sm:$0xff]   ;;  %721 = vmatprep.subr.bf16.mxu0 %v831_v0  ;;  %815 = vmatprep.subr.bf16.mxu1 %v831_v0  ;;  %v834_v3 = vld [vmem:[%s1132_s1 + $0x8] sm:$0xff]   ;;  %v836_v5 = vld [vmem:[%s1132_s1 + $0x10] sm:$0xff]  }
   0x3   :  { %722 = vmatpush3.bf16.msra.mxu0 %v832_v1  ;;  %823 = vmatpush3.bf16.msra.mxu1 %v832_v1  ;;  %v837_v6 = vld [vmem:[%s1132_s1 + $0x58] sm:$0xff]   ;;  %v839_v8 = vld [vmem:[%s1132_s1 + $0x60] sm:$0xff]   ;;  %v841_v10 = vld [vmem:[%s1132_s1 + $0x68] sm:$0xff]  }
   0x4   :  { %723 = vmatprep.subr.bf16.mxu0 %v833_v2  ;;  %816 = vmatprep.subr.bf16.mxu1 %v833_v2  ;;  %v838_v7 = vld [vmem:[%s1132_s1 + $0x18] sm:$0xff]   ;;  %v840_v9 = vld [vmem:[%s1132_s1 + $0x20] sm:$0xff]   ;;  %v842_v13 = vld [vmem:[%s1132_s1 + $0x28] sm:$0xff]  }
   0x5   :  { %v849_v11 = vld [vmem:[%s1133_s0 + $0x4] ss:$12 sps:$4 sm:$0xff]   ;;  %v852_v12 = vld [vmem:[%s1133_s0 + $0x94] ss:$12 sps:$4 sm:$0xff]   ;;  %v845_v16 = vld [vmem:[%s1132_s1 + $0x78] sm:$0xff]  }
   0x6   :  { %v843_v14 = vld [vmem:[%s1132_s1 + $0x70] sm:$0xff]   ;;  %375 = vmatprep.mubr.bf16.mxu0 %v849_v11  ;;  %423 = vmatprep.mubr.bf16.mxu1 %v852_v12  ;;  %v846_v17 = vld [vmem:[%s1132_s1 + $0x38] sm:$0xff]   ;;  %v847_v18 = vld [vmem:[%s1133_s0] ss:$12 sps:$4 sm:$0xff]  }
   0x7   :  { %724 = vmatpush3.bf16.msra.mxu0 %v834_v3  ;;  %824 = vmatpush3.bf16.msra.mxu1 %v834_v3  ;;  %v844_v15 = vld [vmem:[%s1132_s1 + $0x30] sm:$0xff]   ;;  %v853_v19 = vld [vmem:[%s1132_s1 + $0x80] sm:$0xff]   ;;  %v854_v21 = vld [vmem:[%s1133_s0 + $0x1c] ss:$12 sps:$4 sm:$0xff]  }
   0x8   :  { %725 = vmatprep.subr.bf16.mxu0 %v835_v4  ;;  %817 = vmatprep.subr.bf16.mxu1 %v835_v4  ;;  %v850_v20 = vld [vmem:[%s1133_s0 + $0x90] ss:$12 sps:$4 sm:$0xff]   ;;  %v856_v22 = vld [vmem:[%s1133_s0 + $0xac] ss:$12 sps:$4 sm:$0xff]   ;;  %v859_v25 = vld [vmem:[%s1133_s0 + $0xa8] ss:$12 sps:$4 sm:$0xff]  }
   0x9   :  { %v860_v23 = vld [vmem:[%s1132_s1 + $0x88] sm:$0xff]   ;;  %v858_v24 = vld [vmem:[%s1133_s0 + $0x18] ss:$12 sps:$4 sm:$0xff]   ;;  %v861_v26 = vld [vmem:[%s1133_s0 + $0x34] ss:$12 sps:$4 sm:$0xff]  }
   0xa   :  { %v863_v27 = vld [vmem:[%s1133_s0 + $0x8] ss:$12 sps:$4 sm:$0xff]   ;;  %v864_v28 = vld [vmem:[%s1133_s0 + $0x30] ss:$12 sps:$4 sm:$0xff]   ;;  %v865_v29 = vld [vmem:[%s1133_s0 + $0x20] ss:$12 sps:$4 sm:$0xff]  }
   0xb   :  { %726 = vmatpush3.bf16.msra.mxu0 %v836_v5  ;;  %825 = vmatpush3.bf16.msra.mxu1 %v836_v5  ;;  %v866_v30 = vld [vmem:[%s1133_s0 + $0x4c] ss:$12 sps:$4 sm:$0xff]   ;;  %v869_v32 = vld [vmem:[%s1133_s0 + $0x48] ss:$12 sps:$4 sm:$0xff]   ;;  %v870_v33 = vld [vmem:[%s1133_s0 + $0x50] ss:$12 sps:$4 sm:$0xff]  }
   0xc   :  { %727 = vmatprep.subr.bf16.mxu0 %v837_v6  ;;  %818 = vmatprep.subr.bf16.mxu1 %v837_v6  ;;  %v868_v31 = vld [vmem:[%s1133_s0 + $0x38] ss:$12 sps:$4 sm:$0xff]   ;;  %v873_v35 = vld [vmem:[%s1133_s0 + $0x68] ss:$12 sps:$4 sm:$0xff]   ;;  %v874_v36 = vld [vmem:[%s1133_s0 + $0x60] ss:$12 sps:$4 sm:$0xff]  }
   0xd   :  { %v871_v34 = vld [vmem:[%s1133_s0 + $0x64] ss:$12 sps:$4 sm:$0xff]   ;;  %v875_v37 = vld [vmem:[%s1133_s0 + $0x80] ss:$12 sps:$4 sm:$0xff]   ;;  %v876_v38 = vld [vmem:[%s1133_s0 + $0x7c] ss:$12 sps:$4 sm:$0xff]  }
   0xe   :  { %v878_v39 = vld [vmem:[%s1133_s0 + $0x98] ss:$12 sps:$4 sm:$0xff]   ;;  %v880_v41 = vld [vmem:[%s1133_s0 + $0xb0] ss:$12 sps:$4 sm:$0xff]   ;;  %v1046_v2 = vld [vmem:[%s1134_s2] ss:$0 sm:$0xff] }
   0xf   :  { %728 = vmatpush3.bf16.msra.mxu0 %v838_v7  ;;  %826 = vmatpush3.bf16.msra.mxu1 %v838_v7  ;;  %v879_v40 = vld [vmem:[%s1133_s0 + $0x78] ss:$12 sps:$4 sm:$0xff]  }
  0x10   :  { %729 = vmatprep.subr.bf16.mxu0 %v839_v8  ;;  %819 = vmatprep.subr.bf16.mxu1 %v839_v8 }
  0x13   :  { %730 = vmatpush3.bf16.msra.mxu0 %v840_v9  ;;  %827 = vmatpush3.bf16.msra.mxu1 %v840_v9 }
  0x14   :  { %731 = vmatprep.subr.bf16.mxu0 %v841_v10  ;;  %820 = vmatprep.subr.bf16.mxu1 %v841_v10 }
  0x17   :  { %732 = vmatpush3.bf16.msra.mxu0 %v842_v13  ;;  %828 = vmatpush3.bf16.msra.mxu1 %v842_v13 }
  0x18   :  { %733 = vmatprep.subr.bf16.mxu0 %v843_v14  ;;  %821 = vmatprep.subr.bf16.mxu1 %v843_v14 }
  0x1b   :  { %734 = vmatpush3.bf16.msra.mxu0 %v844_v15  ;;  %829 = vmatpush3.bf16.msra.mxu1 %v844_v15 }
  0x1c   :  { %735 = vmatprep.subr.bf16.mxu0 %v845_v16  ;;  %822 = vmatprep.subr.bf16.mxu1 %v845_v16 }
  0x1f   :  { %736 = vmatpush3.bf16.msra.mxu0 %v846_v17  ;;  %830 = vmatpush3.bf16.msra.mxu1 %v846_v17 }
  0x20   :  { %795 = vmatprep.subr.bf16.mxu1 %v853_v19 }
  0x22   :  { %376 = vmatmul.mubr.bf16.vlgmr.msra.gmra.mrb[0].mxu0 %v847_v18  ;;  %424 = vmatmul.mubr.bf16.vlgmr.msra.gmra.mrb[0].mxu1 %v850_v20 }
  0x23   :  { %796 = vmatpush3.bf16.msra.mxu1 %v853_v19  ;;  %383 = vmatprep.mubr.bf16.mxu0 %v854_v21 }
  0x24   :  { %431 = vmatprep.mubr.bf16.mxu1 %v856_v22  ;;  %797 = vmatprep.subr.bf16.mxu1 %v860_v23 }
  0x27   :  { %798 = vmatpush3.bf16.msra.mxu1 %v860_v23 }
  0x2a   :  { %384 = vmatmul.mubr.bf16.gmra.mrb[4].mxu0 %v858_v24  ;;  %432 = vmatmul.mubr.bf16.gmra.mrb[4].mxu1 %v859_v25 }
  0x2b   :  { %391 = vmatprep.mubr.bf16.mxu0 %v861_v26  ;;  %799 = vmatprep.mubr.msk.bf16.mxu1 %vm318_vm0, %v863_v27 }
  0x32   :  { %392 = vmatmul.mubr.bf16.gmra.mrb[8].mxu0 %v864_v28  ;;  %800 = vmatmul.mubr.msk.bf16.vlgmr.msra.gmra.mrb[8].mxu1 %vm318_vm0, %v865_v29 }
  0x33   :  { %399 = vmatprep.mubr.bf16.mxu0 %v866_v30  ;;  %803 = vmatprep.mubr.msk.bf16.mxu1 %vm318_vm0, %v868_v31 }
  0x3a   :  { %400 = vmatmul.mubr.bf16.gmra.mrb[12].mxu0 %v869_v32  ;;  %804 = vmatmul.mubr.msk.bf16.gmra.mrb[12].mxu1 %vm318_vm0, %v870_v33 }
  0x3b   :  { %407 = vmatprep.mubr.bf16.mxu0 %v871_v34  ;;  %807 = vmatprep.mubr.msk.bf16.mxu1 %vm318_vm0, %v873_v35 }
  0x42   :  { %408 = vmatmul.mubr.bf16.gmra.mrb[16].mxu0 %v874_v36  ;;  %808 = vmatmul.mubr.msk.bf16.gmra.mrb[16].mxu1 %vm318_vm0, %v875_v37 }
  0x43   :  { %415 = vmatprep.mubr.bf16.mxu0 %v876_v38  ;;  %811 = vmatprep.mubr.msk.bf16.mxu1 %vm318_vm0, %v878_v39 }
  0x4a   :  { %416 = vmatmul.mubr.bf16.gmra.mrb[20].mxu0 %v879_v40  ;;  %812 = vmatmul.mubr.msk.bf16.gmra.mrb[20].mxu1 %vm318_vm0, %v880_v41 }
  0xf5   :  { %v737_v42 = vpop.f32.mrb[0].mxu0  ;;  %v773_v43 = vpop.f32.mrb[0].mxu1 }
  0xf6   :  { %v738_v44 = vpop.f32.mrb[1].mxu0  ;;  %v774_v45 = vpop.f32.mrb[1].mxu1 }
  0xf7   :  { %v739_v46 = vadd.f32 %v738_v44, %v737_v42  ;;  %v740_v47 = vpop.f32.mrb[2].mxu0  ;;  %v1035_v48 = vadd.f32 %v774_v45, %v773_v43  ;;  %v776_v49 = vpop.f32.mrb[2].mxu1 }
  0xf8   :  { %v741_v50 = vpop.f32.mrb[3].mxu0  ;;  %v777_v51 = vpop.f32.mrb[3].mxu1 }
  0xf9   :  { %v742_v52 = vadd.f32 %v741_v50, %v740_v47  ;;  %v1037_v53 = vadd.f32 %v777_v51, %v776_v49  ;;  %v378_v6 = vadd.f32 %v739_v46, %v1046_v2 }
  0xfb   :  { %v381_v15 = vadd.f32 %v742_v52, %v1046_v2 }
  0xfd   :  { %v743_v54 = vpop.f32.mrb[4].mxu0  ;;  %v779_v55 = vpop.f32.mrb[4].mxu1 }
  0xfe   :  { %v744_v56 = vpop.f32.mrb[5].mxu0  ;;  %v780_v57 = vpop.f32.mrb[5].mxu1 }
  0xff   :  { %v745_v58 = vadd.f32 %v744_v56, %v743_v54  ;;  %v746_v59 = vpop.f32.mrb[6].mxu0  ;;  %v1039_v60 = vadd.f32 %v780_v57, %v779_v55  ;;  %v782_v61 = vpop.f32.mrb[6].mxu1 }
 0x100   :  { %v747_v62 = vpop.f32.mrb[7].mxu0  ;;  %v783_v63 = vpop.f32.mrb[7].mxu1 }
 0x101   :  { %v748_v0 = vadd.f32 %v747_v62, %v746_v59  ;;  %v1041_v1 = vadd.f32 %v783_v63, %v782_v61  ;;  %v386_v3 = vadd.f32 %v745_v58, %v1046_v2 }
 0x103   :  { %v389_v10 = vadd.f32 %v748_v0, %v1046_v2 }
 0x105   :  { %v749_v4 = vpop.f32.mrb[8].mxu0  ;;  %v801_v5 = vpop.f32.mrb[8].mxu1 }
 0x106   :  { %v483_v7 = vadd.f32 %v801_v5, %v386_v3  ;;  %v750_v8 = vpop.f32.mrb[9].mxu0  ;;  %v474_v9 = vpop.f32.mrb[9].mxu1 }
 0x107   :  { %v751_v11 = vadd.f32 %v750_v8, %v749_v4  ;;  %v475_v12 = vadd.f32 %v474_v9, %v378_v6  ;;  %v752_v13 = vpop.f32.mrb[10].mxu0  ;;  %v802_v14 = vpop.f32.mrb[10].mxu1  ;;  %v434_v9 = vadd.f32 %v1039_v60, %v1046_v2 }
 0x108   :  { %v539_v16 = vmax.f32 %v483_v7, 0.0  ;;  %v486_v17 = vadd.f32 %v802_v14, %v389_v10  ;;  %v753_v18 = vpop.f32.mrb[11].mxu0  ;;  %v477_v19 = vpop.f32.mrb[11].mxu1  ;;  %v426_v14 = vadd.f32 %v1035_v48, %v1046_v2 }
 0x109   :  { %v537_v20 = vmax.f32 %v475_v12, 0.0  ;;  %v754_v21 = vadd.f32 %v753_v18, %v752_v13  ;;  %v478_v22 = vadd.f32 %v477_v19, %v381_v15  ;;  %v394_v31 = vadd.f32 %v751_v11, %v1046_v2 }
 0x10a   :  { %v707_v23 = vpack.c.bf16 %v539_v16, %v539_v16  ;;  %v540_v24 = vmax.f32 %v486_v17, 0.0  ;;  %v437_v18 = vadd.f32 %v1041_v1, %v1046_v2 }
 0x10b   :  { %v705_v25 = vpack.c.bf16 %v537_v20, %v537_v20  ;;  %v538_v26 = vmax.f32 %v478_v22, 0.0  ;;  %v397_v38 = vadd.f32 %v754_v21, %v1046_v2 }
 0x10c   :  { %620 = vst.msk [vmem:[%s1135_s3 + $0x8] sm:$0xf] %vm617_vm1, %v707_v23  ;;  %v708_v27 = vpack.c.bf16 %v540_v24, %v540_v24 }
 0x10d   :  { %618 = vst.msk [vmem:[%s1135_s3] sm:$0xf] %vm617_vm1, %v705_v25  ;;  %v706_v28 = vpack.c.bf16 %v538_v26, %v538_v26  ;;  %v755_v29 = vpop.f32.mrb[12].mxu0  ;;  %v805_v30 = vpop.f32.mrb[12].mxu1 }
 0x10e   :  { %621 = vst.msk [vmem:[%s1135_s3 + $0xc] sm:$0xf] %vm617_vm1, %v708_v27  ;;  %v756_v32 = vpop.f32.mrb[13].mxu0  ;;  %v490_v33 = vpop.f32.mrb[13].mxu1  ;;  %v429_v27 = vadd.f32 %v1037_v53, %v1046_v2 }
 0x10f   :  { %619 = vst.msk [vmem:[%s1135_s3 + $0x4] sm:$0xf] %vm617_vm1, %v706_v28  ;;  %v757_v34 = vadd.f32 %v756_v32, %v755_v29  ;;  %v491_v35 = vadd.f32 %v490_v33, %v394_v31  ;;  %v758_v36 = vpop.f32.mrb[14].mxu0  ;;  %v806_v37 = vpop.f32.mrb[14].mxu1 }
 0x110   :  { %v759_v39 = vpop.f32.mrb[15].mxu0  ;;  %v493_v40 = vpop.f32.mrb[15].mxu1 }
 0x111   :  { %v402_v41 = vadd.f32 %v757_v34, %v1046_v2  ;;  %v541_v42 = vmax.f32 %v491_v35, 0.0  ;;  %v760_v43 = vadd.f32 %v759_v39, %v758_v36  ;;  %v494_v44 = vadd.f32 %v493_v40, %v397_v38 }
 0x113   :  { %v499_v45 = vadd.f32 %v805_v30, %v402_v41  ;;  %v709_v46 = vpack.c.bf16 %v541_v42, %v541_v42  ;;  %v405_v47 = vadd.f32 %v760_v43, %v1046_v2  ;;  %v542_v49 = vmax.f32 %v494_v44, 0.0 }
 0x115   :  { %v543_v50 = vmax.f32 %v499_v45, 0.0  ;;  %622 = vst.msk [vmem:[%s1135_s3 + $0x10] sm:$0xf] %vm617_vm1, %v709_v46  ;;  %v502_v51 = vadd.f32 %v806_v37, %v405_v47  ;;  %v710_v52 = vpack.c.bf16 %v542_v49, %v542_v49  ;;  %v761_v54 = vpop.f32.mrb[16].mxu0  ;;  %v809_v55 = vpop.f32.mrb[16].mxu1 }
 0x116   :  { %v762_v56 = vpop.f32.mrb[17].mxu0  ;;  %v506_v57 = vpop.f32.mrb[17].mxu1 }
 0x117   :  { %v711_v58 = vpack.c.bf16 %v543_v50, %v543_v50  ;;  %v544_v59 = vmax.f32 %v502_v51, 0.0  ;;  %623 = vst.msk [vmem:[%s1135_s3 + $0x14] sm:$0xf] %vm617_vm1, %v710_v52  ;;  %v763_v61 = vadd.f32 %v762_v56, %v761_v54  ;;  %v764_v62 = vpop.f32.mrb[18].mxu0  ;;  %v810_v63 = vpop.f32.mrb[18].mxu1 }
 0x118   :  { %v765_v0 = vpop.f32.mrb[19].mxu0  ;;  %v509_v3 = vpop.f32.mrb[19].mxu1 }
 0x119   :  { %624 = vst.msk [vmem:[%s1135_s3 + $0x18] sm:$0xf] %vm617_vm1, %v711_v58  ;;  %v712_v4 = vpack.c.bf16 %v544_v59, %v544_v59  ;;  %v410_v5 = vadd.f32 %v763_v61, %v1046_v2  ;;  %v766_v6 = vadd.f32 %v765_v0, %v764_v62 }
 0x11b   :  { %625 = vst.msk [vmem:[%s1135_s3 + $0x1c] sm:$0xf] %vm617_vm1, %v712_v4  ;;  %v507_v7 = vadd.f32 %v506_v57, %v410_v5  ;;  %v413_v8 = vadd.f32 %v766_v6, %v1046_v2 }
 0x11d   :  { %v545_v10 = vmax.f32 %v507_v7, 0.0  ;;  %v510_v11 = vadd.f32 %v509_v3, %v413_v8  ;;  %v767_v12 = vpop.f32.mrb[20].mxu0  ;;  %v813_v13 = vpop.f32.mrb[20].mxu1 }
 0x11e   :  { %v531_v15 = vadd.f32 %v813_v13, %v434_v9  ;;  %v768_v16 = vpop.f32.mrb[21].mxu0  ;;  %v522_v17 = vpop.f32.mrb[21].mxu1 }
 0x11f   :  { %v713_v19 = vpack.c.bf16 %v545_v10, %v545_v10  ;;  %v546_v20 = vmax.f32 %v510_v11, 0.0  ;;  %v769_v21 = vadd.f32 %v768_v16, %v767_v12  ;;  %v523_v22 = vadd.f32 %v522_v17, %v426_v14  ;;  %v770_v23 = vpop.f32.mrb[22].mxu0  ;;  %v814_v24 = vpop.f32.mrb[22].mxu1 }
 0x120   :  { %v551_v60 = vmax.f32 %v531_v15, 0.0  ;;  %v534_v25 = vadd.f32 %v814_v24, %v437_v18  ;;  %v771_v26 = vpop.f32.mrb[23].mxu0  ;;  %v525_v28 = vpop.f32.mrb[23].mxu1 }
 0x121   :  { %626 = vst.msk [vmem:[%s1135_s3 + $0x20] sm:$0xf] %vm617_vm1, %v713_v19  ;;  %v714_v48 = vpack.c.bf16 %v546_v20, %v546_v20  ;;  %v418_v1 = vadd.f32 %v769_v21, %v1046_v2  ;;  %v549_v29 = vmax.f32 %v523_v22, 0.0  ;;  %v772_v30 = vadd.f32 %v771_v26, %v770_v23 }
 0x122   :  { %v719_v31 = vpack.c.bf16 %v551_v60, %v551_v60  ;;  %v552_v32 = vmax.f32 %v534_v25, 0.0  ;;  %v526_v33 = vadd.f32 %v525_v28, %v429_v27 }
 0x123   :  { %627 = vst.msk [vmem:[%s1135_s3 + $0x24] sm:$0xf] %vm617_vm1, %v714_v48  ;;  %v515_v53 = vadd.f32 %v809_v55, %v418_v1  ;;  %v717_v34 = vpack.c.bf16 %v549_v29, %v549_v29  ;;  %v421_v35 = vadd.f32 %v772_v30, %v1046_v2 }
 0x124   :  { %632 = vst.msk [vmem:[%s1135_s3 + $0x38] sm:$0xf] %vm617_vm1, %v719_v31  ;;  %v720_v36 = vpack.c.bf16 %v552_v32, %v552_v32  ;;  %v550_v37 = vmax.f32 %v526_v33, 0.0 }
 0x125   :  { %v547_v38 = vmax.f32 %v515_v53, 0.0  ;;  %630 = vst.msk [vmem:[%s1135_s3 + $0x30] sm:$0xf] %vm617_vm1, %v717_v34  ;;  %v518_v39 = vadd.f32 %v810_v63, %v421_v35 }
 0x126   :  { %633 = vst.msk [vmem:[%s1135_s3 + $0x3c] sm:$0xf] %vm617_vm1, %v720_v36  ;;  %v718_v2 = vpack.c.bf16 %v550_v37, %v550_v37 }
 0x127   :  { %v715_v40 = vpack.c.bf16 %v547_v38, %v547_v38  ;;  %v548_v41 = vmax.f32 %v518_v39, 0.0 }
 0x128   :  { %631 = vst.msk [vmem:[%s1135_s3 + $0x34] sm:$0xf] %vm617_vm1, %v718_v2 }
 0x129   :  { %628 = vst.msk [vmem:[%s1135_s3 + $0x28] sm:$0xf] %vm617_vm1, %v715_v40  ;;  %v716_v42 = vpack.c.bf16 %v548_v41, %v548_v41 }
 0x12b   :  { %629 = vst.msk [vmem:[%s1135_s3 + $0x2c] sm:$0xf] %vm617_vm1, %v716_v42 }

// kernel: _lambda_.36
= control target key start
LH: loop header
LB: loop body
LE: loop exit
PB: predicated region body
PF: predicated region fallthrough
CT: control target
= control target key end

     0   :  { %vm318_vm0 = vcmask 261120   ;;  %vm617_vm1 = vcmask 519168   ;;  %s1132_s1 = inlined_call_operand.vmem [shape: bf16[288,64], index: 1, kind: input, shape index: {}]   ;;  %s1133_s0 = inlined_call_operand.vmem [shape: bf16[128,288], index: 0, kind: input, shape index: {}]   ;;  %s1134_s2 = inlined_call_operand.vmem [shape: f32[1,64], index: 2, kind: input, shape index: {}]   ;;  %s1135_s3 = inlined_call_operand.vmem [shape: bf16[128,64], index: 3, kind: output, shape index: {}]  }
   0x1   :  { %v831_v0 = vld [vmem:[%s1132_s1 + $0x40] sm:$0xff]   ;;  %v833_v2 = vld [vmem:[%s1132_s1 + $0x48] sm:$0xff]   ;;  %v835_v4 = vld [vmem:[%s1132_s1 + $0x50] sm:$0xff]  }
   0x2   :  { %v832_v1 = vld [vmem:[%s1132_s1] sm:$0xff]   ;;  %721 = vmatprep.subr.bf16.mxu0 %v831_v0  ;;  %815 = vmatprep.subr.bf16.mxu1 %v831_v0  ;;  %v834_v3 = vld [vmem:[%s1132_s1 + $0x8] sm:$0xff]   ;;  %v836_v5 = vld [vmem:[%s1132_s1 + $0x10] sm:$0xff]  }
   0x3   :  { %722 = vmatpush3.bf16.msra.mxu0 %v832_v1  ;;  %823 = vmatpush3.bf16.msra.mxu1 %v832_v1  ;;  %v837_v6 = vld [vmem:[%s1132_s1 + $0x58] sm:$0xff]   ;;  %v839_v8 = vld [vmem:[%s1132_s1 + $0x60] sm:$0xff]   ;;  %v841_v10 = vld [vmem:[%s1132_s1 + $0x68] sm:$0xff]  }
   0x4   :  { %723 = vmatprep.subr.bf16.mxu0 %v833_v2  ;;  %816 = vmatprep.subr.bf16.mxu1 %v833_v2  ;;  %v838_v7 = vld [vmem:[%s1132_s1 + $0x18] sm:$0xff]   ;;  %v840_v9 = vld [vmem:[%s1132_s1 + $0x20] sm:$0xff]   ;;  %v842_v13 = vld [vmem:[%s1132_s1 + $0x28] sm:$0xff]  }
   0x5   :  { %v849_v11 = vld [vmem:[%s1133_s0 + $0x4] ss:$12 sps:$4 sm:$0xff]   ;;  %v852_v12 = vld [vmem:[%s1133_s0 + $0x94] ss:$12 sps:$4 sm:$0xff]   ;;  %v845_v16 = vld [vmem:[%s1132_s1 + $0x78] sm:$0xff]  }
   0x6   :  { %v843_v14 = vld [vmem:[%s1132_s1 + $0x70] sm:$0xff]   ;;  %375 = vmatprep.mubr.bf16.mxu0 %v849_v11  ;;  %423 = vmatprep.mubr.bf16.mxu1 %v852_v12  ;;  %v846_v17 = vld [vmem:[%s1132_s1 + $0x38] sm:$0xff]   ;;  %v847_v18 = vld [vmem:[%s1133_s0] ss:$12 sps:$4 sm:$0xff]  }
   0x7   :  { %724 = vmatpush3.bf16.msra.mxu0 %v834_v3  ;;  %824 = vmatpush3.bf16.msra.mxu1 %v834_v3  ;;  %v844_v15 = vld [vmem:[%s1132_s1 + $0x30] sm:$0xff]   ;;  %v853_v19 = vld [vmem:[%s1132_s1 + $0x80] sm:$0xff]   ;;  %v854_v21 = vld [vmem:[%s1133_s0 + $0x1c] ss:$12 sps:$4 sm:$0xff]  }
   0x8   :  { %725 = vmatprep.subr.bf16.mxu0 %v835_v4  ;;  %817 = vmatprep.subr.bf16.mxu1 %v835_v4  ;;  %v850_v20 = vld [vmem:[%s1133_s0 + $0x90] ss:$12 sps:$4 sm:$0xff]   ;;  %v856_v22 = vld [vmem:[%s1133_s0 + $0xac] ss:$12 sps:$4 sm:$0xff]   ;;  %v859_v25 = vld [vmem:[%s1133_s0 + $0xa8] ss:$12 sps:$4 sm:$0xff]  }
   0x9   :  { %v860_v23 = vld [vmem:[%s1132_s1 + $0x88] sm:$0xff]   ;;  %v858_v24 = vld [vmem:[%s1133_s0 + $0x18] ss:$12 sps:$4 sm:$0xff]   ;;  %v861_v26 = vld [vmem:[%s1133_s0 + $0x34] ss:$12 sps:$4 sm:$0xff]  }
   0xa   :  { %v863_v27 = vld [vmem:[%s1133_s0 + $0x8] ss:$12 sps:$4 sm:$0xff]   ;;  %v864_v28 = vld [vmem:[%s1133_s0 + $0x30] ss:$12 sps:$4 sm:$0xff]   ;;  %v865_v29 = vld [vmem:[%s1133_s0 + $0x20] ss:$12 sps:$4 sm:$0xff]  }
   0xb   :  { %726 = vmatpush3.bf16.msra.mxu0 %v836_v5  ;;  %825 = vmatpush3.bf16.msra.mxu1 %v836_v5  ;;  %v866_v30 = vld [vmem:[%s1133_s0 + $0x4c] ss:$12 sps:$4 sm:$0xff]   ;;  %v869_v32 = vld [vmem:[%s1133_s0 + $0x48] ss:$12 sps:$4 sm:$0xff]   ;;  %v870_v33 = vld [vmem:[%s1133_s0 + $0x50] ss:$12 sps:$4 sm:$0xff]  }
   0xc   :  { %727 = vmatprep.subr.bf16.mxu0 %v837_v6  ;;  %818 = vmatprep.subr.bf16.mxu1 %v837_v6  ;;  %v868_v31 = vld [vmem:[%s1133_s0 + $0x38] ss:$12 sps:$4 sm:$0xff]   ;;  %v873_v35 = vld [vmem:[%s1133_s0 + $0x68] ss:$12 sps:$4 sm:$0xff]   ;;  %v874_v36 = vld [vmem:[%s1133_s0 + $0x60] ss:$12 sps:$4 sm:$0xff]  }
   0xd   :  { %v871_v34 = vld [vmem:[%s1133_s0 + $0x64] ss:$12 sps:$4 sm:$0xff]   ;;  %v875_v37 = vld [vmem:[%s1133_s0 + $0x80] ss:$12 sps:$4 sm:$0xff]   ;;  %v876_v38 = vld [vmem:[%s1133_s0 + $0x7c] ss:$12 sps:$4 sm:$0xff]  }
   0xe   :  { %v878_v39 = vld [vmem:[%s1133_s0 + $0x98] ss:$12 sps:$4 sm:$0xff]   ;;  %v880_v41 = vld [vmem:[%s1133_s0 + $0xb0] ss:$12 sps:$4 sm:$0xff]   ;;  %v1046_v2 = vld [vmem:[%s1134_s2] ss:$0 sm:$0xff] }
   0xf   :  { %728 = vmatpush3.bf16.msra.mxu0 %v838_v7  ;;  %826 = vmatpush3.bf16.msra.mxu1 %v838_v7  ;;  %v879_v40 = vld [vmem:[%s1133_s0 + $0x78] ss:$12 sps:$4 sm:$0xff]  }
  0x10   :  { %729 = vmatprep.subr.bf16.mxu0 %v839_v8  ;;  %819 = vmatprep.subr.bf16.mxu1 %v839_v8 }
  0x13   :  { %730 = vmatpush3.bf16.msra.mxu0 %v840_v9  ;;  %827 = vmatpush3.bf16.msra.mxu1 %v840_v9 }
  0x14   :  { %731 = vmatprep.subr.bf16.mxu0 %v841_v10  ;;  %820 = vmatprep.subr.bf16.mxu1 %v841_v10 }
  0x17   :  { %732 = vmatpush3.bf16.msra.mxu0 %v842_v13  ;;  %828 = vmatpush3.bf16.msra.mxu1 %v842_v13 }
  0x18   :  { %733 = vmatprep.subr.bf16.mxu0 %v843_v14  ;;  %821 = vmatprep.subr.bf16.mxu1 %v843_v14 }
  0x1b   :  { %734 = vmatpush3.bf16.msra.mxu0 %v844_v15  ;;  %829 = vmatpush3.bf16.msra.mxu1 %v844_v15 }
  0x1c   :  { %735 = vmatprep.subr.bf16.mxu0 %v845_v16  ;;  %822 = vmatprep.subr.bf16.mxu1 %v845_v16 }
  0x1f   :  { %736 = vmatpush3.bf16.msra.mxu0 %v846_v17  ;;  %830 = vmatpush3.bf16.msra.mxu1 %v846_v17 }
  0x20   :  { %795 = vmatprep.subr.bf16.mxu1 %v853_v19 }
  0x22   :  { %376 = vmatmul.mubr.bf16.vlgmr.msra.gmra.mrb[0].mxu0 %v847_v18  ;;  %424 = vmatmul.mubr.bf16.vlgmr.msra.gmra.mrb[0].mxu1 %v850_v20 }
  0x23   :  { %796 = vmatpush3.bf16.msra.mxu1 %v853_v19  ;;  %383 = vmatprep.mubr.bf16.mxu0 %v854_v21 }
  0x24   :  { %431 = vmatprep.mubr.bf16.mxu1 %v856_v22  ;;  %797 = vmatprep.subr.bf16.mxu1 %v860_v23 }
  0x27   :  { %798 = vmatpush3.bf16.msra.mxu1 %v860_v23 }
  0x2a   :  { %384 = vmatmul.mubr.bf16.gmra.mrb[4].mxu0 %v858_v24  ;;  %432 = vmatmul.mubr.bf16.gmra.mrb[4].mxu1 %v859_v25 }
  0x2b   :  { %391 = vmatprep.mubr.bf16.mxu0 %v861_v26  ;;  %799 = vmatprep.mubr.msk.bf16.mxu1 %vm318_vm0, %v863_v27 }
  0x32   :  { %392 = vmatmul.mubr.bf16.gmra.mrb[8].mxu0 %v864_v28  ;;  %800 = vmatmul.mubr.msk.bf16.vlgmr.msra.gmra.mrb[8].mxu1 %vm318_vm0, %v865_v29 }
  0x33   :  { %399 = vmatprep.mubr.bf16.mxu0 %v866_v30  ;;  %803 = vmatprep.mubr.msk.bf16.mxu1 %vm318_vm0, %v868_v31 }
  0x3a   :  { %400 = vmatmul.mubr.bf16.gmra.mrb[12].mxu0 %v869_v32  ;;  %804 = vmatmul.mubr.msk.bf16.gmra.mrb[12].mxu1 %vm318_vm0, %v870_v33 }
  0x3b   :  { %407 = vmatprep.mubr.bf16.mxu0 %v871_v34  ;;  %807 = vmatprep.mubr.msk.bf16.mxu1 %vm318_vm0, %v873_v35 }
  0x42   :  { %408 = vmatmul.mubr.bf16.gmra.mrb[16].mxu0 %v874_v36  ;;  %808 = vmatmul.mubr.msk.bf16.gmra.mrb[16].mxu1 %vm318_vm0, %v875_v37 }
  0x43   :  { %415 = vmatprep.mubr.bf16.mxu0 %v876_v38  ;;  %811 = vmatprep.mubr.msk.bf16.mxu1 %vm318_vm0, %v878_v39 }
  0x4a   :  { %416 = vmatmul.mubr.bf16.gmra.mrb[20].mxu0 %v879_v40  ;;  %812 = vmatmul.mubr.msk.bf16.gmra.mrb[20].mxu1 %vm318_vm0, %v880_v41 }
  0xf5   :  { %v737_v42 = vpop.f32.mrb[0].mxu0  ;;  %v773_v43 = vpop.f32.mrb[0].mxu1 }
  0xf6   :  { %v738_v44 = vpop.f32.mrb[1].mxu0  ;;  %v774_v45 = vpop.f32.mrb[1].mxu1 }
  0xf7   :  { %v739_v46 = vadd.f32 %v738_v44, %v737_v42  ;;  %v740_v47 = vpop.f32.mrb[2].mxu0  ;;  %v1035_v48 = vadd.f32 %v774_v45, %v773_v43  ;;  %v776_v49 = vpop.f32.mrb[2].mxu1 }
  0xf8   :  { %v741_v50 = vpop.f32.mrb[3].mxu0  ;;  %v777_v51 = vpop.f32.mrb[3].mxu1 }
  0xf9   :  { %v742_v52 = vadd.f32 %v741_v50, %v740_v47  ;;  %v1037_v53 = vadd.f32 %v777_v51, %v776_v49  ;;  %v378_v6 = vadd.f32 %v739_v46, %v1046_v2 }
  0xfb   :  { %v381_v15 = vadd.f32 %v742_v52, %v1046_v2 }
  0xfd   :  { %v743_v54 = vpop.f32.mrb[4].mxu0  ;;  %v779_v55 = vpop.f32.mrb[4].mxu1 }
  0xfe   :  { %v744_v56 = vpop.f32.mrb[5].mxu0  ;;  %v780_v57 = vpop.f32.mrb[5].mxu1 }
  0xff   :  { %v745_v58 = vadd.f32 %v744_v56, %v743_v54  ;;  %v746_v59 = vpop.f32.mrb[6].mxu0  ;;  %v1039_v60 = vadd.f32 %v780_v57, %v779_v55  ;;  %v782_v61 = vpop.f32.mrb[6].mxu1 }
 0x100   :  { %v747_v62 = vpop.f32.mrb[7].mxu0  ;;  %v783_v63 = vpop.f32.mrb[7].mxu1 }
 0x101   :  { %v748_v0 = vadd.f32 %v747_v62, %v746_v59  ;;  %v1041_v1 = vadd.f32 %v783_v63, %v782_v61  ;;  %v386_v3 = vadd.f32 %v745_v58, %v1046_v2 }
 0x103   :  { %v389_v10 = vadd.f32 %v748_v0, %v1046_v2 }
 0x105   :  { %v749_v4 = vpop.f32.mrb[8].mxu0  ;;  %v801_v5 = vpop.f32.mrb[8].mxu1 }
 0x106   :  { %v483_v7 = vadd.f32 %v801_v5, %v386_v3  ;;  %v750_v8 = vpop.f32.mrb[9].mxu0  ;;  %v474_v9 = vpop.f32.mrb[9].mxu1 }
 0x107   :  { %v751_v11 = vadd.f32 %v750_v8, %v749_v4  ;;  %v475_v12 = vadd.f32 %v474_v9, %v378_v6  ;;  %v752_v13 = vpop.f32.mrb[10].mxu0  ;;  %v802_v14 = vpop.f32.mrb[10].mxu1  ;;  %v434_v9 = vadd.f32 %v1039_v60, %v1046_v2 }
 0x108   :  { %v539_v16 = vmax.f32 %v483_v7, 0.0  ;;  %v486_v17 = vadd.f32 %v802_v14, %v389_v10  ;;  %v753_v18 = vpop.f32.mrb[11].mxu0  ;;  %v477_v19 = vpop.f32.mrb[11].mxu1  ;;  %v426_v14 = vadd.f32 %v1035_v48, %v1046_v2 }
 0x109   :  { %v537_v20 = vmax.f32 %v475_v12, 0.0  ;;  %v754_v21 = vadd.f32 %v753_v18, %v752_v13  ;;  %v478_v22 = vadd.f32 %v477_v19, %v381_v15  ;;  %v394_v31 = vadd.f32 %v751_v11, %v1046_v2 }
 0x10a   :  { %v707_v23 = vpack.c.bf16 %v539_v16, %v539_v16  ;;  %v540_v24 = vmax.f32 %v486_v17, 0.0  ;;  %v437_v18 = vadd.f32 %v1041_v1, %v1046_v2 }
 0x10b   :  { %v705_v25 = vpack.c.bf16 %v537_v20, %v537_v20  ;;  %v538_v26 = vmax.f32 %v478_v22, 0.0  ;;  %v397_v38 = vadd.f32 %v754_v21, %v1046_v2 }
 0x10c   :  { %620 = vst.msk [vmem:[%s1135_s3 + $0x8] sm:$0xf] %vm617_vm1, %v707_v23  ;;  %v708_v27 = vpack.c.bf16 %v540_v24, %v540_v24 }
 0x10d   :  { %618 = vst.msk [vmem:[%s1135_s3] sm:$0xf] %vm617_vm1, %v705_v25  ;;  %v706_v28 = vpack.c.bf16 %v538_v26, %v538_v26  ;;  %v755_v29 = vpop.f32.mrb[12].mxu0  ;;  %v805_v30 = vpop.f32.mrb[12].mxu1 }
 0x10e   :  { %621 = vst.msk [vmem:[%s1135_s3 + $0xc] sm:$0xf] %vm617_vm1, %v708_v27  ;;  %v756_v32 = vpop.f32.mrb[13].mxu0  ;;  %v490_v33 = vpop.f32.mrb[13].mxu1  ;;  %v429_v27 = vadd.f32 %v1037_v53, %v1046_v2 }
 0x10f   :  { %619 = vst.msk [vmem:[%s1135_s3 + $0x4] sm:$0xf] %vm617_vm1, %v706_v28  ;;  %v757_v34 = vadd.f32 %v756_v32, %v755_v29  ;;  %v491_v35 = vadd.f32 %v490_v33, %v394_v31  ;;  %v758_v36 = vpop.f32.mrb[14].mxu0  ;;  %v806_v37 = vpop.f32.mrb[14].mxu1 }
 0x110   :  { %v759_v39 = vpop.f32.mrb[15].mxu0  ;;  %v493_v40 = vpop.f32.mrb[15].mxu1 }
 0x111   :  { %v402_v41 = vadd.f32 %v757_v34, %v1046_v2  ;;  %v541_v42 = vmax.f32 %v491_v35, 0.0  ;;  %v760_v43 = vadd.f32 %v759_v39, %v758_v36  ;;  %v494_v44 = vadd.f32 %v493_v40, %v397_v38 }
 0x113   :  { %v499_v45 = vadd.f32 %v805_v30, %v402_v41  ;;  %v709_v46 = vpack.c.bf16 %v541_v42, %v541_v42  ;;  %v405_v47 = vadd.f32 %v760_v43, %v1046_v2  ;;  %v542_v49 = vmax.f32 %v494_v44, 0.0 }
 0x115   :  { %v543_v50 = vmax.f32 %v499_v45, 0.0  ;;  %622 = vst.msk [vmem:[%s1135_s3 + $0x10] sm:$0xf] %vm617_vm1, %v709_v46  ;;  %v502_v51 = vadd.f32 %v806_v37, %v405_v47  ;;  %v710_v52 = vpack.c.bf16 %v542_v49, %v542_v49  ;;  %v761_v54 = vpop.f32.mrb[16].mxu0  ;;  %v809_v55 = vpop.f32.mrb[16].mxu1 }
 0x116   :  { %v762_v56 = vpop.f32.mrb[17].mxu0  ;;  %v506_v57 = vpop.f32.mrb[17].mxu1 }
 0x117   :  { %v711_v58 = vpack.c.bf16 %v543_v50, %v543_v50  ;;  %v544_v59 = vmax.f32 %v502_v51, 0.0  ;;  %623 = vst.msk [vmem:[%s1135_s3 + $0x14] sm:$0xf] %vm617_vm1, %v710_v52  ;;  %v763_v61 = vadd.f32 %v762_v56, %v761_v54  ;;  %v764_v62 = vpop.f32.mrb[18].mxu0  ;;  %v810_v63 = vpop.f32.mrb[18].mxu1 }
 0x118   :  { %v765_v0 = vpop.f32.mrb[19].mxu0  ;;  %v509_v3 = vpop.f32.mrb[19].mxu1 }
 0x119   :  { %624 = vst.msk [vmem:[%s1135_s3 + $0x18] sm:$0xf] %vm617_vm1, %v711_v58  ;;  %v712_v4 = vpack.c.bf16 %v544_v59, %v544_v59  ;;  %v410_v5 = vadd.f32 %v763_v61, %v1046_v2  ;;  %v766_v6 = vadd.f32 %v765_v0, %v764_v62 }
 0x11b   :  { %625 = vst.msk [vmem:[%s1135_s3 + $0x1c] sm:$0xf] %vm617_vm1, %v712_v4  ;;  %v507_v7 = vadd.f32 %v506_v57, %v410_v5  ;;  %v413_v8 = vadd.f32 %v766_v6, %v1046_v2 }
 0x11d   :  { %v545_v10 = vmax.f32 %v507_v7, 0.0  ;;  %v510_v11 = vadd.f32 %v509_v3, %v413_v8  ;;  %v767_v12 = vpop.f32.mrb[20].mxu0  ;;  %v813_v13 = vpop.f32.mrb[20].mxu1 }
 0x11e   :  { %v531_v15 = vadd.f32 %v813_v13, %v434_v9  ;;  %v768_v16 = vpop.f32.mrb[21].mxu0  ;;  %v522_v17 = vpop.f32.mrb[21].mxu1 }
 0x11f   :  { %v713_v19 = vpack.c.bf16 %v545_v10, %v545_v10  ;;  %v546_v20 = vmax.f32 %v510_v11, 0.0  ;;  %v769_v21 = vadd.f32 %v768_v16, %v767_v12  ;;  %v523_v22 = vadd.f32 %v522_v17, %v426_v14  ;;  %v770_v23 = vpop.f32.mrb[22].mxu0  ;;  %v814_v24 = vpop.f32.mrb[22].mxu1 }
 0x120   :  { %v551_v60 = vmax.f32 %v531_v15, 0.0  ;;  %v534_v25 = vadd.f32 %v814_v24, %v437_v18  ;;  %v771_v26 = vpop.f32.mrb[23].mxu0  ;;  %v525_v28 = vpop.f32.mrb[23].mxu1 }
 0x121   :  { %626 = vst.msk [vmem:[%s1135_s3 + $0x20] sm:$0xf] %vm617_vm1, %v713_v19  ;;  %v714_v48 = vpack.c.bf16 %v546_v20, %v546_v20  ;;  %v418_v1 = vadd.f32 %v769_v21, %v1046_v2  ;;  %v549_v29 = vmax.f32 %v523_v22, 0.0  ;;  %v772_v30 = vadd.f32 %v771_v26, %v770_v23 }
 0x122   :  { %v719_v31 = vpack.c.bf16 %v551_v60, %v551_v60  ;;  %v552_v32 = vmax.f32 %v534_v25, 0.0  ;;  %v526_v33 = vadd.f32 %v525_v28, %v429_v27 }
 0x123   :  { %627 = vst.msk [vmem:[%s1135_s3 + $0x24] sm:$0xf] %vm617_vm1, %v714_v48  ;;  %v515_v53 = vadd.f32 %v809_v55, %v418_v1  ;;  %v717_v34 = vpack.c.bf16 %v549_v29, %v549_v29  ;;  %v421_v35 = vadd.f32 %v772_v30, %v1046_v2 }
 0x124   :  { %632 = vst.msk [vmem:[%s1135_s3 + $0x38] sm:$0xf] %vm617_vm1, %v719_v31  ;;  %v720_v36 = vpack.c.bf16 %v552_v32, %v552_v32  ;;  %v550_v37 = vmax.f32 %v526_v33, 0.0 }
 0x125   :  { %v547_v38 = vmax.f32 %v515_v53, 0.0  ;;  %630 = vst.msk [vmem:[%s1135_s3 + $0x30] sm:$0xf] %vm617_vm1, %v717_v34  ;;  %v518_v39 = vadd.f32 %v810_v63, %v421_v35 }
 0x126   :  { %633 = vst.msk [vmem:[%s1135_s3 + $0x3c] sm:$0xf] %vm617_vm1, %v720_v36  ;;  %v718_v2 = vpack.c.bf16 %v550_v37, %v550_v37 }
 0x127   :  { %v715_v40 = vpack.c.bf16 %v547_v38, %v547_v38  ;;  %v548_v41 = vmax.f32 %v518_v39, 0.0 }
 0x128   :  { %631 = vst.msk [vmem:[%s1135_s3 + $0x34] sm:$0xf] %vm617_vm1, %v718_v2 }
 0x129   :  { %628 = vst.msk [vmem:[%s1135_s3 + $0x28] sm:$0xf] %vm617_vm1, %v715_v40  ;;  %v716_v42 = vpack.c.bf16 %v548_v41, %v548_v41 }
 0x12b   :  { %629 = vst.msk [vmem:[%s1135_s3 + $0x2c] sm:$0xf] %vm617_vm1, %v716_v42 }

// kernel: _lambda_.37
= control target key start
LH: loop header
LB: loop body
LE: loop exit
PB: predicated region body
PF: predicated region fallthrough
CT: control target
= control target key end

     0   :  { %vm558_vm0 = vcmask 523264   ;;  %vm954_vm1 = vcmask 519168   ;;  %s1730_s1 = inlined_call_operand.vmem [shape: bf16[576,64], index: 1, kind: input, shape index: {}]   ;;  %s1731_s0 = inlined_call_operand.vmem [shape: bf16[128,576], index: 0, kind: input, shape index: {}]   ;;  %s1732_s2 = inlined_call_operand.vmem [shape: f32[1,64], index: 2, kind: input, shape index: {}]   ;;  %s1733_s3 = inlined_call_operand.vmem [shape: bf16[128,64], index: 3, kind: output, shape index: {}]  }
   0x1   :  { %v1264_v0 = vld [vmem:[%s1730_s1 + $0x40] sm:$0xff]   ;;  %v1268_v4 = vld [vmem:[%s1730_s1 + $0x48] sm:$0xff]   ;;  %v1272_v8 = vld [vmem:[%s1730_s1 + $0x50] sm:$0xff]  }
   0x2   :  { %v1265_v1 = vld [vmem:[%s1730_s1 + $0xc0] sm:$0xff]   ;;  %1092 = vmatprep.subr.bf16.mxu0 %v1264_v0  ;;  %v1269_v5 = vld [vmem:[%s1730_s1 + $0xc8] sm:$0xff]   ;;  %v1273_v9 = vld [vmem:[%s1730_s1 + $0xd0] sm:$0xff]  }
   0x3   :  { %v1266_v2 = vld [vmem:[%s1730_s1] sm:$0xff]   ;;  %1156 = vmatprep.subr.bf16.mxu1 %v1265_v1  ;;  %v1270_v6 = vld [vmem:[%s1730_s1 + $0x8] sm:$0xff]   ;;  %v1274_v10 = vld [vmem:[%s1730_s1 + $0x10] sm:$0xff]  }
   0x4   :  { %v1267_v3 = vld [vmem:[%s1730_s1 + $0x80] sm:$0xff]   ;;  %1093 = vmatpush3.bf16.msra.mxu0 %v1266_v2  ;;  %v1271_v7 = vld [vmem:[%s1730_s1 + $0x88] sm:$0xff]   ;;  %v1275_v11 = vld [vmem:[%s1730_s1 + $0x90] sm:$0xff]  }
   0x5   :  { %1157 = vmatpush3.bf16.msra.mxu1 %v1267_v3  ;;  %1094 = vmatprep.subr.bf16.mxu0 %v1268_v4  ;;  %v1276_v12 = vld [vmem:[%s1730_s1 + $0x58] sm:$0xff]   ;;  %v1280_v16 = vld [vmem:[%s1730_s1 + $0x60] sm:$0xff]   ;;  %v1284_v20 = vld [vmem:[%s1730_s1 + $0x68] sm:$0xff]  }
   0x6   :  { %1158 = vmatprep.subr.bf16.mxu1 %v1269_v5  ;;  %v1277_v13 = vld [vmem:[%s1730_s1 + $0xd8] sm:$0xff]   ;;  %v1281_v17 = vld [vmem:[%s1730_s1 + $0xe0] sm:$0xff]   ;;  %v1285_v21 = vld [vmem:[%s1730_s1 + $0xe8] sm:$0xff]  }
   0x7   :  { %v1278_v14 = vld [vmem:[%s1730_s1 + $0x18] sm:$0xff]   ;;  %v1282_v18 = vld [vmem:[%s1730_s1 + $0x20] sm:$0xff]   ;;  %v1286_v22 = vld [vmem:[%s1730_s1 + $0x28] sm:$0xff]  }
   0x8   :  { %1095 = vmatpush3.bf16.msra.mxu0 %v1270_v6  ;;  %v1279_v15 = vld [vmem:[%s1730_s1 + $0x98] sm:$0xff]   ;;  %v1283_v19 = vld [vmem:[%s1730_s1 + $0xa0] sm:$0xff]   ;;  %v1287_v23 = vld [vmem:[%s1730_s1 + $0xa8] sm:$0xff]  }
   0x9   :  { %1159 = vmatpush3.bf16.msra.mxu1 %v1271_v7  ;;  %1096 = vmatprep.subr.bf16.mxu0 %v1272_v8  ;;  %v1288_v24 = vld [vmem:[%s1730_s1 + $0x70] sm:$0xff]   ;;  %v1292_v28 = vld [vmem:[%s1730_s1 + $0x78] sm:$0xff]   ;;  %v1301_v35 = vld [vmem:[%s1731_s0 + $0xc] ss:$20 sps:$4 sm:$0xff]  }
   0xa   :  { %1160 = vmatprep.subr.bf16.mxu1 %v1273_v9  ;;  %v1289_v25 = vld [vmem:[%s1730_s1 + $0xf0] sm:$0xff]   ;;  %v1293_v29 = vld [vmem:[%s1730_s1 + $0xf8] sm:$0xff]   ;;  %v1302_v36 = vld [vmem:[%s1730_s1 + $0x100] sm:$0xff]   ;;  %712 = vmatprep.mubr.bf16.mxu1 %v1301_v35 }
   0xb   :  { %v1290_v26 = vld [vmem:[%s1730_s1 + $0x30] sm:$0xff]   ;;  %v1294_v30 = vld [vmem:[%s1730_s1 + $0x38] sm:$0xff]   ;;  %v1303_v37 = vld [vmem:[%s1731_s0 + $0x2c] ss:$20 sps:$4 sm:$0xff]  }
   0xc   :  { %1097 = vmatpush3.bf16.msra.mxu0 %v1274_v10  ;;  %v1291_v27 = vld [vmem:[%s1730_s1 + $0xb0] sm:$0xff]   ;;  %v1295_v31 = vld [vmem:[%s1730_s1 + $0xb8] sm:$0xff]   ;;  %v1315_v42 = vld [vmem:[%s1730_s1 + $0x108] sm:$0xff]  }
   0xd   :  { %1161 = vmatpush3.bf16.msra.mxu1 %v1275_v11  ;;  %1098 = vmatprep.subr.bf16.mxu0 %v1276_v12  ;;  %v1296_v32 = vld [vmem:[%s1731_s0] ss:$20 sps:$4 sm:$0xff]   ;;  %v1298_v33 = vld [vmem:[%s1731_s0 + $0x4] ss:$20 sps:$4 sm:$0xff]   ;;  %v1299_v34 = vld [vmem:[%s1731_s0 + $0x8] ss:$20 sps:$4 sm:$0xff]  }
   0xe   :  { %1162 = vmatprep.subr.bf16.mxu1 %v1277_v13  ;;  %615 = vmatprep.mubr.bf16.mxu0 %v1298_v33  ;;  %v1305_v38 = vld [vmem:[%s1731_s0 + $0x34] ss:$20 sps:$4 sm:$0xff]   ;;  %v1308_v40 = vld [vmem:[%s1731_s0 + $0x30] ss:$20 sps:$4 sm:$0xff]   ;;  %v1314_v45 = vld [vmem:[%s1731_s0 + $0x58] ss:$20 sps:$4 sm:$0xff]  }
   0xf   :  { %v1307_v39 = vld [vmem:[%s1731_s0 + $0x28] ss:$20 sps:$4 sm:$0xff]   ;;  %v1313_v44 = vld [vmem:[%s1731_s0 + $0x50] ss:$20 sps:$4 sm:$0xff]   ;;  %v1320_v50 = vld [vmem:[%s1731_s0 + $0x78] ss:$20 sps:$4 sm:$0xff]  }
  0x10   :  { %1099 = vmatpush3.bf16.msra.mxu0 %v1278_v14  ;;  %v1309_v41 = vld [vmem:[%s1731_s0 + $0x54] ss:$20 sps:$4 sm:$0xff]   ;;  %v1311_v43 = vld [vmem:[%s1731_s0 + $0x5c] ss:$20 sps:$4 sm:$0xff]   ;;  %v1318_v48 = vld [vmem:[%s1731_s0 + $0x84] ss:$20 sps:$4 sm:$0xff]  }
  0x11   :  { %1163 = vmatpush3.bf16.msra.mxu1 %v1279_v15  ;;  %1100 = vmatprep.subr.bf16.mxu0 %v1280_v16  ;;  %v1328_v46 = vld [vmem:[%s1730_s1 + $0x110] sm:$0xff]   ;;  %v1341_v49 = vld [vmem:[%s1730_s1 + $0x118] sm:$0xff]   ;;  %v1324_v53 = vld [vmem:[%s1731_s0 + $0xac] ss:$20 sps:$4 sm:$0xff]  }
  0x12   :  { %1164 = vmatprep.subr.bf16.mxu1 %v1281_v17  ;;  %v1316_v47 = vld [vmem:[%s1731_s0 + $0x7c] ss:$20 sps:$4 sm:$0xff]   ;;  %v1321_v51 = vld [vmem:[%s1731_s0 + $0x80] ss:$20 sps:$4 sm:$0xff]   ;;  %v1322_v52 = vld [vmem:[%s1731_s0 + $0xa4] ss:$20 sps:$4 sm:$0xff]  }
  0x13   :  { %v1326_v54 = vld [vmem:[%s1731_s0 + $0xa0] ss:$20 sps:$4 sm:$0xff]   ;;  %v1327_v55 = vld [vmem:[%s1731_s0 + $0xa8] ss:$20 sps:$4 sm:$0xff]   ;;  %v1334_v59 = vld [vmem:[%s1731_s0 + $0xd0] ss:$20 sps:$4 sm:$0xff]  }
  0x14   :  { %1101 = vmatpush3.bf16.msra.mxu0 %v1282_v18  ;;  %v1329_v56 = vld [vmem:[%s1731_s0 + $0xcc] ss:$20 sps:$4 sm:$0xff]   ;;  %v1331_v57 = vld [vmem:[%s1731_s0 + $0xd4] ss:$20 sps:$4 sm:$0xff]   ;;  %v1337_v61 = vld [vmem:[%s1731_s0 + $0xfc] ss:$20 sps:$4 sm:$0xff]  }
  0x15   :  { %1165 = vmatpush3.bf16.msra.mxu1 %v1283_v19  ;;  %1102 = vmatprep.subr.bf16.mxu0 %v1284_v20  ;;  %v1333_v58 = vld [vmem:[%s1731_s0 + $0xc8] ss:$20 sps:$4 sm:$0xff]   ;;  %v1339_v62 = vld [vmem:[%s1731_s0 + $0xf0] ss:$20 sps:$4 sm:$0xff]   ;;  %v1340_v63 = vld [vmem:[%s1731_s0 + $0xf8] ss:$20 sps:$4 sm:$0xff]  }
  0x16   :  { %1166 = vmatprep.subr.bf16.mxu1 %v1285_v21  ;;  %v1335_v60 = vld [vmem:[%s1731_s0 + $0xf4] ss:$20 sps:$4 sm:$0xff]   ;;  %v1342_v0 = vld [vmem:[%s1731_s0 + $0x11c] ss:$20 sps:$4 sm:$0xff]   ;;  %v1344_v1 = vld [vmem:[%s1731_s0 + $0x124] ss:$20 sps:$4 sm:$0xff]  }
  0x17   :  { %v1346_v2 = vld [vmem:[%s1731_s0 + $0x118] ss:$20 sps:$4 sm:$0xff]   ;;  %v1347_v3 = vld [vmem:[%s1731_s0 + $0x120] ss:$20 sps:$4 sm:$0xff]   ;;  %v1348_v4 = vld [vmem:[%s1731_s0 + $0x10] ss:$20 sps:$4 sm:$0xff]  }
  0x18   :  { %1103 = vmatpush3.bf16.msra.mxu0 %v1286_v22  ;;  %v1349_v5 = vld [vmem:[%s1731_s0 + $0xb0] ss:$20 sps:$4 sm:$0xff]   ;;  %v1350_v6 = vld [vmem:[%s1731_s0 + $0x38] ss:$20 sps:$4 sm:$0xff]   ;;  %v1352_v8 = vld [vmem:[%s1731_s0 + $0x60] ss:$20 sps:$4 sm:$0xff]  }
  0x19   :  { %1167 = vmatpush3.bf16.msra.mxu1 %v1287_v23  ;;  %1104 = vmatprep.subr.bf16.mxu0 %v1288_v24  ;;  %v1351_v7 = vld [vmem:[%s1731_s0 + $0xd8] ss:$20 sps:$4 sm:$0xff]   ;;  %v1353_v9 = vld [vmem:[%s1731_s0 + $0x100] ss:$20 sps:$4 sm:$0xff]   ;;  %v1354_v10 = vld [vmem:[%s1731_s0 + $0x88] ss:$20 sps:$4 sm:$0xff]  }
  0x1a   :  { %1168 = vmatprep.subr.bf16.mxu1 %v1289_v25  ;;  %v1355_v11 = vld [vmem:[%s1731_s0 + $0x128] ss:$20 sps:$4 sm:$0xff]   ;;  %v1615_v14 = vld [vmem:[%s1732_s2] ss:$0 sm:$0xff] }
  0x1c   :  { %1105 = vmatpush3.bf16.msra.mxu0 %v1290_v26 }
  0x1d   :  { %1169 = vmatpush3.bf16.msra.mxu1 %v1291_v27  ;;  %1106 = vmatprep.subr.bf16.mxu0 %v1292_v28 }
  0x1e   :  { %1170 = vmatprep.subr.bf16.mxu1 %v1293_v29 }
  0x20   :  { %1107 = vmatpush3.bf16.msra.mxu0 %v1294_v30 }
  0x21   :  { %1171 = vmatpush3.bf16.msra.mxu1 %v1295_v31  ;;  %1232 = vmatprep.subr.bf16.mxu0 %v1302_v36 }
  0x22   :  { %1256 = vmatprep.subr.bf16.mxu1 %v1302_v36 }
  0x23   :  { %616 = vmatmul.mubr.bf16.vlgmr.msra.gmra.mrb[0].mxu0 %v1296_v32 }
  0x24   :  { %713 = vmatmul.mubr.bf16.vlgmr.msra.gmra.mrb[0].mxu1 %v1299_v34  ;;  %1233 = vmatpush3.bf16.msra.mxu0 %v1302_v36 }
  0x25   :  { %1260 = vmatpush3.bf16.msra.mxu1 %v1302_v36  ;;  %623 = vmatprep.mubr.bf16.mxu0 %v1303_v37 }
  0x26   :  { %720 = vmatprep.mubr.bf16.mxu1 %v1305_v38  ;;  %1234 = vmatprep.subr.bf16.mxu0 %v1315_v42 }
  0x27   :  { %1257 = vmatprep.subr.bf16.mxu1 %v1315_v42 }
  0x28   :  { %1235 = vmatpush3.bf16.msra.mxu0 %v1315_v42 }
  0x29   :  { %1261 = vmatpush3.bf16.msra.mxu1 %v1315_v42  ;;  %1236 = vmatprep.subr.bf16.mxu0 %v1328_v46 }
  0x2a   :  { %1258 = vmatprep.subr.bf16.mxu1 %v1328_v46 }
  0x2b   :  { %624 = vmatmul.mubr.bf16.gmra.mrb[4].mxu0 %v1307_v39 }
  0x2c   :  { %721 = vmatmul.mubr.bf16.gmra.mrb[4].mxu1 %v1308_v40  ;;  %631 = vmatprep.mubr.bf16.mxu0 %v1309_v41 }
  0x2d   :  { %728 = vmatprep.mubr.bf16.mxu1 %v1311_v43  ;;  %1237 = vmatpush3.bf16.msra.mxu0 %v1328_v46 }
  0x2e   :  { %1262 = vmatpush3.bf16.msra.mxu1 %v1328_v46  ;;  %1238 = vmatprep.subr.bf16.mxu0 %v1341_v49 }
  0x2f   :  { %1259 = vmatprep.subr.bf16.mxu1 %v1341_v49 }
  0x31   :  { %1239 = vmatpush3.bf16.msra.mxu0 %v1341_v49 }
  0x32   :  { %1263 = vmatpush3.bf16.msra.mxu1 %v1341_v49 }
  0x33   :  { %632 = vmatmul.mubr.bf16.gmra.mrb[8].mxu0 %v1313_v44 }
  0x34   :  { %729 = vmatmul.mubr.bf16.gmra.mrb[8].mxu1 %v1314_v45  ;;  %639 = vmatprep.mubr.bf16.mxu0 %v1316_v47 }
  0x35   :  { %736 = vmatprep.mubr.bf16.mxu1 %v1318_v48 }
  0x3b   :  { %640 = vmatmul.mubr.bf16.gmra.mrb[12].mxu0 %v1320_v50 }
  0x3c   :  { %737 = vmatmul.mubr.bf16.gmra.mrb[12].mxu1 %v1321_v51  ;;  %647 = vmatprep.mubr.bf16.mxu0 %v1322_v52 }
  0x3d   :  { %744 = vmatprep.mubr.bf16.mxu1 %v1324_v53 }
  0x43   :  { %648 = vmatmul.mubr.bf16.gmra.mrb[16].mxu0 %v1326_v54 }
  0x44   :  { %745 = vmatmul.mubr.bf16.gmra.mrb[16].mxu1 %v1327_v55  ;;  %655 = vmatprep.mubr.bf16.mxu0 %v1329_v56 }
  0x45   :  { %752 = vmatprep.mubr.bf16.mxu1 %v1331_v57 }
  0x4b   :  { %656 = vmatmul.mubr.bf16.gmra.mrb[20].mxu0 %v1333_v58 }
  0x4c   :  { %753 = vmatmul.mubr.bf16.gmra.mrb[20].mxu1 %v1334_v59  ;;  %663 = vmatprep.mubr.bf16.mxu0 %v1335_v60 }
  0x4d   :  { %760 = vmatprep.mubr.bf16.mxu1 %v1337_v61 }
  0x53   :  { %664 = vmatmul.mubr.bf16.gmra.mrb[24].mxu0 %v1339_v62 }
  0x54   :  { %761 = vmatmul.mubr.bf16.gmra.mrb[24].mxu1 %v1340_v63  ;;  %671 = vmatprep.mubr.bf16.mxu0 %v1342_v0 }
  0x55   :  { %768 = vmatprep.mubr.bf16.mxu1 %v1344_v1 }
  0x5b   :  { %672 = vmatmul.mubr.bf16.gmra.mrb[28].mxu0 %v1346_v2 }
  0x5c   :  { %769 = vmatmul.mubr.bf16.gmra.mrb[28].mxu1 %v1347_v3  ;;  %1240 = vmatprep.mubr.msk.bf16.mxu0 %vm558_vm0, %v1348_v4 }
  0x5d   :  { %1248 = vmatprep.mubr.msk.bf16.mxu1 %vm558_vm0, %v1349_v5 }
  0x63   :  { %1241 = vmatmul.mubr.msk.bf16.vlgmr.msra.gmra.mrb[32].mxu0 %vm558_vm0, %v1350_v6 }
  0x64   :  { %1249 = vmatmul.mubr.msk.bf16.vlgmr.msra.gmra.mrb[32].mxu1 %vm558_vm0, %v1351_v7  ;;  %1244 = vmatprep.mubr.msk.bf16.mxu0 %vm558_vm0, %v1352_v8 }
  0x65   :  { %1252 = vmatprep.mubr.msk.bf16.mxu1 %vm558_vm0, %v1353_v9 }
  0x6b   :  { %1245 = vmatmul.mubr.msk.bf16.gmra.mrb[36].mxu0 %vm558_vm0, %v1354_v10 }
  0x6c   :  { %1253 = vmatmul.mubr.msk.bf16.gmra.mrb[36].mxu1 %vm558_vm0, %v1355_v11 }
  0xf6   :  { %v1108_v12 = vpop.f32.mrb[0].mxu0 }
  0xf7   :  { %v1172_v13 = vpop.f32.mrb[0].mxu1  ;;  %v1109_v15 = vpop.f32.mrb[1].mxu0 }
  0xf8   :  { %v1110_v16 = vadd.f32 %v1109_v15, %v1108_v12  ;;  %v1173_v17 = vpop.f32.mrb[1].mxu1  ;;  %v1111_v18 = vpop.f32.mrb[2].mxu0 }
  0xf9   :  { %v1174_v19 = vadd.f32 %v1173_v17, %v1172_v13  ;;  %v1175_v20 = vpop.f32.mrb[2].mxu1  ;;  %v1112_v21 = vpop.f32.mrb[3].mxu0 }
  0xfa   :  { %v618_v22 = vadd.f32 %v1110_v16, %v1615_v14  ;;  %v1113_v23 = vadd.f32 %v1112_v21, %v1111_v18  ;;  %v1176_v24 = vpop.f32.mrb[3].mxu1 }
  0xfb   :  { %v1177_v25 = vadd.f32 %v1176_v24, %v1175_v20 }
  0xfc   :  { %v621_v26 = vadd.f32 %v1113_v23, %v1615_v14  ;;  %v1619_v27 = vadd.f32 %v1174_v19, %v618_v22 }
  0xfe   :  { %v1114_v28 = vpop.f32.mrb[4].mxu0  ;;  %v1621_v29 = vadd.f32 %v1177_v25, %v621_v26 }
  0xff   :  { %v1178_v30 = vpop.f32.mrb[4].mxu1  ;;  %v1115_v31 = vpop.f32.mrb[5].mxu0 }
 0x100   :  { %v1116_v32 = vadd.f32 %v1115_v31, %v1114_v28  ;;  %v1179_v33 = vpop.f32.mrb[5].mxu1  ;;  %v1117_v34 = vpop.f32.mrb[6].mxu0 }
 0x101   :  { %v1180_v35 = vadd.f32 %v1179_v33, %v1178_v30  ;;  %v1181_v36 = vpop.f32.mrb[6].mxu1  ;;  %v1118_v37 = vpop.f32.mrb[7].mxu0 }
 0x102   :  { %v626_v38 = vadd.f32 %v1116_v32, %v1615_v14  ;;  %v1119_v39 = vadd.f32 %v1118_v37, %v1117_v34  ;;  %v1182_v40 = vpop.f32.mrb[7].mxu1 }
 0x103   :  { %v1183_v41 = vadd.f32 %v1182_v40, %v1181_v36 }
 0x104   :  { %v629_v42 = vadd.f32 %v1119_v39, %v1615_v14  ;;  %v1625_v43 = vadd.f32 %v1180_v35, %v626_v38 }
 0x106   :  { %v1120_v44 = vpop.f32.mrb[8].mxu0  ;;  %v1627_v45 = vadd.f32 %v1183_v41, %v629_v42 }
 0x107   :  { %v1184_v46 = vpop.f32.mrb[8].mxu1  ;;  %v1121_v47 = vpop.f32.mrb[9].mxu0 }
 0x108   :  { %v1122_v48 = vadd.f32 %v1121_v47, %v1120_v44  ;;  %v1185_v49 = vpop.f32.mrb[9].mxu1  ;;  %v1123_v50 = vpop.f32.mrb[10].mxu0 }
 0x109   :  { %v1186_v51 = vadd.f32 %v1185_v49, %v1184_v46  ;;  %v1187_v52 = vpop.f32.mrb[10].mxu1  ;;  %v1124_v53 = vpop.f32.mrb[11].mxu0 }
 0x10a   :  { %v634_v54 = vadd.f32 %v1122_v48, %v1615_v14  ;;  %v1125_v55 = vadd.f32 %v1124_v53, %v1123_v50  ;;  %v1188_v56 = vpop.f32.mrb[11].mxu1 }
 0x10b   :  { %v1189_v57 = vadd.f32 %v1188_v56, %v1187_v52 }
 0x10c   :  { %v637_v58 = vadd.f32 %v1125_v55, %v1615_v14  ;;  %v1631_v59 = vadd.f32 %v1186_v51, %v634_v54 }
 0x10e   :  { %v1126_v60 = vpop.f32.mrb[12].mxu0  ;;  %v1633_v61 = vadd.f32 %v1189_v57, %v637_v58 }
 0x10f   :  { %v1190_v62 = vpop.f32.mrb[12].mxu1  ;;  %v1127_v63 = vpop.f32.mrb[13].mxu0 }
 0x110   :  { %v1128_v0 = vadd.f32 %v1127_v63, %v1126_v60  ;;  %v1191_v1 = vpop.f32.mrb[13].mxu1  ;;  %v1129_v2 = vpop.f32.mrb[14].mxu0 }
 0x111   :  { %v1192_v3 = vadd.f32 %v1191_v1, %v1190_v62  ;;  %v1193_v4 = vpop.f32.mrb[14].mxu1  ;;  %v1130_v5 = vpop.f32.mrb[15].mxu0 }
 0x112   :  { %v642_v6 = vadd.f32 %v1128_v0, %v1615_v14  ;;  %v1131_v7 = vadd.f32 %v1130_v5, %v1129_v2  ;;  %v1194_v8 = vpop.f32.mrb[15].mxu1 }
 0x113   :  { %v1195_v9 = vadd.f32 %v1194_v8, %v1193_v4 }
 0x114   :  { %v645_v10 = vadd.f32 %v1131_v7, %v1615_v14  ;;  %v1637_v11 = vadd.f32 %v1192_v3, %v642_v6 }
 0x116   :  { %v1132_v12 = vpop.f32.mrb[16].mxu0  ;;  %v1639_v13 = vadd.f32 %v1195_v9, %v645_v10 }
 0x117   :  { %v1196_v15 = vpop.f32.mrb[16].mxu1  ;;  %v1133_v16 = vpop.f32.mrb[17].mxu0 }
 0x118   :  { %v1134_v17 = vadd.f32 %v1133_v16, %v1132_v12  ;;  %v1197_v18 = vpop.f32.mrb[17].mxu1  ;;  %v1135_v19 = vpop.f32.mrb[18].mxu0 }
 0x119   :  { %v1198_v20 = vadd.f32 %v1197_v18, %v1196_v15  ;;  %v1199_v21 = vpop.f32.mrb[18].mxu1  ;;  %v1136_v22 = vpop.f32.mrb[19].mxu0 }
 0x11a   :  { %v650_v23 = vadd.f32 %v1134_v17, %v1615_v14  ;;  %v1137_v24 = vadd.f32 %v1136_v22, %v1135_v19  ;;  %v1200_v25 = vpop.f32.mrb[19].mxu1 }
 0x11b   :  { %v1201_v26 = vadd.f32 %v1200_v25, %v1199_v21 }
 0x11c   :  { %v653_v28 = vadd.f32 %v1137_v24, %v1615_v14  ;;  %v747_v30 = vadd.f32 %v1198_v20, %v650_v23 }
 0x11e   :  { %v1138_v31 = vpop.f32.mrb[20].mxu0  ;;  %v1643_v32 = vadd.f32 %v1201_v26, %v653_v28 }
 0x11f   :  { %v1202_v33 = vpop.f32.mrb[20].mxu1  ;;  %v1139_v34 = vpop.f32.mrb[21].mxu0 }
 0x120   :  { %v1140_v35 = vadd.f32 %v1139_v34, %v1138_v31  ;;  %v1203_v36 = vpop.f32.mrb[21].mxu1  ;;  %v1141_v37 = vpop.f32.mrb[22].mxu0 }
 0x121   :  { %v1204_v38 = vadd.f32 %v1203_v36, %v1202_v33  ;;  %v1205_v39 = vpop.f32.mrb[22].mxu1  ;;  %v1142_v40 = vpop.f32.mrb[23].mxu0 }
 0x122   :  { %v658_v41 = vadd.f32 %v1140_v35, %v1615_v14  ;;  %v1143_v42 = vadd.f32 %v1142_v40, %v1141_v37  ;;  %v1206_v44 = vpop.f32.mrb[23].mxu1 }
 0x123   :  { %v1207_v46 = vadd.f32 %v1206_v44, %v1205_v39 }
 0x124   :  { %v661_v47 = vadd.f32 %v1143_v42, %v1615_v14  ;;  %v755_v48 = vadd.f32 %v1204_v38, %v658_v41 }
 0x126   :  { %v1144_v49 = vpop.f32.mrb[24].mxu0  ;;  %v758_v50 = vadd.f32 %v1207_v46, %v661_v47 }
 0x127   :  { %v1208_v51 = vpop.f32.mrb[24].mxu1  ;;  %v1145_v52 = vpop.f32.mrb[25].mxu0 }
 0x128   :  { %v1146_v53 = vadd.f32 %v1145_v52, %v1144_v49  ;;  %v1209_v54 = vpop.f32.mrb[25].mxu1  ;;  %v1147_v55 = vpop.f32.mrb[26].mxu0 }
 0x129   :  { %v1210_v56 = vadd.f32 %v1209_v54, %v1208_v51  ;;  %v1211_v57 = vpop.f32.mrb[26].mxu1  ;;  %v1148_v58 = vpop.f32.mrb[27].mxu0 }
 0x12a   :  { %v666_v60 = vadd.f32 %v1146_v53, %v1615_v14  ;;  %v1149_v62 = vadd.f32 %v1148_v58, %v1147_v55  ;;  %v1212_v63 = vpop.f32.mrb[27].mxu1 }
 0x12b   :  { %v1213_v0 = vadd.f32 %v1212_v63, %v1211_v57 }
 0x12c   :  { %v669_v1 = vadd.f32 %v1149_v62, %v1615_v14  ;;  %v1649_v2 = vadd.f32 %v1210_v56, %v666_v60 }
 0x12e   :  { %v1150_v3 = vpop.f32.mrb[28].mxu0  ;;  %v1651_v4 = vadd.f32 %v1213_v0, %v669_v1 }
 0x12f   :  { %v1214_v5 = vpop.f32.mrb[28].mxu1  ;;  %v1151_v6 = vpop.f32.mrb[29].mxu0 }
 0x130   :  { %v1152_v7 = vadd.f32 %v1151_v6, %v1150_v3  ;;  %v1215_v8 = vpop.f32.mrb[29].mxu1  ;;  %v1153_v9 = vpop.f32.mrb[30].mxu0 }
 0x131   :  { %v1216_v10 = vadd.f32 %v1215_v8, %v1214_v5  ;;  %v1217_v12 = vpop.f32.mrb[30].mxu1  ;;  %v1154_v15 = vpop.f32.mrb[31].mxu0 }
 0x132   :  { %v674_v16 = vadd.f32 %v1152_v7, %v1615_v14  ;;  %v1155_v17 = vadd.f32 %v1154_v15, %v1153_v9  ;;  %v1218_v18 = vpop.f32.mrb[31].mxu1 }
 0x133   :  { %v1219_v19 = vadd.f32 %v1218_v18, %v1217_v12 }
 0x134   :  { %v677_v20 = vadd.f32 %v1155_v17, %v1615_v14  ;;  %v771_v21 = vadd.f32 %v1216_v10, %v674_v16 }
 0x136   :  { %v1242_v22 = vpop.f32.mrb[32].mxu0  ;;  %v774_v23 = vadd.f32 %v1219_v19, %v677_v20 }
 0x137   :  { %v820_v24 = vadd.f32 %v1242_v22, %v1625_v43  ;;  %v1250_v25 = vpop.f32.mrb[32].mxu1  ;;  %v811_v26 = vpop.f32.mrb[33].mxu0 }
 0x138   :  { %v852_v28 = vadd.f32 %v1250_v25, %v755_v48  ;;  %v812_v31 = vadd.f32 %v811_v26, %v1619_v27  ;;  %v843_v33 = vpop.f32.mrb[33].mxu1  ;;  %v1243_v34 = vpop.f32.mrb[34].mxu0 }
 0x139   :  { %v876_v35 = vmax.f32 %v820_v24, 0.0  ;;  %v844_v36 = vadd.f32 %v843_v33, %v747_v30  ;;  %v823_v37 = vadd.f32 %v1243_v34, %v1627_v45  ;;  %v1251_v38 = vpop.f32.mrb[34].mxu1  ;;  %v814_v39 = vpop.f32.mrb[35].mxu0 }
 0x13a   :  { %v884_v14 = vmax.f32 %v852_v28, 0.0  ;;  %v874_v40 = vmax.f32 %v812_v31, 0.0  ;;  %v855_v41 = vadd.f32 %v1251_v38, %v758_v50  ;;  %v815_v42 = vadd.f32 %v814_v39, %v1621_v29  ;;  %v846_v43 = vpop.f32.mrb[35].mxu1 }
 0x13b   :  { %v1078_v44 = vpack.c.bf16 %v876_v35, %v876_v35  ;;  %v882_v46 = vmax.f32 %v844_v36, 0.0  ;;  %v877_v47 = vmax.f32 %v823_v37, 0.0  ;;  %v847_v27 = vadd.f32 %v846_v43, %v1643_v32 }
 0x13c   :  { %v1086_v48 = vpack.c.bf16 %v884_v14, %v884_v14  ;;  %v1076_v49 = vpack.c.bf16 %v874_v40, %v874_v40  ;;  %v885_v51 = vmax.f32 %v855_v41, 0.0  ;;  %v875_v52 = vmax.f32 %v815_v42, 0.0 }
 0x13d   :  { %957 = vst.msk [vmem:[%s1733_s3 + $0x8] sm:$0xf] %vm954_vm1, %v1078_v44  ;;  %v1084_v45 = vpack.c.bf16 %v882_v46, %v882_v46  ;;  %v1079_v30 = vpack.c.bf16 %v877_v47, %v877_v47  ;;  %v883_v50 = vmax.f32 %v847_v27, 0.0 }
 0x13e   :  { %965 = vst.msk [vmem:[%s1733_s3 + $0x28] sm:$0xf] %vm954_vm1, %v1086_v48  ;;  %955 = vst.msk [vmem:[%s1733_s3] sm:$0xf] %vm954_vm1, %v1076_v49  ;;  %v1087_v29 = vpack.c.bf16 %v885_v51, %v885_v51  ;;  %v1077_v32 = vpack.c.bf16 %v875_v52, %v875_v52  ;;  %v1246_v53 = vpop.f32.mrb[36].mxu0 }
 0x13f   :  { %963 = vst.msk [vmem:[%s1733_s3 + $0x20] sm:$0xf] %vm954_vm1, %v1084_v45  ;;  %958 = vst.msk [vmem:[%s1733_s3 + $0xc] sm:$0xf] %vm954_vm1, %v1079_v30  ;;  %v1085_v54 = vpack.c.bf16 %v883_v50, %v883_v50  ;;  %v836_v55 = vadd.f32 %v1246_v53, %v1637_v11  ;;  %v1254_v56 = vpop.f32.mrb[36].mxu1  ;;  %v827_v57 = vpop.f32.mrb[37].mxu0 }
 0x140   :  { %966 = vst.msk [vmem:[%s1733_s3 + $0x2c] sm:$0xf] %vm954_vm1, %v1087_v29  ;;  %956 = vst.msk [vmem:[%s1733_s3 + $0x4] sm:$0xf] %vm954_vm1, %v1077_v32  ;;  %v868_v58 = vadd.f32 %v1254_v56, %v771_v21  ;;  %v828_v60 = vadd.f32 %v827_v57, %v1631_v59  ;;  %v859_v62 = vpop.f32.mrb[37].mxu1  ;;  %v1247_v63 = vpop.f32.mrb[38].mxu0 }
 0x141   :  { %964 = vst.msk [vmem:[%s1733_s3 + $0x24] sm:$0xf] %vm954_vm1, %v1085_v54  ;;  %v880_v11 = vmax.f32 %v836_v55, 0.0  ;;  %v860_v0 = vadd.f32 %v859_v62, %v1649_v2  ;;  %v839_v1 = vadd.f32 %v1247_v63, %v1639_v13  ;;  %v1255_v3 = vpop.f32.mrb[38].mxu1  ;;  %v830_v5 = vpop.f32.mrb[39].mxu0 }
 0x142   :  { %v888_v6 = vmax.f32 %v868_v58, 0.0  ;;  %v878_v7 = vmax.f32 %v828_v60, 0.0  ;;  %v871_v8 = vadd.f32 %v1255_v3, %v774_v23  ;;  %v831_v9 = vadd.f32 %v830_v5, %v1633_v61  ;;  %v862_v59 = vpop.f32.mrb[39].mxu1 }
 0x143   :  { %v1082_v10 = vpack.c.bf16 %v880_v11, %v880_v11  ;;  %v886_v12 = vmax.f32 %v860_v0, 0.0  ;;  %v881_v15 = vmax.f32 %v839_v1, 0.0  ;;  %v863_v16 = vadd.f32 %v862_v59, %v1651_v4 }
 0x144   :  { %v1090_v17 = vpack.c.bf16 %v888_v6, %v888_v6  ;;  %v1080_v18 = vpack.c.bf16 %v878_v7, %v878_v7  ;;  %v889_v19 = vmax.f32 %v871_v8, 0.0  ;;  %v879_v20 = vmax.f32 %v831_v9, 0.0 }
 0x145   :  { %961 = vst.msk [vmem:[%s1733_s3 + $0x18] sm:$0xf] %vm954_vm1, %v1082_v10  ;;  %v1088_v13 = vpack.c.bf16 %v886_v12, %v886_v12  ;;  %v1083_v2 = vpack.c.bf16 %v881_v15, %v881_v15  ;;  %v887_v21 = vmax.f32 %v863_v16, 0.0 }
 0x146   :  { %969 = vst.msk [vmem:[%s1733_s3 + $0x38] sm:$0xf] %vm954_vm1, %v1090_v17  ;;  %959 = vst.msk [vmem:[%s1733_s3 + $0x10] sm:$0xf] %vm954_vm1, %v1080_v18  ;;  %v1091_v61 = vpack.c.bf16 %v889_v19, %v889_v19  ;;  %v1081_v4 = vpack.c.bf16 %v879_v20, %v879_v20 }
 0x147   :  { %967 = vst.msk [vmem:[%s1733_s3 + $0x30] sm:$0xf] %vm954_vm1, %v1088_v13  ;;  %962 = vst.msk [vmem:[%s1733_s3 + $0x1c] sm:$0xf] %vm954_vm1, %v1083_v2  ;;  %v1089_v22 = vpack.c.bf16 %v887_v21, %v887_v21 }
 0x148   :  { %970 = vst.msk [vmem:[%s1733_s3 + $0x3c] sm:$0xf] %vm954_vm1, %v1091_v61  ;;  %960 = vst.msk [vmem:[%s1733_s3 + $0x14] sm:$0xf] %vm954_vm1, %v1081_v4 }
 0x149   :  { %968 = vst.msk [vmem:[%s1733_s3 + $0x34] sm:$0xf] %vm954_vm1, %v1089_v22 }

// kernel: _lambda_.41
= control target key start
LH: loop header
LB: loop body
LE: loop exit
PB: predicated region body
PF: predicated region fallthrough
CT: control target
= control target key end

     0   :  { %v608_v35 = vmov 0.0   ;;  %vm609_vm0 = vmmov 0   ;;  %vm330_vm1 = vcmask 523264   ;;  %s753_s1 = inlined_call_operand.vmem [shape: bf16[576,128], index: 1, kind: input, shape index: {}]   ;;  %s754_s0 = inlined_call_operand.vmem [shape: bf16[8,576], index: 0, kind: input, shape index: {}]   ;;  %s755_s2 = inlined_call_operand.vmem [shape: f32[1,128], index: 2, kind: input, shape index: {}]   ;;  %s756_s3 = inlined_call_operand.vmem [shape: bf16[8,128], index: 3, kind: output, shape index: {}]  }
   0x1   :  { %v567_v0 = vld [vmem:[%s753_s1 + $0x40] sm:$0xff]   ;;  %v571_v4 = vld [vmem:[%s753_s1 + $0x48] sm:$0xff]   ;;  %v575_v8 = vld [vmem:[%s753_s1 + $0x50] sm:$0xff]  }
   0x2   :  { %v568_v1 = vld [vmem:[%s753_s1] sm:$0xff]   ;;  %504 = vmatprep.subr.bf16.mxu0 %v567_v0  ;;  %v572_v5 = vld [vmem:[%s753_s1 + $0x8] sm:$0xff]   ;;  %v576_v9 = vld [vmem:[%s753_s1 + $0x10] sm:$0xff]  }
   0x3   :  { %v569_v2 = vld [vmem:[%s753_s1 + $0xc0] sm:$0xff]   ;;  %505 = vmatpush3.bf16.msra.mxu0 %v568_v1  ;;  %v573_v6 = vld [vmem:[%s753_s1 + $0xc8] sm:$0xff]   ;;  %v577_v10 = vld [vmem:[%s753_s1 + $0xd0] sm:$0xff]  }
   0x4   :  { %v570_v3 = vld [vmem:[%s753_s1 + $0x80] sm:$0xff]   ;;  %526 = vmatprep.subr.bf16.mxu1 %v569_v2  ;;  %506 = vmatprep.subr.bf16.mxu0 %v571_v4  ;;  %v574_v7 = vld [vmem:[%s753_s1 + $0x88] sm:$0xff]   ;;  %v578_v11 = vld [vmem:[%s753_s1 + $0x90] sm:$0xff]  }
   0x5   :  { %527 = vmatpush3.bf16.msra.mxu1 %v570_v3  ;;  %v579_v12 = vld [vmem:[%s753_s1 + $0x58] sm:$0xff]   ;;  %v583_v16 = vld [vmem:[%s753_s1 + $0x60] sm:$0xff]   ;;  %v587_v20 = vld [vmem:[%s753_s1 + $0x68] sm:$0xff]  }
   0x6   :  { %528 = vmatprep.subr.bf16.mxu1 %v573_v6  ;;  %v580_v13 = vld [vmem:[%s753_s1 + $0x18] sm:$0xff]   ;;  %v584_v17 = vld [vmem:[%s753_s1 + $0x20] sm:$0xff]   ;;  %v588_v21 = vld [vmem:[%s753_s1 + $0x28] sm:$0xff]  }
   0x7   :  { %507 = vmatpush3.bf16.msra.mxu0 %v572_v5  ;;  %v581_v14 = vld [vmem:[%s753_s1 + $0xd8] sm:$0xff]   ;;  %v585_v18 = vld [vmem:[%s753_s1 + $0xe0] sm:$0xff]   ;;  %v589_v22 = vld [vmem:[%s753_s1 + $0xe8] sm:$0xff]  }
   0x8   :  { %508 = vmatprep.subr.bf16.mxu0 %v575_v8  ;;  %v582_v15 = vld [vmem:[%s753_s1 + $0x98] sm:$0xff]   ;;  %v586_v19 = vld [vmem:[%s753_s1 + $0xa0] sm:$0xff]   ;;  %v590_v23 = vld [vmem:[%s753_s1 + $0xa8] sm:$0xff]  }
   0x9   :  { %529 = vmatpush3.bf16.msra.mxu1 %v574_v7  ;;  %v591_v24 = vld [vmem:[%s753_s1 + $0x70] sm:$0xff]   ;;  %v595_v28 = vld [vmem:[%s753_s1 + $0x78] sm:$0xff]   ;;  %v15_v31 = vld [vmem:[%s754_s0] sm:$0xff] }
   0xa   :  { %530 = vmatprep.subr.bf16.mxu1 %v577_v10  ;;  %v592_v25 = vld [vmem:[%s753_s1 + $0x30] sm:$0xff]   ;;  %v596_v29 = vld [vmem:[%s753_s1 + $0x38] sm:$0xff]   ;;  %v462_v32 = vcombine.low %v15_v31, %v15_v31  ;;  %v463_v33 = vcombine.high %v15_v31, %v15_v31  ;;  %v16_v36 = vld [vmem:[%s754_s0 + $0x8] sm:$0xff] }
   0xb   :  { %509 = vmatpush3.bf16.msra.mxu0 %v576_v9  ;;  %v593_v26 = vld [vmem:[%s753_s1 + $0xf0] sm:$0xff]   ;;  %v597_v30 = vld [vmem:[%s753_s1 + $0xf8] sm:$0xff]   ;;  %v464_v37 = vcombine.low %v16_v36, %v16_v36  ;;  %v465_v38 = vcombine.high %v16_v36, %v16_v36  ;;  %v604_v39 = vld [vmem:[%s753_s1 + $0x100] sm:$0xff]  }
   0xc   :  { %510 = vmatprep.subr.bf16.mxu0 %v579_v12  ;;  %v594_v27 = vld [vmem:[%s753_s1 + $0xb0] sm:$0xff]   ;;  %v601_v34 = vld [vmem:[%s753_s1 + $0xb8] sm:$0xff]   ;;  %366 = vmatprep.mubr.bf16.mxu0 %v463_v33  ;;  %v605_v40 = vld [vmem:[%s753_s1 + $0x108] sm:$0xff]  }
   0xd   :  { %531 = vmatpush3.bf16.msra.mxu1 %v578_v11  ;;  %406 = vmatprep.mubr.bf16.mxu1 %v465_v38  ;;  %v606_v41 = vld [vmem:[%s753_s1 + $0x110] sm:$0xff]   ;;  %v607_v42 = vld [vmem:[%s753_s1 + $0x118] sm:$0xff]   ;;  %v461_v45 = vld [vmem:[%s755_s2] ss:$0 sm:$0xff] }
   0xe   :  { %532 = vmatprep.subr.bf16.mxu1 %v581_v14  ;;  %v600_v43 = vld [vmem:[%s754_s0 + $0x10] ss:$0 sps:$4 sm:$0xff]  }
   0xf   :  { %511 = vmatpush3.bf16.msra.mxu0 %v580_v13 }
  0x10   :  { %512 = vmatprep.subr.bf16.mxu0 %v583_v16 }
  0x11   :  { %533 = vmatpush3.bf16.msra.mxu1 %v582_v15 }
  0x12   :  { %534 = vmatprep.subr.bf16.mxu1 %v585_v18 }
  0x13   :  { %513 = vmatpush3.bf16.msra.mxu0 %v584_v17 }
  0x14   :  { %514 = vmatprep.subr.bf16.mxu0 %v587_v20 }
  0x15   :  { %535 = vmatpush3.bf16.msra.mxu1 %v586_v19 }
  0x16   :  { %536 = vmatprep.subr.bf16.mxu1 %v589_v22 }
  0x17   :  { %515 = vmatpush3.bf16.msra.mxu0 %v588_v21 }
  0x18   :  { %516 = vmatprep.subr.bf16.mxu0 %v591_v24 }
  0x19   :  { %537 = vmatpush3.bf16.msra.mxu1 %v590_v23 }
  0x1a   :  { %538 = vmatprep.subr.bf16.mxu1 %v593_v26 }
  0x1b   :  { %517 = vmatpush3.bf16.msra.mxu0 %v592_v25 }
  0x1c   :  { %518 = vmatprep.subr.bf16.mxu0 %v595_v28 }
  0x1d   :  { %539 = vmatpush3.bf16.msra.mxu1 %v594_v27 }
  0x1e   :  { %540 = vmatprep.subr.bf16.mxu1 %v597_v30 }
  0x1f   :  { %519 = vmatpush3.bf16.msra.mxu0 %v596_v29 }
  0x20   :  { %553 = vmatprep.subr.bf16.mxu0 %v608_v35 }
  0x21   :  { %541 = vmatpush3.bf16.msra.mxu1 %v601_v34 }
  0x22   :  { %367 = vmatmul.mubr.bf16.vlgmr.msra.gmra.mrb[0].mxu0 %v462_v32 }
  0x23   :  { %554 = vmatpush3.bf16.msra.mxu0 %v604_v39  ;;  %561 = vmatprep.mubr.msk.bf16.mxu0 %vm609_vm0, %v608_v35 }
  0x24   :  { %407 = vmatmul.mubr.bf16.vlgmr.msra.gmra.mrb[0].mxu1 %v464_v37  ;;  %555 = vmatprep.subr.bf16.mxu0 %v608_v35 }
  0x27   :  { %556 = vmatpush3.bf16.msra.mxu0 %v605_v40 }
  0x28   :  { %557 = vmatprep.subr.bf16.mxu0 %v608_v35 }
  0x2b   :  { %558 = vmatpush3.bf16.msra.mxu0 %v606_v41 }
  0x2c   :  { %559 = vmatprep.subr.bf16.mxu0 %v608_v35 }
  0x2f   :  { %560 = vmatpush3.bf16.msra.mxu0 %v607_v42 }
  0x32   :  { %562 = vmatmul.mubr.msk.bf16.vlgmr.msra.gmra.mrb[4].mxu0 %vm330_vm1, %v600_v43 }
  0xf5   :  { %v520_v44 = vpop.f32.mrb[0].mxu0 }
  0xf6   :  { %v521_v46 = vpop.f32.mrb[1].mxu0 }
  0xf7   :  { %v522_v47 = vadd.f32 %v521_v46, %v520_v44  ;;  %v523_v48 = vpop.f32.mrb[2].mxu0  ;;  %v542_v49 = vpop.f32.mrb[0].mxu1 }
  0xf8   :  { %v524_v50 = vpop.f32.mrb[3].mxu0  ;;  %v543_v51 = vpop.f32.mrb[1].mxu1 }
  0xf9   :  { %v369_v52 = vadd.f32 %v522_v47, %v461_v45  ;;  %v544_v53 = vadd.f32 %v543_v51, %v542_v49  ;;  %v545_v54 = vpop.f32.mrb[2].mxu1 }
  0xfa   :  { %v546_v55 = vpop.f32.mrb[3].mxu1 }
  0xfb   :  { %v409_v56 = vadd.f32 %v544_v53, %v369_v52 }
 0x105   :  { %v448_v57 = vpop.f32.mrb[4].mxu0 }
 0x106   :  { %v449_v58 = vadd.f32 %v448_v57, %v409_v56  ;;  %v563_v59 = vpop.f32.mrb[5].mxu0 }
 0x107   :  { %v451_v60 = vpop.f32.mrb[6].mxu0 }
 0x108   :  { %v454_v61 = vmax.f32 %v449_v58, 0.0  ;;  %v564_v62 = vpop.f32.mrb[7].mxu0 }
 0x10a   :  { %v455_v63 = vpack.c.bf16 %v454_v61, %v454_v61 }
 0x10c   :  { %456 = vst [vmem:[%s756_s3] sm:$0xf] %v455_v63 }

// kernel: _lambda_.47
= control target key start
LH: loop header
LB: loop body
LE: loop exit
PB: predicated region body
PF: predicated region fallthrough
CT: control target
= control target key end

     0   :  { %s43_s0 = inlined_call_operand.vmem [shape: bf16[8,128], index: 0, kind: input, shape index: {}]   ;;  %s44_s1 = inlined_call_operand.vmem [shape: bf16[8,128], index: 1, kind: input, shape index: {}]   ;;  %s45_s2 = inlined_call_operand.vmem [shape: bf16[8,128], index: 2, kind: output, shape index: {}]  }
   0x1   :  { %v11_v0 = vld [vmem:[%s43_s0] sm:$0xf] }
   0x2   :  { %v12_v1 = vld [vmem:[%s44_s1] sm:$0xf] }
   0x3   :  { %v13_v2 = vadd.bf16 %v12_v1, %v11_v0 }
   0x5   :  { %14 = vst [vmem:[%s45_s2] sm:$0xf] %v13_v2 }

// kernel: _lambda_.38
= control target key start
LH: loop header
LB: loop body
LE: loop exit
PB: predicated region body
PF: predicated region fallthrough
CT: control target
= control target key end

     0   :  { %vm372_vm0 = vcmask 523264   ;;  %vm546_vm1 = vcmask 519168   ;;  %s909_s1 = inlined_call_operand.vmem [shape: bf16[576,64], index: 1, kind: input, shape index: {}]   ;;  %s910_s0 = inlined_call_operand.vmem [shape: bf16[32,576], index: 0, kind: input, shape index: {}]   ;;  %s911_s2 = inlined_call_operand.vmem [shape: f32[1,64], index: 2, kind: input, shape index: {}]   ;;  %s912_s3 = inlined_call_operand.vmem [shape: bf16[32,64], index: 3, kind: output, shape index: {}]  }
   0x1   :  { %v686_v0 = vld [vmem:[%s909_s1 + $0x40] sm:$0xff]   ;;  %v690_v4 = vld [vmem:[%s909_s1 + $0x48] sm:$0xff]   ;;  %v694_v8 = vld [vmem:[%s909_s1 + $0x50] sm:$0xff]  }
   0x2   :  { %v687_v1 = vld [vmem:[%s909_s1] sm:$0xff]   ;;  %612 = vmatprep.subr.bf16.mxu0 %v686_v0  ;;  %v691_v5 = vld [vmem:[%s909_s1 + $0x8] sm:$0xff]   ;;  %v695_v9 = vld [vmem:[%s909_s1 + $0x10] sm:$0xff]  }
   0x3   :  { %v688_v2 = vld [vmem:[%s909_s1 + $0xc0] sm:$0xff]   ;;  %613 = vmatpush3.bf16.msra.mxu0 %v687_v1  ;;  %v692_v6 = vld [vmem:[%s909_s1 + $0xc8] sm:$0xff]   ;;  %v696_v10 = vld [vmem:[%s909_s1 + $0xd0] sm:$0xff]  }
   0x4   :  { %v689_v3 = vld [vmem:[%s909_s1 + $0x80] sm:$0xff]   ;;  %640 = vmatprep.subr.bf16.mxu1 %v688_v2  ;;  %614 = vmatprep.subr.bf16.mxu0 %v690_v4  ;;  %v693_v7 = vld [vmem:[%s909_s1 + $0x88] sm:$0xff]   ;;  %v697_v11 = vld [vmem:[%s909_s1 + $0x90] sm:$0xff]  }
   0x5   :  { %641 = vmatpush3.bf16.msra.mxu1 %v689_v3  ;;  %v698_v12 = vld [vmem:[%s909_s1 + $0x58] sm:$0xff]   ;;  %v702_v16 = vld [vmem:[%s909_s1 + $0x60] sm:$0xff]   ;;  %v706_v20 = vld [vmem:[%s909_s1 + $0x68] sm:$0xff]  }
   0x6   :  { %642 = vmatprep.subr.bf16.mxu1 %v692_v6  ;;  %v699_v13 = vld [vmem:[%s909_s1 + $0x18] sm:$0xff]   ;;  %v703_v17 = vld [vmem:[%s909_s1 + $0x20] sm:$0xff]   ;;  %v707_v21 = vld [vmem:[%s909_s1 + $0x28] sm:$0xff]  }
   0x7   :  { %615 = vmatpush3.bf16.msra.mxu0 %v691_v5  ;;  %v700_v14 = vld [vmem:[%s909_s1 + $0xd8] sm:$0xff]   ;;  %v704_v18 = vld [vmem:[%s909_s1 + $0xe0] sm:$0xff]   ;;  %v708_v22 = vld [vmem:[%s909_s1 + $0xe8] sm:$0xff]  }
   0x8   :  { %616 = vmatprep.subr.bf16.mxu0 %v694_v8  ;;  %v701_v15 = vld [vmem:[%s909_s1 + $0x98] sm:$0xff]   ;;  %v705_v19 = vld [vmem:[%s909_s1 + $0xa0] sm:$0xff]   ;;  %v709_v23 = vld [vmem:[%s909_s1 + $0xa8] sm:$0xff]  }
   0x9   :  { %643 = vmatpush3.bf16.msra.mxu1 %v693_v7  ;;  %v710_v24 = vld [vmem:[%s909_s1 + $0x70] sm:$0xff]   ;;  %v714_v28 = vld [vmem:[%s909_s1 + $0x78] sm:$0xff]   ;;  %v721_v34 = vld [vmem:[%s909_s1 + $0x100] sm:$0xff]  }
   0xa   :  { %644 = vmatprep.subr.bf16.mxu1 %v696_v10  ;;  %v711_v25 = vld [vmem:[%s909_s1 + $0x30] sm:$0xff]   ;;  %v715_v29 = vld [vmem:[%s909_s1 + $0x38] sm:$0xff]   ;;  %v724_v36 = vld [vmem:[%s910_s0 + $0xc] ss:$20 sps:$4 sm:$0xff]  }
   0xb   :  { %617 = vmatpush3.bf16.msra.mxu0 %v695_v9  ;;  %v712_v26 = vld [vmem:[%s909_s1 + $0xf0] sm:$0xff]   ;;  %v716_v30 = vld [vmem:[%s909_s1 + $0xf8] sm:$0xff]   ;;  %v725_v37 = vld [vmem:[%s909_s1 + $0x108] sm:$0xff]   ;;  %460 = vmatprep.mubr.bf16.mxu1 %v724_v36 }
   0xc   :  { %618 = vmatprep.subr.bf16.mxu0 %v698_v12  ;;  %v713_v27 = vld [vmem:[%s909_s1 + $0xb0] sm:$0xff]   ;;  %v719_v32 = vld [vmem:[%s910_s0 + $0x4] ss:$20 sps:$4 sm:$0xff]   ;;  %v722_v35 = vld [vmem:[%s910_s0 + $0x8] ss:$20 sps:$4 sm:$0xff]  }
   0xd   :  { %645 = vmatpush3.bf16.msra.mxu1 %v697_v11  ;;  %v717_v31 = vld [vmem:[%s910_s0] ss:$20 sps:$4 sm:$0xff]   ;;  %v720_v33 = vld [vmem:[%s909_s1 + $0xb8] sm:$0xff]   ;;  %411 = vmatprep.mubr.bf16.mxu0 %v719_v32  ;;  %v732_v42 = vld [vmem:[%s910_s0 + $0x30] ss:$20 sps:$4 sm:$0xff]  }
   0xe   :  { %646 = vmatprep.subr.bf16.mxu1 %v700_v14  ;;  %v726_v38 = vld [vmem:[%s910_s0 + $0x2c] ss:$20 sps:$4 sm:$0xff]   ;;  %v728_v39 = vld [vmem:[%s910_s0 + $0x28] ss:$20 sps:$4 sm:$0xff]   ;;  %v729_v40 = vld [vmem:[%s909_s1 + $0x110] sm:$0xff]  }
   0xf   :  { %619 = vmatpush3.bf16.msra.mxu0 %v699_v13  ;;  %v730_v41 = vld [vmem:[%s910_s0 + $0x34] ss:$20 sps:$4 sm:$0xff]   ;;  %v733_v43 = vld [vmem:[%s909_s1 + $0x118] sm:$0xff]   ;;  %v734_v44 = vld [vmem:[%s910_s0 + $0x10] ss:$20 sps:$4 sm:$0xff]  }
  0x10   :  { %620 = vmatprep.subr.bf16.mxu0 %v702_v16  ;;  %v735_v45 = vld [vmem:[%s910_s0 + $0x38] ss:$20 sps:$4 sm:$0xff]   ;;  %v555_v47 = vld [vmem:[%s911_s2] ss:$0 sm:$0xff] }
  0x11   :  { %647 = vmatpush3.bf16.msra.mxu1 %v701_v15 }
  0x12   :  { %648 = vmatprep.subr.bf16.mxu1 %v704_v18 }
  0x13   :  { %621 = vmatpush3.bf16.msra.mxu0 %v703_v17 }
  0x14   :  { %622 = vmatprep.subr.bf16.mxu0 %v706_v20 }
  0x15   :  { %649 = vmatpush3.bf16.msra.mxu1 %v705_v19 }
  0x16   :  { %650 = vmatprep.subr.bf16.mxu1 %v708_v22 }
  0x17   :  { %623 = vmatpush3.bf16.msra.mxu0 %v707_v21 }
  0x18   :  { %624 = vmatprep.subr.bf16.mxu0 %v710_v24 }
  0x19   :  { %651 = vmatpush3.bf16.msra.mxu1 %v709_v23 }
  0x1a   :  { %652 = vmatprep.subr.bf16.mxu1 %v712_v26 }
  0x1b   :  { %625 = vmatpush3.bf16.msra.mxu0 %v711_v25 }
  0x1c   :  { %626 = vmatprep.subr.bf16.mxu0 %v714_v28 }
  0x1d   :  { %653 = vmatpush3.bf16.msra.mxu1 %v713_v27 }
  0x1e   :  { %654 = vmatprep.subr.bf16.mxu1 %v716_v30 }
  0x1f   :  { %627 = vmatpush3.bf16.msra.mxu0 %v715_v29 }
  0x20   :  { %674 = vmatprep.subr.bf16.mxu0 %v721_v34 }
  0x21   :  { %655 = vmatpush3.bf16.msra.mxu1 %v720_v33 }
  0x22   :  { %412 = vmatmul.mubr.bf16.vlgmr.msra.gmra.mrb[0].mxu0 %v717_v31 }
  0x23   :  { %675 = vmatpush3.bf16.msra.mxu0 %v721_v34  ;;  %419 = vmatprep.mubr.bf16.mxu0 %v726_v38 }
  0x24   :  { %461 = vmatmul.mubr.bf16.vlgmr.msra.gmra.mrb[0].mxu1 %v722_v35  ;;  %676 = vmatprep.subr.bf16.mxu0 %v725_v37 }
  0x25   :  { %468 = vmatprep.mubr.bf16.mxu1 %v730_v41 }
  0x27   :  { %677 = vmatpush3.bf16.msra.mxu0 %v725_v37 }
  0x28   :  { %678 = vmatprep.subr.bf16.mxu0 %v729_v40 }
  0x2a   :  { %420 = vmatmul.mubr.bf16.gmra.mrb[4].mxu0 %v728_v39 }
  0x2b   :  { %682 = vmatprep.mubr.msk.bf16.mxu0 %vm372_vm0, %v734_v44  ;;  %679 = vmatpush3.bf16.msra.mxu0 %v729_v40 }
  0x2c   :  { %469 = vmatmul.mubr.bf16.gmra.mrb[4].mxu1 %v732_v42  ;;  %680 = vmatprep.subr.bf16.mxu0 %v733_v43 }
  0x2f   :  { %681 = vmatpush3.bf16.msra.mxu0 %v733_v43 }
  0x32   :  { %683 = vmatmul.mubr.msk.bf16.vlgmr.msra.gmra.mrb[8].mxu0 %vm372_vm0, %v735_v45 }
  0xf5   :  { %v628_v46 = vpop.f32.mrb[0].mxu0 }
  0xf6   :  { %v629_v48 = vpop.f32.mrb[1].mxu0 }
  0xf7   :  { %v630_v49 = vadd.f32 %v629_v48, %v628_v46  ;;  %v631_v50 = vpop.f32.mrb[2].mxu0  ;;  %v656_v51 = vpop.f32.mrb[0].mxu1 }
  0xf8   :  { %v632_v52 = vpop.f32.mrb[3].mxu0  ;;  %v657_v55 = vpop.f32.mrb[1].mxu1 }
  0xf9   :  { %v414_v53 = vadd.f32 %v630_v49, %v555_v47  ;;  %v633_v54 = vadd.f32 %v632_v52, %v631_v50  ;;  %v658_v56 = vadd.f32 %v657_v55, %v656_v51  ;;  %v659_v57 = vpop.f32.mrb[2].mxu1 }
  0xfa   :  { %v660_v59 = vpop.f32.mrb[3].mxu1 }
  0xfb   :  { %v417_v58 = vadd.f32 %v633_v54, %v555_v47  ;;  %v661_v60 = vadd.f32 %v660_v59, %v659_v57  ;;  %v463_v61 = vadd.f32 %v658_v56, %v414_v53 }
  0xfd   :  { %v634_v62 = vpop.f32.mrb[4].mxu0  ;;  %v466_v0 = vadd.f32 %v661_v60, %v417_v58 }
  0xfe   :  { %v635_v63 = vpop.f32.mrb[5].mxu0 }
  0xff   :  { %v636_v1 = vadd.f32 %v635_v63, %v634_v62  ;;  %v637_v2 = vpop.f32.mrb[6].mxu0  ;;  %v662_v3 = vpop.f32.mrb[4].mxu1 }
 0x100   :  { %v638_v4 = vpop.f32.mrb[7].mxu0  ;;  %v663_v7 = vpop.f32.mrb[5].mxu1 }
 0x101   :  { %v422_v5 = vadd.f32 %v636_v1, %v555_v47  ;;  %v639_v6 = vadd.f32 %v638_v4, %v637_v2  ;;  %v664_v8 = vadd.f32 %v663_v7, %v662_v3  ;;  %v665_v9 = vpop.f32.mrb[6].mxu1 }
 0x102   :  { %v666_v11 = vpop.f32.mrb[7].mxu1 }
 0x103   :  { %v425_v10 = vadd.f32 %v639_v6, %v555_v47  ;;  %v667_v12 = vadd.f32 %v666_v11, %v665_v9  ;;  %v471_v13 = vadd.f32 %v664_v8, %v422_v5 }
 0x105   :  { %v684_v14 = vpop.f32.mrb[8].mxu0  ;;  %v474_v15 = vadd.f32 %v667_v12, %v425_v10 }
 0x106   :  { %v520_v16 = vadd.f32 %v684_v14, %v471_v13  ;;  %v511_v17 = vpop.f32.mrb[9].mxu0 }
 0x107   :  { %v512_v18 = vadd.f32 %v511_v17, %v463_v61  ;;  %v685_v19 = vpop.f32.mrb[10].mxu0 }
 0x108   :  { %v528_v20 = vmax.f32 %v520_v16, 0.0  ;;  %v523_v21 = vadd.f32 %v685_v19, %v474_v15  ;;  %v514_v22 = vpop.f32.mrb[11].mxu0 }
 0x109   :  { %v526_v23 = vmax.f32 %v512_v18, 0.0  ;;  %v515_v24 = vadd.f32 %v514_v22, %v466_v0 }
 0x10a   :  { %v610_v25 = vpack.c.bf16 %v528_v20, %v528_v20  ;;  %v529_v26 = vmax.f32 %v523_v21, 0.0 }
 0x10b   :  { %v608_v27 = vpack.c.bf16 %v526_v23, %v526_v23  ;;  %v527_v28 = vmax.f32 %v515_v24, 0.0 }
 0x10c   :  { %549 = vst.msk [vmem:[%s912_s3 + $0x8] sm:$0xf] %vm546_vm1, %v610_v25  ;;  %v611_v29 = vpack.c.bf16 %v529_v26, %v529_v26 }
 0x10d   :  { %547 = vst.msk [vmem:[%s912_s3] sm:$0xf] %vm546_vm1, %v608_v27  ;;  %v609_v30 = vpack.c.bf16 %v527_v28, %v527_v28 }
 0x10e   :  { %550 = vst.msk [vmem:[%s912_s3 + $0xc] sm:$0xf] %vm546_vm1, %v611_v29 }
 0x10f   :  { %548 = vst.msk [vmem:[%s912_s3 + $0x4] sm:$0xf] %vm546_vm1, %v609_v30 }

// kernel: _lambda_.46
= control target key start
LH: loop header
LB: loop body
LE: loop exit
PB: predicated region body
PF: predicated region fallthrough
CT: control target
= control target key end

     0   :  { %vm1125_vm0 = vmmov 0   ;;  %s1383_s1 = inlined_call_operand.vmem [shape: bf16[1152,128], index: 1, kind: input, shape index: {}]   ;;  %s1384_s0 = inlined_call_operand.vmem [shape: bf16[8,1152], index: 0, kind: input, shape index: {}]   ;;  %s1385_s2 = inlined_call_operand.vmem [shape: f32[1,128], index: 2, kind: input, shape index: {}]   ;;  %s1386_s3 = inlined_call_operand.vmem [shape: bf16[8,128], index: 3, kind: output, shape index: {}]  }
   0x1   :  { %v1043_v0 = vld [vmem:[%s1383_s1 + $0x40] sm:$0xff]   ;;  %v1047_v4 = vld [vmem:[%s1383_s1 + $0x48] sm:$0xff]   ;;  %v1051_v8 = vld [vmem:[%s1383_s1 + $0x50] sm:$0xff]  }
   0x2   :  { %v1044_v1 = vld [vmem:[%s1383_s1] sm:$0xff]   ;;  %924 = vmatprep.subr.bf16.mxu0 %v1043_v0  ;;  %v1048_v5 = vld [vmem:[%s1383_s1 + $0x8] sm:$0xff]   ;;  %v1052_v9 = vld [vmem:[%s1383_s1 + $0x10] sm:$0xff]  }
   0x3   :  { %v1045_v2 = vld [vmem:[%s1383_s1 + $0xc0] sm:$0xff]   ;;  %925 = vmatpush3.bf16.msra.mxu0 %v1044_v1  ;;  %v1049_v6 = vld [vmem:[%s1383_s1 + $0xc8] sm:$0xff]   ;;  %v1053_v10 = vld [vmem:[%s1383_s1 + $0xd0] sm:$0xff]  }
   0x4   :  { %v1046_v3 = vld [vmem:[%s1383_s1 + $0x80] sm:$0xff]   ;;  %946 = vmatprep.subr.bf16.mxu1 %v1045_v2  ;;  %926 = vmatprep.subr.bf16.mxu0 %v1047_v4  ;;  %v1050_v7 = vld [vmem:[%s1383_s1 + $0x88] sm:$0xff]   ;;  %v1054_v11 = vld [vmem:[%s1383_s1 + $0x90] sm:$0xff]  }
   0x5   :  { %947 = vmatpush3.bf16.msra.mxu1 %v1046_v3  ;;  %v1055_v12 = vld [vmem:[%s1383_s1 + $0x58] sm:$0xff]   ;;  %v1059_v16 = vld [vmem:[%s1383_s1 + $0x60] sm:$0xff]   ;;  %v1063_v20 = vld [vmem:[%s1383_s1 + $0x68] sm:$0xff]  }
   0x6   :  { %948 = vmatprep.subr.bf16.mxu1 %v1049_v6  ;;  %v1056_v13 = vld [vmem:[%s1383_s1 + $0x18] sm:$0xff]   ;;  %v1060_v17 = vld [vmem:[%s1383_s1 + $0x20] sm:$0xff]   ;;  %v1064_v21 = vld [vmem:[%s1383_s1 + $0x28] sm:$0xff]  }
   0x7   :  { %927 = vmatpush3.bf16.msra.mxu0 %v1048_v5  ;;  %v1057_v14 = vld [vmem:[%s1383_s1 + $0xd8] sm:$0xff]   ;;  %v1061_v18 = vld [vmem:[%s1383_s1 + $0xe0] sm:$0xff]   ;;  %v1065_v22 = vld [vmem:[%s1383_s1 + $0xe8] sm:$0xff]  }
   0x8   :  { %928 = vmatprep.subr.bf16.mxu0 %v1051_v8  ;;  %v1058_v15 = vld [vmem:[%s1383_s1 + $0x98] sm:$0xff]   ;;  %v1062_v19 = vld [vmem:[%s1383_s1 + $0xa0] sm:$0xff]   ;;  %v1066_v23 = vld [vmem:[%s1383_s1 + $0xa8] sm:$0xff]  }
   0x9   :  { %949 = vmatpush3.bf16.msra.mxu1 %v1050_v7  ;;  %v1067_v24 = vld [vmem:[%s1383_s1 + $0x70] sm:$0xff]   ;;  %v1071_v28 = vld [vmem:[%s1383_s1 + $0x78] sm:$0xff]   ;;  %v15_v31 = vld [vmem:[%s1384_s0] sm:$0xff] }
   0xa   :  { %950 = vmatprep.subr.bf16.mxu1 %v1053_v10  ;;  %v1068_v25 = vld [vmem:[%s1383_s1 + $0x30] sm:$0xff]   ;;  %v1072_v29 = vld [vmem:[%s1383_s1 + $0x38] sm:$0xff]   ;;  %v843_v32 = vcombine.low %v15_v31, %v15_v31  ;;  %v844_v33 = vcombine.high %v15_v31, %v15_v31  ;;  %v1077_v35 = vld [vmem:[%s1383_s1 + $0x140] sm:$0xff]  }
   0xb   :  { %929 = vmatpush3.bf16.msra.mxu0 %v1052_v9  ;;  %v1069_v26 = vld [vmem:[%s1383_s1 + $0xf0] sm:$0xff]   ;;  %v1073_v30 = vld [vmem:[%s1383_s1 + $0xf8] sm:$0xff]   ;;  %v16_v36 = vld [vmem:[%s1384_s0 + $0x8] sm:$0xff]  ;;  %v1124_v9 = vmov 0.0  }
   0xc   :  { %930 = vmatprep.subr.bf16.mxu0 %v1055_v12  ;;  %v1070_v27 = vld [vmem:[%s1383_s1 + $0xb0] sm:$0xff]   ;;  %v1076_v34 = vld [vmem:[%s1383_s1 + $0xb8] sm:$0xff]   ;;  %667 = vmatprep.mubr.bf16.mxu0 %v844_v33  ;;  %v845_v37 = vcombine.low %v16_v36, %v16_v36  ;;  %v846_v38 = vcombine.high %v16_v36, %v16_v36  ;;  %v1080_v39 = vld [vmem:[%s1383_s1 + $0x100] sm:$0xff]  }
   0xd   :  { %951 = vmatpush3.bf16.msra.mxu1 %v1054_v11  ;;  %v1081_v40 = vld [vmem:[%s1383_s1 + $0x1c0] sm:$0xff]   ;;  %v1083_v42 = vld [vmem:[%s1383_s1 + $0x148] sm:$0xff]   ;;  %v1087_v46 = vld [vmem:[%s1383_s1 + $0x150] sm:$0xff]  }
   0xe   :  { %952 = vmatprep.subr.bf16.mxu1 %v1057_v14  ;;  %707 = vmatprep.mubr.bf16.mxu1 %v846_v38  ;;  %v1082_v41 = vld [vmem:[%s1383_s1 + $0x180] sm:$0xff]   ;;  %v1084_v43 = vld [vmem:[%s1383_s1 + $0x108] sm:$0xff]   ;;  %v1088_v47 = vld [vmem:[%s1383_s1 + $0x110] sm:$0xff]  }
   0xf   :  { %931 = vmatpush3.bf16.msra.mxu0 %v1056_v13  ;;  %v1085_v44 = vld [vmem:[%s1383_s1 + $0x1c8] sm:$0xff]   ;;  %v1089_v48 = vld [vmem:[%s1383_s1 + $0x1d0] sm:$0xff]   ;;  %v1091_v50 = vld [vmem:[%s1383_s1 + $0x158] sm:$0xff]  }
  0x10   :  { %932 = vmatprep.subr.bf16.mxu0 %v1059_v16  ;;  %v1086_v45 = vld [vmem:[%s1383_s1 + $0x188] sm:$0xff]   ;;  %v1090_v49 = vld [vmem:[%s1383_s1 + $0x190] sm:$0xff]   ;;  %v1092_v51 = vld [vmem:[%s1383_s1 + $0x118] sm:$0xff]  }
  0x11   :  { %953 = vmatpush3.bf16.msra.mxu1 %v1058_v15  ;;  %v1093_v52 = vld [vmem:[%s1383_s1 + $0x1d8] sm:$0xff]   ;;  %v1095_v54 = vld [vmem:[%s1383_s1 + $0x160] sm:$0xff]   ;;  %v1099_v58 = vld [vmem:[%s1383_s1 + $0x168] sm:$0xff]  }
  0x12   :  { %954 = vmatprep.subr.bf16.mxu1 %v1061_v18  ;;  %v1094_v53 = vld [vmem:[%s1383_s1 + $0x198] sm:$0xff]   ;;  %v1096_v55 = vld [vmem:[%s1383_s1 + $0x120] sm:$0xff]   ;;  %v1100_v59 = vld [vmem:[%s1383_s1 + $0x128] sm:$0xff]  }
  0x13   :  { %933 = vmatpush3.bf16.msra.mxu0 %v1060_v17  ;;  %v1097_v56 = vld [vmem:[%s1383_s1 + $0x1e0] sm:$0xff]   ;;  %v1101_v60 = vld [vmem:[%s1383_s1 + $0x1e8] sm:$0xff]   ;;  %v1103_v62 = vld [vmem:[%s1383_s1 + $0x170] sm:$0xff]  }
  0x14   :  { %934 = vmatprep.subr.bf16.mxu0 %v1063_v20  ;;  %v1098_v57 = vld [vmem:[%s1383_s1 + $0x1a0] sm:$0xff]   ;;  %v1102_v61 = vld [vmem:[%s1383_s1 + $0x1a8] sm:$0xff]   ;;  %v1104_v63 = vld [vmem:[%s1383_s1 + $0x130] sm:$0xff]  }
  0x15   :  { %955 = vmatpush3.bf16.msra.mxu1 %v1062_v19  ;;  %v1105_v0 = vld [vmem:[%s1383_s1 + $0x1f0] sm:$0xff]   ;;  %v1107_v2 = vld [vmem:[%s1383_s1 + $0x178] sm:$0xff]   ;;  %v1115_v13 = vld [vmem:[%s1383_s1 + $0x200] sm:$0xff]  }
  0x16   :  { %956 = vmatprep.subr.bf16.mxu1 %v1065_v22  ;;  %v1106_v1 = vld [vmem:[%s1383_s1 + $0x1b0] sm:$0xff]   ;;  %v1108_v3 = vld [vmem:[%s1383_s1 + $0x138] sm:$0xff]   ;;  %v1116_v14 = vld [vmem:[%s1383_s1 + $0x208] sm:$0xff]  }
  0x17   :  { %935 = vmatpush3.bf16.msra.mxu0 %v1064_v21  ;;  %v1109_v4 = vld [vmem:[%s1383_s1 + $0x1f8] sm:$0xff]   ;;  %v17_v5 = vld [vmem:[%s1384_s0 + $0x10] sm:$0xff]  ;;  %v1119_v17 = vld [vmem:[%s1383_s1 + $0x220] sm:$0xff]  }
  0x18   :  { %936 = vmatprep.subr.bf16.mxu0 %v1067_v24  ;;  %v847_v6 = vcombine.low %v17_v5, %v17_v5  ;;  %v848_v7 = vcombine.high %v17_v5, %v17_v5  ;;  %v1112_v8 = vld [vmem:[%s1383_s1 + $0x1b8] sm:$0xff]   ;;  %v1117_v15 = vld [vmem:[%s1383_s1 + $0x210] sm:$0xff]   ;;  %v1120_v18 = vld [vmem:[%s1383_s1 + $0x228] sm:$0xff]  }
  0x19   :  { %957 = vmatpush3.bf16.msra.mxu1 %v1066_v23  ;;  %v18_v10 = vld [vmem:[%s1384_s0 + $0x18] sm:$0xff]  ;;  %v1121_v19 = vld [vmem:[%s1383_s1 + $0x230] sm:$0xff]   ;;  %v1123_v21 = vld [vmem:[%s1384_s0 + $0x20] ss:$0 sps:$4 sm:$0xff]  }
  0x1a   :  { %958 = vmatprep.subr.bf16.mxu1 %v1069_v26  ;;  %v849_v11 = vcombine.low %v18_v10, %v18_v10  ;;  %v850_v12 = vcombine.high %v18_v10, %v18_v10  ;;  %v1118_v16 = vld [vmem:[%s1383_s1 + $0x218] sm:$0xff]   ;;  %v842_v23 = vld [vmem:[%s1385_s2] ss:$0 sm:$0xff] }
  0x1b   :  { %937 = vmatpush3.bf16.msra.mxu0 %v1068_v25  ;;  %v1122_v20 = vld [vmem:[%s1383_s1 + $0x238] sm:$0xff]  }
  0x1c   :  { %938 = vmatprep.subr.bf16.mxu0 %v1071_v28 }
  0x1d   :  { %959 = vmatpush3.bf16.msra.mxu1 %v1070_v27 }
  0x1e   :  { %960 = vmatprep.subr.bf16.mxu1 %v1073_v30 }
  0x1f   :  { %939 = vmatpush3.bf16.msra.mxu0 %v1072_v29 }
  0x20   :  { %968 = vmatprep.subr.bf16.mxu0 %v1077_v35 }
  0x21   :  { %961 = vmatpush3.bf16.msra.mxu1 %v1076_v34 }
  0x22   :  { %668 = vmatmul.mubr.bf16.vlgmr.msra.gmra.mrb[0].mxu0 %v843_v32  ;;  %990 = vmatprep.subr.bf16.mxu1 %v1081_v40 }
  0x23   :  { %969 = vmatpush3.bf16.msra.mxu0 %v1080_v39  ;;  %747 = vmatprep.mubr.bf16.mxu0 %v848_v7 }
  0x24   :  { %708 = vmatmul.mubr.bf16.vlgmr.msra.gmra.mrb[0].mxu1 %v845_v37  ;;  %970 = vmatprep.subr.bf16.mxu0 %v1083_v42 }
  0x25   :  { %991 = vmatpush3.bf16.msra.mxu1 %v1082_v41  ;;  %787 = vmatprep.mubr.bf16.mxu1 %v850_v12 }
  0x26   :  { %992 = vmatprep.subr.bf16.mxu1 %v1085_v44 }
  0x27   :  { %971 = vmatpush3.bf16.msra.mxu0 %v1084_v43 }
  0x28   :  { %972 = vmatprep.subr.bf16.mxu0 %v1087_v46 }
  0x29   :  { %993 = vmatpush3.bf16.msra.mxu1 %v1086_v45 }
  0x2a   :  { %994 = vmatprep.subr.bf16.mxu1 %v1089_v48 }
  0x2b   :  { %973 = vmatpush3.bf16.msra.mxu0 %v1088_v47 }
  0x2c   :  { %974 = vmatprep.subr.bf16.mxu0 %v1091_v50 }
  0x2d   :  { %995 = vmatpush3.bf16.msra.mxu1 %v1090_v49 }
  0x2e   :  { %996 = vmatprep.subr.bf16.mxu1 %v1093_v52 }
  0x2f   :  { %975 = vmatpush3.bf16.msra.mxu0 %v1092_v51 }
  0x30   :  { %976 = vmatprep.subr.bf16.mxu0 %v1095_v54 }
  0x31   :  { %997 = vmatpush3.bf16.msra.mxu1 %v1094_v53 }
  0x32   :  { %998 = vmatprep.subr.bf16.mxu1 %v1097_v56 }
  0x33   :  { %977 = vmatpush3.bf16.msra.mxu0 %v1096_v55 }
  0x34   :  { %978 = vmatprep.subr.bf16.mxu0 %v1099_v58 }
  0x35   :  { %999 = vmatpush3.bf16.msra.mxu1 %v1098_v57 }
  0x36   :  { %1000 = vmatprep.subr.bf16.mxu1 %v1101_v60 }
  0x37   :  { %979 = vmatpush3.bf16.msra.mxu0 %v1100_v59 }
  0x38   :  { %980 = vmatprep.subr.bf16.mxu0 %v1103_v62 }
  0x39   :  { %1001 = vmatpush3.bf16.msra.mxu1 %v1102_v61 }
  0x3a   :  { %1002 = vmatprep.subr.bf16.mxu1 %v1105_v0 }
  0x3b   :  { %981 = vmatpush3.bf16.msra.mxu0 %v1104_v63 }
  0x3c   :  { %982 = vmatprep.subr.bf16.mxu0 %v1107_v2 }
  0x3d   :  { %1003 = vmatpush3.bf16.msra.mxu1 %v1106_v1 }
  0x3e   :  { %1004 = vmatprep.subr.bf16.mxu1 %v1109_v4 }
  0x3f   :  { %983 = vmatpush3.bf16.msra.mxu0 %v1108_v3 }
  0x40   :  { %1021 = vmatprep.subr.bf16.mxu0 %v1124_v9 }
  0x41   :  { %1005 = vmatpush3.bf16.msra.mxu1 %v1112_v8 }
  0x42   :  { %748 = vmatmul.mubr.bf16.vlgmr.msra.gmra.mrb[4].mxu0 %v847_v6 }
  0x43   :  { %1022 = vmatpush3.bf16.msra.mxu0 %v1115_v13  ;;  %1037 = vmatprep.mubr.msk.bf16.mxu0 %vm1125_vm0, %v1124_v9 }
  0x44   :  { %788 = vmatmul.mubr.bf16.vlgmr.msra.gmra.mrb[4].mxu1 %v849_v11  ;;  %1023 = vmatprep.subr.bf16.mxu0 %v1124_v9 }
  0x47   :  { %1024 = vmatpush3.bf16.msra.mxu0 %v1116_v14 }
  0x48   :  { %1025 = vmatprep.subr.bf16.mxu0 %v1124_v9 }
  0x4b   :  { %1026 = vmatpush3.bf16.msra.mxu0 %v1117_v15 }
  0x4c   :  { %1027 = vmatprep.subr.bf16.mxu0 %v1124_v9 }
  0x4f   :  { %1028 = vmatpush3.bf16.msra.mxu0 %v1118_v16 }
  0x50   :  { %1029 = vmatprep.subr.bf16.mxu0 %v1124_v9 }
  0x53   :  { %1030 = vmatpush3.bf16.msra.mxu0 %v1119_v17 }
  0x54   :  { %1031 = vmatprep.subr.bf16.mxu0 %v1124_v9 }
  0x57   :  { %1032 = vmatpush3.bf16.msra.mxu0 %v1120_v18 }
  0x58   :  { %1033 = vmatprep.subr.bf16.mxu0 %v1124_v9 }
  0x5b   :  { %1034 = vmatpush3.bf16.msra.mxu0 %v1121_v19 }
  0x5c   :  { %1035 = vmatprep.subr.bf16.mxu0 %v1124_v9 }
  0x5f   :  { %1036 = vmatpush3.bf16.msra.mxu0 %v1122_v20 }
  0x62   :  { %1038 = vmatmul.mubr.bf16.vlgmr.msra.gmra.mrb[8].mxu0 %v1123_v21 }
  0xf5   :  { %v940_v22 = vpop.f32.mrb[0].mxu0 }
  0xf6   :  { %v941_v24 = vpop.f32.mrb[1].mxu0 }
  0xf7   :  { %v942_v25 = vadd.f32 %v941_v24, %v940_v22  ;;  %v943_v26 = vpop.f32.mrb[2].mxu0  ;;  %v962_v27 = vpop.f32.mrb[0].mxu1 }
  0xf8   :  { %v944_v28 = vpop.f32.mrb[3].mxu0  ;;  %v963_v29 = vpop.f32.mrb[1].mxu1 }
  0xf9   :  { %v670_v30 = vadd.f32 %v942_v25, %v842_v23  ;;  %v964_v31 = vadd.f32 %v963_v29, %v962_v27  ;;  %v965_v32 = vpop.f32.mrb[2].mxu1 }
  0xfa   :  { %v966_v33 = vpop.f32.mrb[3].mxu1 }
  0xfb   :  { %v710_v34 = vadd.f32 %v964_v31, %v670_v30 }
 0x115   :  { %v984_v35 = vpop.f32.mrb[4].mxu0 }
 0x116   :  { %v985_v36 = vpop.f32.mrb[5].mxu0 }
 0x117   :  { %v986_v37 = vadd.f32 %v985_v36, %v984_v35  ;;  %v987_v38 = vpop.f32.mrb[6].mxu0  ;;  %v1006_v39 = vpop.f32.mrb[4].mxu1 }
 0x118   :  { %v988_v40 = vpop.f32.mrb[7].mxu0  ;;  %v1007_v41 = vpop.f32.mrb[5].mxu1 }
 0x119   :  { %v750_v42 = vadd.f32 %v986_v37, %v710_v34  ;;  %v1008_v43 = vadd.f32 %v1007_v41, %v1006_v39  ;;  %v1009_v44 = vpop.f32.mrb[6].mxu1 }
 0x11a   :  { %v1010_v45 = vpop.f32.mrb[7].mxu1 }
 0x11b   :  { %v790_v46 = vadd.f32 %v1008_v43, %v750_v42 }
 0x135   :  { %v829_v47 = vpop.f32.mrb[8].mxu0 }
 0x136   :  { %v830_v48 = vadd.f32 %v829_v47, %v790_v46  ;;  %v1039_v49 = vpop.f32.mrb[9].mxu0 }
 0x137   :  { %v832_v50 = vpop.f32.mrb[10].mxu0 }
 0x138   :  { %v835_v51 = vmax.f32 %v830_v48, 0.0  ;;  %v1040_v52 = vpop.f32.mrb[11].mxu0 }
 0x13a   :  { %v836_v53 = vpack.c.bf16 %v835_v51, %v835_v51 }
 0x13c   :  { %837 = vst [vmem:[%s1386_s3] sm:$0xf] %v836_v53 }

// kernel: tile.22
= control target key start
LH: loop header
LB: loop body
LE: loop exit
PB: predicated region body
PF: predicated region fallthrough
CT: control target
= control target key end

     0   :  { %s22_s0 = inlined_call_operand.vmem [shape: f32[128], index: 0, kind: input, shape index: {}]   ;;  %s23_s1 = inlined_call_operand.vmem [shape: f32[4,128], index: 1, kind: output, shape index: {}]  }
   0x1   :  { %v4_v0 = vld [vmem:[%s22_s0] ss:$0 sm:$0xff] }
   0x2   :  { %5 = vst [vmem:[%s23_s1] sm:$0xf] %v4_v0 }

// kernel: _lambda_.53
= control target key start
LH: loop header
LB: loop body
LE: loop exit
PB: predicated region body
PF: predicated region fallthrough
CT: control target
= control target key end

     0   :  { %v163_v36 = vlaneseq  ;;  %v1581_v37 = vmov 1966171168   ;;  %s2072_s1 = inlined_call_operand.vmem [shape: bf16[1152,256], index: 1, kind: input, shape index: {}]   ;;  %s2073_s0 = inlined_call_operand.vmem [shape: bf16[2,1152], index: 0, kind: input, shape index: {}]   ;;  %s2074_s2 = inlined_call_operand.vmem [shape: f32[1,256], index: 2, kind: input, shape index: {}]   ;;  %s2075_s3 = inlined_call_operand.vmem [shape: bf16[2,256], index: 3, kind: output, shape index: {}]  }
   0x1   :  { %v1364_v0 = vld [vmem:[%s2072_s1 + $0x4] ss:$8 sps:$4 sm:$0xff]   ;;  %v1368_v2 = vld [vmem:[%s2072_s1] ss:$8 sps:$4 sm:$0xff]   ;;  %v1370_v4 = vld [vmem:[%s2072_s1 + $0x14] ss:$8 sps:$4 sm:$0xff]   ;;  %v177_v38 = vunpack.c.l.s4 %v1581_v37 }
   0x2   :  { %v1366_v1 = vld [vmem:[%s2072_s1 + $0x204] ss:$8 sps:$4 sm:$0xff]   ;;  %967 = vmatprep.subr.bf16.mxu1 %v1364_v0  ;;  %v1369_v3 = vld [vmem:[%s2072_s1 + $0x200] ss:$8 sps:$4 sm:$0xff]   ;;  %v1372_v5 = vld [vmem:[%s2072_s1 + $0x214] ss:$8 sps:$4 sm:$0xff]  }
   0x3   :  { %1049 = vmatprep.subr.bf16.mxu0 %v1366_v1  ;;  %968 = vmatpush1.bf16.msra.mxu1 %v1368_v2  ;;  %v1374_v6 = vld [vmem:[%s2072_s1 + $0x10] ss:$8 sps:$4 sm:$0xff]   ;;  %v1376_v8 = vld [vmem:[%s2072_s1 + $0x24] ss:$8 sps:$4 sm:$0xff]   ;;  %v1380_v10 = vld [vmem:[%s2072_s1 + $0x20] ss:$8 sps:$4 sm:$0xff]   ;;  %v178_v43 = vunpack.c.0.s8 %v177_v38 }
   0x4   :  { %1050 = vmatpush1.bf16.msra.mxu0 %v1369_v3  ;;  %969 = vmatprep.subr.bf16.mxu1 %v1370_v4  ;;  %v1375_v7 = vld [vmem:[%s2072_s1 + $0x210] ss:$8 sps:$4 sm:$0xff]   ;;  %v1378_v9 = vld [vmem:[%s2072_s1 + $0x224] ss:$8 sps:$4 sm:$0xff]   ;;  %v1381_v11 = vld [vmem:[%s2072_s1 + $0x220] ss:$8 sps:$4 sm:$0xff]  }
   0x5   :  { %1051 = vmatprep.subr.bf16.mxu0 %v1372_v5  ;;  %v1382_v12 = vld [vmem:[%s2072_s1 + $0x34] ss:$8 sps:$4 sm:$0xff]   ;;  %v1386_v14 = vld [vmem:[%s2072_s1 + $0x30] ss:$8 sps:$4 sm:$0xff]   ;;  %v1388_v16 = vld [vmem:[%s2072_s1 + $0x44] ss:$8 sps:$4 sm:$0xff]  }
   0x6   :  { %v1384_v13 = vld [vmem:[%s2072_s1 + $0x234] ss:$8 sps:$4 sm:$0xff]   ;;  %v1387_v15 = vld [vmem:[%s2072_s1 + $0x230] ss:$8 sps:$4 sm:$0xff]   ;;  %v1390_v17 = vld [vmem:[%s2072_s1 + $0x244] ss:$8 sps:$4 sm:$0xff]  }
   0x7   :  { %970 = vmatpush1.bf16.msra.mxu1 %v1374_v6  ;;  %v1392_v18 = vld [vmem:[%s2072_s1 + $0x40] ss:$8 sps:$4 sm:$0xff]   ;;  %v1394_v20 = vld [vmem:[%s2072_s1 + $0x54] ss:$8 sps:$4 sm:$0xff]   ;;  %v1398_v22 = vld [vmem:[%s2072_s1 + $0x50] ss:$8 sps:$4 sm:$0xff]  }
   0x8   :  { %1052 = vmatpush1.bf16.msra.mxu0 %v1375_v7  ;;  %971 = vmatprep.subr.bf16.mxu1 %v1376_v8  ;;  %v1393_v19 = vld [vmem:[%s2072_s1 + $0x240] ss:$8 sps:$4 sm:$0xff]   ;;  %v1396_v21 = vld [vmem:[%s2072_s1 + $0x254] ss:$8 sps:$4 sm:$0xff]   ;;  %v1399_v23 = vld [vmem:[%s2072_s1 + $0x250] ss:$8 sps:$4 sm:$0xff]  }
   0x9   :  { %1053 = vmatprep.subr.bf16.mxu0 %v1378_v9  ;;  %v1400_v24 = vld [vmem:[%s2072_s1 + $0x64] ss:$8 sps:$4 sm:$0xff]   ;;  %v1404_v26 = vld [vmem:[%s2072_s1 + $0x60] ss:$8 sps:$4 sm:$0xff]   ;;  %v1406_v28 = vld [vmem:[%s2072_s1 + $0x74] ss:$8 sps:$4 sm:$0xff]  }
   0xa   :  { %v1402_v25 = vld [vmem:[%s2072_s1 + $0x264] ss:$8 sps:$4 sm:$0xff]   ;;  %v1405_v27 = vld [vmem:[%s2072_s1 + $0x260] ss:$8 sps:$4 sm:$0xff]   ;;  %v1408_v29 = vld [vmem:[%s2072_s1 + $0x274] ss:$8 sps:$4 sm:$0xff]  }
   0xb   :  { %972 = vmatpush1.bf16.msra.mxu1 %v1380_v10  ;;  %v1410_v30 = vld [vmem:[%s2072_s1 + $0x70] ss:$8 sps:$4 sm:$0xff]   ;;  %v1412_v32 = vld [vmem:[%s2072_s1 + $0x84] ss:$8 sps:$4 sm:$0xff]   ;;  %v1416_v34 = vld [vmem:[%s2072_s1 + $0x80] ss:$8 sps:$4 sm:$0xff]  }
   0xc   :  { %1054 = vmatpush1.bf16.msra.mxu0 %v1381_v11  ;;  %973 = vmatprep.subr.bf16.mxu1 %v1382_v12  ;;  %v1411_v31 = vld [vmem:[%s2072_s1 + $0x270] ss:$8 sps:$4 sm:$0xff]   ;;  %v1414_v33 = vld [vmem:[%s2072_s1 + $0x284] ss:$8 sps:$4 sm:$0xff]   ;;  %v1417_v35 = vld [vmem:[%s2072_s1 + $0x280] ss:$8 sps:$4 sm:$0xff]  }
   0xd   :  { %1055 = vmatprep.subr.bf16.mxu0 %v1384_v13  ;;  %v1418_v39 = vld [vmem:[%s2072_s1 + $0x94] ss:$8 sps:$4 sm:$0xff]   ;;  %v1422_v41 = vld [vmem:[%s2072_s1 + $0x90] ss:$8 sps:$4 sm:$0xff]   ;;  %v1720_v42 = vshrl.u32 %v163_v36, 7  ;;  %v15_v52 = vld [vmem:[%s2073_s0] sm:$0xff] }
   0xe   :  { %v1420_v40 = vld [vmem:[%s2072_s1 + $0x294] ss:$8 sps:$4 sm:$0xff]   ;;  %v1423_v44 = vld [vmem:[%s2072_s1 + $0x290] ss:$8 sps:$4 sm:$0xff]   ;;  %v1424_v45 = vld [vmem:[%s2072_s1 + $0xa4] ss:$8 sps:$4 sm:$0xff]   ;;  %v175_v55 = vcombine.high %v15_v52, %v15_v52 }
   0xf   :  { %974 = vmatpush1.bf16.msra.mxu1 %v1386_v14  ;;  %v1426_v46 = vld [vmem:[%s2072_s1 + $0x2a4] ss:$8 sps:$4 sm:$0xff]   ;;  %v1428_v47 = vld [vmem:[%s2072_s1 + $0xa0] ss:$8 sps:$4 sm:$0xff]   ;;  %v1738_v49 = vsub.s32 %v178_v43, %v1720_v42  ;;  %v1430_v50 = vld [vmem:[%s2072_s1 + $0xb4] ss:$8 sps:$4 sm:$0xff]  }
  0x10   :  { %1056 = vmatpush1.bf16.msra.mxu0 %v1387_v15  ;;  %975 = vmatprep.subr.bf16.mxu1 %v1388_v16  ;;  %v1429_v48 = vld [vmem:[%s2072_s1 + $0x2a0] ss:$8 sps:$4 sm:$0xff]   ;;  %v1432_v51 = vld [vmem:[%s2072_s1 + $0x2b4] ss:$8 sps:$4 sm:$0xff]   ;;  %v1434_v53 = vld [vmem:[%s2072_s1 + $0xb0] ss:$8 sps:$4 sm:$0xff]  }
  0x11   :  { %1057 = vmatprep.subr.bf16.mxu0 %v1390_v17  ;;  %v182_v54 = vrot.slane %v15_v52, %v1738_v49  ;;  %v1435_v56 = vld [vmem:[%s2072_s1 + $0x2b0] ss:$8 sps:$4 sm:$0xff]   ;;  %v1436_v57 = vld [vmem:[%s2072_s1 + $0xc4] ss:$8 sps:$4 sm:$0xff]   ;;  %v189_v60 = vrot.slane %v175_v55, %v1738_v49  ;;  %v1440_v61 = vld [vmem:[%s2072_s1 + $0xc0] ss:$8 sps:$4 sm:$0xff]  }
  0x12   :  { %v1438_v58 = vld [vmem:[%s2072_s1 + $0x2c4] ss:$8 sps:$4 sm:$0xff]   ;;  %v1441_v0 = vld [vmem:[%s2072_s1 + $0x2c0] ss:$8 sps:$4 sm:$0xff]   ;;  %v1442_v1 = vld [vmem:[%s2072_s1 + $0xd4] ss:$8 sps:$4 sm:$0xff]  }
  0x13   :  { %976 = vmatpush1.bf16.msra.mxu1 %v1392_v18  ;;  %v190_v59 = vcombine.high %v182_v54, %v182_v54  ;;  %v191_v63 = vcombine.high %v189_v60, %v189_v60  ;;  %v1444_v2 = vld [vmem:[%s2072_s1 + $0x2d4] ss:$8 sps:$4 sm:$0xff]   ;;  %v1446_v4 = vld [vmem:[%s2072_s1 + $0xd0] ss:$8 sps:$4 sm:$0xff]   ;;  %v1448_v6 = vld [vmem:[%s2072_s1 + $0xe4] ss:$8 sps:$4 sm:$0xff]   ;;  %v1817_v17 = vrot.slane %v182_v54, %v1738_v49  ;;  %v1820_v18 = vrot.slane %v189_v60, %v1738_v49 }
  0x14   :  { %1058 = vmatpush1.bf16.msra.mxu0 %v1393_v19  ;;  %977 = vmatprep.subr.bf16.mxu1 %v1394_v20  ;;  %v1447_v5 = vld [vmem:[%s2072_s1 + $0x2d0] ss:$8 sps:$4 sm:$0xff]   ;;  %v1450_v7 = vld [vmem:[%s2072_s1 + $0x2e4] ss:$8 sps:$4 sm:$0xff]   ;;  %v1452_v8 = vld [vmem:[%s2072_s1 + $0xe0] ss:$8 sps:$4 sm:$0xff]  }
  0x15   :  { %1059 = vmatprep.subr.bf16.mxu0 %v1396_v21  ;;  %v212_v62 = vrot.slane %v190_v59, %v1738_v49  ;;  %v219_v3 = vrot.slane %v191_v63, %v1738_v49  ;;  %v1453_v9 = vld [vmem:[%s2072_s1 + $0x2e0] ss:$8 sps:$4 sm:$0xff]   ;;  %v1454_v10 = vld [vmem:[%s2072_s1 + $0xf4] ss:$8 sps:$4 sm:$0xff]   ;;  %v1458_v12 = vld [vmem:[%s2072_s1 + $0xf0] ss:$8 sps:$4 sm:$0xff]  }
  0x16   :  { %v1456_v11 = vld [vmem:[%s2072_s1 + $0x2f4] ss:$8 sps:$4 sm:$0xff]   ;;  %v1459_v13 = vld [vmem:[%s2072_s1 + $0x2f0] ss:$8 sps:$4 sm:$0xff]   ;;  %v1462_v14 = vld [vmem:[%s2072_s1 + $0x104] ss:$8 sps:$4 sm:$0xff]  }
  0x17   :  { %978 = vmatpush1.bf16.msra.mxu1 %v1398_v22  ;;  %999 = vmatprep.mubr.bf16.mxu1 %v212_v62  ;;  %v1466_v15 = vld [vmem:[%s2072_s1 + $0x304] ss:$8 sps:$4 sm:$0xff]   ;;  %v1460_v16 = vld [vmem:[%s2072_s1 + $0x100] ss:$8 sps:$4 sm:$0xff]   ;;  %v1469_v20 = vld [vmem:[%s2072_s1 + $0x114] ss:$8 sps:$4 sm:$0xff]   ;;  %v222_v22 = vcombine.high %v212_v62, %v212_v62 }
  0x18   :  { %1060 = vmatpush1.bf16.msra.mxu0 %v1399_v23  ;;  %979 = vmatprep.subr.bf16.mxu1 %v1400_v24  ;;  %v1464_v19 = vld [vmem:[%s2072_s1 + $0x300] ss:$8 sps:$4 sm:$0xff]   ;;  %v1472_v21 = vld [vmem:[%s2072_s1 + $0x314] ss:$8 sps:$4 sm:$0xff]   ;;  %v223_v23 = vcombine.high %v219_v3, %v219_v3  ;;  %v1467_v24 = vld [vmem:[%s2072_s1 + $0x110] ss:$8 sps:$4 sm:$0xff]  }
  0x19   :  { %1061 = vmatprep.subr.bf16.mxu0 %v1402_v25  ;;  %1081 = vmatprep.mubr.bf16.mxu0 %v219_v3  ;;  %v1470_v25 = vld [vmem:[%s2072_s1 + $0x310] ss:$8 sps:$4 sm:$0xff]   ;;  %v1485_v36 = vld [vmem:[%s2072_s1 + $0x140] ss:$8 sps:$4 sm:$0xff]   ;;  %v1493_v38 = vld [vmem:[%s2072_s1 + $0x154] ss:$8 sps:$4 sm:$0xff]  }
  0x1a   :  { %v1488_v37 = vld [vmem:[%s2072_s1 + $0x340] ss:$8 sps:$4 sm:$0xff]   ;;  %v1499_v43 = vld [vmem:[%s2072_s1 + $0x164] ss:$8 sps:$4 sm:$0xff]   ;;  %v1518_v59 = vld [vmem:[%s2072_s1 + $0x390] ss:$8 sps:$4 sm:$0xff]  }
  0x1b   :  { %980 = vmatpush1.bf16.msra.mxu1 %v1404_v26  ;;  %v1475_v26 = vld [vmem:[%s2072_s1 + $0x124] ss:$8 sps:$4 sm:$0xff]   ;;  %v1509_v54 = vld [vmem:[%s2072_s1 + $0x180] ss:$8 sps:$4 sm:$0xff]   ;;  %v1530_v3 = vld [vmem:[%s2072_s1 + $0x3b0] ss:$8 sps:$4 sm:$0xff]  }
  0x1c   :  { %1062 = vmatpush1.bf16.msra.mxu0 %v1405_v27  ;;  %981 = vmatprep.subr.bf16.mxu1 %v1406_v28  ;;  %v1478_v27 = vld [vmem:[%s2072_s1 + $0x324] ss:$8 sps:$4 sm:$0xff]   ;;  %v1473_v28 = vld [vmem:[%s2072_s1 + $0x120] ss:$8 sps:$4 sm:$0xff]  }
  0x1d   :  { %1063 = vmatprep.subr.bf16.mxu0 %v1408_v29  ;;  %v1476_v29 = vld [vmem:[%s2072_s1 + $0x320] ss:$8 sps:$4 sm:$0xff]   ;;  %v1511_v52 = vld [vmem:[%s2072_s1 + $0x184] ss:$8 sps:$4 sm:$0xff]  }
  0x1e   :  { %v1512_v55 = vld [vmem:[%s2072_s1 + $0x380] ss:$8 sps:$4 sm:$0xff]   ;;  %v1523_v60 = vld [vmem:[%s2072_s1 + $0x1a4] ss:$8 sps:$4 sm:$0xff]  }
  0x1f   :  { %982 = vmatpush1.bf16.msra.mxu1 %v1410_v30  ;;  %v1481_v30 = vld [vmem:[%s2072_s1 + $0x134] ss:$8 sps:$4 sm:$0xff]   ;;  %v1521_v62 = vld [vmem:[%s2072_s1 + $0x1a0] ss:$8 sps:$4 sm:$0xff]  }
  0x20   :  { %1064 = vmatpush1.bf16.msra.mxu0 %v1411_v31  ;;  %983 = vmatprep.subr.bf16.mxu1 %v1412_v32  ;;  %v1484_v31 = vld [vmem:[%s2072_s1 + $0x334] ss:$8 sps:$4 sm:$0xff]   ;;  %v1479_v32 = vld [vmem:[%s2072_s1 + $0x130] ss:$8 sps:$4 sm:$0xff]   ;;  %v1524_v63 = vld [vmem:[%s2072_s1 + $0x3a0] ss:$8 sps:$4 sm:$0xff]  }
  0x21   :  { %1065 = vmatprep.subr.bf16.mxu0 %v1414_v33  ;;  %v1482_v33 = vld [vmem:[%s2072_s1 + $0x330] ss:$8 sps:$4 sm:$0xff]  }
  0x23   :  { %984 = vmatpush1.bf16.msra.mxu1 %v1416_v34  ;;  %v1487_v34 = vld [vmem:[%s2072_s1 + $0x144] ss:$8 sps:$4 sm:$0xff]  }
  0x24   :  { %1066 = vmatpush1.bf16.msra.mxu0 %v1417_v35  ;;  %985 = vmatprep.subr.bf16.mxu1 %v1418_v39  ;;  %v1490_v35 = vld [vmem:[%s2072_s1 + $0x344] ss:$8 sps:$4 sm:$0xff]   ;;  %v1496_v39 = vld [vmem:[%s2072_s1 + $0x354] ss:$8 sps:$4 sm:$0xff]  }
  0x25   :  { %1067 = vmatprep.subr.bf16.mxu0 %v1420_v40  ;;  %v1491_v40 = vld [vmem:[%s2072_s1 + $0x150] ss:$8 sps:$4 sm:$0xff]  }
  0x27   :  { %986 = vmatpush1.bf16.msra.mxu1 %v1422_v41  ;;  %v1494_v41 = vld [vmem:[%s2072_s1 + $0x350] ss:$8 sps:$4 sm:$0xff]  }
  0x28   :  { %1068 = vmatpush1.bf16.msra.mxu0 %v1423_v44  ;;  %987 = vmatprep.subr.bf16.mxu1 %v1424_v45  ;;  %v1502_v44 = vld [vmem:[%s2072_s1 + $0x364] ss:$8 sps:$4 sm:$0xff]   ;;  %v1497_v45 = vld [vmem:[%s2072_s1 + $0x160] ss:$8 sps:$4 sm:$0xff]  }
  0x29   :  { %1069 = vmatprep.subr.bf16.mxu0 %v1426_v46  ;;  %v1500_v46 = vld [vmem:[%s2072_s1 + $0x360] ss:$8 sps:$4 sm:$0xff]  }
  0x2b   :  { %988 = vmatpush1.bf16.msra.mxu1 %v1428_v47  ;;  %v1505_v47 = vld [vmem:[%s2072_s1 + $0x174] ss:$8 sps:$4 sm:$0xff]  }
  0x2c   :  { %1070 = vmatpush1.bf16.msra.mxu0 %v1429_v48  ;;  %989 = vmatprep.subr.bf16.mxu1 %v1430_v50  ;;  %v1508_v48 = vld [vmem:[%s2072_s1 + $0x374] ss:$8 sps:$4 sm:$0xff]   ;;  %v1503_v50 = vld [vmem:[%s2072_s1 + $0x170] ss:$8 sps:$4 sm:$0xff]  }
  0x2d   :  { %1071 = vmatprep.subr.bf16.mxu0 %v1432_v51  ;;  %v1506_v51 = vld [vmem:[%s2072_s1 + $0x370] ss:$8 sps:$4 sm:$0xff]  }
  0x2f   :  { %990 = vmatpush1.bf16.msra.mxu1 %v1434_v53  ;;  %v1514_v53 = vld [vmem:[%s2072_s1 + $0x384] ss:$8 sps:$4 sm:$0xff]  }
  0x30   :  { %1072 = vmatpush1.bf16.msra.mxu0 %v1435_v56  ;;  %991 = vmatprep.subr.bf16.mxu1 %v1436_v57  ;;  %v1517_v56 = vld [vmem:[%s2072_s1 + $0x194] ss:$8 sps:$4 sm:$0xff]  }
  0x31   :  { %1073 = vmatprep.subr.bf16.mxu0 %v1438_v58  ;;  %v1520_v57 = vld [vmem:[%s2072_s1 + $0x394] ss:$8 sps:$4 sm:$0xff]   ;;  %v1515_v58 = vld [vmem:[%s2072_s1 + $0x190] ss:$8 sps:$4 sm:$0xff]  }
  0x33   :  { %992 = vmatpush1.bf16.msra.mxu1 %v1440_v61  ;;  %v1526_v61 = vld [vmem:[%s2072_s1 + $0x3a4] ss:$8 sps:$4 sm:$0xff]  }
  0x34   :  { %1074 = vmatpush1.bf16.msra.mxu0 %v1441_v0  ;;  %993 = vmatprep.subr.bf16.mxu1 %v1442_v1  ;;  %v1529_v0 = vld [vmem:[%s2072_s1 + $0x1b4] ss:$8 sps:$4 sm:$0xff]  }
  0x35   :  { %1075 = vmatprep.subr.bf16.mxu0 %v1444_v2  ;;  %v1532_v1 = vld [vmem:[%s2072_s1 + $0x3b4] ss:$8 sps:$4 sm:$0xff]   ;;  %v1527_v2 = vld [vmem:[%s2072_s1 + $0x1b0] ss:$8 sps:$4 sm:$0xff]  }
  0x37   :  { %994 = vmatpush1.bf16.msra.mxu1 %v1446_v4  ;;  %v1535_v4 = vld [vmem:[%s2072_s1 + $0x1c4] ss:$8 sps:$4 sm:$0xff]  }
  0x38   :  { %1076 = vmatpush1.bf16.msra.mxu0 %v1447_v5  ;;  %995 = vmatprep.subr.bf16.mxu1 %v1448_v6  ;;  %v1538_v5 = vld [vmem:[%s2072_s1 + $0x3c4] ss:$8 sps:$4 sm:$0xff]   ;;  %v1533_v6 = vld [vmem:[%s2072_s1 + $0x1c0] ss:$8 sps:$4 sm:$0xff]  }
  0x39   :  { %1077 = vmatprep.subr.bf16.mxu0 %v1450_v7  ;;  %v1536_v7 = vld [vmem:[%s2072_s1 + $0x3c0] ss:$8 sps:$4 sm:$0xff]  }
  0x3b   :  { %996 = vmatpush1.bf16.msra.mxu1 %v1452_v8  ;;  %v1541_v8 = vld [vmem:[%s2072_s1 + $0x1d4] ss:$8 sps:$4 sm:$0xff]  }
  0x3c   :  { %1078 = vmatpush1.bf16.msra.mxu0 %v1453_v9  ;;  %997 = vmatprep.subr.bf16.mxu1 %v1454_v10  ;;  %v1544_v9 = vld [vmem:[%s2072_s1 + $0x3d4] ss:$8 sps:$4 sm:$0xff]   ;;  %v1539_v10 = vld [vmem:[%s2072_s1 + $0x1d0] ss:$8 sps:$4 sm:$0xff]  }
  0x3d   :  { %1079 = vmatprep.subr.bf16.mxu0 %v1456_v11  ;;  %v1542_v11 = vld [vmem:[%s2072_s1 + $0x3d0] ss:$8 sps:$4 sm:$0xff]  }
  0x3f   :  { %998 = vmatpush1.bf16.msra.mxu1 %v1458_v12  ;;  %v1547_v12 = vld [vmem:[%s2072_s1 + $0x1e4] ss:$8 sps:$4 sm:$0xff]  }
  0x40   :  { %1080 = vmatpush1.bf16.msra.mxu0 %v1459_v13  ;;  %1008 = vmatprep.subr.bf16.mxu1 %v1462_v14  ;;  %v1550_v13 = vld [vmem:[%s2072_s1 + $0x3e4] ss:$8 sps:$4 sm:$0xff]   ;;  %v1545_v14 = vld [vmem:[%s2072_s1 + $0x1e0] ss:$8 sps:$4 sm:$0xff]  }
  0x41   :  { %1090 = vmatprep.subr.bf16.mxu0 %v1466_v15  ;;  %v1548_v15 = vld [vmem:[%s2072_s1 + $0x3e0] ss:$8 sps:$4 sm:$0xff]  }
  0x42   :  { %1000 = vmatmul.mubr.bf16.vlgmr.msra.gmra.mrb[0].mxu1 %v1817_v17 }
  0x43   :  { %1082 = vmatmul.mubr.bf16.vlgmr.msra.gmra.mrb[0].mxu0 %v1820_v18  ;;  %1009 = vmatpush1.bf16.msra.mxu1 %v1460_v16  ;;  %v1553_v16 = vld [vmem:[%s2072_s1 + $0x1f4] ss:$8 sps:$4 sm:$0xff]  }
  0x44   :  { %1091 = vmatpush1.bf16.msra.mxu0 %v1464_v19  ;;  %1010 = vmatprep.subr.bf16.mxu1 %v1469_v20  ;;  %v1556_v19 = vld [vmem:[%s2072_s1 + $0x3f4] ss:$8 sps:$4 sm:$0xff]   ;;  %v1551_v20 = vld [vmem:[%s2072_s1 + $0x1f0] ss:$8 sps:$4 sm:$0xff]  }
  0x45   :  { %1092 = vmatprep.subr.bf16.mxu0 %v1472_v21  ;;  %1040 = vmatprep.mubr.bf16.mxu1 %v222_v22  ;;  %v1554_v21 = vld [vmem:[%s2072_s1 + $0x3f0] ss:$8 sps:$4 sm:$0xff]   ;;  %v1559_v22 = vld [vmem:[%s2072_s1 + $0x404] ss:$8 sps:$4 sm:$0xff]  }
  0x46   :  { %1122 = vmatprep.mubr.bf16.mxu0 %v223_v23  ;;  %v220_v23 = vcombine.high %v1817_v17, %v1817_v17  ;;  %v1560_v17 = vld [vmem:[%s2072_s1 + $0x410] ss:$8 sps:$4 sm:$0xff]  }
  0x47   :  { %1011 = vmatpush1.bf16.msra.mxu1 %v1467_v24  ;;  %v221_v24 = vcombine.high %v1820_v18, %v1820_v18  ;;  %v1565_v18 = vld [vmem:[%s2072_s1 + $0x424] ss:$8 sps:$4 sm:$0xff]  }
  0x48   :  { %1093 = vmatpush1.bf16.msra.mxu0 %v1470_v25  ;;  %1012 = vmatprep.subr.bf16.mxu1 %v1475_v26  ;;  %v1557_v25 = vld [vmem:[%s2072_s1 + $0x400] ss:$8 sps:$4 sm:$0xff]   ;;  %v1562_v26 = vld [vmem:[%s2072_s1 + $0x414] ss:$8 sps:$4 sm:$0xff]  }
  0x49   :  { %1094 = vmatprep.subr.bf16.mxu0 %v1478_v27  ;;  %v1582_v27 = vmov 0  }
  0x4b   :  { %1013 = vmatpush1.bf16.msra.mxu1 %v1473_v28  ;;  %v1563_v28 = vld [vmem:[%s2072_s1 + $0x420] ss:$8 sps:$4 sm:$0xff]  }
  0x4c   :  { %1095 = vmatpush1.bf16.msra.mxu0 %v1476_v29  ;;  %1014 = vmatprep.subr.bf16.mxu1 %v1481_v30  ;;  %v1568_v29 = vld [vmem:[%s2072_s1 + $0x434] ss:$8 sps:$4 sm:$0xff]   ;;  %v1566_v30 = vld [vmem:[%s2072_s1 + $0x430] ss:$8 sps:$4 sm:$0xff]  }
  0x4d   :  { %1096 = vmatprep.subr.bf16.mxu0 %v1484_v31  ;;  %v1571_v31 = vld [vmem:[%s2072_s1 + $0x444] ss:$8 sps:$4 sm:$0xff]  }
  0x4f   :  { %1015 = vmatpush1.bf16.msra.mxu1 %v1479_v32  ;;  %v1569_v32 = vld [vmem:[%s2072_s1 + $0x440] ss:$8 sps:$4 sm:$0xff]  }
  0x50   :  { %1097 = vmatpush1.bf16.msra.mxu0 %v1482_v33  ;;  %1016 = vmatprep.subr.bf16.mxu1 %v1487_v34  ;;  %v1574_v33 = vld [vmem:[%s2072_s1 + $0x454] ss:$8 sps:$4 sm:$0xff]   ;;  %v1572_v34 = vld [vmem:[%s2072_s1 + $0x450] ss:$8 sps:$4 sm:$0xff]  }
  0x51   :  { %1098 = vmatprep.subr.bf16.mxu0 %v1490_v35  ;;  %v1577_v35 = vld [vmem:[%s2072_s1 + $0x464] ss:$8 sps:$4 sm:$0xff]  }
  0x53   :  { %1017 = vmatpush1.bf16.msra.mxu1 %v1485_v36  ;;  %v1575_v36 = vld [vmem:[%s2072_s1 + $0x460] ss:$8 sps:$4 sm:$0xff]  }
  0x54   :  { %1099 = vmatpush1.bf16.msra.mxu0 %v1488_v37  ;;  %1018 = vmatprep.subr.bf16.mxu1 %v1493_v38  ;;  %v1580_v37 = vld [vmem:[%s2072_s1 + $0x474] ss:$8 sps:$4 sm:$0xff]   ;;  %v1578_v38 = vld [vmem:[%s2072_s1 + $0x470] ss:$8 sps:$4 sm:$0xff]  }
  0x55   :  { %1100 = vmatprep.subr.bf16.mxu0 %v1496_v39  ;;  %v1199_v39 = vld.sshfl [vmem:[%s2073_s0 + $0x8] sm:$0x1 pattern:$0x75316420] }
  0x57   :  { %1019 = vmatpush1.bf16.msra.mxu1 %v1491_v40  ;;  %v237_v40 = vrot.slane %v1199_v39, %v1738_v49 }
  0x58   :  { %1101 = vmatpush1.bf16.msra.mxu0 %v1494_v41  ;;  %1020 = vmatprep.subr.bf16.mxu1 %v1499_v43 }
  0x59   :  { %1102 = vmatprep.subr.bf16.mxu0 %v1502_v44 }
  0x5b   :  { %1021 = vmatpush1.bf16.msra.mxu1 %v1497_v45 }
  0x5c   :  { %1103 = vmatpush1.bf16.msra.mxu0 %v1500_v46  ;;  %1022 = vmatprep.subr.bf16.mxu1 %v1505_v47  ;;  %v165_v46 = vsub.s32 0, %v1720_v42  ;;  %v161_v47 = vld [vmem:[%s2074_s2] sm:$0x3] }
  0x5d   :  { %1104 = vmatprep.subr.bf16.mxu0 %v1508_v48  ;;  %v169_v48 = vsub.s32 1, %v1720_v42 }
  0x5f   :  { %1023 = vmatpush1.bf16.msra.mxu1 %v1503_v50  ;;  %v166_v50 = vrot.slane %v161_v47, %v165_v46 }
  0x60   :  { %1105 = vmatpush1.bf16.msra.mxu0 %v1506_v51  ;;  %1024 = vmatprep.subr.bf16.mxu1 %v1511_v52  ;;  %v170_v51 = vrot.slane %v161_v47, %v169_v48 }
  0x61   :  { %1106 = vmatprep.subr.bf16.mxu0 %v1514_v53 }
  0x63   :  { %1025 = vmatpush1.bf16.msra.mxu1 %v1509_v54 }
  0x64   :  { %1107 = vmatpush1.bf16.msra.mxu0 %v1512_v55  ;;  %1026 = vmatprep.subr.bf16.mxu1 %v1517_v56 }
  0x65   :  { %1108 = vmatprep.subr.bf16.mxu0 %v1520_v57 }
  0x67   :  { %1027 = vmatpush1.bf16.msra.mxu1 %v1515_v58 }
  0x68   :  { %1109 = vmatpush1.bf16.msra.mxu0 %v1518_v59  ;;  %1028 = vmatprep.subr.bf16.mxu1 %v1523_v60 }
  0x69   :  { %1110 = vmatprep.subr.bf16.mxu0 %v1526_v61 }
  0x6b   :  { %1029 = vmatpush1.bf16.msra.mxu1 %v1521_v62 }
  0x6c   :  { %1111 = vmatpush1.bf16.msra.mxu0 %v1524_v63  ;;  %1030 = vmatprep.subr.bf16.mxu1 %v1529_v0 }
  0x6d   :  { %1112 = vmatprep.subr.bf16.mxu0 %v1532_v1 }
  0x6f   :  { %1031 = vmatpush1.bf16.msra.mxu1 %v1527_v2 }
  0x70   :  { %1113 = vmatpush1.bf16.msra.mxu0 %v1530_v3  ;;  %1032 = vmatprep.subr.bf16.mxu1 %v1535_v4 }
  0x71   :  { %1114 = vmatprep.subr.bf16.mxu0 %v1538_v5 }
  0x73   :  { %1033 = vmatpush1.bf16.msra.mxu1 %v1533_v6 }
  0x74   :  { %1115 = vmatpush1.bf16.msra.mxu0 %v1536_v7  ;;  %1034 = vmatprep.subr.bf16.mxu1 %v1541_v8 }
  0x75   :  { %1116 = vmatprep.subr.bf16.mxu0 %v1544_v9 }
  0x77   :  { %1035 = vmatpush1.bf16.msra.mxu1 %v1539_v10 }
  0x78   :  { %1117 = vmatpush1.bf16.msra.mxu0 %v1542_v11  ;;  %1036 = vmatprep.subr.bf16.mxu1 %v1547_v12 }
  0x79   :  { %1118 = vmatprep.subr.bf16.mxu0 %v1550_v13 }
  0x7b   :  { %1037 = vmatpush1.bf16.msra.mxu1 %v1545_v14 }
  0x7c   :  { %1119 = vmatpush1.bf16.msra.mxu0 %v1548_v15  ;;  %1038 = vmatprep.subr.bf16.mxu1 %v1553_v16 }
  0x7d   :  { %1120 = vmatprep.subr.bf16.mxu0 %v1556_v19 }
  0x7f   :  { %1039 = vmatpush1.bf16.msra.mxu1 %v1551_v20 }
  0x80   :  { %1121 = vmatpush1.bf16.msra.mxu0 %v1554_v21 }
  0x81   :  { %1131 = vmatprep.subr.bf16.mxu0 %v1559_v22 }
  0x82   :  { %1041 = vmatmul.mubr.bf16.vlgmr.msra.gmra.mrb[0].mxu1 %v220_v23 }
  0x83   :  { %1123 = vmatmul.mubr.bf16.vlgmr.msra.gmra.mrb[0].mxu0 %v221_v24 }
  0x84   :  { %1132 = vmatpush1.bf16.msra.mxu0 %v1557_v25  ;;  %1163 = vmatprep.mubr.bf16.mxu0 %v1582_v27 }
  0x85   :  { %1133 = vmatprep.subr.bf16.mxu0 %v1562_v26 }
  0x88   :  { %1134 = vmatpush1.bf16.msra.mxu0 %v1560_v17 }
  0x89   :  { %1135 = vmatprep.subr.bf16.mxu0 %v1565_v18 }
  0x8c   :  { %1136 = vmatpush1.bf16.msra.mxu0 %v1563_v28 }
  0x8d   :  { %1137 = vmatprep.subr.bf16.mxu0 %v1568_v29 }
  0x90   :  { %1138 = vmatpush1.bf16.msra.mxu0 %v1566_v30 }
  0x91   :  { %1139 = vmatprep.subr.bf16.mxu0 %v1571_v31 }
  0x94   :  { %1140 = vmatpush1.bf16.msra.mxu0 %v1569_v32 }
  0x95   :  { %1141 = vmatprep.subr.bf16.mxu0 %v1574_v33 }
  0x98   :  { %1142 = vmatpush1.bf16.msra.mxu0 %v1572_v34 }
  0x99   :  { %1143 = vmatprep.subr.bf16.mxu0 %v1577_v35 }
  0x9c   :  { %1144 = vmatpush1.bf16.msra.mxu0 %v1575_v36 }
  0x9d   :  { %1145 = vmatprep.subr.bf16.mxu0 %v1580_v37 }
  0xa0   :  { %1146 = vmatpush1.bf16.msra.mxu0 %v1578_v38 }
  0xa3   :  { %1164 = vmatmul.mubr.bf16.vlgmr.msra.gmra.mrb[0].mxu0 %v237_v40 }
 0x155   :  { %v1042_v41 = vpop.f32.mrb[0].mxu1 }
 0x156   :  { %v1044_v43 = vpop.f32.mrb[1].mxu1  ;;  %v1346_v52 = vadd.f32 %v1042_v41, %v166_v50 }
 0x157   :  { %v1046_v44 = vpop.f32.mrb[2].mxu1  ;;  %v1348_v53 = vadd.f32 %v1044_v43, %v170_v51 }
 0x158   :  { %v1047_v45 = vpop.f32.mrb[3].mxu1 }
 0x176   :  { %v1165_v54 = vpop.f32.mrb[0].mxu0 }
 0x177   :  { %v1347_v55 = vadd.f32 %v1346_v52, %v1165_v54  ;;  %v1167_v56 = vpop.f32.mrb[1].mxu0 }
 0x178   :  { %v1349_v57 = vadd.f32 %v1348_v53, %v1167_v56  ;;  %v1169_v58 = vpop.f32.mrb[2].mxu0 }
 0x179   :  { %v1172_v59 = vmax.f32 %v1347_v55, 0.0  ;;  %v1170_v60 = vpop.f32.mrb[3].mxu0 }
 0x17a   :  { %v1173_v61 = vmax.f32 %v1349_v57, 0.0 }
 0x17c   :  { %v1344_v62 = vpack.c.bf16 %v1173_v61, %v1172_v59 }
 0x17e   :  { %v1185_v63 = vrot.slane %v1344_v62, %v1738_v49 }
 0x180   :  { %1345 = vst.sshfl [vmem:[%s2075_s3] sm:$0x5 pattern:$0x73625140] %v1185_v63 }

// kernel: _lambda_.57
= control target key start
LH: loop header
LB: loop body
LE: loop exit
PB: predicated region body
PF: predicated region fallthrough
CT: control target
= control target key end

     0   :  { %v307_v36 = vlaneseq  ;;  %v3052_v37 = vmov 1966171168   ;;  %s4029_s1 = inlined_call_operand.vmem [shape: bf16[2304,256], index: 1, kind: input, shape index: {}]   ;;  %s4030_s0 = inlined_call_operand.vmem [shape: bf16[2,2304], index: 0, kind: input, shape index: {}]   ;;  %s4031_s2 = inlined_call_operand.vmem [shape: f32[1,256], index: 2, kind: input, shape index: {}]   ;;  %s4032_s3 = inlined_call_operand.vmem [shape: bf16[2,256], index: 3, kind: output, shape index: {}]  }
   0x1   :  { %v2618_v0 = vld [vmem:[%s4029_s1 + $0x4] ss:$8 sps:$4 sm:$0xff]   ;;  %v2622_v2 = vld [vmem:[%s4029_s1] ss:$8 sps:$4 sm:$0xff]   ;;  %v2624_v4 = vld [vmem:[%s4029_s1 + $0x14] ss:$8 sps:$4 sm:$0xff]   ;;  %v322_v38 = vunpack.c.l.s4 %v3052_v37 }
   0x2   :  { %v2620_v1 = vld [vmem:[%s4029_s1 + $0x404] ss:$8 sps:$4 sm:$0xff]   ;;  %1898 = vmatprep.subr.bf16.mxu1 %v2618_v0  ;;  %v2623_v3 = vld [vmem:[%s4029_s1 + $0x400] ss:$8 sps:$4 sm:$0xff]   ;;  %v2626_v5 = vld [vmem:[%s4029_s1 + $0x414] ss:$8 sps:$4 sm:$0xff]  }
   0x3   :  { %2062 = vmatprep.subr.bf16.mxu0 %v2620_v1  ;;  %1899 = vmatpush1.bf16.msra.mxu1 %v2622_v2  ;;  %v2628_v6 = vld [vmem:[%s4029_s1 + $0x10] ss:$8 sps:$4 sm:$0xff]   ;;  %v2630_v8 = vld [vmem:[%s4029_s1 + $0x24] ss:$8 sps:$4 sm:$0xff]   ;;  %v2634_v10 = vld [vmem:[%s4029_s1 + $0x20] ss:$8 sps:$4 sm:$0xff]   ;;  %v323_v43 = vunpack.c.0.s8 %v322_v38 }
   0x4   :  { %2063 = vmatpush1.bf16.msra.mxu0 %v2623_v3  ;;  %1900 = vmatprep.subr.bf16.mxu1 %v2624_v4  ;;  %v2629_v7 = vld [vmem:[%s4029_s1 + $0x410] ss:$8 sps:$4 sm:$0xff]   ;;  %v2632_v9 = vld [vmem:[%s4029_s1 + $0x424] ss:$8 sps:$4 sm:$0xff]   ;;  %v2635_v11 = vld [vmem:[%s4029_s1 + $0x420] ss:$8 sps:$4 sm:$0xff]  }
   0x5   :  { %2064 = vmatprep.subr.bf16.mxu0 %v2626_v5  ;;  %v2636_v12 = vld [vmem:[%s4029_s1 + $0x34] ss:$8 sps:$4 sm:$0xff]   ;;  %v2640_v14 = vld [vmem:[%s4029_s1 + $0x30] ss:$8 sps:$4 sm:$0xff]   ;;  %v2642_v16 = vld [vmem:[%s4029_s1 + $0x44] ss:$8 sps:$4 sm:$0xff]  }
   0x6   :  { %v2638_v13 = vld [vmem:[%s4029_s1 + $0x434] ss:$8 sps:$4 sm:$0xff]   ;;  %v2641_v15 = vld [vmem:[%s4029_s1 + $0x430] ss:$8 sps:$4 sm:$0xff]   ;;  %v2644_v17 = vld [vmem:[%s4029_s1 + $0x444] ss:$8 sps:$4 sm:$0xff]  }
   0x7   :  { %1901 = vmatpush1.bf16.msra.mxu1 %v2628_v6  ;;  %v2646_v18 = vld [vmem:[%s4029_s1 + $0x40] ss:$8 sps:$4 sm:$0xff]   ;;  %v2648_v20 = vld [vmem:[%s4029_s1 + $0x54] ss:$8 sps:$4 sm:$0xff]   ;;  %v2652_v22 = vld [vmem:[%s4029_s1 + $0x50] ss:$8 sps:$4 sm:$0xff]  }
   0x8   :  { %2065 = vmatpush1.bf16.msra.mxu0 %v2629_v7  ;;  %1902 = vmatprep.subr.bf16.mxu1 %v2630_v8  ;;  %v2647_v19 = vld [vmem:[%s4029_s1 + $0x440] ss:$8 sps:$4 sm:$0xff]   ;;  %v2650_v21 = vld [vmem:[%s4029_s1 + $0x454] ss:$8 sps:$4 sm:$0xff]   ;;  %v2653_v23 = vld [vmem:[%s4029_s1 + $0x450] ss:$8 sps:$4 sm:$0xff]  }
   0x9   :  { %2066 = vmatprep.subr.bf16.mxu0 %v2632_v9  ;;  %v2654_v24 = vld [vmem:[%s4029_s1 + $0x64] ss:$8 sps:$4 sm:$0xff]   ;;  %v2658_v26 = vld [vmem:[%s4029_s1 + $0x60] ss:$8 sps:$4 sm:$0xff]   ;;  %v2660_v28 = vld [vmem:[%s4029_s1 + $0x74] ss:$8 sps:$4 sm:$0xff]  }
   0xa   :  { %v2656_v25 = vld [vmem:[%s4029_s1 + $0x464] ss:$8 sps:$4 sm:$0xff]   ;;  %v2659_v27 = vld [vmem:[%s4029_s1 + $0x460] ss:$8 sps:$4 sm:$0xff]   ;;  %v2662_v29 = vld [vmem:[%s4029_s1 + $0x474] ss:$8 sps:$4 sm:$0xff]  }
   0xb   :  { %1903 = vmatpush1.bf16.msra.mxu1 %v2634_v10  ;;  %v2664_v30 = vld [vmem:[%s4029_s1 + $0x70] ss:$8 sps:$4 sm:$0xff]   ;;  %v2666_v32 = vld [vmem:[%s4029_s1 + $0x84] ss:$8 sps:$4 sm:$0xff]   ;;  %v2670_v34 = vld [vmem:[%s4029_s1 + $0x80] ss:$8 sps:$4 sm:$0xff]  }
   0xc   :  { %2067 = vmatpush1.bf16.msra.mxu0 %v2635_v11  ;;  %1904 = vmatprep.subr.bf16.mxu1 %v2636_v12  ;;  %v2665_v31 = vld [vmem:[%s4029_s1 + $0x470] ss:$8 sps:$4 sm:$0xff]   ;;  %v2668_v33 = vld [vmem:[%s4029_s1 + $0x484] ss:$8 sps:$4 sm:$0xff]   ;;  %v2671_v35 = vld [vmem:[%s4029_s1 + $0x480] ss:$8 sps:$4 sm:$0xff]  }
   0xd   :  { %2068 = vmatprep.subr.bf16.mxu0 %v2638_v13  ;;  %v2672_v39 = vld [vmem:[%s4029_s1 + $0x94] ss:$8 sps:$4 sm:$0xff]   ;;  %v2676_v41 = vld [vmem:[%s4029_s1 + $0x90] ss:$8 sps:$4 sm:$0xff]   ;;  %v3190_v42 = vshrl.u32 %v307_v36, 7  ;;  %v3219_v52 = vld [vmem:[%s4030_s0] sm:$0xff] }
   0xe   :  { %v2674_v40 = vld [vmem:[%s4029_s1 + $0x494] ss:$8 sps:$4 sm:$0xff]   ;;  %v2677_v44 = vld [vmem:[%s4029_s1 + $0x490] ss:$8 sps:$4 sm:$0xff]   ;;  %v2678_v45 = vld [vmem:[%s4029_s1 + $0xa4] ss:$8 sps:$4 sm:$0xff]  }
   0xf   :  { %1905 = vmatpush1.bf16.msra.mxu1 %v2640_v14  ;;  %v2680_v46 = vld [vmem:[%s4029_s1 + $0x4a4] ss:$8 sps:$4 sm:$0xff]   ;;  %v2682_v47 = vld [vmem:[%s4029_s1 + $0xa0] ss:$8 sps:$4 sm:$0xff]   ;;  %v3208_v49 = vsub.s32 %v323_v43, %v3190_v42  ;;  %v2684_v50 = vld [vmem:[%s4029_s1 + $0xb4] ss:$8 sps:$4 sm:$0xff]  }
  0x10   :  { %2069 = vmatpush1.bf16.msra.mxu0 %v2641_v15  ;;  %1906 = vmatprep.subr.bf16.mxu1 %v2642_v16  ;;  %v2683_v48 = vld [vmem:[%s4029_s1 + $0x4a0] ss:$8 sps:$4 sm:$0xff]   ;;  %v2686_v51 = vld [vmem:[%s4029_s1 + $0x4b4] ss:$8 sps:$4 sm:$0xff]   ;;  %v2688_v53 = vld [vmem:[%s4029_s1 + $0xb0] ss:$8 sps:$4 sm:$0xff]  }
  0x11   :  { %2070 = vmatprep.subr.bf16.mxu0 %v2644_v17  ;;  %v327_v54 = vrot.slane %v3219_v52, %v3208_v49  ;;  %v2689_v55 = vld [vmem:[%s4029_s1 + $0x4b0] ss:$8 sps:$4 sm:$0xff]   ;;  %v3232_v56 = vld [vmem:[%s4030_s0 + $0x8] sm:$0xff]  ;;  %v2696_v1 = vld [vmem:[%s4029_s1 + $0xd4] ss:$8 sps:$4 sm:$0xff]  }
  0x12   :  { %v2690_v57 = vld [vmem:[%s4029_s1 + $0xc4] ss:$8 sps:$4 sm:$0xff]   ;;  %v376_v60 = vrot.slane %v3232_v56, %v3208_v49  ;;  %v2694_v63 = vld [vmem:[%s4029_s1 + $0xc0] ss:$8 sps:$4 sm:$0xff]   ;;  %v2698_v2 = vld [vmem:[%s4029_s1 + $0x4d4] ss:$8 sps:$4 sm:$0xff]  }
  0x13   :  { %1907 = vmatpush1.bf16.msra.mxu1 %v2646_v18  ;;  %v2692_v58 = vld [vmem:[%s4029_s1 + $0x4c4] ss:$8 sps:$4 sm:$0xff]   ;;  %v335_v59 = vcombine.high %v327_v54, %v327_v54  ;;  %v2695_v0 = vld [vmem:[%s4029_s1 + $0x4c0] ss:$8 sps:$4 sm:$0xff]   ;;  %v2700_v4 = vld [vmem:[%s4029_s1 + $0xd0] ss:$8 sps:$4 sm:$0xff]   ;;  %v3293_v16 = vrot.slane %v327_v54, %v3208_v49 }
  0x14   :  { %2071 = vmatpush1.bf16.msra.mxu0 %v2647_v19  ;;  %1908 = vmatprep.subr.bf16.mxu1 %v2648_v20  ;;  %v384_v62 = vcombine.high %v376_v60, %v376_v60  ;;  %v2701_v5 = vld [vmem:[%s4029_s1 + $0x4d0] ss:$8 sps:$4 sm:$0xff]   ;;  %v2702_v6 = vld [vmem:[%s4029_s1 + $0xe4] ss:$8 sps:$4 sm:$0xff]   ;;  %v2706_v8 = vld [vmem:[%s4029_s1 + $0xe0] ss:$8 sps:$4 sm:$0xff]   ;;  %v3296_v17 = vrot.slane %v376_v60, %v3208_v49 }
  0x15   :  { %2072 = vmatprep.subr.bf16.mxu0 %v2650_v21  ;;  %v357_v61 = vrot.slane %v335_v59, %v3208_v49  ;;  %v2704_v7 = vld [vmem:[%s4029_s1 + $0x4e4] ss:$8 sps:$4 sm:$0xff]   ;;  %v2707_v9 = vld [vmem:[%s4029_s1 + $0x4e0] ss:$8 sps:$4 sm:$0xff]   ;;  %v2708_v10 = vld [vmem:[%s4029_s1 + $0xf4] ss:$8 sps:$4 sm:$0xff]  }
  0x16   :  { %v406_v3 = vrot.slane %v384_v62, %v3208_v49  ;;  %v2710_v11 = vld [vmem:[%s4029_s1 + $0x4f4] ss:$8 sps:$4 sm:$0xff]   ;;  %v2712_v12 = vld [vmem:[%s4029_s1 + $0xf0] ss:$8 sps:$4 sm:$0xff]   ;;  %v2717_v14 = vld [vmem:[%s4029_s1 + $0x104] ss:$8 sps:$4 sm:$0xff]  }
  0x17   :  { %1909 = vmatpush1.bf16.msra.mxu1 %v2652_v22  ;;  %1930 = vmatprep.mubr.bf16.mxu1 %v357_v61  ;;  %v2713_v13 = vld [vmem:[%s4029_s1 + $0x4f0] ss:$8 sps:$4 sm:$0xff]   ;;  %v2721_v15 = vld [vmem:[%s4029_s1 + $0x504] ss:$8 sps:$4 sm:$0xff]   ;;  %v2715_v18 = vld [vmem:[%s4029_s1 + $0x100] ss:$8 sps:$4 sm:$0xff]   ;;  %v367_v22 = vcombine.high %v357_v61, %v357_v61 }
  0x18   :  { %2073 = vmatpush1.bf16.msra.mxu0 %v2653_v23  ;;  %1910 = vmatprep.subr.bf16.mxu1 %v2654_v24  ;;  %v2719_v19 = vld [vmem:[%s4029_s1 + $0x500] ss:$8 sps:$4 sm:$0xff]   ;;  %v2724_v20 = vld [vmem:[%s4029_s1 + $0x114] ss:$8 sps:$4 sm:$0xff]   ;;  %v416_v23 = vcombine.high %v406_v3, %v406_v3  ;;  %v2722_v24 = vld [vmem:[%s4029_s1 + $0x110] ss:$8 sps:$4 sm:$0xff]  }
  0x19   :  { %2074 = vmatprep.subr.bf16.mxu0 %v2656_v25  ;;  %2094 = vmatprep.mubr.bf16.mxu0 %v406_v3  ;;  %v2727_v21 = vld [vmem:[%s4029_s1 + $0x514] ss:$8 sps:$4 sm:$0xff]   ;;  %v2725_v25 = vld [vmem:[%s4029_s1 + $0x510] ss:$8 sps:$4 sm:$0xff]   ;;  %v2740_v36 = vld [vmem:[%s4029_s1 + $0x140] ss:$8 sps:$4 sm:$0xff]  }
  0x1a   :  { %v2743_v37 = vld [vmem:[%s4029_s1 + $0x540] ss:$8 sps:$4 sm:$0xff]   ;;  %v2748_v38 = vld [vmem:[%s4029_s1 + $0x154] ss:$8 sps:$4 sm:$0xff]   ;;  %v2754_v43 = vld [vmem:[%s4029_s1 + $0x164] ss:$8 sps:$4 sm:$0xff]  }
  0x1b   :  { %1911 = vmatpush1.bf16.msra.mxu1 %v2658_v26  ;;  %v2730_v26 = vld [vmem:[%s4029_s1 + $0x124] ss:$8 sps:$4 sm:$0xff]   ;;  %v2775_v59 = vld [vmem:[%s4029_s1 + $0x594] ss:$8 sps:$4 sm:$0xff]   ;;  %v2770_v60 = vld [vmem:[%s4029_s1 + $0x190] ss:$8 sps:$4 sm:$0xff]  }
  0x1c   :  { %2075 = vmatpush1.bf16.msra.mxu0 %v2659_v27  ;;  %1912 = vmatprep.subr.bf16.mxu1 %v2660_v28  ;;  %v2733_v27 = vld [vmem:[%s4029_s1 + $0x524] ss:$8 sps:$4 sm:$0xff]   ;;  %v2728_v28 = vld [vmem:[%s4029_s1 + $0x120] ss:$8 sps:$4 sm:$0xff]   ;;  %v2773_v61 = vld [vmem:[%s4029_s1 + $0x590] ss:$8 sps:$4 sm:$0xff]  }
  0x1d   :  { %2076 = vmatprep.subr.bf16.mxu0 %v2662_v29  ;;  %v2731_v29 = vld [vmem:[%s4029_s1 + $0x520] ss:$8 sps:$4 sm:$0xff]   ;;  %v2769_v54 = vld [vmem:[%s4029_s1 + $0x584] ss:$8 sps:$4 sm:$0xff]   ;;  %v2787_v3 = vld [vmem:[%s4029_s1 + $0x5b4] ss:$8 sps:$4 sm:$0xff]  }
  0x1e   :  { %v2778_v62 = vld [vmem:[%s4029_s1 + $0x1a4] ss:$8 sps:$4 sm:$0xff]  }
  0x1f   :  { %1913 = vmatpush1.bf16.msra.mxu1 %v2664_v30  ;;  %v2736_v30 = vld [vmem:[%s4029_s1 + $0x134] ss:$8 sps:$4 sm:$0xff]  }
  0x20   :  { %2077 = vmatpush1.bf16.msra.mxu0 %v2665_v31  ;;  %1914 = vmatprep.subr.bf16.mxu1 %v2666_v32  ;;  %v2739_v31 = vld [vmem:[%s4029_s1 + $0x534] ss:$8 sps:$4 sm:$0xff]   ;;  %v2734_v32 = vld [vmem:[%s4029_s1 + $0x130] ss:$8 sps:$4 sm:$0xff]  }
  0x21   :  { %2078 = vmatprep.subr.bf16.mxu0 %v2668_v33  ;;  %v2737_v33 = vld [vmem:[%s4029_s1 + $0x530] ss:$8 sps:$4 sm:$0xff]  }
  0x23   :  { %1915 = vmatpush1.bf16.msra.mxu1 %v2670_v34  ;;  %v2742_v34 = vld [vmem:[%s4029_s1 + $0x144] ss:$8 sps:$4 sm:$0xff]  }
  0x24   :  { %2079 = vmatpush1.bf16.msra.mxu0 %v2671_v35  ;;  %1916 = vmatprep.subr.bf16.mxu1 %v2672_v39  ;;  %v2745_v35 = vld [vmem:[%s4029_s1 + $0x544] ss:$8 sps:$4 sm:$0xff]   ;;  %v2751_v39 = vld [vmem:[%s4029_s1 + $0x554] ss:$8 sps:$4 sm:$0xff]  }
  0x25   :  { %2080 = vmatprep.subr.bf16.mxu0 %v2674_v40  ;;  %v2746_v40 = vld [vmem:[%s4029_s1 + $0x150] ss:$8 sps:$4 sm:$0xff]  }
  0x27   :  { %1917 = vmatpush1.bf16.msra.mxu1 %v2676_v41  ;;  %v2749_v41 = vld [vmem:[%s4029_s1 + $0x550] ss:$8 sps:$4 sm:$0xff]  }
  0x28   :  { %2081 = vmatpush1.bf16.msra.mxu0 %v2677_v44  ;;  %1918 = vmatprep.subr.bf16.mxu1 %v2678_v45  ;;  %v2757_v44 = vld [vmem:[%s4029_s1 + $0x564] ss:$8 sps:$4 sm:$0xff]   ;;  %v2752_v45 = vld [vmem:[%s4029_s1 + $0x160] ss:$8 sps:$4 sm:$0xff]  }
  0x29   :  { %2082 = vmatprep.subr.bf16.mxu0 %v2680_v46  ;;  %v2755_v46 = vld [vmem:[%s4029_s1 + $0x560] ss:$8 sps:$4 sm:$0xff]  }
  0x2b   :  { %1919 = vmatpush1.bf16.msra.mxu1 %v2682_v47  ;;  %v2760_v47 = vld [vmem:[%s4029_s1 + $0x174] ss:$8 sps:$4 sm:$0xff]  }
  0x2c   :  { %2083 = vmatpush1.bf16.msra.mxu0 %v2683_v48  ;;  %1920 = vmatprep.subr.bf16.mxu1 %v2684_v50  ;;  %v2763_v48 = vld [vmem:[%s4029_s1 + $0x574] ss:$8 sps:$4 sm:$0xff]   ;;  %v2758_v50 = vld [vmem:[%s4029_s1 + $0x170] ss:$8 sps:$4 sm:$0xff]  }
  0x2d   :  { %2084 = vmatprep.subr.bf16.mxu0 %v2686_v51  ;;  %v2761_v51 = vld [vmem:[%s4029_s1 + $0x570] ss:$8 sps:$4 sm:$0xff]  }
  0x2f   :  { %1921 = vmatpush1.bf16.msra.mxu1 %v2688_v53  ;;  %v2766_v53 = vld [vmem:[%s4029_s1 + $0x184] ss:$8 sps:$4 sm:$0xff]  }
  0x30   :  { %2085 = vmatpush1.bf16.msra.mxu0 %v2689_v55  ;;  %1922 = vmatprep.subr.bf16.mxu1 %v2690_v57  ;;  %v2764_v55 = vld [vmem:[%s4029_s1 + $0x180] ss:$8 sps:$4 sm:$0xff]  }
  0x31   :  { %2086 = vmatprep.subr.bf16.mxu0 %v2692_v58  ;;  %v2767_v57 = vld [vmem:[%s4029_s1 + $0x580] ss:$8 sps:$4 sm:$0xff]   ;;  %v2772_v58 = vld [vmem:[%s4029_s1 + $0x194] ss:$8 sps:$4 sm:$0xff]  }
  0x33   :  { %1923 = vmatpush1.bf16.msra.mxu1 %v2694_v63  ;;  %v2781_v63 = vld [vmem:[%s4029_s1 + $0x5a4] ss:$8 sps:$4 sm:$0xff]  }
  0x34   :  { %2087 = vmatpush1.bf16.msra.mxu0 %v2695_v0  ;;  %1924 = vmatprep.subr.bf16.mxu1 %v2696_v1  ;;  %v2776_v0 = vld [vmem:[%s4029_s1 + $0x1a0] ss:$8 sps:$4 sm:$0xff]  }
  0x35   :  { %2088 = vmatprep.subr.bf16.mxu0 %v2698_v2  ;;  %v2779_v1 = vld [vmem:[%s4029_s1 + $0x5a0] ss:$8 sps:$4 sm:$0xff]   ;;  %v2784_v2 = vld [vmem:[%s4029_s1 + $0x1b4] ss:$8 sps:$4 sm:$0xff]  }
  0x37   :  { %1925 = vmatpush1.bf16.msra.mxu1 %v2700_v4  ;;  %v2782_v4 = vld [vmem:[%s4029_s1 + $0x1b0] ss:$8 sps:$4 sm:$0xff]  }
  0x38   :  { %2089 = vmatpush1.bf16.msra.mxu0 %v2701_v5  ;;  %1926 = vmatprep.subr.bf16.mxu1 %v2702_v6  ;;  %v2785_v5 = vld [vmem:[%s4029_s1 + $0x5b0] ss:$8 sps:$4 sm:$0xff]   ;;  %v2790_v6 = vld [vmem:[%s4029_s1 + $0x1c4] ss:$8 sps:$4 sm:$0xff]  }
  0x39   :  { %2090 = vmatprep.subr.bf16.mxu0 %v2704_v7  ;;  %v2793_v7 = vld [vmem:[%s4029_s1 + $0x5c4] ss:$8 sps:$4 sm:$0xff]  }
  0x3b   :  { %1927 = vmatpush1.bf16.msra.mxu1 %v2706_v8  ;;  %v2788_v8 = vld [vmem:[%s4029_s1 + $0x1c0] ss:$8 sps:$4 sm:$0xff]  }
  0x3c   :  { %2091 = vmatpush1.bf16.msra.mxu0 %v2707_v9  ;;  %1928 = vmatprep.subr.bf16.mxu1 %v2708_v10  ;;  %v2791_v9 = vld [vmem:[%s4029_s1 + $0x5c0] ss:$8 sps:$4 sm:$0xff]   ;;  %v2796_v10 = vld [vmem:[%s4029_s1 + $0x1d4] ss:$8 sps:$4 sm:$0xff]  }
  0x3d   :  { %2092 = vmatprep.subr.bf16.mxu0 %v2710_v11  ;;  %v2799_v11 = vld [vmem:[%s4029_s1 + $0x5d4] ss:$8 sps:$4 sm:$0xff]  }
  0x3f   :  { %1929 = vmatpush1.bf16.msra.mxu1 %v2712_v12  ;;  %v2794_v12 = vld [vmem:[%s4029_s1 + $0x1d0] ss:$8 sps:$4 sm:$0xff]  }
  0x40   :  { %2093 = vmatpush1.bf16.msra.mxu0 %v2713_v13  ;;  %1939 = vmatprep.subr.bf16.mxu1 %v2717_v14  ;;  %v2797_v13 = vld [vmem:[%s4029_s1 + $0x5d0] ss:$8 sps:$4 sm:$0xff]   ;;  %v2802_v14 = vld [vmem:[%s4029_s1 + $0x1e4] ss:$8 sps:$4 sm:$0xff]  }
  0x41   :  { %2103 = vmatprep.subr.bf16.mxu0 %v2721_v15  ;;  %v2805_v15 = vld [vmem:[%s4029_s1 + $0x5e4] ss:$8 sps:$4 sm:$0xff]  }
  0x42   :  { %1931 = vmatmul.mubr.bf16.vlgmr.msra.gmra.mrb[0].mxu1 %v3293_v16 }
  0x43   :  { %2095 = vmatmul.mubr.bf16.vlgmr.msra.gmra.mrb[0].mxu0 %v3296_v17  ;;  %1940 = vmatpush1.bf16.msra.mxu1 %v2715_v18  ;;  %v320_v18 = vcombine.high %v3219_v52, %v3219_v52  ;;  %v2811_v52 = vld [vmem:[%s4029_s1 + $0x5f4] ss:$8 sps:$4 sm:$0xff]  }
  0x44   :  { %2104 = vmatpush1.bf16.msra.mxu0 %v2719_v19  ;;  %1941 = vmatprep.subr.bf16.mxu1 %v2724_v20  ;;  %v369_v19 = vcombine.high %v3232_v56, %v3232_v56  ;;  %v2800_v20 = vld [vmem:[%s4029_s1 + $0x1e0] ss:$8 sps:$4 sm:$0xff]  }
  0x45   :  { %2105 = vmatprep.subr.bf16.mxu0 %v2727_v21  ;;  %1971 = vmatprep.mubr.bf16.mxu1 %v367_v22  ;;  %v2803_v21 = vld [vmem:[%s4029_s1 + $0x5e0] ss:$8 sps:$4 sm:$0xff]   ;;  %v2808_v22 = vld [vmem:[%s4029_s1 + $0x1f4] ss:$8 sps:$4 sm:$0xff]   ;;  %v3485_v56 = vrot.slane %v320_v18, %v3208_v49  ;;  %v2878_v18 = vld [vmem:[%s4029_s1 + $0x2b0] ss:$8 sps:$4 sm:$0xff]  }
  0x46   :  { %2135 = vmatprep.mubr.bf16.mxu0 %v416_v23  ;;  %v3488_v23 = vrot.slane %v369_v19, %v3208_v49  ;;  %v2881_v19 = vld [vmem:[%s4029_s1 + $0x6b0] ss:$8 sps:$4 sm:$0xff]  }
  0x47   :  { %1942 = vmatpush1.bf16.msra.mxu1 %v2722_v24  ;;  %v2806_v24 = vld [vmem:[%s4029_s1 + $0x1f0] ss:$8 sps:$4 sm:$0xff]  }
  0x48   :  { %2106 = vmatpush1.bf16.msra.mxu0 %v2725_v25  ;;  %1943 = vmatprep.subr.bf16.mxu1 %v2730_v26  ;;  %v2809_v25 = vld [vmem:[%s4029_s1 + $0x5f0] ss:$8 sps:$4 sm:$0xff]   ;;  %v2814_v26 = vld [vmem:[%s4029_s1 + $0x204] ss:$8 sps:$4 sm:$0xff]  }
  0x49   :  { %2107 = vmatprep.subr.bf16.mxu0 %v2733_v27  ;;  %v2817_v27 = vld [vmem:[%s4029_s1 + $0x604] ss:$8 sps:$4 sm:$0xff]  }
  0x4b   :  { %1944 = vmatpush1.bf16.msra.mxu1 %v2728_v28  ;;  %v336_v28 = vcombine.high %v3485_v56, %v3485_v56 }
  0x4c   :  { %2108 = vmatpush1.bf16.msra.mxu0 %v2731_v29  ;;  %1945 = vmatprep.subr.bf16.mxu1 %v2736_v30  ;;  %v385_v29 = vcombine.high %v3488_v23, %v3488_v23  ;;  %v365_v30 = vcombine.high %v3293_v16, %v3293_v16  ;;  %v2823_v16 = vld [vmem:[%s4029_s1 + $0x614] ss:$8 sps:$4 sm:$0xff]  }
  0x4d   :  { %2109 = vmatprep.subr.bf16.mxu0 %v2739_v31  ;;  %v414_v31 = vcombine.high %v3296_v17, %v3296_v17  ;;  %v3523_v17 = vrot.slane %v336_v28, %v3208_v49  ;;  %v2898_v28 = vld [vmem:[%s4029_s1 + $0x2e4] ss:$8 sps:$4 sm:$0xff]  }
  0x4f   :  { %1946 = vmatpush1.bf16.msra.mxu1 %v2734_v32  ;;  %v2812_v32 = vld [vmem:[%s4029_s1 + $0x200] ss:$8 sps:$4 sm:$0xff]  }
  0x50   :  { %2110 = vmatpush1.bf16.msra.mxu0 %v2737_v33  ;;  %1947 = vmatprep.subr.bf16.mxu1 %v2742_v34  ;;  %v2815_v33 = vld [vmem:[%s4029_s1 + $0x600] ss:$8 sps:$4 sm:$0xff]   ;;  %v2820_v34 = vld [vmem:[%s4029_s1 + $0x214] ss:$8 sps:$4 sm:$0xff]  }
  0x51   :  { %2111 = vmatprep.subr.bf16.mxu0 %v2745_v35  ;;  %v3526_v35 = vrot.slane %v385_v29, %v3208_v49  ;;  %v2901_v29 = vld [vmem:[%s4029_s1 + $0x6e4] ss:$8 sps:$4 sm:$0xff]  }
  0x53   :  { %1948 = vmatpush1.bf16.msra.mxu1 %v2740_v36  ;;  %v2818_v36 = vld [vmem:[%s4029_s1 + $0x210] ss:$8 sps:$4 sm:$0xff]  }
  0x54   :  { %2112 = vmatpush1.bf16.msra.mxu0 %v2743_v37  ;;  %1949 = vmatprep.subr.bf16.mxu1 %v2748_v38  ;;  %v2821_v37 = vld [vmem:[%s4029_s1 + $0x610] ss:$8 sps:$4 sm:$0xff]   ;;  %v2826_v38 = vld [vmem:[%s4029_s1 + $0x224] ss:$8 sps:$4 sm:$0xff]  }
  0x55   :  { %2113 = vmatprep.subr.bf16.mxu0 %v2751_v39  ;;  %v2829_v39 = vld [vmem:[%s4029_s1 + $0x624] ss:$8 sps:$4 sm:$0xff]  }
  0x57   :  { %1950 = vmatpush1.bf16.msra.mxu1 %v2746_v40  ;;  %v2824_v40 = vld [vmem:[%s4029_s1 + $0x220] ss:$8 sps:$4 sm:$0xff]  }
  0x58   :  { %2114 = vmatpush1.bf16.msra.mxu0 %v2749_v41  ;;  %1951 = vmatprep.subr.bf16.mxu1 %v2754_v43  ;;  %v2827_v41 = vld [vmem:[%s4029_s1 + $0x620] ss:$8 sps:$4 sm:$0xff]   ;;  %v2832_v43 = vld [vmem:[%s4029_s1 + $0x234] ss:$8 sps:$4 sm:$0xff]  }
  0x59   :  { %2115 = vmatprep.subr.bf16.mxu0 %v2757_v44  ;;  %v2835_v44 = vld [vmem:[%s4029_s1 + $0x634] ss:$8 sps:$4 sm:$0xff]  }
  0x5b   :  { %1952 = vmatpush1.bf16.msra.mxu1 %v2752_v45  ;;  %v2830_v45 = vld [vmem:[%s4029_s1 + $0x230] ss:$8 sps:$4 sm:$0xff]  }
  0x5c   :  { %2116 = vmatpush1.bf16.msra.mxu0 %v2755_v46  ;;  %1953 = vmatprep.subr.bf16.mxu1 %v2760_v47  ;;  %v2833_v46 = vld [vmem:[%s4029_s1 + $0x630] ss:$8 sps:$4 sm:$0xff]   ;;  %v2838_v47 = vld [vmem:[%s4029_s1 + $0x244] ss:$8 sps:$4 sm:$0xff]  }
  0x5d   :  { %2117 = vmatprep.subr.bf16.mxu0 %v2763_v48  ;;  %v2841_v48 = vld [vmem:[%s4029_s1 + $0x644] ss:$8 sps:$4 sm:$0xff]  }
  0x5f   :  { %1954 = vmatpush1.bf16.msra.mxu1 %v2758_v50  ;;  %v2836_v50 = vld [vmem:[%s4029_s1 + $0x240] ss:$8 sps:$4 sm:$0xff]  }
  0x60   :  { %2118 = vmatpush1.bf16.msra.mxu0 %v2761_v51  ;;  %1955 = vmatprep.subr.bf16.mxu1 %v2766_v53  ;;  %v2839_v51 = vld [vmem:[%s4029_s1 + $0x640] ss:$8 sps:$4 sm:$0xff]   ;;  %v2844_v53 = vld [vmem:[%s4029_s1 + $0x254] ss:$8 sps:$4 sm:$0xff]  }
  0x61   :  { %2119 = vmatprep.subr.bf16.mxu0 %v2769_v54  ;;  %v2847_v54 = vld [vmem:[%s4029_s1 + $0x654] ss:$8 sps:$4 sm:$0xff]  }
  0x63   :  { %1956 = vmatpush1.bf16.msra.mxu1 %v2764_v55  ;;  %v2842_v55 = vld [vmem:[%s4029_s1 + $0x250] ss:$8 sps:$4 sm:$0xff]  }
  0x64   :  { %2120 = vmatpush1.bf16.msra.mxu0 %v2767_v57  ;;  %1957 = vmatprep.subr.bf16.mxu1 %v2772_v58  ;;  %v2845_v57 = vld [vmem:[%s4029_s1 + $0x650] ss:$8 sps:$4 sm:$0xff]   ;;  %v2850_v58 = vld [vmem:[%s4029_s1 + $0x264] ss:$8 sps:$4 sm:$0xff]  }
  0x65   :  { %2121 = vmatprep.subr.bf16.mxu0 %v2775_v59  ;;  %v2853_v59 = vld [vmem:[%s4029_s1 + $0x664] ss:$8 sps:$4 sm:$0xff]  }
  0x67   :  { %1958 = vmatpush1.bf16.msra.mxu1 %v2770_v60  ;;  %v2848_v60 = vld [vmem:[%s4029_s1 + $0x260] ss:$8 sps:$4 sm:$0xff]  }
  0x68   :  { %2122 = vmatpush1.bf16.msra.mxu0 %v2773_v61  ;;  %1959 = vmatprep.subr.bf16.mxu1 %v2778_v62  ;;  %v2851_v61 = vld [vmem:[%s4029_s1 + $0x660] ss:$8 sps:$4 sm:$0xff]   ;;  %v2856_v62 = vld [vmem:[%s4029_s1 + $0x274] ss:$8 sps:$4 sm:$0xff]  }
  0x69   :  { %2123 = vmatprep.subr.bf16.mxu0 %v2781_v63  ;;  %v2859_v63 = vld [vmem:[%s4029_s1 + $0x674] ss:$8 sps:$4 sm:$0xff]  }
  0x6b   :  { %1960 = vmatpush1.bf16.msra.mxu1 %v2776_v0  ;;  %v2854_v0 = vld [vmem:[%s4029_s1 + $0x270] ss:$8 sps:$4 sm:$0xff]  }
  0x6c   :  { %2124 = vmatpush1.bf16.msra.mxu0 %v2779_v1  ;;  %1961 = vmatprep.subr.bf16.mxu1 %v2784_v2  ;;  %v2857_v1 = vld [vmem:[%s4029_s1 + $0x670] ss:$8 sps:$4 sm:$0xff]   ;;  %v2862_v2 = vld [vmem:[%s4029_s1 + $0x284] ss:$8 sps:$4 sm:$0xff]  }
  0x6d   :  { %2125 = vmatprep.subr.bf16.mxu0 %v2787_v3  ;;  %v2865_v3 = vld [vmem:[%s4029_s1 + $0x684] ss:$8 sps:$4 sm:$0xff]  }
  0x6f   :  { %1962 = vmatpush1.bf16.msra.mxu1 %v2782_v4  ;;  %v2860_v4 = vld [vmem:[%s4029_s1 + $0x280] ss:$8 sps:$4 sm:$0xff]  }
  0x70   :  { %2126 = vmatpush1.bf16.msra.mxu0 %v2785_v5  ;;  %1963 = vmatprep.subr.bf16.mxu1 %v2790_v6  ;;  %v2863_v5 = vld [vmem:[%s4029_s1 + $0x680] ss:$8 sps:$4 sm:$0xff]   ;;  %v2868_v6 = vld [vmem:[%s4029_s1 + $0x294] ss:$8 sps:$4 sm:$0xff]  }
  0x71   :  { %2127 = vmatprep.subr.bf16.mxu0 %v2793_v7  ;;  %v2871_v7 = vld [vmem:[%s4029_s1 + $0x694] ss:$8 sps:$4 sm:$0xff]  }
  0x73   :  { %1964 = vmatpush1.bf16.msra.mxu1 %v2788_v8  ;;  %v2866_v8 = vld [vmem:[%s4029_s1 + $0x290] ss:$8 sps:$4 sm:$0xff]  }
  0x74   :  { %2128 = vmatpush1.bf16.msra.mxu0 %v2791_v9  ;;  %1965 = vmatprep.subr.bf16.mxu1 %v2796_v10  ;;  %v2869_v9 = vld [vmem:[%s4029_s1 + $0x690] ss:$8 sps:$4 sm:$0xff]   ;;  %v2874_v10 = vld [vmem:[%s4029_s1 + $0x2a4] ss:$8 sps:$4 sm:$0xff]  }
  0x75   :  { %2129 = vmatprep.subr.bf16.mxu0 %v2799_v11  ;;  %v2877_v11 = vld [vmem:[%s4029_s1 + $0x6a4] ss:$8 sps:$4 sm:$0xff]  }
  0x77   :  { %1966 = vmatpush1.bf16.msra.mxu1 %v2794_v12  ;;  %v2872_v12 = vld [vmem:[%s4029_s1 + $0x2a0] ss:$8 sps:$4 sm:$0xff]  }
  0x78   :  { %2130 = vmatpush1.bf16.msra.mxu0 %v2797_v13  ;;  %1967 = vmatprep.subr.bf16.mxu1 %v2802_v14  ;;  %v2875_v13 = vld [vmem:[%s4029_s1 + $0x6a0] ss:$8 sps:$4 sm:$0xff]   ;;  %v2880_v14 = vld [vmem:[%s4029_s1 + $0x2b4] ss:$8 sps:$4 sm:$0xff]  }
  0x79   :  { %2131 = vmatprep.subr.bf16.mxu0 %v2805_v15  ;;  %v2883_v15 = vld [vmem:[%s4029_s1 + $0x6b4] ss:$8 sps:$4 sm:$0xff]  }
  0x7b   :  { %1968 = vmatpush1.bf16.msra.mxu1 %v2800_v20  ;;  %v2886_v20 = vld [vmem:[%s4029_s1 + $0x2c4] ss:$8 sps:$4 sm:$0xff]  }
  0x7c   :  { %2132 = vmatpush1.bf16.msra.mxu0 %v2803_v21  ;;  %1969 = vmatprep.subr.bf16.mxu1 %v2808_v22  ;;  %v2889_v21 = vld [vmem:[%s4029_s1 + $0x6c4] ss:$8 sps:$4 sm:$0xff]   ;;  %v2884_v22 = vld [vmem:[%s4029_s1 + $0x2c0] ss:$8 sps:$4 sm:$0xff]  }
  0x7d   :  { %2133 = vmatprep.subr.bf16.mxu0 %v2811_v52  ;;  %v2887_v52 = vld [vmem:[%s4029_s1 + $0x6c0] ss:$8 sps:$4 sm:$0xff]  }
  0x7f   :  { %1970 = vmatpush1.bf16.msra.mxu1 %v2806_v24  ;;  %v2892_v24 = vld [vmem:[%s4029_s1 + $0x2d4] ss:$8 sps:$4 sm:$0xff]  }
  0x80   :  { %2134 = vmatpush1.bf16.msra.mxu0 %v2809_v25  ;;  %1980 = vmatprep.subr.bf16.mxu1 %v2814_v26  ;;  %v2895_v25 = vld [vmem:[%s4029_s1 + $0x6d4] ss:$8 sps:$4 sm:$0xff]   ;;  %v2890_v26 = vld [vmem:[%s4029_s1 + $0x2d0] ss:$8 sps:$4 sm:$0xff]  }
  0x81   :  { %2144 = vmatprep.subr.bf16.mxu0 %v2817_v27  ;;  %v2893_v27 = vld [vmem:[%s4029_s1 + $0x6d0] ss:$8 sps:$4 sm:$0xff]  }
  0x82   :  { %1972 = vmatmul.mubr.bf16.vlgmr.msra.gmra.mrb[0].mxu1 %v365_v30  ;;  %v2896_v30 = vld [vmem:[%s4029_s1 + $0x2e0] ss:$8 sps:$4 sm:$0xff]  }
  0x83   :  { %2136 = vmatmul.mubr.bf16.vlgmr.msra.gmra.mrb[0].mxu0 %v414_v31  ;;  %1981 = vmatpush1.bf16.msra.mxu1 %v2812_v32  ;;  %v2899_v31 = vld [vmem:[%s4029_s1 + $0x6e0] ss:$8 sps:$4 sm:$0xff]   ;;  %v2904_v32 = vld [vmem:[%s4029_s1 + $0x2f4] ss:$8 sps:$4 sm:$0xff]  }
  0x84   :  { %2145 = vmatpush1.bf16.msra.mxu0 %v2815_v33  ;;  %1982 = vmatprep.subr.bf16.mxu1 %v2820_v34  ;;  %v2907_v33 = vld [vmem:[%s4029_s1 + $0x6f4] ss:$8 sps:$4 sm:$0xff]   ;;  %v2902_v34 = vld [vmem:[%s4029_s1 + $0x2f0] ss:$8 sps:$4 sm:$0xff]  }
  0x85   :  { %2146 = vmatprep.subr.bf16.mxu0 %v2823_v16  ;;  %2012 = vmatprep.mubr.bf16.mxu1 %v3523_v17  ;;  %v2905_v16 = vld [vmem:[%s4029_s1 + $0x6f0] ss:$8 sps:$4 sm:$0xff]  }
  0x86   :  { %2176 = vmatprep.mubr.bf16.mxu0 %v3526_v35 }
  0x87   :  { %1983 = vmatpush1.bf16.msra.mxu1 %v2818_v36  ;;  %v2910_v36 = vld [vmem:[%s4029_s1 + $0x304] ss:$8 sps:$4 sm:$0xff]  }
  0x88   :  { %2147 = vmatpush1.bf16.msra.mxu0 %v2821_v37  ;;  %1984 = vmatprep.subr.bf16.mxu1 %v2826_v38  ;;  %v2913_v37 = vld [vmem:[%s4029_s1 + $0x704] ss:$8 sps:$4 sm:$0xff]   ;;  %v3712_v38 = vrot.slane %v3485_v56, %v3208_v49  ;;  %v2916_v56 = vld [vmem:[%s4029_s1 + $0x314] ss:$8 sps:$4 sm:$0xff]  }
  0x89   :  { %2148 = vmatprep.subr.bf16.mxu0 %v2829_v39  ;;  %v3716_v39 = vrot.slane %v3488_v23, %v3208_v49  ;;  %v2919_v23 = vld [vmem:[%s4029_s1 + $0x714] ss:$8 sps:$4 sm:$0xff]  }
  0x8b   :  { %1985 = vmatpush1.bf16.msra.mxu1 %v2824_v40  ;;  %v2908_v40 = vld [vmem:[%s4029_s1 + $0x300] ss:$8 sps:$4 sm:$0xff]  }
  0x8c   :  { %2149 = vmatpush1.bf16.msra.mxu0 %v2827_v41  ;;  %1986 = vmatprep.subr.bf16.mxu1 %v2832_v43  ;;  %v2911_v41 = vld [vmem:[%s4029_s1 + $0x700] ss:$8 sps:$4 sm:$0xff]   ;;  %v368_v43 = vcombine.high %v3523_v17, %v3523_v17  ;;  %v2922_v17 = vld [vmem:[%s4029_s1 + $0x324] ss:$8 sps:$4 sm:$0xff]  }
  0x8d   :  { %2150 = vmatprep.subr.bf16.mxu0 %v2835_v44  ;;  %v417_v44 = vcombine.high %v3526_v35, %v3526_v35  ;;  %v2925_v35 = vld [vmem:[%s4029_s1 + $0x724] ss:$8 sps:$4 sm:$0xff]  }
  0x8f   :  { %1987 = vmatpush1.bf16.msra.mxu1 %v2830_v45  ;;  %v2914_v45 = vld [vmem:[%s4029_s1 + $0x310] ss:$8 sps:$4 sm:$0xff]  }
  0x90   :  { %2151 = vmatpush1.bf16.msra.mxu0 %v2833_v46  ;;  %1988 = vmatprep.subr.bf16.mxu1 %v2838_v47  ;;  %v2917_v46 = vld [vmem:[%s4029_s1 + $0x710] ss:$8 sps:$4 sm:$0xff]   ;;  %v2920_v47 = vld [vmem:[%s4029_s1 + $0x320] ss:$8 sps:$4 sm:$0xff]  }
  0x91   :  { %2152 = vmatprep.subr.bf16.mxu0 %v2841_v48  ;;  %v2923_v48 = vld [vmem:[%s4029_s1 + $0x720] ss:$8 sps:$4 sm:$0xff]  }
  0x93   :  { %1989 = vmatpush1.bf16.msra.mxu1 %v2836_v50  ;;  %v2928_v50 = vld [vmem:[%s4029_s1 + $0x334] ss:$8 sps:$4 sm:$0xff]  }
  0x94   :  { %2153 = vmatpush1.bf16.msra.mxu0 %v2839_v51  ;;  %1990 = vmatprep.subr.bf16.mxu1 %v2844_v53  ;;  %v2931_v51 = vld [vmem:[%s4029_s1 + $0x734] ss:$8 sps:$4 sm:$0xff]   ;;  %v2926_v53 = vld [vmem:[%s4029_s1 + $0x330] ss:$8 sps:$4 sm:$0xff]  }
  0x95   :  { %2154 = vmatprep.subr.bf16.mxu0 %v2847_v54  ;;  %v2929_v54 = vld [vmem:[%s4029_s1 + $0x730] ss:$8 sps:$4 sm:$0xff]  }
  0x97   :  { %1991 = vmatpush1.bf16.msra.mxu1 %v2842_v55  ;;  %v2934_v55 = vld [vmem:[%s4029_s1 + $0x344] ss:$8 sps:$4 sm:$0xff]  }
  0x98   :  { %2155 = vmatpush1.bf16.msra.mxu0 %v2845_v57  ;;  %1992 = vmatprep.subr.bf16.mxu1 %v2850_v58  ;;  %v2937_v57 = vld [vmem:[%s4029_s1 + $0x744] ss:$8 sps:$4 sm:$0xff]   ;;  %v2932_v58 = vld [vmem:[%s4029_s1 + $0x340] ss:$8 sps:$4 sm:$0xff]  }
  0x99   :  { %2156 = vmatprep.subr.bf16.mxu0 %v2853_v59  ;;  %v2935_v59 = vld [vmem:[%s4029_s1 + $0x740] ss:$8 sps:$4 sm:$0xff]  }
  0x9b   :  { %1993 = vmatpush1.bf16.msra.mxu1 %v2848_v60  ;;  %v2940_v60 = vld [vmem:[%s4029_s1 + $0x354] ss:$8 sps:$4 sm:$0xff]  }
  0x9c   :  { %2157 = vmatpush1.bf16.msra.mxu0 %v2851_v61  ;;  %1994 = vmatprep.subr.bf16.mxu1 %v2856_v62  ;;  %v2943_v61 = vld [vmem:[%s4029_s1 + $0x754] ss:$8 sps:$4 sm:$0xff]   ;;  %v2938_v62 = vld [vmem:[%s4029_s1 + $0x350] ss:$8 sps:$4 sm:$0xff]  }
  0x9d   :  { %2158 = vmatprep.subr.bf16.mxu0 %v2859_v63  ;;  %v2941_v63 = vld [vmem:[%s4029_s1 + $0x750] ss:$8 sps:$4 sm:$0xff]  }
  0x9f   :  { %1995 = vmatpush1.bf16.msra.mxu1 %v2854_v0  ;;  %v2946_v0 = vld [vmem:[%s4029_s1 + $0x364] ss:$8 sps:$4 sm:$0xff]  }
  0xa0   :  { %2159 = vmatpush1.bf16.msra.mxu0 %v2857_v1  ;;  %1996 = vmatprep.subr.bf16.mxu1 %v2862_v2  ;;  %v2949_v1 = vld [vmem:[%s4029_s1 + $0x764] ss:$8 sps:$4 sm:$0xff]   ;;  %v2944_v2 = vld [vmem:[%s4029_s1 + $0x360] ss:$8 sps:$4 sm:$0xff]  }
  0xa1   :  { %2160 = vmatprep.subr.bf16.mxu0 %v2865_v3  ;;  %v2947_v3 = vld [vmem:[%s4029_s1 + $0x760] ss:$8 sps:$4 sm:$0xff]  }
  0xa3   :  { %1997 = vmatpush1.bf16.msra.mxu1 %v2860_v4  ;;  %v2952_v4 = vld [vmem:[%s4029_s1 + $0x374] ss:$8 sps:$4 sm:$0xff]  }
  0xa4   :  { %2161 = vmatpush1.bf16.msra.mxu0 %v2863_v5  ;;  %1998 = vmatprep.subr.bf16.mxu1 %v2868_v6  ;;  %v2955_v5 = vld [vmem:[%s4029_s1 + $0x774] ss:$8 sps:$4 sm:$0xff]   ;;  %v2950_v6 = vld [vmem:[%s4029_s1 + $0x370] ss:$8 sps:$4 sm:$0xff]  }
  0xa5   :  { %2162 = vmatprep.subr.bf16.mxu0 %v2871_v7  ;;  %v2953_v7 = vld [vmem:[%s4029_s1 + $0x770] ss:$8 sps:$4 sm:$0xff]  }
  0xa7   :  { %1999 = vmatpush1.bf16.msra.mxu1 %v2866_v8  ;;  %v2958_v8 = vld [vmem:[%s4029_s1 + $0x384] ss:$8 sps:$4 sm:$0xff]  }
  0xa8   :  { %2163 = vmatpush1.bf16.msra.mxu0 %v2869_v9  ;;  %2000 = vmatprep.subr.bf16.mxu1 %v2874_v10  ;;  %v2961_v9 = vld [vmem:[%s4029_s1 + $0x784] ss:$8 sps:$4 sm:$0xff]   ;;  %v2956_v10 = vld [vmem:[%s4029_s1 + $0x380] ss:$8 sps:$4 sm:$0xff]  }
  0xa9   :  { %2164 = vmatprep.subr.bf16.mxu0 %v2877_v11  ;;  %v2959_v11 = vld [vmem:[%s4029_s1 + $0x780] ss:$8 sps:$4 sm:$0xff]  }
  0xab   :  { %2001 = vmatpush1.bf16.msra.mxu1 %v2872_v12  ;;  %v2964_v12 = vld [vmem:[%s4029_s1 + $0x394] ss:$8 sps:$4 sm:$0xff]  }
  0xac   :  { %2165 = vmatpush1.bf16.msra.mxu0 %v2875_v13  ;;  %2002 = vmatprep.subr.bf16.mxu1 %v2880_v14  ;;  %v2967_v13 = vld [vmem:[%s4029_s1 + $0x794] ss:$8 sps:$4 sm:$0xff]   ;;  %v2962_v14 = vld [vmem:[%s4029_s1 + $0x390] ss:$8 sps:$4 sm:$0xff]  }
  0xad   :  { %2166 = vmatprep.subr.bf16.mxu0 %v2883_v15  ;;  %v2965_v15 = vld [vmem:[%s4029_s1 + $0x790] ss:$8 sps:$4 sm:$0xff]  }
  0xaf   :  { %2003 = vmatpush1.bf16.msra.mxu1 %v2878_v18  ;;  %v2970_v18 = vld [vmem:[%s4029_s1 + $0x3a4] ss:$8 sps:$4 sm:$0xff]  }
  0xb0   :  { %2167 = vmatpush1.bf16.msra.mxu0 %v2881_v19  ;;  %2004 = vmatprep.subr.bf16.mxu1 %v2886_v20  ;;  %v2973_v19 = vld [vmem:[%s4029_s1 + $0x7a4] ss:$8 sps:$4 sm:$0xff]   ;;  %v2968_v20 = vld [vmem:[%s4029_s1 + $0x3a0] ss:$8 sps:$4 sm:$0xff]  }
  0xb1   :  { %2168 = vmatprep.subr.bf16.mxu0 %v2889_v21  ;;  %v2971_v21 = vld [vmem:[%s4029_s1 + $0x7a0] ss:$8 sps:$4 sm:$0xff]  }
  0xb3   :  { %2005 = vmatpush1.bf16.msra.mxu1 %v2884_v22  ;;  %v2976_v22 = vld [vmem:[%s4029_s1 + $0x3b4] ss:$8 sps:$4 sm:$0xff]  }
  0xb4   :  { %2169 = vmatpush1.bf16.msra.mxu0 %v2887_v52  ;;  %2006 = vmatprep.subr.bf16.mxu1 %v2892_v24  ;;  %v2979_v52 = vld [vmem:[%s4029_s1 + $0x7b4] ss:$8 sps:$4 sm:$0xff]   ;;  %v2974_v24 = vld [vmem:[%s4029_s1 + $0x3b0] ss:$8 sps:$4 sm:$0xff]  }
  0xb5   :  { %2170 = vmatprep.subr.bf16.mxu0 %v2895_v25  ;;  %v2977_v25 = vld [vmem:[%s4029_s1 + $0x7b0] ss:$8 sps:$4 sm:$0xff]  }
  0xb7   :  { %2007 = vmatpush1.bf16.msra.mxu1 %v2890_v26  ;;  %v2982_v26 = vld [vmem:[%s4029_s1 + $0x3c4] ss:$8 sps:$4 sm:$0xff]  }
  0xb8   :  { %2171 = vmatpush1.bf16.msra.mxu0 %v2893_v27  ;;  %2008 = vmatprep.subr.bf16.mxu1 %v2898_v28  ;;  %v2985_v27 = vld [vmem:[%s4029_s1 + $0x7c4] ss:$8 sps:$4 sm:$0xff]   ;;  %v2980_v28 = vld [vmem:[%s4029_s1 + $0x3c0] ss:$8 sps:$4 sm:$0xff]  }
  0xb9   :  { %2172 = vmatprep.subr.bf16.mxu0 %v2901_v29  ;;  %v2983_v29 = vld [vmem:[%s4029_s1 + $0x7c0] ss:$8 sps:$4 sm:$0xff]  }
  0xbb   :  { %2009 = vmatpush1.bf16.msra.mxu1 %v2896_v30  ;;  %v2988_v30 = vld [vmem:[%s4029_s1 + $0x3d4] ss:$8 sps:$4 sm:$0xff]  }
  0xbc   :  { %2173 = vmatpush1.bf16.msra.mxu0 %v2899_v31  ;;  %2010 = vmatprep.subr.bf16.mxu1 %v2904_v32  ;;  %v2991_v31 = vld [vmem:[%s4029_s1 + $0x7d4] ss:$8 sps:$4 sm:$0xff]   ;;  %v2986_v32 = vld [vmem:[%s4029_s1 + $0x3d0] ss:$8 sps:$4 sm:$0xff]  }
  0xbd   :  { %2174 = vmatprep.subr.bf16.mxu0 %v2907_v33  ;;  %v2989_v33 = vld [vmem:[%s4029_s1 + $0x7d0] ss:$8 sps:$4 sm:$0xff]  }
  0xbf   :  { %2011 = vmatpush1.bf16.msra.mxu1 %v2902_v34  ;;  %v2994_v34 = vld [vmem:[%s4029_s1 + $0x3e4] ss:$8 sps:$4 sm:$0xff]  }
  0xc0   :  { %2175 = vmatpush1.bf16.msra.mxu0 %v2905_v16  ;;  %2021 = vmatprep.subr.bf16.mxu1 %v2910_v36  ;;  %v2997_v16 = vld [vmem:[%s4029_s1 + $0x7e4] ss:$8 sps:$4 sm:$0xff]   ;;  %v2992_v36 = vld [vmem:[%s4029_s1 + $0x3e0] ss:$8 sps:$4 sm:$0xff]  }
  0xc1   :  { %2185 = vmatprep.subr.bf16.mxu0 %v2913_v37  ;;  %v2995_v37 = vld [vmem:[%s4029_s1 + $0x7e0] ss:$8 sps:$4 sm:$0xff]  }
  0xc2   :  { %2013 = vmatmul.mubr.bf16.vlgmr.msra.gmra.mrb[0].mxu1 %v3712_v38 }
  0xc3   :  { %2177 = vmatmul.mubr.bf16.vlgmr.msra.gmra.mrb[0].mxu0 %v3716_v39  ;;  %2022 = vmatpush1.bf16.msra.mxu1 %v2908_v40  ;;  %v3000_v40 = vld [vmem:[%s4029_s1 + $0x3f4] ss:$8 sps:$4 sm:$0xff]  }
  0xc4   :  { %2186 = vmatpush1.bf16.msra.mxu0 %v2911_v41  ;;  %2023 = vmatprep.subr.bf16.mxu1 %v2916_v56  ;;  %v3003_v41 = vld [vmem:[%s4029_s1 + $0x7f4] ss:$8 sps:$4 sm:$0xff]   ;;  %v3907_v56 = vld.sshfl [vmem:[%s4030_s0 + $0x10] sm:$0x11 pattern:$0x75316420] }
  0xc5   :  { %2187 = vmatprep.subr.bf16.mxu0 %v2919_v23  ;;  %2053 = vmatprep.mubr.bf16.mxu1 %v368_v43  ;;  %v2998_v23 = vld [vmem:[%s4029_s1 + $0x3f0] ss:$8 sps:$4 sm:$0xff]  }
  0xc6   :  { %2217 = vmatprep.mubr.bf16.mxu0 %v417_v44  ;;  %v3001_v43 = vld [vmem:[%s4029_s1 + $0x7f0] ss:$8 sps:$4 sm:$0xff]   ;;  %v425_v44 = vcombine.high %v3907_v56, %v3907_v56 }
  0xc7   :  { %2024 = vmatpush1.bf16.msra.mxu1 %v2914_v45  ;;  %v3006_v45 = vld [vmem:[%s4029_s1 + $0x804] ss:$8 sps:$4 sm:$0xff]  }
  0xc8   :  { %2188 = vmatpush1.bf16.msra.mxu0 %v2917_v46  ;;  %2025 = vmatprep.subr.bf16.mxu1 %v2922_v17  ;;  %v366_v46 = vcombine.high %v3712_v38, %v3712_v38  ;;  %v415_v17 = vcombine.high %v3716_v39, %v3716_v39  ;;  %v3007_v38 = vld [vmem:[%s4029_s1 + $0x810] ss:$8 sps:$4 sm:$0xff]   ;;  %v3012_v39 = vld [vmem:[%s4029_s1 + $0x824] ss:$8 sps:$4 sm:$0xff]  }
  0xc9   :  { %2189 = vmatprep.subr.bf16.mxu0 %v2925_v35  ;;  %v3004_v35 = vld [vmem:[%s4029_s1 + $0x800] ss:$8 sps:$4 sm:$0xff]  }
  0xcb   :  { %2026 = vmatpush1.bf16.msra.mxu1 %v2920_v47  ;;  %v439_v47 = vrot.slane %v425_v44, %v3208_v49 }
  0xcc   :  { %2190 = vmatpush1.bf16.msra.mxu0 %v2923_v48  ;;  %2027 = vmatprep.subr.bf16.mxu1 %v2928_v50  ;;  %v3009_v48 = vld [vmem:[%s4029_s1 + $0x814] ss:$8 sps:$4 sm:$0xff]   ;;  %v3010_v50 = vld [vmem:[%s4029_s1 + $0x820] ss:$8 sps:$4 sm:$0xff]  }
  0xcd   :  { %2191 = vmatprep.subr.bf16.mxu0 %v2931_v51  ;;  %v3015_v51 = vld [vmem:[%s4029_s1 + $0x834] ss:$8 sps:$4 sm:$0xff]  }
  0xcf   :  { %2028 = vmatpush1.bf16.msra.mxu1 %v2926_v53  ;;  %v3013_v53 = vld [vmem:[%s4029_s1 + $0x830] ss:$8 sps:$4 sm:$0xff]  }
  0xd0   :  { %2192 = vmatpush1.bf16.msra.mxu0 %v2929_v54  ;;  %2029 = vmatprep.subr.bf16.mxu1 %v2934_v55  ;;  %v3018_v54 = vld [vmem:[%s4029_s1 + $0x844] ss:$8 sps:$4 sm:$0xff]   ;;  %v3016_v55 = vld [vmem:[%s4029_s1 + $0x840] ss:$8 sps:$4 sm:$0xff]  }
  0xd1   :  { %2193 = vmatprep.subr.bf16.mxu0 %v2937_v57  ;;  %v3021_v57 = vld [vmem:[%s4029_s1 + $0x854] ss:$8 sps:$4 sm:$0xff]  }
  0xd3   :  { %2030 = vmatpush1.bf16.msra.mxu1 %v2932_v58  ;;  %v3019_v58 = vld [vmem:[%s4029_s1 + $0x850] ss:$8 sps:$4 sm:$0xff]  }
  0xd4   :  { %2194 = vmatpush1.bf16.msra.mxu0 %v2935_v59  ;;  %2031 = vmatprep.subr.bf16.mxu1 %v2940_v60  ;;  %v3024_v59 = vld [vmem:[%s4029_s1 + $0x864] ss:$8 sps:$4 sm:$0xff]   ;;  %v3022_v60 = vld [vmem:[%s4029_s1 + $0x860] ss:$8 sps:$4 sm:$0xff]  }
  0xd5   :  { %2195 = vmatprep.subr.bf16.mxu0 %v2943_v61  ;;  %v3027_v61 = vld [vmem:[%s4029_s1 + $0x874] ss:$8 sps:$4 sm:$0xff]  }
  0xd7   :  { %2032 = vmatpush1.bf16.msra.mxu1 %v2938_v62  ;;  %v3025_v62 = vld [vmem:[%s4029_s1 + $0x870] ss:$8 sps:$4 sm:$0xff]  }
  0xd8   :  { %2196 = vmatpush1.bf16.msra.mxu0 %v2941_v63  ;;  %2033 = vmatprep.subr.bf16.mxu1 %v2946_v0  ;;  %v3030_v63 = vld [vmem:[%s4029_s1 + $0x884] ss:$8 sps:$4 sm:$0xff]   ;;  %v3028_v0 = vld [vmem:[%s4029_s1 + $0x880] ss:$8 sps:$4 sm:$0xff]  }
  0xd9   :  { %2197 = vmatprep.subr.bf16.mxu0 %v2949_v1  ;;  %v3033_v1 = vld [vmem:[%s4029_s1 + $0x894] ss:$8 sps:$4 sm:$0xff]  }
  0xdb   :  { %2034 = vmatpush1.bf16.msra.mxu1 %v2944_v2  ;;  %v3031_v2 = vld [vmem:[%s4029_s1 + $0x890] ss:$8 sps:$4 sm:$0xff]  }
  0xdc   :  { %2198 = vmatpush1.bf16.msra.mxu0 %v2947_v3  ;;  %2035 = vmatprep.subr.bf16.mxu1 %v2952_v4  ;;  %v3036_v3 = vld [vmem:[%s4029_s1 + $0x8a4] ss:$8 sps:$4 sm:$0xff]   ;;  %v3034_v4 = vld [vmem:[%s4029_s1 + $0x8a0] ss:$8 sps:$4 sm:$0xff]  }
  0xdd   :  { %2199 = vmatprep.subr.bf16.mxu0 %v2955_v5  ;;  %v3039_v5 = vld [vmem:[%s4029_s1 + $0x8b4] ss:$8 sps:$4 sm:$0xff]  }
  0xdf   :  { %2036 = vmatpush1.bf16.msra.mxu1 %v2950_v6  ;;  %v3037_v6 = vld [vmem:[%s4029_s1 + $0x8b0] ss:$8 sps:$4 sm:$0xff]  }
  0xe0   :  { %2200 = vmatpush1.bf16.msra.mxu0 %v2953_v7  ;;  %2037 = vmatprep.subr.bf16.mxu1 %v2958_v8  ;;  %v3042_v7 = vld [vmem:[%s4029_s1 + $0x8c4] ss:$8 sps:$4 sm:$0xff]   ;;  %v3040_v8 = vld [vmem:[%s4029_s1 + $0x8c0] ss:$8 sps:$4 sm:$0xff]  }
  0xe1   :  { %2201 = vmatprep.subr.bf16.mxu0 %v2961_v9  ;;  %v3045_v9 = vld [vmem:[%s4029_s1 + $0x8d4] ss:$8 sps:$4 sm:$0xff]  }
  0xe3   :  { %2038 = vmatpush1.bf16.msra.mxu1 %v2956_v10  ;;  %v3043_v10 = vld [vmem:[%s4029_s1 + $0x8d0] ss:$8 sps:$4 sm:$0xff]  }
  0xe4   :  { %2202 = vmatpush1.bf16.msra.mxu0 %v2959_v11  ;;  %2039 = vmatprep.subr.bf16.mxu1 %v2964_v12  ;;  %v3048_v11 = vld [vmem:[%s4029_s1 + $0x8e4] ss:$8 sps:$4 sm:$0xff]   ;;  %v3046_v12 = vld [vmem:[%s4029_s1 + $0x8e0] ss:$8 sps:$4 sm:$0xff]  }
  0xe5   :  { %2203 = vmatprep.subr.bf16.mxu0 %v2967_v13  ;;  %v3051_v13 = vld [vmem:[%s4029_s1 + $0x8f4] ss:$8 sps:$4 sm:$0xff]  }
  0xe7   :  { %2040 = vmatpush1.bf16.msra.mxu1 %v2962_v14  ;;  %v3049_v14 = vld [vmem:[%s4029_s1 + $0x8f0] ss:$8 sps:$4 sm:$0xff]  }
  0xe8   :  { %2204 = vmatpush1.bf16.msra.mxu0 %v2965_v15  ;;  %2041 = vmatprep.subr.bf16.mxu1 %v2970_v18  ;;  %v432_v15 = vrot.slane %v3907_v56, %v3208_v49 }
  0xe9   :  { %2205 = vmatprep.subr.bf16.mxu0 %v2973_v19 }
  0xeb   :  { %2042 = vmatpush1.bf16.msra.mxu1 %v2968_v20 }
  0xec   :  { %2206 = vmatpush1.bf16.msra.mxu0 %v2971_v21  ;;  %2043 = vmatprep.subr.bf16.mxu1 %v2976_v22  ;;  %v309_v22 = vsub.s32 0, %v3190_v42 }
  0xed   :  { %2207 = vmatprep.subr.bf16.mxu0 %v2979_v52  ;;  %v305_v52 = vld [vmem:[%s4031_s2] sm:$0x3] }
  0xef   :  { %2044 = vmatpush1.bf16.msra.mxu1 %v2974_v24  ;;  %v313_v24 = vsub.s32 1, %v3190_v42 }
  0xf0   :  { %2208 = vmatpush1.bf16.msra.mxu0 %v2977_v25  ;;  %2045 = vmatprep.subr.bf16.mxu1 %v2982_v26  ;;  %v310_v25 = vrot.slane %v305_v52, %v309_v22 }
  0xf1   :  { %2209 = vmatprep.subr.bf16.mxu0 %v2985_v27  ;;  %v314_v26 = vrot.slane %v305_v52, %v313_v24 }
  0xf3   :  { %2046 = vmatpush1.bf16.msra.mxu1 %v2980_v28 }
  0xf4   :  { %2210 = vmatpush1.bf16.msra.mxu0 %v2983_v29  ;;  %2047 = vmatprep.subr.bf16.mxu1 %v2988_v30 }
  0xf5   :  { %2211 = vmatprep.subr.bf16.mxu0 %v2991_v31 }
  0xf7   :  { %2048 = vmatpush1.bf16.msra.mxu1 %v2986_v32 }
  0xf8   :  { %2212 = vmatpush1.bf16.msra.mxu0 %v2989_v33  ;;  %2049 = vmatprep.subr.bf16.mxu1 %v2994_v34 }
  0xf9   :  { %2213 = vmatprep.subr.bf16.mxu0 %v2997_v16 }
  0xfb   :  { %2050 = vmatpush1.bf16.msra.mxu1 %v2992_v36 }
  0xfc   :  { %2214 = vmatpush1.bf16.msra.mxu0 %v2995_v37  ;;  %2051 = vmatprep.subr.bf16.mxu1 %v3000_v40 }
  0xfd   :  { %2215 = vmatprep.subr.bf16.mxu0 %v3003_v41 }
  0xff   :  { %2052 = vmatpush1.bf16.msra.mxu1 %v2998_v23 }
 0x100   :  { %2216 = vmatpush1.bf16.msra.mxu0 %v3001_v43 }
 0x101   :  { %2226 = vmatprep.subr.bf16.mxu0 %v3006_v45 }
 0x102   :  { %2054 = vmatmul.mubr.bf16.vlgmr.msra.gmra.mrb[0].mxu1 %v366_v46 }
 0x103   :  { %2218 = vmatmul.mubr.bf16.vlgmr.msra.gmra.mrb[0].mxu0 %v415_v17 }
 0x104   :  { %2227 = vmatpush1.bf16.msra.mxu0 %v3004_v35  ;;  %2258 = vmatprep.mubr.bf16.mxu0 %v439_v47 }
 0x105   :  { %2228 = vmatprep.subr.bf16.mxu0 %v3009_v48 }
 0x108   :  { %2229 = vmatpush1.bf16.msra.mxu0 %v3007_v38 }
 0x109   :  { %2230 = vmatprep.subr.bf16.mxu0 %v3012_v39 }
 0x10c   :  { %2231 = vmatpush1.bf16.msra.mxu0 %v3010_v50 }
 0x10d   :  { %2232 = vmatprep.subr.bf16.mxu0 %v3015_v51 }
 0x110   :  { %2233 = vmatpush1.bf16.msra.mxu0 %v3013_v53 }
 0x111   :  { %2234 = vmatprep.subr.bf16.mxu0 %v3018_v54 }
 0x114   :  { %2235 = vmatpush1.bf16.msra.mxu0 %v3016_v55 }
 0x115   :  { %2236 = vmatprep.subr.bf16.mxu0 %v3021_v57 }
 0x118   :  { %2237 = vmatpush1.bf16.msra.mxu0 %v3019_v58 }
 0x119   :  { %2238 = vmatprep.subr.bf16.mxu0 %v3024_v59 }
 0x11c   :  { %2239 = vmatpush1.bf16.msra.mxu0 %v3022_v60 }
 0x11d   :  { %2240 = vmatprep.subr.bf16.mxu0 %v3027_v61 }
 0x120   :  { %2241 = vmatpush1.bf16.msra.mxu0 %v3025_v62 }
 0x121   :  { %2242 = vmatprep.subr.bf16.mxu0 %v3030_v63 }
 0x124   :  { %2243 = vmatpush1.bf16.msra.mxu0 %v3028_v0 }
 0x125   :  { %2244 = vmatprep.subr.bf16.mxu0 %v3033_v1 }
 0x128   :  { %2245 = vmatpush1.bf16.msra.mxu0 %v3031_v2 }
 0x129   :  { %2246 = vmatprep.subr.bf16.mxu0 %v3036_v3 }
 0x12c   :  { %2247 = vmatpush1.bf16.msra.mxu0 %v3034_v4 }
 0x12d   :  { %2248 = vmatprep.subr.bf16.mxu0 %v3039_v5 }
 0x130   :  { %2249 = vmatpush1.bf16.msra.mxu0 %v3037_v6 }
 0x131   :  { %2250 = vmatprep.subr.bf16.mxu0 %v3042_v7 }
 0x134   :  { %2251 = vmatpush1.bf16.msra.mxu0 %v3040_v8 }
 0x135   :  { %2252 = vmatprep.subr.bf16.mxu0 %v3045_v9 }
 0x138   :  { %2253 = vmatpush1.bf16.msra.mxu0 %v3043_v10 }
 0x139   :  { %2254 = vmatprep.subr.bf16.mxu0 %v3048_v11 }
 0x13c   :  { %2255 = vmatpush1.bf16.msra.mxu0 %v3046_v12 }
 0x13d   :  { %2256 = vmatprep.subr.bf16.mxu0 %v3051_v13 }
 0x140   :  { %2257 = vmatpush1.bf16.msra.mxu0 %v3049_v14 }
 0x143   :  { %2259 = vmatmul.mubr.bf16.vlgmr.msra.gmra.mrb[0].mxu0 %v432_v15 }
 0x1d5   :  { %v2055_v18 = vpop.f32.mrb[0].mxu1 }
 0x1d6   :  { %v2057_v19 = vpop.f32.mrb[1].mxu1  ;;  %v2585_v27 = vadd.f32 %v2055_v18, %v310_v25 }
 0x1d7   :  { %v2059_v20 = vpop.f32.mrb[2].mxu1  ;;  %v2587_v28 = vadd.f32 %v2057_v19, %v314_v26 }
 0x1d8   :  { %v2060_v21 = vpop.f32.mrb[3].mxu1 }
 0x216   :  { %v2260_v29 = vpop.f32.mrb[0].mxu0 }
 0x217   :  { %v2586_v30 = vadd.f32 %v2585_v27, %v2260_v29  ;;  %v2262_v31 = vpop.f32.mrb[1].mxu0 }
 0x218   :  { %v2588_v32 = vadd.f32 %v2587_v28, %v2262_v31  ;;  %v2264_v33 = vpop.f32.mrb[2].mxu0 }
 0x219   :  { %v2267_v34 = vmax.f32 %v2586_v30, 0.0  ;;  %v2265_v16 = vpop.f32.mrb[3].mxu0 }
 0x21a   :  { %v2268_v36 = vmax.f32 %v2588_v32, 0.0 }
 0x21c   :  { %v2583_v37 = vpack.c.bf16 %v2268_v36, %v2267_v34 }
 0x21e   :  { %v2280_v40 = vrot.slane %v2583_v37, %v3208_v49 }
 0x220   :  { %2584 = vst.sshfl [vmem:[%s4032_s3] sm:$0x5 pattern:$0x73625140] %v2280_v40 }

// kernel: _lambda_.58
= control target key start
LH: loop header
LB: loop body
LE: loop exit
PB: predicated region body
PF: predicated region fallthrough
CT: control target
= control target key end

     0   :  { %v81_v38 = vlaneseq  ;;  %v731_v39 = vmov 1966171168   ;;  %s966_s1 = inlined_call_operand.vmem [shape: bf16[256,512], index: 1, kind: input, shape index: {}]   ;;  %s967_s0 = inlined_call_operand.vmem [shape: bf16[2,256], index: 0, kind: input, shape index: {}]   ;;  %s968_s2 = inlined_call_operand.vmem [shape: f32[1,512], index: 2, kind: input, shape index: {}]   ;;  %s969_s3 = inlined_call_operand.vmem [shape: bf16[2,512], index: 3, kind: output, shape index: {}]  }
   0x1   :  { %v635_v0 = vld [vmem:[%s966_s1 + $0x4] ss:$16 sps:$4 sm:$0xff]   ;;  %v637_v1 = vld [vmem:[%s966_s1 + $0xc] ss:$16 sps:$4 sm:$0xff]   ;;  %v639_v2 = vld [vmem:[%s966_s1] ss:$16 sps:$4 sm:$0xff]   ;;  %v111_v40 = vunpack.c.l.s4 %v731_v39 }
   0x2   :  { %446 = vmatprep.subr.bf16.mxu0 %v635_v0  ;;  %v640_v3 = vld [vmem:[%s966_s1 + $0x8] ss:$16 sps:$4 sm:$0xff]   ;;  %487 = vmatprep.subr.bf16.mxu1 %v637_v1  ;;  %v641_v4 = vld [vmem:[%s966_s1 + $0x24] ss:$16 sps:$4 sm:$0xff]   ;;  %v643_v5 = vld [vmem:[%s966_s1 + $0x2c] ss:$16 sps:$4 sm:$0xff]  }
   0x3   :  { %447 = vmatpush1.bf16.msra.mxu0 %v639_v2  ;;  %488 = vmatpush1.bf16.msra.mxu1 %v640_v3  ;;  %v645_v6 = vld [vmem:[%s966_s1 + $0x20] ss:$16 sps:$4 sm:$0xff]   ;;  %v646_v7 = vld [vmem:[%s966_s1 + $0x28] ss:$16 sps:$4 sm:$0xff]   ;;  %v647_v8 = vld [vmem:[%s966_s1 + $0x44] ss:$16 sps:$4 sm:$0xff]   ;;  %v112_v46 = vunpack.c.0.s8 %v111_v40 }
   0x4   :  { %448 = vmatprep.subr.bf16.mxu0 %v641_v4  ;;  %489 = vmatprep.subr.bf16.mxu1 %v643_v5  ;;  %v649_v9 = vld [vmem:[%s966_s1 + $0x4c] ss:$16 sps:$4 sm:$0xff]   ;;  %v651_v10 = vld [vmem:[%s966_s1 + $0x40] ss:$16 sps:$4 sm:$0xff]   ;;  %v652_v11 = vld [vmem:[%s966_s1 + $0x48] ss:$16 sps:$4 sm:$0xff]  }
   0x5   :  { %v653_v12 = vld [vmem:[%s966_s1 + $0x64] ss:$16 sps:$4 sm:$0xff]   ;;  %v655_v13 = vld [vmem:[%s966_s1 + $0x6c] ss:$16 sps:$4 sm:$0xff]   ;;  %v657_v14 = vld [vmem:[%s966_s1 + $0x60] ss:$16 sps:$4 sm:$0xff]  }
   0x6   :  { %v658_v15 = vld [vmem:[%s966_s1 + $0x68] ss:$16 sps:$4 sm:$0xff]   ;;  %v659_v16 = vld [vmem:[%s966_s1 + $0x84] ss:$16 sps:$4 sm:$0xff]   ;;  %v661_v17 = vld [vmem:[%s966_s1 + $0x8c] ss:$16 sps:$4 sm:$0xff]  }
   0x7   :  { %449 = vmatpush1.bf16.msra.mxu0 %v645_v6  ;;  %490 = vmatpush1.bf16.msra.mxu1 %v646_v7  ;;  %v663_v18 = vld [vmem:[%s966_s1 + $0x80] ss:$16 sps:$4 sm:$0xff]   ;;  %v664_v19 = vld [vmem:[%s966_s1 + $0x88] ss:$16 sps:$4 sm:$0xff]   ;;  %v665_v20 = vld [vmem:[%s966_s1 + $0xa4] ss:$16 sps:$4 sm:$0xff]  }
   0x8   :  { %450 = vmatprep.subr.bf16.mxu0 %v647_v8  ;;  %491 = vmatprep.subr.bf16.mxu1 %v649_v9  ;;  %v667_v21 = vld [vmem:[%s966_s1 + $0xac] ss:$16 sps:$4 sm:$0xff]   ;;  %v669_v22 = vld [vmem:[%s966_s1 + $0xa0] ss:$16 sps:$4 sm:$0xff]   ;;  %v670_v23 = vld [vmem:[%s966_s1 + $0xa8] ss:$16 sps:$4 sm:$0xff]  }
   0x9   :  { %v671_v24 = vld [vmem:[%s966_s1 + $0xc4] ss:$16 sps:$4 sm:$0xff]   ;;  %v673_v25 = vld [vmem:[%s966_s1 + $0xcc] ss:$16 sps:$4 sm:$0xff]   ;;  %v675_v26 = vld [vmem:[%s966_s1 + $0xc0] ss:$16 sps:$4 sm:$0xff]  }
   0xa   :  { %v676_v27 = vld [vmem:[%s966_s1 + $0xc8] ss:$16 sps:$4 sm:$0xff]   ;;  %v677_v28 = vld [vmem:[%s966_s1 + $0xe4] ss:$16 sps:$4 sm:$0xff]   ;;  %v679_v29 = vld [vmem:[%s966_s1 + $0xec] ss:$16 sps:$4 sm:$0xff]  }
   0xb   :  { %451 = vmatpush1.bf16.msra.mxu0 %v651_v10  ;;  %492 = vmatpush1.bf16.msra.mxu1 %v652_v11  ;;  %v681_v30 = vld [vmem:[%s966_s1 + $0xe0] ss:$16 sps:$4 sm:$0xff]   ;;  %v682_v31 = vld [vmem:[%s966_s1 + $0xe8] ss:$16 sps:$4 sm:$0xff]   ;;  %v683_v32 = vld [vmem:[%s966_s1 + $0x104] ss:$16 sps:$4 sm:$0xff]  }
   0xc   :  { %452 = vmatprep.subr.bf16.mxu0 %v653_v12  ;;  %493 = vmatprep.subr.bf16.mxu1 %v655_v13  ;;  %v685_v33 = vld [vmem:[%s966_s1 + $0x10c] ss:$16 sps:$4 sm:$0xff]   ;;  %v687_v34 = vld [vmem:[%s966_s1 + $0x100] ss:$16 sps:$4 sm:$0xff]   ;;  %v688_v35 = vld [vmem:[%s966_s1 + $0x108] ss:$16 sps:$4 sm:$0xff]  }
   0xd   :  { %v689_v36 = vld [vmem:[%s966_s1 + $0x124] ss:$16 sps:$4 sm:$0xff]   ;;  %v691_v37 = vld [vmem:[%s966_s1 + $0x12c] ss:$16 sps:$4 sm:$0xff]   ;;  %v693_v41 = vld [vmem:[%s966_s1 + $0x120] ss:$16 sps:$4 sm:$0xff]  }
   0xe   :  { %v694_v42 = vld [vmem:[%s966_s1 + $0x128] ss:$16 sps:$4 sm:$0xff]   ;;  %v695_v43 = vld [vmem:[%s966_s1 + $0x144] ss:$16 sps:$4 sm:$0xff]   ;;  %v697_v44 = vld [vmem:[%s966_s1 + $0x14c] ss:$16 sps:$4 sm:$0xff]  }
   0xf   :  { %453 = vmatpush1.bf16.msra.mxu0 %v657_v14  ;;  %494 = vmatpush1.bf16.msra.mxu1 %v658_v15  ;;  %v878_v45 = vshrl.u32 %v81_v38, 7  ;;  %v699_v47 = vld [vmem:[%s966_s1 + $0x140] ss:$16 sps:$4 sm:$0xff]   ;;  %v700_v48 = vld [vmem:[%s966_s1 + $0x148] ss:$16 sps:$4 sm:$0xff]  }
  0x10   :  { %454 = vmatprep.subr.bf16.mxu0 %v659_v16  ;;  %495 = vmatprep.subr.bf16.mxu1 %v661_v17  ;;  %v701_v49 = vld [vmem:[%s966_s1 + $0x164] ss:$16 sps:$4 sm:$0xff]   ;;  %v703_v50 = vld [vmem:[%s966_s1 + $0x16c] ss:$16 sps:$4 sm:$0xff]   ;;  %v705_v53 = vld [vmem:[%s966_s1 + $0x160] ss:$16 sps:$4 sm:$0xff]  }
  0x11   :  { %v893_v51 = vsub.s32 %v112_v46, %v878_v45  ;;  %v566_v52 = vld.sshfl [vmem:[%s967_s0] sm:$0x11 pattern:$0x75316420]  ;;  %v706_v54 = vld [vmem:[%s966_s1 + $0x168] ss:$16 sps:$4 sm:$0xff]  }
  0x12   :  { %v109_v55 = vcombine.high %v566_v52, %v566_v52  ;;  %v707_v56 = vld [vmem:[%s966_s1 + $0x184] ss:$16 sps:$4 sm:$0xff]   ;;  %v709_v57 = vld [vmem:[%s966_s1 + $0x18c] ss:$16 sps:$4 sm:$0xff]   ;;  %v711_v59 = vld [vmem:[%s966_s1 + $0x180] ss:$16 sps:$4 sm:$0xff]  }
  0x13   :  { %455 = vmatpush1.bf16.msra.mxu0 %v663_v18  ;;  %496 = vmatpush1.bf16.msra.mxu1 %v664_v19  ;;  %v712_v60 = vld [vmem:[%s966_s1 + $0x188] ss:$16 sps:$4 sm:$0xff]   ;;  %v713_v61 = vld [vmem:[%s966_s1 + $0x1a4] ss:$16 sps:$4 sm:$0xff]   ;;  %v715_v62 = vld [vmem:[%s966_s1 + $0x1ac] ss:$16 sps:$4 sm:$0xff]   ;;  %v116_v9 = vrot.slane %v566_v52, %v893_v51 }
  0x14   :  { %456 = vmatprep.subr.bf16.mxu0 %v665_v20  ;;  %497 = vmatprep.subr.bf16.mxu1 %v667_v21  ;;  %v123_v58 = vrot.slane %v109_v55, %v893_v51  ;;  %v717_v63 = vld [vmem:[%s966_s1 + $0x1a0] ss:$16 sps:$4 sm:$0xff]   ;;  %v718_v0 = vld [vmem:[%s966_s1 + $0x1a8] ss:$16 sps:$4 sm:$0xff]   ;;  %v719_v1 = vld [vmem:[%s966_s1 + $0x1c4] ss:$16 sps:$4 sm:$0xff]  }
  0x15   :  { %v721_v2 = vld [vmem:[%s966_s1 + $0x1cc] ss:$16 sps:$4 sm:$0xff]   ;;  %v723_v3 = vld [vmem:[%s966_s1 + $0x1c0] ss:$16 sps:$4 sm:$0xff]   ;;  %v724_v4 = vld [vmem:[%s966_s1 + $0x1c8] ss:$16 sps:$4 sm:$0xff]  }
  0x16   :  { %478 = vmatprep.mubr.bf16.mxu0 %v123_v58  ;;  %519 = vmatprep.mubr.bf16.mxu1 %v123_v58  ;;  %v725_v5 = vld [vmem:[%s966_s1 + $0x1e4] ss:$16 sps:$4 sm:$0xff]   ;;  %v727_v6 = vld [vmem:[%s966_s1 + $0x1ec] ss:$16 sps:$4 sm:$0xff]   ;;  %v729_v7 = vld [vmem:[%s966_s1 + $0x1e0] ss:$16 sps:$4 sm:$0xff]  }
  0x17   :  { %457 = vmatpush1.bf16.msra.mxu0 %v669_v22  ;;  %498 = vmatpush1.bf16.msra.mxu1 %v670_v23  ;;  %v730_v8 = vld [vmem:[%s966_s1 + $0x1e8] ss:$16 sps:$4 sm:$0xff]   ;;  %v83_v10 = vsub.s32 0, %v878_v45  ;;  %v91_v11 = vsub.s32 2, %v878_v45  ;;  %v79_v12 = vld [vmem:[%s968_s2] sm:$0xf] }
  0x18   :  { %458 = vmatprep.subr.bf16.mxu0 %v671_v24  ;;  %499 = vmatprep.subr.bf16.mxu1 %v673_v25  ;;  %v87_v13 = vsub.s32 1, %v878_v45  ;;  %v95_v14 = vsub.s32 3, %v878_v45 }
  0x19   :  { %v84_v15 = vrot.slane %v79_v12, %v83_v10  ;;  %v92_v16 = vrot.slane %v79_v12, %v91_v11 }
  0x1a   :  { %v88_v17 = vrot.slane %v79_v12, %v87_v13  ;;  %v96_v18 = vrot.slane %v79_v12, %v95_v14 }
  0x1b   :  { %459 = vmatpush1.bf16.msra.mxu0 %v675_v26  ;;  %500 = vmatpush1.bf16.msra.mxu1 %v676_v27 }
  0x1c   :  { %460 = vmatprep.subr.bf16.mxu0 %v677_v28  ;;  %501 = vmatprep.subr.bf16.mxu1 %v679_v29 }
  0x1f   :  { %461 = vmatpush1.bf16.msra.mxu0 %v681_v30  ;;  %502 = vmatpush1.bf16.msra.mxu1 %v682_v31 }
  0x20   :  { %462 = vmatprep.subr.bf16.mxu0 %v683_v32  ;;  %503 = vmatprep.subr.bf16.mxu1 %v685_v33 }
  0x23   :  { %463 = vmatpush1.bf16.msra.mxu0 %v687_v34  ;;  %504 = vmatpush1.bf16.msra.mxu1 %v688_v35 }
  0x24   :  { %464 = vmatprep.subr.bf16.mxu0 %v689_v36  ;;  %505 = vmatprep.subr.bf16.mxu1 %v691_v37 }
  0x27   :  { %465 = vmatpush1.bf16.msra.mxu0 %v693_v41  ;;  %506 = vmatpush1.bf16.msra.mxu1 %v694_v42 }
  0x28   :  { %466 = vmatprep.subr.bf16.mxu0 %v695_v43  ;;  %507 = vmatprep.subr.bf16.mxu1 %v697_v44 }
  0x2b   :  { %467 = vmatpush1.bf16.msra.mxu0 %v699_v47  ;;  %508 = vmatpush1.bf16.msra.mxu1 %v700_v48 }
  0x2c   :  { %468 = vmatprep.subr.bf16.mxu0 %v701_v49  ;;  %509 = vmatprep.subr.bf16.mxu1 %v703_v50 }
  0x2f   :  { %469 = vmatpush1.bf16.msra.mxu0 %v705_v53  ;;  %510 = vmatpush1.bf16.msra.mxu1 %v706_v54 }
  0x30   :  { %470 = vmatprep.subr.bf16.mxu0 %v707_v56  ;;  %511 = vmatprep.subr.bf16.mxu1 %v709_v57 }
  0x33   :  { %471 = vmatpush1.bf16.msra.mxu0 %v711_v59  ;;  %512 = vmatpush1.bf16.msra.mxu1 %v712_v60 }
  0x34   :  { %472 = vmatprep.subr.bf16.mxu0 %v713_v61  ;;  %513 = vmatprep.subr.bf16.mxu1 %v715_v62 }
  0x37   :  { %473 = vmatpush1.bf16.msra.mxu0 %v717_v63  ;;  %514 = vmatpush1.bf16.msra.mxu1 %v718_v0 }
  0x38   :  { %474 = vmatprep.subr.bf16.mxu0 %v719_v1  ;;  %515 = vmatprep.subr.bf16.mxu1 %v721_v2 }
  0x3b   :  { %475 = vmatpush1.bf16.msra.mxu0 %v723_v3  ;;  %516 = vmatpush1.bf16.msra.mxu1 %v724_v4 }
  0x3c   :  { %476 = vmatprep.subr.bf16.mxu0 %v725_v5  ;;  %517 = vmatprep.subr.bf16.mxu1 %v727_v6 }
  0x3f   :  { %477 = vmatpush1.bf16.msra.mxu0 %v729_v7  ;;  %518 = vmatpush1.bf16.msra.mxu1 %v730_v8 }
  0x42   :  { %479 = vmatmul.mubr.bf16.vlgmr.msra.gmra.mrb[0].mxu0 %v116_v9  ;;  %520 = vmatmul.mubr.bf16.vlgmr.msra.gmra.mrb[0].mxu1 %v116_v9 }
 0x115   :  { %v480_v19 = vpop.f32.mrb[0].mxu0  ;;  %v521_v20 = vpop.f32.mrb[0].mxu1 }
 0x116   :  { %v481_v21 = vadd.f32 %v480_v19, %v84_v15  ;;  %v522_v22 = vadd.f32 %v521_v20, %v92_v16  ;;  %v482_v23 = vpop.f32.mrb[1].mxu0  ;;  %v523_v24 = vpop.f32.mrb[1].mxu1 }
 0x117   :  { %v483_v25 = vadd.f32 %v482_v23, %v88_v17  ;;  %v524_v26 = vadd.f32 %v523_v24, %v96_v18  ;;  %v484_v27 = vpop.f32.mrb[2].mxu0  ;;  %v525_v28 = vpop.f32.mrb[2].mxu1 }
 0x118   :  { %v485_v29 = vpop.f32.mrb[3].mxu0  ;;  %v526_v30 = vpop.f32.mrb[3].mxu1 }
 0x119   :  { %v631_v31 = vpack.c.bf16 %v483_v25, %v481_v21  ;;  %v632_v32 = vpack.c.bf16 %v524_v26, %v522_v22 }
 0x11b   :  { %v544_v33 = vrot.slane %v631_v31, %v893_v51  ;;  %v551_v34 = vrot.slane %v632_v32, %v893_v51 }
 0x11d   :  { %v552_v35 = vcombine.low %v544_v33, %v551_v34 }
 0x11f   :  { %633 = vst.sshfl [vmem:[%s969_s3] sm:$0x55 pattern:$0x73625140] %v552_v35 }

// kernel: tile.18
= control target key start
LH: loop header
LB: loop body
LE: loop exit
PB: predicated region body
PF: predicated region fallthrough
CT: control target
= control target key end

     0   :  { %s22_s0 = inlined_call_operand.vmem [shape: f32[64], index: 0, kind: input, shape index: {}]   ;;  %s23_s1 = inlined_call_operand.vmem [shape: f32[4,64], index: 1, kind: output, shape index: {}]  }
   0x1   :  { %v4_v0 = vld [vmem:[%s22_s0] ss:$0 sm:$0xff] }
   0x2   :  { %5 = vst [vmem:[%s23_s1] sm:$0xf] %v4_v0 }

// kernel: tile.19
= control target key start
LH: loop header
LB: loop body
LE: loop exit
PB: predicated region body
PF: predicated region fallthrough
CT: control target
= control target key end

     0   :  { %s6_s8 = smov 3  ;;  %vm8_vm0 = vcmask 523264   ;;  %s30_s9 = smov 64   ;;  %vm15_vm1 = vcmask 1048064   ;;  %s50_s0 = inlined_call_operand.vmem [shape: f32[4,64], index: 0, kind: input, shape index: {}]   ;;  %s51_s1 = inlined_call_operand.vmem [shape: f32[1,256], index: 1, kind: output, shape index: {}]  }
   0x1   :  { %v4_v0 = vld [vmem:[%s50_s0] sm:$0xf]  ;;  %s11_s0 = smov 3 }
   0x2   :  { %5 = vst [vmem:[#allocation1] sm:$0xf] %v4_v0 }
   0x9   :  { %v12_v1 = vld [vmem:[#allocation1 + $0x1] ss:$2 sm:%s11_s0]   ;;  %v7_v2 = vld [vmem:[#allocation1] ss:$2 sm:%s6_s8]  }
   0xa   :  { %13 = vrot.lane.b32.xlu0 %v12_v1, %s30_s9  ;;  %9 = vst.msk [vmem:[#allocation0] ss:$8 sm:$0x3] %vm8_vm0, %v7_v2  }
  0x7c   :  { %v14_v3 = vpop.permute.xlu0 %13  }
  0x7d   :  { %16 = vst.msk [vmem:[#allocation0] ss:$8 sm:$0x3] %vm15_vm1, %v14_v3  }
  0x84   :  { %v20_v4 = vld [vmem:[#allocation0] sm:$0x1]  ;;  %v24_v5 = vld [vmem:[#allocation0 + $0x8] sm:$0x1] }
  0x85   :  { %22 = vst [vmem:[%s51_s1] sm:$0x1] %v20_v4  ;;  %28 = vst [vmem:[%s51_s1 + $0x1] sm:$0x1] %v24_v5 }

// kernel: _lambda_.59
= control target key start
LH: loop header
LB: loop body
LE: loop exit
PB: predicated region body
PF: predicated region fallthrough
CT: control target
= control target key end

     0   :  { %vm1131_vm0 = vmmov 0   ;;  %s1397_s1 = inlined_call_operand.vmem [shape: bf16[1152,128], index: 1, kind: input, shape index: {}]   ;;  %s1398_s0 = inlined_call_operand.vmem [shape: bf16[8,1152], index: 0, kind: input, shape index: {}]   ;;  %s1399_s2 = inlined_call_operand.vmem [shape: f32[1,128], index: 2, kind: input, shape index: {}]   ;;  %s1400_s3 = inlined_call_operand.vmem [shape: bf16[8,128], index: 3, kind: input, shape index: {}]   ;;  %s1401_s4 = inlined_call_operand.vmem [shape: bf16[8,128], index: 4, kind: output, shape index: {}]  }
   0x1   :  { %v1049_v0 = vld [vmem:[%s1397_s1 + $0x40] sm:$0xff]   ;;  %v1053_v4 = vld [vmem:[%s1397_s1 + $0x48] sm:$0xff]   ;;  %v1057_v8 = vld [vmem:[%s1397_s1 + $0x50] sm:$0xff]  }
   0x2   :  { %v1050_v1 = vld [vmem:[%s1397_s1] sm:$0xff]   ;;  %930 = vmatprep.subr.bf16.mxu0 %v1049_v0  ;;  %v1054_v5 = vld [vmem:[%s1397_s1 + $0x8] sm:$0xff]   ;;  %v1058_v9 = vld [vmem:[%s1397_s1 + $0x10] sm:$0xff]  }
   0x3   :  { %v1051_v2 = vld [vmem:[%s1397_s1 + $0xc0] sm:$0xff]   ;;  %931 = vmatpush3.bf16.msra.mxu0 %v1050_v1  ;;  %v1055_v6 = vld [vmem:[%s1397_s1 + $0xc8] sm:$0xff]   ;;  %v1059_v10 = vld [vmem:[%s1397_s1 + $0xd0] sm:$0xff]  }
   0x4   :  { %v1052_v3 = vld [vmem:[%s1397_s1 + $0x80] sm:$0xff]   ;;  %952 = vmatprep.subr.bf16.mxu1 %v1051_v2  ;;  %932 = vmatprep.subr.bf16.mxu0 %v1053_v4  ;;  %v1056_v7 = vld [vmem:[%s1397_s1 + $0x88] sm:$0xff]   ;;  %v1060_v11 = vld [vmem:[%s1397_s1 + $0x90] sm:$0xff]  }
   0x5   :  { %953 = vmatpush3.bf16.msra.mxu1 %v1052_v3  ;;  %v1061_v12 = vld [vmem:[%s1397_s1 + $0x58] sm:$0xff]   ;;  %v1065_v16 = vld [vmem:[%s1397_s1 + $0x60] sm:$0xff]   ;;  %v1069_v20 = vld [vmem:[%s1397_s1 + $0x68] sm:$0xff]  }
   0x6   :  { %954 = vmatprep.subr.bf16.mxu1 %v1055_v6  ;;  %v1062_v13 = vld [vmem:[%s1397_s1 + $0x18] sm:$0xff]   ;;  %v1066_v17 = vld [vmem:[%s1397_s1 + $0x20] sm:$0xff]   ;;  %v1070_v21 = vld [vmem:[%s1397_s1 + $0x28] sm:$0xff]  }
   0x7   :  { %933 = vmatpush3.bf16.msra.mxu0 %v1054_v5  ;;  %v1063_v14 = vld [vmem:[%s1397_s1 + $0xd8] sm:$0xff]   ;;  %v1067_v18 = vld [vmem:[%s1397_s1 + $0xe0] sm:$0xff]   ;;  %v1071_v22 = vld [vmem:[%s1397_s1 + $0xe8] sm:$0xff]  }
   0x8   :  { %934 = vmatprep.subr.bf16.mxu0 %v1057_v8  ;;  %v1064_v15 = vld [vmem:[%s1397_s1 + $0x98] sm:$0xff]   ;;  %v1068_v19 = vld [vmem:[%s1397_s1 + $0xa0] sm:$0xff]   ;;  %v1072_v23 = vld [vmem:[%s1397_s1 + $0xa8] sm:$0xff]  }
   0x9   :  { %955 = vmatpush3.bf16.msra.mxu1 %v1056_v7  ;;  %v1073_v24 = vld [vmem:[%s1397_s1 + $0x70] sm:$0xff]   ;;  %v1077_v28 = vld [vmem:[%s1397_s1 + $0x78] sm:$0xff]   ;;  %v18_v31 = vld [vmem:[%s1398_s0] sm:$0xff] }
   0xa   :  { %956 = vmatprep.subr.bf16.mxu1 %v1059_v10  ;;  %v1074_v25 = vld [vmem:[%s1397_s1 + $0x30] sm:$0xff]   ;;  %v1078_v29 = vld [vmem:[%s1397_s1 + $0x38] sm:$0xff]   ;;  %v849_v32 = vcombine.low %v18_v31, %v18_v31  ;;  %v850_v33 = vcombine.high %v18_v31, %v18_v31  ;;  %v1083_v35 = vld [vmem:[%s1397_s1 + $0x140] sm:$0xff]  }
   0xb   :  { %935 = vmatpush3.bf16.msra.mxu0 %v1058_v9  ;;  %v1075_v26 = vld [vmem:[%s1397_s1 + $0xf0] sm:$0xff]   ;;  %v1079_v30 = vld [vmem:[%s1397_s1 + $0xf8] sm:$0xff]   ;;  %v19_v36 = vld [vmem:[%s1398_s0 + $0x8] sm:$0xff]  ;;  %v1130_v9 = vmov 0.0  }
   0xc   :  { %936 = vmatprep.subr.bf16.mxu0 %v1061_v12  ;;  %v1076_v27 = vld [vmem:[%s1397_s1 + $0xb0] sm:$0xff]   ;;  %v1082_v34 = vld [vmem:[%s1397_s1 + $0xb8] sm:$0xff]   ;;  %670 = vmatprep.mubr.bf16.mxu0 %v850_v33  ;;  %v851_v37 = vcombine.low %v19_v36, %v19_v36  ;;  %v852_v38 = vcombine.high %v19_v36, %v19_v36  ;;  %v1086_v39 = vld [vmem:[%s1397_s1 + $0x100] sm:$0xff]  }
   0xd   :  { %957 = vmatpush3.bf16.msra.mxu1 %v1060_v11  ;;  %v1087_v40 = vld [vmem:[%s1397_s1 + $0x1c0] sm:$0xff]   ;;  %v1089_v42 = vld [vmem:[%s1397_s1 + $0x148] sm:$0xff]   ;;  %v1093_v46 = vld [vmem:[%s1397_s1 + $0x150] sm:$0xff]  }
   0xe   :  { %958 = vmatprep.subr.bf16.mxu1 %v1063_v14  ;;  %710 = vmatprep.mubr.bf16.mxu1 %v852_v38  ;;  %v1088_v41 = vld [vmem:[%s1397_s1 + $0x180] sm:$0xff]   ;;  %v1090_v43 = vld [vmem:[%s1397_s1 + $0x108] sm:$0xff]   ;;  %v1094_v47 = vld [vmem:[%s1397_s1 + $0x110] sm:$0xff]  }
   0xf   :  { %937 = vmatpush3.bf16.msra.mxu0 %v1062_v13  ;;  %v1091_v44 = vld [vmem:[%s1397_s1 + $0x1c8] sm:$0xff]   ;;  %v1095_v48 = vld [vmem:[%s1397_s1 + $0x1d0] sm:$0xff]   ;;  %v1097_v50 = vld [vmem:[%s1397_s1 + $0x158] sm:$0xff]  }
  0x10   :  { %938 = vmatprep.subr.bf16.mxu0 %v1065_v16  ;;  %v1092_v45 = vld [vmem:[%s1397_s1 + $0x188] sm:$0xff]   ;;  %v1096_v49 = vld [vmem:[%s1397_s1 + $0x190] sm:$0xff]   ;;  %v1098_v51 = vld [vmem:[%s1397_s1 + $0x118] sm:$0xff]  }
  0x11   :  { %959 = vmatpush3.bf16.msra.mxu1 %v1064_v15  ;;  %v1099_v52 = vld [vmem:[%s1397_s1 + $0x1d8] sm:$0xff]   ;;  %v1101_v54 = vld [vmem:[%s1397_s1 + $0x160] sm:$0xff]   ;;  %v1105_v58 = vld [vmem:[%s1397_s1 + $0x168] sm:$0xff]  }
  0x12   :  { %960 = vmatprep.subr.bf16.mxu1 %v1067_v18  ;;  %v1100_v53 = vld [vmem:[%s1397_s1 + $0x198] sm:$0xff]   ;;  %v1102_v55 = vld [vmem:[%s1397_s1 + $0x120] sm:$0xff]   ;;  %v1106_v59 = vld [vmem:[%s1397_s1 + $0x128] sm:$0xff]  }
  0x13   :  { %939 = vmatpush3.bf16.msra.mxu0 %v1066_v17  ;;  %v1103_v56 = vld [vmem:[%s1397_s1 + $0x1e0] sm:$0xff]   ;;  %v1107_v60 = vld [vmem:[%s1397_s1 + $0x1e8] sm:$0xff]   ;;  %v1109_v62 = vld [vmem:[%s1397_s1 + $0x170] sm:$0xff]  }
  0x14   :  { %940 = vmatprep.subr.bf16.mxu0 %v1069_v20  ;;  %v1104_v57 = vld [vmem:[%s1397_s1 + $0x1a0] sm:$0xff]   ;;  %v1108_v61 = vld [vmem:[%s1397_s1 + $0x1a8] sm:$0xff]   ;;  %v1110_v63 = vld [vmem:[%s1397_s1 + $0x130] sm:$0xff]  }
  0x15   :  { %961 = vmatpush3.bf16.msra.mxu1 %v1068_v19  ;;  %v1111_v0 = vld [vmem:[%s1397_s1 + $0x1f0] sm:$0xff]   ;;  %v1113_v2 = vld [vmem:[%s1397_s1 + $0x178] sm:$0xff]   ;;  %v1121_v13 = vld [vmem:[%s1397_s1 + $0x200] sm:$0xff]  }
  0x16   :  { %962 = vmatprep.subr.bf16.mxu1 %v1071_v22  ;;  %v1112_v1 = vld [vmem:[%s1397_s1 + $0x1b0] sm:$0xff]   ;;  %v1114_v3 = vld [vmem:[%s1397_s1 + $0x138] sm:$0xff]   ;;  %v1122_v14 = vld [vmem:[%s1397_s1 + $0x208] sm:$0xff]  }
  0x17   :  { %941 = vmatpush3.bf16.msra.mxu0 %v1070_v21  ;;  %v1115_v4 = vld [vmem:[%s1397_s1 + $0x1f8] sm:$0xff]   ;;  %v20_v5 = vld [vmem:[%s1398_s0 + $0x10] sm:$0xff]  ;;  %v1125_v17 = vld [vmem:[%s1397_s1 + $0x220] sm:$0xff]  }
  0x18   :  { %942 = vmatprep.subr.bf16.mxu0 %v1073_v24  ;;  %v853_v6 = vcombine.low %v20_v5, %v20_v5  ;;  %v854_v7 = vcombine.high %v20_v5, %v20_v5  ;;  %v1118_v8 = vld [vmem:[%s1397_s1 + $0x1b8] sm:$0xff]   ;;  %v1123_v15 = vld [vmem:[%s1397_s1 + $0x210] sm:$0xff]   ;;  %v1126_v18 = vld [vmem:[%s1397_s1 + $0x228] sm:$0xff]  }
  0x19   :  { %963 = vmatpush3.bf16.msra.mxu1 %v1072_v23  ;;  %v21_v10 = vld [vmem:[%s1398_s0 + $0x18] sm:$0xff]  ;;  %v1127_v19 = vld [vmem:[%s1397_s1 + $0x230] sm:$0xff]   ;;  %v1129_v21 = vld [vmem:[%s1398_s0 + $0x20] ss:$0 sps:$4 sm:$0xff]  }
  0x1a   :  { %964 = vmatprep.subr.bf16.mxu1 %v1075_v26  ;;  %v855_v11 = vcombine.low %v21_v10, %v21_v10  ;;  %v856_v12 = vcombine.high %v21_v10, %v21_v10  ;;  %v1124_v16 = vld [vmem:[%s1397_s1 + $0x218] sm:$0xff]   ;;  %v848_v23 = vld [vmem:[%s1399_s2] ss:$0 sm:$0xff] }
  0x1b   :  { %943 = vmatpush3.bf16.msra.mxu0 %v1074_v25  ;;  %v1128_v20 = vld [vmem:[%s1397_s1 + $0x238] sm:$0xff]  }
  0x1c   :  { %944 = vmatprep.subr.bf16.mxu0 %v1077_v28 }
  0x1d   :  { %965 = vmatpush3.bf16.msra.mxu1 %v1076_v27 }
  0x1e   :  { %966 = vmatprep.subr.bf16.mxu1 %v1079_v30 }
  0x1f   :  { %945 = vmatpush3.bf16.msra.mxu0 %v1078_v29 }
  0x20   :  { %974 = vmatprep.subr.bf16.mxu0 %v1083_v35 }
  0x21   :  { %967 = vmatpush3.bf16.msra.mxu1 %v1082_v34 }
  0x22   :  { %671 = vmatmul.mubr.bf16.vlgmr.msra.gmra.mrb[0].mxu0 %v849_v32  ;;  %996 = vmatprep.subr.bf16.mxu1 %v1087_v40 }
  0x23   :  { %975 = vmatpush3.bf16.msra.mxu0 %v1086_v39  ;;  %750 = vmatprep.mubr.bf16.mxu0 %v854_v7 }
  0x24   :  { %711 = vmatmul.mubr.bf16.vlgmr.msra.gmra.mrb[0].mxu1 %v851_v37  ;;  %976 = vmatprep.subr.bf16.mxu0 %v1089_v42 }
  0x25   :  { %997 = vmatpush3.bf16.msra.mxu1 %v1088_v41  ;;  %790 = vmatprep.mubr.bf16.mxu1 %v856_v12 }
  0x26   :  { %998 = vmatprep.subr.bf16.mxu1 %v1091_v44 }
  0x27   :  { %977 = vmatpush3.bf16.msra.mxu0 %v1090_v43 }
  0x28   :  { %978 = vmatprep.subr.bf16.mxu0 %v1093_v46 }
  0x29   :  { %999 = vmatpush3.bf16.msra.mxu1 %v1092_v45 }
  0x2a   :  { %1000 = vmatprep.subr.bf16.mxu1 %v1095_v48 }
  0x2b   :  { %979 = vmatpush3.bf16.msra.mxu0 %v1094_v47  ;;  %v839_v47 = vld [vmem:[%s1400_s3] sm:$0xf] }
  0x2c   :  { %980 = vmatprep.subr.bf16.mxu0 %v1097_v50  ;;  %v840_v50 = vunpack.c.l.bf16 %v839_v47 }
  0x2d   :  { %1001 = vmatpush3.bf16.msra.mxu1 %v1096_v49 }
  0x2e   :  { %1002 = vmatprep.subr.bf16.mxu1 %v1099_v52 }
  0x2f   :  { %981 = vmatpush3.bf16.msra.mxu0 %v1098_v51 }
  0x30   :  { %982 = vmatprep.subr.bf16.mxu0 %v1101_v54 }
  0x31   :  { %1003 = vmatpush3.bf16.msra.mxu1 %v1100_v53 }
  0x32   :  { %1004 = vmatprep.subr.bf16.mxu1 %v1103_v56 }
  0x33   :  { %983 = vmatpush3.bf16.msra.mxu0 %v1102_v55 }
  0x34   :  { %984 = vmatprep.subr.bf16.mxu0 %v1105_v58 }
  0x35   :  { %1005 = vmatpush3.bf16.msra.mxu1 %v1104_v57 }
  0x36   :  { %1006 = vmatprep.subr.bf16.mxu1 %v1107_v60 }
  0x37   :  { %985 = vmatpush3.bf16.msra.mxu0 %v1106_v59 }
  0x38   :  { %986 = vmatprep.subr.bf16.mxu0 %v1109_v62 }
  0x39   :  { %1007 = vmatpush3.bf16.msra.mxu1 %v1108_v61 }
  0x3a   :  { %1008 = vmatprep.subr.bf16.mxu1 %v1111_v0 }
  0x3b   :  { %987 = vmatpush3.bf16.msra.mxu0 %v1110_v63 }
  0x3c   :  { %988 = vmatprep.subr.bf16.mxu0 %v1113_v2 }
  0x3d   :  { %1009 = vmatpush3.bf16.msra.mxu1 %v1112_v1 }
  0x3e   :  { %1010 = vmatprep.subr.bf16.mxu1 %v1115_v4 }
  0x3f   :  { %989 = vmatpush3.bf16.msra.mxu0 %v1114_v3 }
  0x40   :  { %1027 = vmatprep.subr.bf16.mxu0 %v1130_v9 }
  0x41   :  { %1011 = vmatpush3.bf16.msra.mxu1 %v1118_v8 }
  0x42   :  { %751 = vmatmul.mubr.bf16.vlgmr.msra.gmra.mrb[4].mxu0 %v853_v6 }
  0x43   :  { %1028 = vmatpush3.bf16.msra.mxu0 %v1121_v13  ;;  %1043 = vmatprep.mubr.msk.bf16.mxu0 %vm1131_vm0, %v1130_v9 }
  0x44   :  { %791 = vmatmul.mubr.bf16.vlgmr.msra.gmra.mrb[4].mxu1 %v855_v11  ;;  %1029 = vmatprep.subr.bf16.mxu0 %v1130_v9 }
  0x47   :  { %1030 = vmatpush3.bf16.msra.mxu0 %v1122_v14 }
  0x48   :  { %1031 = vmatprep.subr.bf16.mxu0 %v1130_v9 }
  0x4b   :  { %1032 = vmatpush3.bf16.msra.mxu0 %v1123_v15 }
  0x4c   :  { %1033 = vmatprep.subr.bf16.mxu0 %v1130_v9 }
  0x4f   :  { %1034 = vmatpush3.bf16.msra.mxu0 %v1124_v16 }
  0x50   :  { %1035 = vmatprep.subr.bf16.mxu0 %v1130_v9 }
  0x53   :  { %1036 = vmatpush3.bf16.msra.mxu0 %v1125_v17 }
  0x54   :  { %1037 = vmatprep.subr.bf16.mxu0 %v1130_v9 }
  0x57   :  { %1038 = vmatpush3.bf16.msra.mxu0 %v1126_v18 }
  0x58   :  { %1039 = vmatprep.subr.bf16.mxu0 %v1130_v9 }
  0x5b   :  { %1040 = vmatpush3.bf16.msra.mxu0 %v1127_v19 }
  0x5c   :  { %1041 = vmatprep.subr.bf16.mxu0 %v1130_v9 }
  0x5f   :  { %1042 = vmatpush3.bf16.msra.mxu0 %v1128_v20 }
  0x62   :  { %1044 = vmatmul.mubr.bf16.vlgmr.msra.gmra.mrb[8].mxu0 %v1129_v21 }
  0xf5   :  { %v946_v22 = vpop.f32.mrb[0].mxu0 }
  0xf6   :  { %v947_v24 = vpop.f32.mrb[1].mxu0 }
  0xf7   :  { %v948_v25 = vadd.f32 %v947_v24, %v946_v22  ;;  %v949_v26 = vpop.f32.mrb[2].mxu0  ;;  %v968_v27 = vpop.f32.mrb[0].mxu1 }
  0xf8   :  { %v950_v28 = vpop.f32.mrb[3].mxu0  ;;  %v969_v29 = vpop.f32.mrb[1].mxu1 }
  0xf9   :  { %v673_v30 = vadd.f32 %v948_v25, %v848_v23  ;;  %v970_v31 = vadd.f32 %v969_v29, %v968_v27  ;;  %v971_v32 = vpop.f32.mrb[2].mxu1 }
  0xfa   :  { %v972_v33 = vpop.f32.mrb[3].mxu1 }
  0xfb   :  { %v713_v34 = vadd.f32 %v970_v31, %v673_v30 }
 0x115   :  { %v990_v35 = vpop.f32.mrb[4].mxu0 }
 0x116   :  { %v991_v36 = vpop.f32.mrb[5].mxu0 }
 0x117   :  { %v992_v37 = vadd.f32 %v991_v36, %v990_v35  ;;  %v993_v38 = vpop.f32.mrb[6].mxu0  ;;  %v1012_v39 = vpop.f32.mrb[4].mxu1 }
 0x118   :  { %v994_v40 = vpop.f32.mrb[7].mxu0  ;;  %v1013_v41 = vpop.f32.mrb[5].mxu1 }
 0x119   :  { %v753_v42 = vadd.f32 %v992_v37, %v713_v34  ;;  %v1014_v43 = vadd.f32 %v1013_v41, %v1012_v39  ;;  %v1015_v44 = vpop.f32.mrb[6].mxu1 }
 0x11a   :  { %v1016_v45 = vpop.f32.mrb[7].mxu1 }
 0x11b   :  { %v793_v46 = vadd.f32 %v1014_v43, %v753_v42 }
 0x135   :  { %v832_v48 = vpop.f32.mrb[8].mxu0 }
 0x136   :  { %v833_v49 = vadd.f32 %v832_v48, %v793_v46  ;;  %v1045_v51 = vpop.f32.mrb[9].mxu0 }
 0x137   :  { %v835_v52 = vpop.f32.mrb[10].mxu0 }
 0x138   :  { %v838_v53 = vmax.f32 %v833_v49, 0.0  ;;  %v1046_v54 = vpop.f32.mrb[11].mxu0 }
 0x13a   :  { %v841_v55 = vadd.f32 %v840_v50, %v838_v53 }
 0x13c   :  { %v842_v56 = vpack.c.bf16 %v841_v55, %v841_v55 }
 0x13e   :  { %843 = vst [vmem:[%s1401_s4] sm:$0xf] %v842_v56 }

// kernel: _lambda_.56
= control target key start
LH: loop header
LB: loop body
LE: loop exit
PB: predicated region body
PF: predicated region fallthrough
CT: control target
= control target key end

     0   :  { %v310_v36 = vlaneseq  ;;  %v3071_v37 = vmov 1966171168   ;;  %s4058_s1 = inlined_call_operand.vmem [shape: bf16[2304,256], index: 1, kind: input, shape index: {}]   ;;  %s4059_s0 = inlined_call_operand.vmem [shape: bf16[2,2304], index: 0, kind: input, shape index: {}]   ;;  %s4060_s3 = inlined_call_operand.vmem [shape: bf16[2,256], index: 3, kind: input, shape index: {}]   ;;  %s4061_s2 = inlined_call_operand.vmem [shape: f32[1,256], index: 2, kind: input, shape index: {}]   ;;  %s4062_s4 = inlined_call_operand.vmem [shape: bf16[2,256], index: 4, kind: output, shape index: {}]  }
   0x1   :  { %v2637_v0 = vld [vmem:[%s4058_s1 + $0x4] ss:$8 sps:$4 sm:$0xff]   ;;  %v2641_v2 = vld [vmem:[%s4058_s1] ss:$8 sps:$4 sm:$0xff]   ;;  %v2643_v4 = vld [vmem:[%s4058_s1 + $0x14] ss:$8 sps:$4 sm:$0xff]   ;;  %v325_v38 = vunpack.c.l.s4 %v3071_v37 }
   0x2   :  { %v2639_v1 = vld [vmem:[%s4058_s1 + $0x404] ss:$8 sps:$4 sm:$0xff]   ;;  %1901 = vmatprep.subr.bf16.mxu1 %v2637_v0  ;;  %v2642_v3 = vld [vmem:[%s4058_s1 + $0x400] ss:$8 sps:$4 sm:$0xff]   ;;  %v2645_v5 = vld [vmem:[%s4058_s1 + $0x414] ss:$8 sps:$4 sm:$0xff]  }
   0x3   :  { %2065 = vmatprep.subr.bf16.mxu0 %v2639_v1  ;;  %1902 = vmatpush1.bf16.msra.mxu1 %v2641_v2  ;;  %v2647_v6 = vld [vmem:[%s4058_s1 + $0x10] ss:$8 sps:$4 sm:$0xff]   ;;  %v2649_v8 = vld [vmem:[%s4058_s1 + $0x24] ss:$8 sps:$4 sm:$0xff]   ;;  %v2653_v10 = vld [vmem:[%s4058_s1 + $0x20] ss:$8 sps:$4 sm:$0xff]   ;;  %v326_v43 = vunpack.c.0.s8 %v325_v38 }
   0x4   :  { %2066 = vmatpush1.bf16.msra.mxu0 %v2642_v3  ;;  %1903 = vmatprep.subr.bf16.mxu1 %v2643_v4  ;;  %v2648_v7 = vld [vmem:[%s4058_s1 + $0x410] ss:$8 sps:$4 sm:$0xff]   ;;  %v2651_v9 = vld [vmem:[%s4058_s1 + $0x424] ss:$8 sps:$4 sm:$0xff]   ;;  %v2654_v11 = vld [vmem:[%s4058_s1 + $0x420] ss:$8 sps:$4 sm:$0xff]  }
   0x5   :  { %2067 = vmatprep.subr.bf16.mxu0 %v2645_v5  ;;  %v2655_v12 = vld [vmem:[%s4058_s1 + $0x34] ss:$8 sps:$4 sm:$0xff]   ;;  %v2659_v14 = vld [vmem:[%s4058_s1 + $0x30] ss:$8 sps:$4 sm:$0xff]   ;;  %v2661_v16 = vld [vmem:[%s4058_s1 + $0x44] ss:$8 sps:$4 sm:$0xff]  }
   0x6   :  { %v2657_v13 = vld [vmem:[%s4058_s1 + $0x434] ss:$8 sps:$4 sm:$0xff]   ;;  %v2660_v15 = vld [vmem:[%s4058_s1 + $0x430] ss:$8 sps:$4 sm:$0xff]   ;;  %v2663_v17 = vld [vmem:[%s4058_s1 + $0x444] ss:$8 sps:$4 sm:$0xff]  }
   0x7   :  { %1904 = vmatpush1.bf16.msra.mxu1 %v2647_v6  ;;  %v2665_v18 = vld [vmem:[%s4058_s1 + $0x40] ss:$8 sps:$4 sm:$0xff]   ;;  %v2667_v20 = vld [vmem:[%s4058_s1 + $0x54] ss:$8 sps:$4 sm:$0xff]   ;;  %v2671_v22 = vld [vmem:[%s4058_s1 + $0x50] ss:$8 sps:$4 sm:$0xff]  }
   0x8   :  { %2068 = vmatpush1.bf16.msra.mxu0 %v2648_v7  ;;  %1905 = vmatprep.subr.bf16.mxu1 %v2649_v8  ;;  %v2666_v19 = vld [vmem:[%s4058_s1 + $0x440] ss:$8 sps:$4 sm:$0xff]   ;;  %v2669_v21 = vld [vmem:[%s4058_s1 + $0x454] ss:$8 sps:$4 sm:$0xff]   ;;  %v2672_v23 = vld [vmem:[%s4058_s1 + $0x450] ss:$8 sps:$4 sm:$0xff]  }
   0x9   :  { %2069 = vmatprep.subr.bf16.mxu0 %v2651_v9  ;;  %v2673_v24 = vld [vmem:[%s4058_s1 + $0x64] ss:$8 sps:$4 sm:$0xff]   ;;  %v2677_v26 = vld [vmem:[%s4058_s1 + $0x60] ss:$8 sps:$4 sm:$0xff]   ;;  %v2679_v28 = vld [vmem:[%s4058_s1 + $0x74] ss:$8 sps:$4 sm:$0xff]  }
   0xa   :  { %v2675_v25 = vld [vmem:[%s4058_s1 + $0x464] ss:$8 sps:$4 sm:$0xff]   ;;  %v2678_v27 = vld [vmem:[%s4058_s1 + $0x460] ss:$8 sps:$4 sm:$0xff]   ;;  %v2681_v29 = vld [vmem:[%s4058_s1 + $0x474] ss:$8 sps:$4 sm:$0xff]  }
   0xb   :  { %1906 = vmatpush1.bf16.msra.mxu1 %v2653_v10  ;;  %v2683_v30 = vld [vmem:[%s4058_s1 + $0x70] ss:$8 sps:$4 sm:$0xff]   ;;  %v2685_v32 = vld [vmem:[%s4058_s1 + $0x84] ss:$8 sps:$4 sm:$0xff]   ;;  %v2689_v34 = vld [vmem:[%s4058_s1 + $0x80] ss:$8 sps:$4 sm:$0xff]  }
   0xc   :  { %2070 = vmatpush1.bf16.msra.mxu0 %v2654_v11  ;;  %1907 = vmatprep.subr.bf16.mxu1 %v2655_v12  ;;  %v2684_v31 = vld [vmem:[%s4058_s1 + $0x470] ss:$8 sps:$4 sm:$0xff]   ;;  %v2687_v33 = vld [vmem:[%s4058_s1 + $0x484] ss:$8 sps:$4 sm:$0xff]   ;;  %v2690_v35 = vld [vmem:[%s4058_s1 + $0x480] ss:$8 sps:$4 sm:$0xff]  }
   0xd   :  { %2071 = vmatprep.subr.bf16.mxu0 %v2657_v13  ;;  %v2691_v39 = vld [vmem:[%s4058_s1 + $0x94] ss:$8 sps:$4 sm:$0xff]   ;;  %v2695_v41 = vld [vmem:[%s4058_s1 + $0x90] ss:$8 sps:$4 sm:$0xff]   ;;  %v3215_v42 = vshrl.u32 %v310_v36, 7  ;;  %v3244_v52 = vld [vmem:[%s4059_s0] sm:$0xff] }
   0xe   :  { %v2693_v40 = vld [vmem:[%s4058_s1 + $0x494] ss:$8 sps:$4 sm:$0xff]   ;;  %v2696_v44 = vld [vmem:[%s4058_s1 + $0x490] ss:$8 sps:$4 sm:$0xff]   ;;  %v2697_v45 = vld [vmem:[%s4058_s1 + $0xa4] ss:$8 sps:$4 sm:$0xff]  }
   0xf   :  { %1908 = vmatpush1.bf16.msra.mxu1 %v2659_v14  ;;  %v2699_v46 = vld [vmem:[%s4058_s1 + $0x4a4] ss:$8 sps:$4 sm:$0xff]   ;;  %v2701_v47 = vld [vmem:[%s4058_s1 + $0xa0] ss:$8 sps:$4 sm:$0xff]   ;;  %v3233_v49 = vsub.s32 %v326_v43, %v3215_v42  ;;  %v2703_v50 = vld [vmem:[%s4058_s1 + $0xb4] ss:$8 sps:$4 sm:$0xff]  }
  0x10   :  { %2072 = vmatpush1.bf16.msra.mxu0 %v2660_v15  ;;  %1909 = vmatprep.subr.bf16.mxu1 %v2661_v16  ;;  %v2702_v48 = vld [vmem:[%s4058_s1 + $0x4a0] ss:$8 sps:$4 sm:$0xff]   ;;  %v2705_v51 = vld [vmem:[%s4058_s1 + $0x4b4] ss:$8 sps:$4 sm:$0xff]   ;;  %v2707_v53 = vld [vmem:[%s4058_s1 + $0xb0] ss:$8 sps:$4 sm:$0xff]  }
  0x11   :  { %2073 = vmatprep.subr.bf16.mxu0 %v2663_v17  ;;  %v330_v54 = vrot.slane %v3244_v52, %v3233_v49  ;;  %v2708_v55 = vld [vmem:[%s4058_s1 + $0x4b0] ss:$8 sps:$4 sm:$0xff]   ;;  %v3257_v56 = vld [vmem:[%s4059_s0 + $0x8] sm:$0xff]  ;;  %v2715_v1 = vld [vmem:[%s4058_s1 + $0xd4] ss:$8 sps:$4 sm:$0xff]  }
  0x12   :  { %v2709_v57 = vld [vmem:[%s4058_s1 + $0xc4] ss:$8 sps:$4 sm:$0xff]   ;;  %v379_v60 = vrot.slane %v3257_v56, %v3233_v49  ;;  %v2713_v63 = vld [vmem:[%s4058_s1 + $0xc0] ss:$8 sps:$4 sm:$0xff]   ;;  %v2717_v2 = vld [vmem:[%s4058_s1 + $0x4d4] ss:$8 sps:$4 sm:$0xff]  }
  0x13   :  { %1910 = vmatpush1.bf16.msra.mxu1 %v2665_v18  ;;  %v2711_v58 = vld [vmem:[%s4058_s1 + $0x4c4] ss:$8 sps:$4 sm:$0xff]   ;;  %v338_v59 = vcombine.high %v330_v54, %v330_v54  ;;  %v2714_v0 = vld [vmem:[%s4058_s1 + $0x4c0] ss:$8 sps:$4 sm:$0xff]   ;;  %v2719_v4 = vld [vmem:[%s4058_s1 + $0xd0] ss:$8 sps:$4 sm:$0xff]   ;;  %v3318_v16 = vrot.slane %v330_v54, %v3233_v49 }
  0x14   :  { %2074 = vmatpush1.bf16.msra.mxu0 %v2666_v19  ;;  %1911 = vmatprep.subr.bf16.mxu1 %v2667_v20  ;;  %v387_v62 = vcombine.high %v379_v60, %v379_v60  ;;  %v2720_v5 = vld [vmem:[%s4058_s1 + $0x4d0] ss:$8 sps:$4 sm:$0xff]   ;;  %v2721_v6 = vld [vmem:[%s4058_s1 + $0xe4] ss:$8 sps:$4 sm:$0xff]   ;;  %v2725_v8 = vld [vmem:[%s4058_s1 + $0xe0] ss:$8 sps:$4 sm:$0xff]   ;;  %v3321_v17 = vrot.slane %v379_v60, %v3233_v49 }
  0x15   :  { %2075 = vmatprep.subr.bf16.mxu0 %v2669_v21  ;;  %v360_v61 = vrot.slane %v338_v59, %v3233_v49  ;;  %v2723_v7 = vld [vmem:[%s4058_s1 + $0x4e4] ss:$8 sps:$4 sm:$0xff]   ;;  %v2726_v9 = vld [vmem:[%s4058_s1 + $0x4e0] ss:$8 sps:$4 sm:$0xff]   ;;  %v2727_v10 = vld [vmem:[%s4058_s1 + $0xf4] ss:$8 sps:$4 sm:$0xff]  }
  0x16   :  { %v409_v3 = vrot.slane %v387_v62, %v3233_v49  ;;  %v2729_v11 = vld [vmem:[%s4058_s1 + $0x4f4] ss:$8 sps:$4 sm:$0xff]   ;;  %v2731_v12 = vld [vmem:[%s4058_s1 + $0xf0] ss:$8 sps:$4 sm:$0xff]   ;;  %v2736_v14 = vld [vmem:[%s4058_s1 + $0x104] ss:$8 sps:$4 sm:$0xff]  }
  0x17   :  { %1912 = vmatpush1.bf16.msra.mxu1 %v2671_v22  ;;  %1933 = vmatprep.mubr.bf16.mxu1 %v360_v61  ;;  %v2732_v13 = vld [vmem:[%s4058_s1 + $0x4f0] ss:$8 sps:$4 sm:$0xff]   ;;  %v2740_v15 = vld [vmem:[%s4058_s1 + $0x504] ss:$8 sps:$4 sm:$0xff]   ;;  %v2734_v18 = vld [vmem:[%s4058_s1 + $0x100] ss:$8 sps:$4 sm:$0xff]   ;;  %v370_v22 = vcombine.high %v360_v61, %v360_v61 }
  0x18   :  { %2076 = vmatpush1.bf16.msra.mxu0 %v2672_v23  ;;  %1913 = vmatprep.subr.bf16.mxu1 %v2673_v24  ;;  %v2738_v19 = vld [vmem:[%s4058_s1 + $0x500] ss:$8 sps:$4 sm:$0xff]   ;;  %v2743_v20 = vld [vmem:[%s4058_s1 + $0x114] ss:$8 sps:$4 sm:$0xff]   ;;  %v419_v23 = vcombine.high %v409_v3, %v409_v3  ;;  %v2741_v24 = vld [vmem:[%s4058_s1 + $0x110] ss:$8 sps:$4 sm:$0xff]  }
  0x19   :  { %2077 = vmatprep.subr.bf16.mxu0 %v2675_v25  ;;  %2097 = vmatprep.mubr.bf16.mxu0 %v409_v3  ;;  %v2746_v21 = vld [vmem:[%s4058_s1 + $0x514] ss:$8 sps:$4 sm:$0xff]   ;;  %v2744_v25 = vld [vmem:[%s4058_s1 + $0x510] ss:$8 sps:$4 sm:$0xff]   ;;  %v2759_v36 = vld [vmem:[%s4058_s1 + $0x140] ss:$8 sps:$4 sm:$0xff]  }
  0x1a   :  { %v2762_v37 = vld [vmem:[%s4058_s1 + $0x540] ss:$8 sps:$4 sm:$0xff]   ;;  %v2767_v38 = vld [vmem:[%s4058_s1 + $0x154] ss:$8 sps:$4 sm:$0xff]   ;;  %v2773_v43 = vld [vmem:[%s4058_s1 + $0x164] ss:$8 sps:$4 sm:$0xff]  }
  0x1b   :  { %1914 = vmatpush1.bf16.msra.mxu1 %v2677_v26  ;;  %v2749_v26 = vld [vmem:[%s4058_s1 + $0x124] ss:$8 sps:$4 sm:$0xff]   ;;  %v2794_v59 = vld [vmem:[%s4058_s1 + $0x594] ss:$8 sps:$4 sm:$0xff]   ;;  %v2789_v60 = vld [vmem:[%s4058_s1 + $0x190] ss:$8 sps:$4 sm:$0xff]  }
  0x1c   :  { %2078 = vmatpush1.bf16.msra.mxu0 %v2678_v27  ;;  %1915 = vmatprep.subr.bf16.mxu1 %v2679_v28  ;;  %v2752_v27 = vld [vmem:[%s4058_s1 + $0x524] ss:$8 sps:$4 sm:$0xff]   ;;  %v2747_v28 = vld [vmem:[%s4058_s1 + $0x120] ss:$8 sps:$4 sm:$0xff]   ;;  %v2792_v61 = vld [vmem:[%s4058_s1 + $0x590] ss:$8 sps:$4 sm:$0xff]  }
  0x1d   :  { %2079 = vmatprep.subr.bf16.mxu0 %v2681_v29  ;;  %v2750_v29 = vld [vmem:[%s4058_s1 + $0x520] ss:$8 sps:$4 sm:$0xff]   ;;  %v2788_v54 = vld [vmem:[%s4058_s1 + $0x584] ss:$8 sps:$4 sm:$0xff]   ;;  %v2806_v3 = vld [vmem:[%s4058_s1 + $0x5b4] ss:$8 sps:$4 sm:$0xff]  }
  0x1e   :  { %v2797_v62 = vld [vmem:[%s4058_s1 + $0x1a4] ss:$8 sps:$4 sm:$0xff]  }
  0x1f   :  { %1916 = vmatpush1.bf16.msra.mxu1 %v2683_v30  ;;  %v2755_v30 = vld [vmem:[%s4058_s1 + $0x134] ss:$8 sps:$4 sm:$0xff]  }
  0x20   :  { %2080 = vmatpush1.bf16.msra.mxu0 %v2684_v31  ;;  %1917 = vmatprep.subr.bf16.mxu1 %v2685_v32  ;;  %v2758_v31 = vld [vmem:[%s4058_s1 + $0x534] ss:$8 sps:$4 sm:$0xff]   ;;  %v2753_v32 = vld [vmem:[%s4058_s1 + $0x130] ss:$8 sps:$4 sm:$0xff]  }
  0x21   :  { %2081 = vmatprep.subr.bf16.mxu0 %v2687_v33  ;;  %v2756_v33 = vld [vmem:[%s4058_s1 + $0x530] ss:$8 sps:$4 sm:$0xff]  }
  0x23   :  { %1918 = vmatpush1.bf16.msra.mxu1 %v2689_v34  ;;  %v2761_v34 = vld [vmem:[%s4058_s1 + $0x144] ss:$8 sps:$4 sm:$0xff]  }
  0x24   :  { %2082 = vmatpush1.bf16.msra.mxu0 %v2690_v35  ;;  %1919 = vmatprep.subr.bf16.mxu1 %v2691_v39  ;;  %v2764_v35 = vld [vmem:[%s4058_s1 + $0x544] ss:$8 sps:$4 sm:$0xff]   ;;  %v2770_v39 = vld [vmem:[%s4058_s1 + $0x554] ss:$8 sps:$4 sm:$0xff]  }
  0x25   :  { %2083 = vmatprep.subr.bf16.mxu0 %v2693_v40  ;;  %v2765_v40 = vld [vmem:[%s4058_s1 + $0x150] ss:$8 sps:$4 sm:$0xff]  }
  0x27   :  { %1920 = vmatpush1.bf16.msra.mxu1 %v2695_v41  ;;  %v2768_v41 = vld [vmem:[%s4058_s1 + $0x550] ss:$8 sps:$4 sm:$0xff]  }
  0x28   :  { %2084 = vmatpush1.bf16.msra.mxu0 %v2696_v44  ;;  %1921 = vmatprep.subr.bf16.mxu1 %v2697_v45  ;;  %v2776_v44 = vld [vmem:[%s4058_s1 + $0x564] ss:$8 sps:$4 sm:$0xff]   ;;  %v2771_v45 = vld [vmem:[%s4058_s1 + $0x160] ss:$8 sps:$4 sm:$0xff]  }
  0x29   :  { %2085 = vmatprep.subr.bf16.mxu0 %v2699_v46  ;;  %v2774_v46 = vld [vmem:[%s4058_s1 + $0x560] ss:$8 sps:$4 sm:$0xff]  }
  0x2b   :  { %1922 = vmatpush1.bf16.msra.mxu1 %v2701_v47  ;;  %v2779_v47 = vld [vmem:[%s4058_s1 + $0x174] ss:$8 sps:$4 sm:$0xff]  }
  0x2c   :  { %2086 = vmatpush1.bf16.msra.mxu0 %v2702_v48  ;;  %1923 = vmatprep.subr.bf16.mxu1 %v2703_v50  ;;  %v2782_v48 = vld [vmem:[%s4058_s1 + $0x574] ss:$8 sps:$4 sm:$0xff]   ;;  %v2777_v50 = vld [vmem:[%s4058_s1 + $0x170] ss:$8 sps:$4 sm:$0xff]  }
  0x2d   :  { %2087 = vmatprep.subr.bf16.mxu0 %v2705_v51  ;;  %v2780_v51 = vld [vmem:[%s4058_s1 + $0x570] ss:$8 sps:$4 sm:$0xff]  }
  0x2f   :  { %1924 = vmatpush1.bf16.msra.mxu1 %v2707_v53  ;;  %v2785_v53 = vld [vmem:[%s4058_s1 + $0x184] ss:$8 sps:$4 sm:$0xff]  }
  0x30   :  { %2088 = vmatpush1.bf16.msra.mxu0 %v2708_v55  ;;  %1925 = vmatprep.subr.bf16.mxu1 %v2709_v57  ;;  %v2783_v55 = vld [vmem:[%s4058_s1 + $0x180] ss:$8 sps:$4 sm:$0xff]  }
  0x31   :  { %2089 = vmatprep.subr.bf16.mxu0 %v2711_v58  ;;  %v2786_v57 = vld [vmem:[%s4058_s1 + $0x580] ss:$8 sps:$4 sm:$0xff]   ;;  %v2791_v58 = vld [vmem:[%s4058_s1 + $0x194] ss:$8 sps:$4 sm:$0xff]  }
  0x33   :  { %1926 = vmatpush1.bf16.msra.mxu1 %v2713_v63  ;;  %v2800_v63 = vld [vmem:[%s4058_s1 + $0x5a4] ss:$8 sps:$4 sm:$0xff]  }
  0x34   :  { %2090 = vmatpush1.bf16.msra.mxu0 %v2714_v0  ;;  %1927 = vmatprep.subr.bf16.mxu1 %v2715_v1  ;;  %v2795_v0 = vld [vmem:[%s4058_s1 + $0x1a0] ss:$8 sps:$4 sm:$0xff]  }
  0x35   :  { %2091 = vmatprep.subr.bf16.mxu0 %v2717_v2  ;;  %v2798_v1 = vld [vmem:[%s4058_s1 + $0x5a0] ss:$8 sps:$4 sm:$0xff]   ;;  %v2803_v2 = vld [vmem:[%s4058_s1 + $0x1b4] ss:$8 sps:$4 sm:$0xff]  }
  0x37   :  { %1928 = vmatpush1.bf16.msra.mxu1 %v2719_v4  ;;  %v2801_v4 = vld [vmem:[%s4058_s1 + $0x1b0] ss:$8 sps:$4 sm:$0xff]  }
  0x38   :  { %2092 = vmatpush1.bf16.msra.mxu0 %v2720_v5  ;;  %1929 = vmatprep.subr.bf16.mxu1 %v2721_v6  ;;  %v2804_v5 = vld [vmem:[%s4058_s1 + $0x5b0] ss:$8 sps:$4 sm:$0xff]   ;;  %v2809_v6 = vld [vmem:[%s4058_s1 + $0x1c4] ss:$8 sps:$4 sm:$0xff]  }
  0x39   :  { %2093 = vmatprep.subr.bf16.mxu0 %v2723_v7  ;;  %v2812_v7 = vld [vmem:[%s4058_s1 + $0x5c4] ss:$8 sps:$4 sm:$0xff]  }
  0x3b   :  { %1930 = vmatpush1.bf16.msra.mxu1 %v2725_v8  ;;  %v2807_v8 = vld [vmem:[%s4058_s1 + $0x1c0] ss:$8 sps:$4 sm:$0xff]  }
  0x3c   :  { %2094 = vmatpush1.bf16.msra.mxu0 %v2726_v9  ;;  %1931 = vmatprep.subr.bf16.mxu1 %v2727_v10  ;;  %v2810_v9 = vld [vmem:[%s4058_s1 + $0x5c0] ss:$8 sps:$4 sm:$0xff]   ;;  %v2815_v10 = vld [vmem:[%s4058_s1 + $0x1d4] ss:$8 sps:$4 sm:$0xff]  }
  0x3d   :  { %2095 = vmatprep.subr.bf16.mxu0 %v2729_v11  ;;  %v2818_v11 = vld [vmem:[%s4058_s1 + $0x5d4] ss:$8 sps:$4 sm:$0xff]  }
  0x3f   :  { %1932 = vmatpush1.bf16.msra.mxu1 %v2731_v12  ;;  %v2813_v12 = vld [vmem:[%s4058_s1 + $0x1d0] ss:$8 sps:$4 sm:$0xff]  }
  0x40   :  { %2096 = vmatpush1.bf16.msra.mxu0 %v2732_v13  ;;  %1942 = vmatprep.subr.bf16.mxu1 %v2736_v14  ;;  %v2816_v13 = vld [vmem:[%s4058_s1 + $0x5d0] ss:$8 sps:$4 sm:$0xff]   ;;  %v2821_v14 = vld [vmem:[%s4058_s1 + $0x1e4] ss:$8 sps:$4 sm:$0xff]  }
  0x41   :  { %2106 = vmatprep.subr.bf16.mxu0 %v2740_v15  ;;  %v2824_v15 = vld [vmem:[%s4058_s1 + $0x5e4] ss:$8 sps:$4 sm:$0xff]  }
  0x42   :  { %1934 = vmatmul.mubr.bf16.vlgmr.msra.gmra.mrb[0].mxu1 %v3318_v16 }
  0x43   :  { %2098 = vmatmul.mubr.bf16.vlgmr.msra.gmra.mrb[0].mxu0 %v3321_v17  ;;  %1943 = vmatpush1.bf16.msra.mxu1 %v2734_v18  ;;  %v323_v18 = vcombine.high %v3244_v52, %v3244_v52  ;;  %v2830_v52 = vld [vmem:[%s4058_s1 + $0x5f4] ss:$8 sps:$4 sm:$0xff]  }
  0x44   :  { %2107 = vmatpush1.bf16.msra.mxu0 %v2738_v19  ;;  %1944 = vmatprep.subr.bf16.mxu1 %v2743_v20  ;;  %v372_v19 = vcombine.high %v3257_v56, %v3257_v56  ;;  %v2819_v20 = vld [vmem:[%s4058_s1 + $0x1e0] ss:$8 sps:$4 sm:$0xff]  }
  0x45   :  { %2108 = vmatprep.subr.bf16.mxu0 %v2746_v21  ;;  %1974 = vmatprep.mubr.bf16.mxu1 %v370_v22  ;;  %v2822_v21 = vld [vmem:[%s4058_s1 + $0x5e0] ss:$8 sps:$4 sm:$0xff]   ;;  %v2827_v22 = vld [vmem:[%s4058_s1 + $0x1f4] ss:$8 sps:$4 sm:$0xff]   ;;  %v3510_v56 = vrot.slane %v323_v18, %v3233_v49  ;;  %v2897_v18 = vld [vmem:[%s4058_s1 + $0x2b0] ss:$8 sps:$4 sm:$0xff]  }
  0x46   :  { %2138 = vmatprep.mubr.bf16.mxu0 %v419_v23  ;;  %v3513_v23 = vrot.slane %v372_v19, %v3233_v49  ;;  %v2900_v19 = vld [vmem:[%s4058_s1 + $0x6b0] ss:$8 sps:$4 sm:$0xff]  }
  0x47   :  { %1945 = vmatpush1.bf16.msra.mxu1 %v2741_v24  ;;  %v2825_v24 = vld [vmem:[%s4058_s1 + $0x1f0] ss:$8 sps:$4 sm:$0xff]  }
  0x48   :  { %2109 = vmatpush1.bf16.msra.mxu0 %v2744_v25  ;;  %1946 = vmatprep.subr.bf16.mxu1 %v2749_v26  ;;  %v2828_v25 = vld [vmem:[%s4058_s1 + $0x5f0] ss:$8 sps:$4 sm:$0xff]   ;;  %v2833_v26 = vld [vmem:[%s4058_s1 + $0x204] ss:$8 sps:$4 sm:$0xff]  }
  0x49   :  { %2110 = vmatprep.subr.bf16.mxu0 %v2752_v27  ;;  %v2836_v27 = vld [vmem:[%s4058_s1 + $0x604] ss:$8 sps:$4 sm:$0xff]  }
  0x4b   :  { %1947 = vmatpush1.bf16.msra.mxu1 %v2747_v28  ;;  %v339_v28 = vcombine.high %v3510_v56, %v3510_v56 }
  0x4c   :  { %2111 = vmatpush1.bf16.msra.mxu0 %v2750_v29  ;;  %1948 = vmatprep.subr.bf16.mxu1 %v2755_v30  ;;  %v388_v29 = vcombine.high %v3513_v23, %v3513_v23  ;;  %v368_v30 = vcombine.high %v3318_v16, %v3318_v16  ;;  %v2842_v16 = vld [vmem:[%s4058_s1 + $0x614] ss:$8 sps:$4 sm:$0xff]  }
  0x4d   :  { %2112 = vmatprep.subr.bf16.mxu0 %v2758_v31  ;;  %v417_v31 = vcombine.high %v3321_v17, %v3321_v17  ;;  %v3548_v17 = vrot.slane %v339_v28, %v3233_v49  ;;  %v2917_v28 = vld [vmem:[%s4058_s1 + $0x2e4] ss:$8 sps:$4 sm:$0xff]  }
  0x4f   :  { %1949 = vmatpush1.bf16.msra.mxu1 %v2753_v32  ;;  %v2831_v32 = vld [vmem:[%s4058_s1 + $0x200] ss:$8 sps:$4 sm:$0xff]  }
  0x50   :  { %2113 = vmatpush1.bf16.msra.mxu0 %v2756_v33  ;;  %1950 = vmatprep.subr.bf16.mxu1 %v2761_v34  ;;  %v2834_v33 = vld [vmem:[%s4058_s1 + $0x600] ss:$8 sps:$4 sm:$0xff]   ;;  %v2839_v34 = vld [vmem:[%s4058_s1 + $0x214] ss:$8 sps:$4 sm:$0xff]  }
  0x51   :  { %2114 = vmatprep.subr.bf16.mxu0 %v2764_v35  ;;  %v3551_v35 = vrot.slane %v388_v29, %v3233_v49  ;;  %v2920_v29 = vld [vmem:[%s4058_s1 + $0x6e4] ss:$8 sps:$4 sm:$0xff]  }
  0x53   :  { %1951 = vmatpush1.bf16.msra.mxu1 %v2759_v36  ;;  %v2837_v36 = vld [vmem:[%s4058_s1 + $0x210] ss:$8 sps:$4 sm:$0xff]  }
  0x54   :  { %2115 = vmatpush1.bf16.msra.mxu0 %v2762_v37  ;;  %1952 = vmatprep.subr.bf16.mxu1 %v2767_v38  ;;  %v2840_v37 = vld [vmem:[%s4058_s1 + $0x610] ss:$8 sps:$4 sm:$0xff]   ;;  %v2845_v38 = vld [vmem:[%s4058_s1 + $0x224] ss:$8 sps:$4 sm:$0xff]  }
  0x55   :  { %2116 = vmatprep.subr.bf16.mxu0 %v2770_v39  ;;  %v2848_v39 = vld [vmem:[%s4058_s1 + $0x624] ss:$8 sps:$4 sm:$0xff]  }
  0x57   :  { %1953 = vmatpush1.bf16.msra.mxu1 %v2765_v40  ;;  %v2843_v40 = vld [vmem:[%s4058_s1 + $0x220] ss:$8 sps:$4 sm:$0xff]  }
  0x58   :  { %2117 = vmatpush1.bf16.msra.mxu0 %v2768_v41  ;;  %1954 = vmatprep.subr.bf16.mxu1 %v2773_v43  ;;  %v2846_v41 = vld [vmem:[%s4058_s1 + $0x620] ss:$8 sps:$4 sm:$0xff]   ;;  %v2851_v43 = vld [vmem:[%s4058_s1 + $0x234] ss:$8 sps:$4 sm:$0xff]  }
  0x59   :  { %2118 = vmatprep.subr.bf16.mxu0 %v2776_v44  ;;  %v2854_v44 = vld [vmem:[%s4058_s1 + $0x634] ss:$8 sps:$4 sm:$0xff]  }
  0x5b   :  { %1955 = vmatpush1.bf16.msra.mxu1 %v2771_v45  ;;  %v2849_v45 = vld [vmem:[%s4058_s1 + $0x230] ss:$8 sps:$4 sm:$0xff]  }
  0x5c   :  { %2119 = vmatpush1.bf16.msra.mxu0 %v2774_v46  ;;  %1956 = vmatprep.subr.bf16.mxu1 %v2779_v47  ;;  %v2852_v46 = vld [vmem:[%s4058_s1 + $0x630] ss:$8 sps:$4 sm:$0xff]   ;;  %v2857_v47 = vld [vmem:[%s4058_s1 + $0x244] ss:$8 sps:$4 sm:$0xff]  }
  0x5d   :  { %2120 = vmatprep.subr.bf16.mxu0 %v2782_v48  ;;  %v2860_v48 = vld [vmem:[%s4058_s1 + $0x644] ss:$8 sps:$4 sm:$0xff]  }
  0x5f   :  { %1957 = vmatpush1.bf16.msra.mxu1 %v2777_v50  ;;  %v2855_v50 = vld [vmem:[%s4058_s1 + $0x240] ss:$8 sps:$4 sm:$0xff]  }
  0x60   :  { %2121 = vmatpush1.bf16.msra.mxu0 %v2780_v51  ;;  %1958 = vmatprep.subr.bf16.mxu1 %v2785_v53  ;;  %v2858_v51 = vld [vmem:[%s4058_s1 + $0x640] ss:$8 sps:$4 sm:$0xff]   ;;  %v2863_v53 = vld [vmem:[%s4058_s1 + $0x254] ss:$8 sps:$4 sm:$0xff]  }
  0x61   :  { %2122 = vmatprep.subr.bf16.mxu0 %v2788_v54  ;;  %v2866_v54 = vld [vmem:[%s4058_s1 + $0x654] ss:$8 sps:$4 sm:$0xff]  }
  0x63   :  { %1959 = vmatpush1.bf16.msra.mxu1 %v2783_v55  ;;  %v2861_v55 = vld [vmem:[%s4058_s1 + $0x250] ss:$8 sps:$4 sm:$0xff]  }
  0x64   :  { %2123 = vmatpush1.bf16.msra.mxu0 %v2786_v57  ;;  %1960 = vmatprep.subr.bf16.mxu1 %v2791_v58  ;;  %v2864_v57 = vld [vmem:[%s4058_s1 + $0x650] ss:$8 sps:$4 sm:$0xff]   ;;  %v2869_v58 = vld [vmem:[%s4058_s1 + $0x264] ss:$8 sps:$4 sm:$0xff]  }
  0x65   :  { %2124 = vmatprep.subr.bf16.mxu0 %v2794_v59  ;;  %v2872_v59 = vld [vmem:[%s4058_s1 + $0x664] ss:$8 sps:$4 sm:$0xff]  }
  0x67   :  { %1961 = vmatpush1.bf16.msra.mxu1 %v2789_v60  ;;  %v2867_v60 = vld [vmem:[%s4058_s1 + $0x260] ss:$8 sps:$4 sm:$0xff]  }
  0x68   :  { %2125 = vmatpush1.bf16.msra.mxu0 %v2792_v61  ;;  %1962 = vmatprep.subr.bf16.mxu1 %v2797_v62  ;;  %v2870_v61 = vld [vmem:[%s4058_s1 + $0x660] ss:$8 sps:$4 sm:$0xff]   ;;  %v2875_v62 = vld [vmem:[%s4058_s1 + $0x274] ss:$8 sps:$4 sm:$0xff]  }
  0x69   :  { %2126 = vmatprep.subr.bf16.mxu0 %v2800_v63  ;;  %v2878_v63 = vld [vmem:[%s4058_s1 + $0x674] ss:$8 sps:$4 sm:$0xff]  }
  0x6b   :  { %1963 = vmatpush1.bf16.msra.mxu1 %v2795_v0  ;;  %v2873_v0 = vld [vmem:[%s4058_s1 + $0x270] ss:$8 sps:$4 sm:$0xff]  }
  0x6c   :  { %2127 = vmatpush1.bf16.msra.mxu0 %v2798_v1  ;;  %1964 = vmatprep.subr.bf16.mxu1 %v2803_v2  ;;  %v2876_v1 = vld [vmem:[%s4058_s1 + $0x670] ss:$8 sps:$4 sm:$0xff]   ;;  %v2881_v2 = vld [vmem:[%s4058_s1 + $0x284] ss:$8 sps:$4 sm:$0xff]  }
  0x6d   :  { %2128 = vmatprep.subr.bf16.mxu0 %v2806_v3  ;;  %v2884_v3 = vld [vmem:[%s4058_s1 + $0x684] ss:$8 sps:$4 sm:$0xff]  }
  0x6f   :  { %1965 = vmatpush1.bf16.msra.mxu1 %v2801_v4  ;;  %v2879_v4 = vld [vmem:[%s4058_s1 + $0x280] ss:$8 sps:$4 sm:$0xff]  }
  0x70   :  { %2129 = vmatpush1.bf16.msra.mxu0 %v2804_v5  ;;  %1966 = vmatprep.subr.bf16.mxu1 %v2809_v6  ;;  %v2882_v5 = vld [vmem:[%s4058_s1 + $0x680] ss:$8 sps:$4 sm:$0xff]   ;;  %v2887_v6 = vld [vmem:[%s4058_s1 + $0x294] ss:$8 sps:$4 sm:$0xff]  }
  0x71   :  { %2130 = vmatprep.subr.bf16.mxu0 %v2812_v7  ;;  %v2890_v7 = vld [vmem:[%s4058_s1 + $0x694] ss:$8 sps:$4 sm:$0xff]  }
  0x73   :  { %1967 = vmatpush1.bf16.msra.mxu1 %v2807_v8  ;;  %v2885_v8 = vld [vmem:[%s4058_s1 + $0x290] ss:$8 sps:$4 sm:$0xff]  }
  0x74   :  { %2131 = vmatpush1.bf16.msra.mxu0 %v2810_v9  ;;  %1968 = vmatprep.subr.bf16.mxu1 %v2815_v10  ;;  %v2888_v9 = vld [vmem:[%s4058_s1 + $0x690] ss:$8 sps:$4 sm:$0xff]   ;;  %v2893_v10 = vld [vmem:[%s4058_s1 + $0x2a4] ss:$8 sps:$4 sm:$0xff]  }
  0x75   :  { %2132 = vmatprep.subr.bf16.mxu0 %v2818_v11  ;;  %v2896_v11 = vld [vmem:[%s4058_s1 + $0x6a4] ss:$8 sps:$4 sm:$0xff]  }
  0x77   :  { %1969 = vmatpush1.bf16.msra.mxu1 %v2813_v12  ;;  %v2891_v12 = vld [vmem:[%s4058_s1 + $0x2a0] ss:$8 sps:$4 sm:$0xff]  }
  0x78   :  { %2133 = vmatpush1.bf16.msra.mxu0 %v2816_v13  ;;  %1970 = vmatprep.subr.bf16.mxu1 %v2821_v14  ;;  %v2894_v13 = vld [vmem:[%s4058_s1 + $0x6a0] ss:$8 sps:$4 sm:$0xff]   ;;  %v2899_v14 = vld [vmem:[%s4058_s1 + $0x2b4] ss:$8 sps:$4 sm:$0xff]  }
  0x79   :  { %2134 = vmatprep.subr.bf16.mxu0 %v2824_v15  ;;  %v2902_v15 = vld [vmem:[%s4058_s1 + $0x6b4] ss:$8 sps:$4 sm:$0xff]  }
  0x7b   :  { %1971 = vmatpush1.bf16.msra.mxu1 %v2819_v20  ;;  %v2905_v20 = vld [vmem:[%s4058_s1 + $0x2c4] ss:$8 sps:$4 sm:$0xff]  }
  0x7c   :  { %2135 = vmatpush1.bf16.msra.mxu0 %v2822_v21  ;;  %1972 = vmatprep.subr.bf16.mxu1 %v2827_v22  ;;  %v2908_v21 = vld [vmem:[%s4058_s1 + $0x6c4] ss:$8 sps:$4 sm:$0xff]   ;;  %v2903_v22 = vld [vmem:[%s4058_s1 + $0x2c0] ss:$8 sps:$4 sm:$0xff]  }
  0x7d   :  { %2136 = vmatprep.subr.bf16.mxu0 %v2830_v52  ;;  %v2906_v52 = vld [vmem:[%s4058_s1 + $0x6c0] ss:$8 sps:$4 sm:$0xff]  }
  0x7f   :  { %1973 = vmatpush1.bf16.msra.mxu1 %v2825_v24  ;;  %v2911_v24 = vld [vmem:[%s4058_s1 + $0x2d4] ss:$8 sps:$4 sm:$0xff]  }
  0x80   :  { %2137 = vmatpush1.bf16.msra.mxu0 %v2828_v25  ;;  %1983 = vmatprep.subr.bf16.mxu1 %v2833_v26  ;;  %v2914_v25 = vld [vmem:[%s4058_s1 + $0x6d4] ss:$8 sps:$4 sm:$0xff]   ;;  %v2909_v26 = vld [vmem:[%s4058_s1 + $0x2d0] ss:$8 sps:$4 sm:$0xff]  }
  0x81   :  { %2147 = vmatprep.subr.bf16.mxu0 %v2836_v27  ;;  %v2912_v27 = vld [vmem:[%s4058_s1 + $0x6d0] ss:$8 sps:$4 sm:$0xff]  }
  0x82   :  { %1975 = vmatmul.mubr.bf16.vlgmr.msra.gmra.mrb[0].mxu1 %v368_v30  ;;  %v2915_v30 = vld [vmem:[%s4058_s1 + $0x2e0] ss:$8 sps:$4 sm:$0xff]  }
  0x83   :  { %2139 = vmatmul.mubr.bf16.vlgmr.msra.gmra.mrb[0].mxu0 %v417_v31  ;;  %1984 = vmatpush1.bf16.msra.mxu1 %v2831_v32  ;;  %v2918_v31 = vld [vmem:[%s4058_s1 + $0x6e0] ss:$8 sps:$4 sm:$0xff]   ;;  %v2923_v32 = vld [vmem:[%s4058_s1 + $0x2f4] ss:$8 sps:$4 sm:$0xff]  }
  0x84   :  { %2148 = vmatpush1.bf16.msra.mxu0 %v2834_v33  ;;  %1985 = vmatprep.subr.bf16.mxu1 %v2839_v34  ;;  %v2926_v33 = vld [vmem:[%s4058_s1 + $0x6f4] ss:$8 sps:$4 sm:$0xff]   ;;  %v2921_v34 = vld [vmem:[%s4058_s1 + $0x2f0] ss:$8 sps:$4 sm:$0xff]  }
  0x85   :  { %2149 = vmatprep.subr.bf16.mxu0 %v2842_v16  ;;  %2015 = vmatprep.mubr.bf16.mxu1 %v3548_v17  ;;  %v2924_v16 = vld [vmem:[%s4058_s1 + $0x6f0] ss:$8 sps:$4 sm:$0xff]  }
  0x86   :  { %2179 = vmatprep.mubr.bf16.mxu0 %v3551_v35 }
  0x87   :  { %1986 = vmatpush1.bf16.msra.mxu1 %v2837_v36  ;;  %v2929_v36 = vld [vmem:[%s4058_s1 + $0x304] ss:$8 sps:$4 sm:$0xff]  }
  0x88   :  { %2150 = vmatpush1.bf16.msra.mxu0 %v2840_v37  ;;  %1987 = vmatprep.subr.bf16.mxu1 %v2845_v38  ;;  %v2932_v37 = vld [vmem:[%s4058_s1 + $0x704] ss:$8 sps:$4 sm:$0xff]   ;;  %v3737_v38 = vrot.slane %v3510_v56, %v3233_v49  ;;  %v2935_v56 = vld [vmem:[%s4058_s1 + $0x314] ss:$8 sps:$4 sm:$0xff]  }
  0x89   :  { %2151 = vmatprep.subr.bf16.mxu0 %v2848_v39  ;;  %v3741_v39 = vrot.slane %v3513_v23, %v3233_v49  ;;  %v2938_v23 = vld [vmem:[%s4058_s1 + $0x714] ss:$8 sps:$4 sm:$0xff]  }
  0x8b   :  { %1988 = vmatpush1.bf16.msra.mxu1 %v2843_v40  ;;  %v2927_v40 = vld [vmem:[%s4058_s1 + $0x300] ss:$8 sps:$4 sm:$0xff]  }
  0x8c   :  { %2152 = vmatpush1.bf16.msra.mxu0 %v2846_v41  ;;  %1989 = vmatprep.subr.bf16.mxu1 %v2851_v43  ;;  %v2930_v41 = vld [vmem:[%s4058_s1 + $0x700] ss:$8 sps:$4 sm:$0xff]   ;;  %v371_v43 = vcombine.high %v3548_v17, %v3548_v17  ;;  %v2941_v17 = vld [vmem:[%s4058_s1 + $0x324] ss:$8 sps:$4 sm:$0xff]  }
  0x8d   :  { %2153 = vmatprep.subr.bf16.mxu0 %v2854_v44  ;;  %v420_v44 = vcombine.high %v3551_v35, %v3551_v35  ;;  %v2944_v35 = vld [vmem:[%s4058_s1 + $0x724] ss:$8 sps:$4 sm:$0xff]  }
  0x8f   :  { %1990 = vmatpush1.bf16.msra.mxu1 %v2849_v45  ;;  %v2933_v45 = vld [vmem:[%s4058_s1 + $0x310] ss:$8 sps:$4 sm:$0xff]  }
  0x90   :  { %2154 = vmatpush1.bf16.msra.mxu0 %v2852_v46  ;;  %1991 = vmatprep.subr.bf16.mxu1 %v2857_v47  ;;  %v2936_v46 = vld [vmem:[%s4058_s1 + $0x710] ss:$8 sps:$4 sm:$0xff]   ;;  %v2939_v47 = vld [vmem:[%s4058_s1 + $0x320] ss:$8 sps:$4 sm:$0xff]  }
  0x91   :  { %2155 = vmatprep.subr.bf16.mxu0 %v2860_v48  ;;  %v2942_v48 = vld [vmem:[%s4058_s1 + $0x720] ss:$8 sps:$4 sm:$0xff]  }
  0x93   :  { %1992 = vmatpush1.bf16.msra.mxu1 %v2855_v50  ;;  %v2947_v50 = vld [vmem:[%s4058_s1 + $0x334] ss:$8 sps:$4 sm:$0xff]  }
  0x94   :  { %2156 = vmatpush1.bf16.msra.mxu0 %v2858_v51  ;;  %1993 = vmatprep.subr.bf16.mxu1 %v2863_v53  ;;  %v2950_v51 = vld [vmem:[%s4058_s1 + $0x734] ss:$8 sps:$4 sm:$0xff]   ;;  %v2945_v53 = vld [vmem:[%s4058_s1 + $0x330] ss:$8 sps:$4 sm:$0xff]  }
  0x95   :  { %2157 = vmatprep.subr.bf16.mxu0 %v2866_v54  ;;  %v2948_v54 = vld [vmem:[%s4058_s1 + $0x730] ss:$8 sps:$4 sm:$0xff]  }
  0x97   :  { %1994 = vmatpush1.bf16.msra.mxu1 %v2861_v55  ;;  %v2953_v55 = vld [vmem:[%s4058_s1 + $0x344] ss:$8 sps:$4 sm:$0xff]  }
  0x98   :  { %2158 = vmatpush1.bf16.msra.mxu0 %v2864_v57  ;;  %1995 = vmatprep.subr.bf16.mxu1 %v2869_v58  ;;  %v2956_v57 = vld [vmem:[%s4058_s1 + $0x744] ss:$8 sps:$4 sm:$0xff]   ;;  %v2951_v58 = vld [vmem:[%s4058_s1 + $0x340] ss:$8 sps:$4 sm:$0xff]  }
  0x99   :  { %2159 = vmatprep.subr.bf16.mxu0 %v2872_v59  ;;  %v2954_v59 = vld [vmem:[%s4058_s1 + $0x740] ss:$8 sps:$4 sm:$0xff]  }
  0x9b   :  { %1996 = vmatpush1.bf16.msra.mxu1 %v2867_v60  ;;  %v2959_v60 = vld [vmem:[%s4058_s1 + $0x354] ss:$8 sps:$4 sm:$0xff]  }
  0x9c   :  { %2160 = vmatpush1.bf16.msra.mxu0 %v2870_v61  ;;  %1997 = vmatprep.subr.bf16.mxu1 %v2875_v62  ;;  %v2962_v61 = vld [vmem:[%s4058_s1 + $0x754] ss:$8 sps:$4 sm:$0xff]   ;;  %v2957_v62 = vld [vmem:[%s4058_s1 + $0x350] ss:$8 sps:$4 sm:$0xff]  }
  0x9d   :  { %2161 = vmatprep.subr.bf16.mxu0 %v2878_v63  ;;  %v2960_v63 = vld [vmem:[%s4058_s1 + $0x750] ss:$8 sps:$4 sm:$0xff]  }
  0x9f   :  { %1998 = vmatpush1.bf16.msra.mxu1 %v2873_v0  ;;  %v2965_v0 = vld [vmem:[%s4058_s1 + $0x364] ss:$8 sps:$4 sm:$0xff]  }
  0xa0   :  { %2162 = vmatpush1.bf16.msra.mxu0 %v2876_v1  ;;  %1999 = vmatprep.subr.bf16.mxu1 %v2881_v2  ;;  %v2968_v1 = vld [vmem:[%s4058_s1 + $0x764] ss:$8 sps:$4 sm:$0xff]   ;;  %v2963_v2 = vld [vmem:[%s4058_s1 + $0x360] ss:$8 sps:$4 sm:$0xff]  }
  0xa1   :  { %2163 = vmatprep.subr.bf16.mxu0 %v2884_v3  ;;  %v2966_v3 = vld [vmem:[%s4058_s1 + $0x760] ss:$8 sps:$4 sm:$0xff]  }
  0xa3   :  { %2000 = vmatpush1.bf16.msra.mxu1 %v2879_v4  ;;  %v2971_v4 = vld [vmem:[%s4058_s1 + $0x374] ss:$8 sps:$4 sm:$0xff]  }
  0xa4   :  { %2164 = vmatpush1.bf16.msra.mxu0 %v2882_v5  ;;  %2001 = vmatprep.subr.bf16.mxu1 %v2887_v6  ;;  %v2974_v5 = vld [vmem:[%s4058_s1 + $0x774] ss:$8 sps:$4 sm:$0xff]   ;;  %v2969_v6 = vld [vmem:[%s4058_s1 + $0x370] ss:$8 sps:$4 sm:$0xff]  }
  0xa5   :  { %2165 = vmatprep.subr.bf16.mxu0 %v2890_v7  ;;  %v2972_v7 = vld [vmem:[%s4058_s1 + $0x770] ss:$8 sps:$4 sm:$0xff]  }
  0xa7   :  { %2002 = vmatpush1.bf16.msra.mxu1 %v2885_v8  ;;  %v2977_v8 = vld [vmem:[%s4058_s1 + $0x384] ss:$8 sps:$4 sm:$0xff]  }
  0xa8   :  { %2166 = vmatpush1.bf16.msra.mxu0 %v2888_v9  ;;  %2003 = vmatprep.subr.bf16.mxu1 %v2893_v10  ;;  %v2980_v9 = vld [vmem:[%s4058_s1 + $0x784] ss:$8 sps:$4 sm:$0xff]   ;;  %v2975_v10 = vld [vmem:[%s4058_s1 + $0x380] ss:$8 sps:$4 sm:$0xff]  }
  0xa9   :  { %2167 = vmatprep.subr.bf16.mxu0 %v2896_v11  ;;  %v2978_v11 = vld [vmem:[%s4058_s1 + $0x780] ss:$8 sps:$4 sm:$0xff]  }
  0xab   :  { %2004 = vmatpush1.bf16.msra.mxu1 %v2891_v12  ;;  %v2983_v12 = vld [vmem:[%s4058_s1 + $0x394] ss:$8 sps:$4 sm:$0xff]  }
  0xac   :  { %2168 = vmatpush1.bf16.msra.mxu0 %v2894_v13  ;;  %2005 = vmatprep.subr.bf16.mxu1 %v2899_v14  ;;  %v2986_v13 = vld [vmem:[%s4058_s1 + $0x794] ss:$8 sps:$4 sm:$0xff]   ;;  %v2981_v14 = vld [vmem:[%s4058_s1 + $0x390] ss:$8 sps:$4 sm:$0xff]  }
  0xad   :  { %2169 = vmatprep.subr.bf16.mxu0 %v2902_v15  ;;  %v2984_v15 = vld [vmem:[%s4058_s1 + $0x790] ss:$8 sps:$4 sm:$0xff]  }
  0xaf   :  { %2006 = vmatpush1.bf16.msra.mxu1 %v2897_v18  ;;  %v2989_v18 = vld [vmem:[%s4058_s1 + $0x3a4] ss:$8 sps:$4 sm:$0xff]  }
  0xb0   :  { %2170 = vmatpush1.bf16.msra.mxu0 %v2900_v19  ;;  %2007 = vmatprep.subr.bf16.mxu1 %v2905_v20  ;;  %v2992_v19 = vld [vmem:[%s4058_s1 + $0x7a4] ss:$8 sps:$4 sm:$0xff]   ;;  %v2987_v20 = vld [vmem:[%s4058_s1 + $0x3a0] ss:$8 sps:$4 sm:$0xff]  }
  0xb1   :  { %2171 = vmatprep.subr.bf16.mxu0 %v2908_v21  ;;  %v2990_v21 = vld [vmem:[%s4058_s1 + $0x7a0] ss:$8 sps:$4 sm:$0xff]  }
  0xb3   :  { %2008 = vmatpush1.bf16.msra.mxu1 %v2903_v22  ;;  %v2995_v22 = vld [vmem:[%s4058_s1 + $0x3b4] ss:$8 sps:$4 sm:$0xff]  }
  0xb4   :  { %2172 = vmatpush1.bf16.msra.mxu0 %v2906_v52  ;;  %2009 = vmatprep.subr.bf16.mxu1 %v2911_v24  ;;  %v2998_v52 = vld [vmem:[%s4058_s1 + $0x7b4] ss:$8 sps:$4 sm:$0xff]   ;;  %v2993_v24 = vld [vmem:[%s4058_s1 + $0x3b0] ss:$8 sps:$4 sm:$0xff]  }
  0xb5   :  { %2173 = vmatprep.subr.bf16.mxu0 %v2914_v25  ;;  %v2996_v25 = vld [vmem:[%s4058_s1 + $0x7b0] ss:$8 sps:$4 sm:$0xff]  }
  0xb7   :  { %2010 = vmatpush1.bf16.msra.mxu1 %v2909_v26  ;;  %v3001_v26 = vld [vmem:[%s4058_s1 + $0x3c4] ss:$8 sps:$4 sm:$0xff]  }
  0xb8   :  { %2174 = vmatpush1.bf16.msra.mxu0 %v2912_v27  ;;  %2011 = vmatprep.subr.bf16.mxu1 %v2917_v28  ;;  %v3004_v27 = vld [vmem:[%s4058_s1 + $0x7c4] ss:$8 sps:$4 sm:$0xff]   ;;  %v2999_v28 = vld [vmem:[%s4058_s1 + $0x3c0] ss:$8 sps:$4 sm:$0xff]  }
  0xb9   :  { %2175 = vmatprep.subr.bf16.mxu0 %v2920_v29  ;;  %v3002_v29 = vld [vmem:[%s4058_s1 + $0x7c0] ss:$8 sps:$4 sm:$0xff]  }
  0xbb   :  { %2012 = vmatpush1.bf16.msra.mxu1 %v2915_v30  ;;  %v3007_v30 = vld [vmem:[%s4058_s1 + $0x3d4] ss:$8 sps:$4 sm:$0xff]  }
  0xbc   :  { %2176 = vmatpush1.bf16.msra.mxu0 %v2918_v31  ;;  %2013 = vmatprep.subr.bf16.mxu1 %v2923_v32  ;;  %v3010_v31 = vld [vmem:[%s4058_s1 + $0x7d4] ss:$8 sps:$4 sm:$0xff]   ;;  %v3005_v32 = vld [vmem:[%s4058_s1 + $0x3d0] ss:$8 sps:$4 sm:$0xff]  }
  0xbd   :  { %2177 = vmatprep.subr.bf16.mxu0 %v2926_v33  ;;  %v3008_v33 = vld [vmem:[%s4058_s1 + $0x7d0] ss:$8 sps:$4 sm:$0xff]  }
  0xbf   :  { %2014 = vmatpush1.bf16.msra.mxu1 %v2921_v34  ;;  %v3013_v34 = vld [vmem:[%s4058_s1 + $0x3e4] ss:$8 sps:$4 sm:$0xff]  }
  0xc0   :  { %2178 = vmatpush1.bf16.msra.mxu0 %v2924_v16  ;;  %2024 = vmatprep.subr.bf16.mxu1 %v2929_v36  ;;  %v3016_v16 = vld [vmem:[%s4058_s1 + $0x7e4] ss:$8 sps:$4 sm:$0xff]   ;;  %v3011_v36 = vld [vmem:[%s4058_s1 + $0x3e0] ss:$8 sps:$4 sm:$0xff]  }
  0xc1   :  { %2188 = vmatprep.subr.bf16.mxu0 %v2932_v37  ;;  %v3014_v37 = vld [vmem:[%s4058_s1 + $0x7e0] ss:$8 sps:$4 sm:$0xff]  }
  0xc2   :  { %2016 = vmatmul.mubr.bf16.vlgmr.msra.gmra.mrb[0].mxu1 %v3737_v38 }
  0xc3   :  { %2180 = vmatmul.mubr.bf16.vlgmr.msra.gmra.mrb[0].mxu0 %v3741_v39  ;;  %2025 = vmatpush1.bf16.msra.mxu1 %v2927_v40  ;;  %v3019_v40 = vld [vmem:[%s4058_s1 + $0x3f4] ss:$8 sps:$4 sm:$0xff]  }
  0xc4   :  { %2189 = vmatpush1.bf16.msra.mxu0 %v2930_v41  ;;  %2026 = vmatprep.subr.bf16.mxu1 %v2935_v56  ;;  %v3022_v41 = vld [vmem:[%s4058_s1 + $0x7f4] ss:$8 sps:$4 sm:$0xff]   ;;  %v3932_v56 = vld.sshfl [vmem:[%s4059_s0 + $0x10] sm:$0x11 pattern:$0x75316420] }
  0xc5   :  { %2190 = vmatprep.subr.bf16.mxu0 %v2938_v23  ;;  %2056 = vmatprep.mubr.bf16.mxu1 %v371_v43  ;;  %v3017_v23 = vld [vmem:[%s4058_s1 + $0x3f0] ss:$8 sps:$4 sm:$0xff]  }
  0xc6   :  { %2220 = vmatprep.mubr.bf16.mxu0 %v420_v44  ;;  %v3020_v43 = vld [vmem:[%s4058_s1 + $0x7f0] ss:$8 sps:$4 sm:$0xff]   ;;  %v428_v44 = vcombine.high %v3932_v56, %v3932_v56 }
  0xc7   :  { %2027 = vmatpush1.bf16.msra.mxu1 %v2933_v45  ;;  %v3025_v45 = vld [vmem:[%s4058_s1 + $0x804] ss:$8 sps:$4 sm:$0xff]  }
  0xc8   :  { %2191 = vmatpush1.bf16.msra.mxu0 %v2936_v46  ;;  %2028 = vmatprep.subr.bf16.mxu1 %v2941_v17  ;;  %v369_v46 = vcombine.high %v3737_v38, %v3737_v38  ;;  %v418_v17 = vcombine.high %v3741_v39, %v3741_v39  ;;  %v3026_v38 = vld [vmem:[%s4058_s1 + $0x810] ss:$8 sps:$4 sm:$0xff]   ;;  %v3031_v39 = vld [vmem:[%s4058_s1 + $0x824] ss:$8 sps:$4 sm:$0xff]  }
  0xc9   :  { %2192 = vmatprep.subr.bf16.mxu0 %v2944_v35  ;;  %v3023_v35 = vld [vmem:[%s4058_s1 + $0x800] ss:$8 sps:$4 sm:$0xff]  }
  0xcb   :  { %2029 = vmatpush1.bf16.msra.mxu1 %v2939_v47  ;;  %v442_v47 = vrot.slane %v428_v44, %v3233_v49 }
  0xcc   :  { %2193 = vmatpush1.bf16.msra.mxu0 %v2942_v48  ;;  %2030 = vmatprep.subr.bf16.mxu1 %v2947_v50  ;;  %v3028_v48 = vld [vmem:[%s4058_s1 + $0x814] ss:$8 sps:$4 sm:$0xff]   ;;  %v3029_v50 = vld [vmem:[%s4058_s1 + $0x820] ss:$8 sps:$4 sm:$0xff]  }
  0xcd   :  { %2194 = vmatprep.subr.bf16.mxu0 %v2950_v51  ;;  %v3034_v51 = vld [vmem:[%s4058_s1 + $0x834] ss:$8 sps:$4 sm:$0xff]  }
  0xcf   :  { %2031 = vmatpush1.bf16.msra.mxu1 %v2945_v53  ;;  %v3032_v53 = vld [vmem:[%s4058_s1 + $0x830] ss:$8 sps:$4 sm:$0xff]  }
  0xd0   :  { %2195 = vmatpush1.bf16.msra.mxu0 %v2948_v54  ;;  %2032 = vmatprep.subr.bf16.mxu1 %v2953_v55  ;;  %v3037_v54 = vld [vmem:[%s4058_s1 + $0x844] ss:$8 sps:$4 sm:$0xff]   ;;  %v3035_v55 = vld [vmem:[%s4058_s1 + $0x840] ss:$8 sps:$4 sm:$0xff]  }
  0xd1   :  { %2196 = vmatprep.subr.bf16.mxu0 %v2956_v57  ;;  %v3040_v57 = vld [vmem:[%s4058_s1 + $0x854] ss:$8 sps:$4 sm:$0xff]  }
  0xd3   :  { %2033 = vmatpush1.bf16.msra.mxu1 %v2951_v58  ;;  %v3038_v58 = vld [vmem:[%s4058_s1 + $0x850] ss:$8 sps:$4 sm:$0xff]  }
  0xd4   :  { %2197 = vmatpush1.bf16.msra.mxu0 %v2954_v59  ;;  %2034 = vmatprep.subr.bf16.mxu1 %v2959_v60  ;;  %v3043_v59 = vld [vmem:[%s4058_s1 + $0x864] ss:$8 sps:$4 sm:$0xff]   ;;  %v3041_v60 = vld [vmem:[%s4058_s1 + $0x860] ss:$8 sps:$4 sm:$0xff]  }
  0xd5   :  { %2198 = vmatprep.subr.bf16.mxu0 %v2962_v61  ;;  %v3046_v61 = vld [vmem:[%s4058_s1 + $0x874] ss:$8 sps:$4 sm:$0xff]  }
  0xd7   :  { %2035 = vmatpush1.bf16.msra.mxu1 %v2957_v62  ;;  %v3044_v62 = vld [vmem:[%s4058_s1 + $0x870] ss:$8 sps:$4 sm:$0xff]  }
  0xd8   :  { %2199 = vmatpush1.bf16.msra.mxu0 %v2960_v63  ;;  %2036 = vmatprep.subr.bf16.mxu1 %v2965_v0  ;;  %v3049_v63 = vld [vmem:[%s4058_s1 + $0x884] ss:$8 sps:$4 sm:$0xff]   ;;  %v3047_v0 = vld [vmem:[%s4058_s1 + $0x880] ss:$8 sps:$4 sm:$0xff]  }
  0xd9   :  { %2200 = vmatprep.subr.bf16.mxu0 %v2968_v1  ;;  %v3052_v1 = vld [vmem:[%s4058_s1 + $0x894] ss:$8 sps:$4 sm:$0xff]  }
  0xdb   :  { %2037 = vmatpush1.bf16.msra.mxu1 %v2963_v2  ;;  %v3050_v2 = vld [vmem:[%s4058_s1 + $0x890] ss:$8 sps:$4 sm:$0xff]  }
  0xdc   :  { %2201 = vmatpush1.bf16.msra.mxu0 %v2966_v3  ;;  %2038 = vmatprep.subr.bf16.mxu1 %v2971_v4  ;;  %v3055_v3 = vld [vmem:[%s4058_s1 + $0x8a4] ss:$8 sps:$4 sm:$0xff]   ;;  %v3053_v4 = vld [vmem:[%s4058_s1 + $0x8a0] ss:$8 sps:$4 sm:$0xff]  }
  0xdd   :  { %2202 = vmatprep.subr.bf16.mxu0 %v2974_v5  ;;  %v3058_v5 = vld [vmem:[%s4058_s1 + $0x8b4] ss:$8 sps:$4 sm:$0xff]  }
  0xdf   :  { %2039 = vmatpush1.bf16.msra.mxu1 %v2969_v6  ;;  %v3056_v6 = vld [vmem:[%s4058_s1 + $0x8b0] ss:$8 sps:$4 sm:$0xff]  }
  0xe0   :  { %2203 = vmatpush1.bf16.msra.mxu0 %v2972_v7  ;;  %2040 = vmatprep.subr.bf16.mxu1 %v2977_v8  ;;  %v3061_v7 = vld [vmem:[%s4058_s1 + $0x8c4] ss:$8 sps:$4 sm:$0xff]   ;;  %v3059_v8 = vld [vmem:[%s4058_s1 + $0x8c0] ss:$8 sps:$4 sm:$0xff]  }
  0xe1   :  { %2204 = vmatprep.subr.bf16.mxu0 %v2980_v9  ;;  %v3064_v9 = vld [vmem:[%s4058_s1 + $0x8d4] ss:$8 sps:$4 sm:$0xff]  }
  0xe3   :  { %2041 = vmatpush1.bf16.msra.mxu1 %v2975_v10  ;;  %v3062_v10 = vld [vmem:[%s4058_s1 + $0x8d0] ss:$8 sps:$4 sm:$0xff]  }
  0xe4   :  { %2205 = vmatpush1.bf16.msra.mxu0 %v2978_v11  ;;  %2042 = vmatprep.subr.bf16.mxu1 %v2983_v12  ;;  %v3067_v11 = vld [vmem:[%s4058_s1 + $0x8e4] ss:$8 sps:$4 sm:$0xff]   ;;  %v3065_v12 = vld [vmem:[%s4058_s1 + $0x8e0] ss:$8 sps:$4 sm:$0xff]  }
  0xe5   :  { %2206 = vmatprep.subr.bf16.mxu0 %v2986_v13  ;;  %v3070_v13 = vld [vmem:[%s4058_s1 + $0x8f4] ss:$8 sps:$4 sm:$0xff]  }
  0xe7   :  { %2043 = vmatpush1.bf16.msra.mxu1 %v2981_v14  ;;  %v3068_v14 = vld [vmem:[%s4058_s1 + $0x8f0] ss:$8 sps:$4 sm:$0xff]  }
  0xe8   :  { %2207 = vmatpush1.bf16.msra.mxu0 %v2984_v15  ;;  %2044 = vmatprep.subr.bf16.mxu1 %v2989_v18  ;;  %v435_v15 = vrot.slane %v3932_v56, %v3233_v49 }
  0xe9   :  { %2208 = vmatprep.subr.bf16.mxu0 %v2992_v19 }
  0xeb   :  { %2045 = vmatpush1.bf16.msra.mxu1 %v2987_v20 }
  0xec   :  { %2209 = vmatpush1.bf16.msra.mxu0 %v2990_v21  ;;  %2046 = vmatprep.subr.bf16.mxu1 %v2995_v22  ;;  %v3072_v22 = vmov 1983009808  }
  0xed   :  { %2210 = vmatprep.subr.bf16.mxu0 %v2998_v52  ;;  %v2276_v52 = vunpack.c.l.s4 %v3072_v22 }
  0xef   :  { %2047 = vmatpush1.bf16.msra.mxu1 %v2993_v24  ;;  %v2277_v24 = vunpack.c.0.s8 %v2276_v52 }
  0xf0   :  { %2211 = vmatpush1.bf16.msra.mxu0 %v2996_v25  ;;  %2048 = vmatprep.subr.bf16.mxu1 %v3001_v26  ;;  %v312_v25 = vsub.s32 0, %v3215_v42  ;;  %v2272_v26 = vld [vmem:[%s4060_s3] sm:$0x3] }
  0xf1   :  { %2212 = vmatprep.subr.bf16.mxu0 %v3004_v27  ;;  %v308_v27 = vld [vmem:[%s4061_s2] sm:$0x3] }
  0xf3   :  { %2049 = vmatpush1.bf16.msra.mxu1 %v2999_v28  ;;  %v316_v28 = vsub.s32 1, %v3215_v42 }
  0xf4   :  { %2213 = vmatpush1.bf16.msra.mxu0 %v3002_v29  ;;  %2050 = vmatprep.subr.bf16.mxu1 %v3007_v30  ;;  %v2273_v29 = vunpack.c.l.bf16 %v2272_v26  ;;  %v2280_v30 = vsub.s32 %v2277_v24, %v3215_v42 }
  0xf5   :  { %2214 = vmatprep.subr.bf16.mxu0 %v3010_v31  ;;  %v313_v31 = vrot.slane %v308_v27, %v312_v25 }
  0xf7   :  { %2051 = vmatpush1.bf16.msra.mxu1 %v3005_v32  ;;  %v317_v32 = vrot.slane %v308_v27, %v316_v28 }
  0xf8   :  { %2215 = vmatpush1.bf16.msra.mxu0 %v3008_v33  ;;  %2052 = vmatprep.subr.bf16.mxu1 %v3013_v34  ;;  %v2281_v33 = vrot.slane %v2273_v29, %v2280_v30 }
  0xf9   :  { %2216 = vmatprep.subr.bf16.mxu0 %v3016_v16 }
  0xfa   :  { %v2282_v56 = vcombine.high %v2281_v33, %v2281_v33 }
  0xfb   :  { %2053 = vmatpush1.bf16.msra.mxu1 %v3011_v36 }
  0xfc   :  { %2217 = vmatpush1.bf16.msra.mxu0 %v3014_v37  ;;  %2054 = vmatprep.subr.bf16.mxu1 %v3019_v40 }
  0xfd   :  { %2218 = vmatprep.subr.bf16.mxu0 %v3022_v41 }
  0xff   :  { %2055 = vmatpush1.bf16.msra.mxu1 %v3017_v23 }
 0x100   :  { %2219 = vmatpush1.bf16.msra.mxu0 %v3020_v43 }
 0x101   :  { %2229 = vmatprep.subr.bf16.mxu0 %v3025_v45 }
 0x102   :  { %2057 = vmatmul.mubr.bf16.vlgmr.msra.gmra.mrb[0].mxu1 %v369_v46 }
 0x103   :  { %2221 = vmatmul.mubr.bf16.vlgmr.msra.gmra.mrb[0].mxu0 %v418_v17 }
 0x104   :  { %2230 = vmatpush1.bf16.msra.mxu0 %v3023_v35  ;;  %2261 = vmatprep.mubr.bf16.mxu0 %v442_v47 }
 0x105   :  { %2231 = vmatprep.subr.bf16.mxu0 %v3028_v48 }
 0x108   :  { %2232 = vmatpush1.bf16.msra.mxu0 %v3026_v38 }
 0x109   :  { %2233 = vmatprep.subr.bf16.mxu0 %v3031_v39 }
 0x10c   :  { %2234 = vmatpush1.bf16.msra.mxu0 %v3029_v50 }
 0x10d   :  { %2235 = vmatprep.subr.bf16.mxu0 %v3034_v51 }
 0x110   :  { %2236 = vmatpush1.bf16.msra.mxu0 %v3032_v53 }
 0x111   :  { %2237 = vmatprep.subr.bf16.mxu0 %v3037_v54 }
 0x114   :  { %2238 = vmatpush1.bf16.msra.mxu0 %v3035_v55 }
 0x115   :  { %2239 = vmatprep.subr.bf16.mxu0 %v3040_v57 }
 0x118   :  { %2240 = vmatpush1.bf16.msra.mxu0 %v3038_v58 }
 0x119   :  { %2241 = vmatprep.subr.bf16.mxu0 %v3043_v59 }
 0x11c   :  { %2242 = vmatpush1.bf16.msra.mxu0 %v3041_v60 }
 0x11d   :  { %2243 = vmatprep.subr.bf16.mxu0 %v3046_v61 }
 0x120   :  { %2244 = vmatpush1.bf16.msra.mxu0 %v3044_v62 }
 0x121   :  { %2245 = vmatprep.subr.bf16.mxu0 %v3049_v63 }
 0x124   :  { %2246 = vmatpush1.bf16.msra.mxu0 %v3047_v0 }
 0x125   :  { %2247 = vmatprep.subr.bf16.mxu0 %v3052_v1 }
 0x128   :  { %2248 = vmatpush1.bf16.msra.mxu0 %v3050_v2 }
 0x129   :  { %2249 = vmatprep.subr.bf16.mxu0 %v3055_v3 }
 0x12c   :  { %2250 = vmatpush1.bf16.msra.mxu0 %v3053_v4 }
 0x12d   :  { %2251 = vmatprep.subr.bf16.mxu0 %v3058_v5 }
 0x130   :  { %2252 = vmatpush1.bf16.msra.mxu0 %v3056_v6 }
 0x131   :  { %2253 = vmatprep.subr.bf16.mxu0 %v3061_v7 }
 0x134   :  { %2254 = vmatpush1.bf16.msra.mxu0 %v3059_v8 }
 0x135   :  { %2255 = vmatprep.subr.bf16.mxu0 %v3064_v9 }
 0x138   :  { %2256 = vmatpush1.bf16.msra.mxu0 %v3062_v10 }
 0x139   :  { %2257 = vmatprep.subr.bf16.mxu0 %v3067_v11 }
 0x13c   :  { %2258 = vmatpush1.bf16.msra.mxu0 %v3065_v12 }
 0x13d   :  { %2259 = vmatprep.subr.bf16.mxu0 %v3070_v13 }
 0x140   :  { %2260 = vmatpush1.bf16.msra.mxu0 %v3068_v14 }
 0x143   :  { %2262 = vmatmul.mubr.bf16.vlgmr.msra.gmra.mrb[0].mxu0 %v435_v15 }
 0x1d5   :  { %v2058_v18 = vpop.f32.mrb[0].mxu1 }
 0x1d6   :  { %v2060_v19 = vpop.f32.mrb[1].mxu1  ;;  %v2603_v34 = vadd.f32 %v2058_v18, %v313_v31 }
 0x1d7   :  { %v2062_v20 = vpop.f32.mrb[2].mxu1  ;;  %v2605_v16 = vadd.f32 %v2060_v19, %v317_v32 }
 0x1d8   :  { %v2063_v21 = vpop.f32.mrb[3].mxu1 }
 0x216   :  { %v2263_v36 = vpop.f32.mrb[0].mxu0 }
 0x217   :  { %v2604_v37 = vadd.f32 %v2603_v34, %v2263_v36  ;;  %v2265_v40 = vpop.f32.mrb[1].mxu0 }
 0x218   :  { %v2606_v41 = vadd.f32 %v2605_v16, %v2265_v40  ;;  %v2267_v23 = vpop.f32.mrb[2].mxu0 }
 0x219   :  { %v2270_v43 = vmax.f32 %v2604_v37, 0.0  ;;  %v2268_v44 = vpop.f32.mrb[3].mxu0 }
 0x21a   :  { %v2271_v45 = vmax.f32 %v2606_v41, 0.0 }
 0x21b   :  { %v2285_v46 = vadd.f32 %v2281_v33, %v2270_v43 }
 0x21c   :  { %v2286_v17 = vadd.f32 %v2282_v56, %v2271_v45 }
 0x21e   :  { %v2601_v35 = vpack.c.bf16 %v2286_v17, %v2285_v46 }
 0x220   :  { %v2298_v47 = vrot.slane %v2601_v35, %v3233_v49 }
 0x222   :  { %2602 = vst.sshfl [vmem:[%s4062_s4] sm:$0x5 pattern:$0x73625140] %v2298_v47 }

// kernel: _lambda_.60
= control target key start
LH: loop header
LB: loop body
LE: loop exit
PB: predicated region body
PF: predicated region fallthrough
CT: control target
= control target key end

     0   :  { %v419_v1 = vmov 0   ;;  %v50_v34 = vlaneseq  ;;  %s548_s1 = inlined_call_operand.vmem [shape: bf16[128,512], index: 1, kind: input, shape index: {}]   ;;  %s549_s0 = inlined_call_operand.vmem [shape: bf16[8,128], index: 0, kind: input, shape index: {}]   ;;  %s550_s2 = inlined_call_operand.vmem [shape: f32[1,512], index: 2, kind: input, shape index: {}]   ;;  %s551_s3 = inlined_call_operand.vmem [shape: bf16[8,512], index: 3, kind: output, shape index: {}]  }
   0x1   :  { %v371_v0 = vld [vmem:[%s548_s1 + $0x4] ss:$16 sps:$4 sm:$0xff]   ;;  %262 = vmatprep.mubr.bf16.mxu0 %v419_v1  ;;  %303 = vmatprep.mubr.bf16.mxu1 %v419_v1  ;;  %v373_v2 = vld [vmem:[%s548_s1 + $0xc] ss:$16 sps:$4 sm:$0xff]   ;;  %v375_v3 = vld [vmem:[%s548_s1] ss:$16 sps:$4 sm:$0xff]  }
   0x2   :  { %230 = vmatprep.subr.bf16.mxu0 %v371_v0  ;;  %v376_v4 = vld [vmem:[%s548_s1 + $0x8] ss:$16 sps:$4 sm:$0xff]   ;;  %271 = vmatprep.subr.bf16.mxu1 %v373_v2  ;;  %v377_v5 = vld [vmem:[%s548_s1 + $0x24] ss:$16 sps:$4 sm:$0xff]   ;;  %v379_v6 = vld [vmem:[%s548_s1 + $0x2c] ss:$16 sps:$4 sm:$0xff]  }
   0x3   :  { %231 = vmatpush1.bf16.msra.mxu0 %v375_v3  ;;  %272 = vmatpush1.bf16.msra.mxu1 %v376_v4  ;;  %v381_v7 = vld [vmem:[%s548_s1 + $0x20] ss:$16 sps:$4 sm:$0xff]   ;;  %v382_v8 = vld [vmem:[%s548_s1 + $0x28] ss:$16 sps:$4 sm:$0xff]   ;;  %v383_v9 = vld [vmem:[%s548_s1 + $0x44] ss:$16 sps:$4 sm:$0xff]  }
   0x4   :  { %232 = vmatprep.subr.bf16.mxu0 %v377_v5  ;;  %273 = vmatprep.subr.bf16.mxu1 %v379_v6  ;;  %v385_v10 = vld [vmem:[%s548_s1 + $0x4c] ss:$16 sps:$4 sm:$0xff]   ;;  %v387_v11 = vld [vmem:[%s548_s1 + $0x40] ss:$16 sps:$4 sm:$0xff]   ;;  %v388_v12 = vld [vmem:[%s548_s1 + $0x48] ss:$16 sps:$4 sm:$0xff]  }
   0x5   :  { %v389_v13 = vld [vmem:[%s548_s1 + $0x64] ss:$16 sps:$4 sm:$0xff]   ;;  %v391_v14 = vld [vmem:[%s548_s1 + $0x6c] ss:$16 sps:$4 sm:$0xff]   ;;  %v393_v15 = vld [vmem:[%s548_s1 + $0x60] ss:$16 sps:$4 sm:$0xff]  }
   0x6   :  { %v394_v16 = vld [vmem:[%s548_s1 + $0x68] ss:$16 sps:$4 sm:$0xff]   ;;  %v395_v17 = vld [vmem:[%s548_s1 + $0x84] ss:$16 sps:$4 sm:$0xff]   ;;  %v397_v18 = vld [vmem:[%s548_s1 + $0x8c] ss:$16 sps:$4 sm:$0xff]  }
   0x7   :  { %233 = vmatpush1.bf16.msra.mxu0 %v381_v7  ;;  %274 = vmatpush1.bf16.msra.mxu1 %v382_v8  ;;  %v399_v19 = vld [vmem:[%s548_s1 + $0x80] ss:$16 sps:$4 sm:$0xff]   ;;  %v400_v20 = vld [vmem:[%s548_s1 + $0x88] ss:$16 sps:$4 sm:$0xff]   ;;  %v401_v21 = vld [vmem:[%s548_s1 + $0xa4] ss:$16 sps:$4 sm:$0xff]  }
   0x8   :  { %234 = vmatprep.subr.bf16.mxu0 %v383_v9  ;;  %275 = vmatprep.subr.bf16.mxu1 %v385_v10  ;;  %v403_v22 = vld [vmem:[%s548_s1 + $0xac] ss:$16 sps:$4 sm:$0xff]   ;;  %v405_v23 = vld [vmem:[%s548_s1 + $0xa0] ss:$16 sps:$4 sm:$0xff]   ;;  %v406_v24 = vld [vmem:[%s548_s1 + $0xa8] ss:$16 sps:$4 sm:$0xff]  }
   0x9   :  { %v407_v25 = vld [vmem:[%s548_s1 + $0xc4] ss:$16 sps:$4 sm:$0xff]   ;;  %v409_v26 = vld [vmem:[%s548_s1 + $0xcc] ss:$16 sps:$4 sm:$0xff]   ;;  %v411_v27 = vld [vmem:[%s548_s1 + $0xc0] ss:$16 sps:$4 sm:$0xff]  }
   0xa   :  { %v412_v28 = vld [vmem:[%s548_s1 + $0xc8] ss:$16 sps:$4 sm:$0xff]   ;;  %v413_v29 = vld [vmem:[%s548_s1 + $0xe4] ss:$16 sps:$4 sm:$0xff]   ;;  %v415_v30 = vld [vmem:[%s548_s1 + $0xec] ss:$16 sps:$4 sm:$0xff]  }
   0xb   :  { %235 = vmatpush1.bf16.msra.mxu0 %v387_v11  ;;  %276 = vmatpush1.bf16.msra.mxu1 %v388_v12  ;;  %v417_v31 = vld [vmem:[%s548_s1 + $0xe0] ss:$16 sps:$4 sm:$0xff]   ;;  %v418_v32 = vld [vmem:[%s548_s1 + $0xe8] ss:$16 sps:$4 sm:$0xff]   ;;  %v51_v35 = vshrl.u32 %v50_v34, 7 }
   0xc   :  { %236 = vmatprep.subr.bf16.mxu0 %v389_v13  ;;  %277 = vmatprep.subr.bf16.mxu1 %v391_v14  ;;  %v15_v33 = vld [vmem:[%s549_s0] sm:$0xf] }
   0xd   :  { %v52_v36 = vsub.s32 0, %v51_v35  ;;  %v60_v37 = vsub.s32 2, %v51_v35  ;;  %v48_v38 = vld [vmem:[%s550_s2] sm:$0xf]  ;;  %v56_v39 = vsub.s32 1, %v51_v35  ;;  %v64_v40 = vsub.s32 3, %v51_v35 }
   0xf   :  { %237 = vmatpush1.bf16.msra.mxu0 %v393_v15  ;;  %278 = vmatpush1.bf16.msra.mxu1 %v394_v16  ;;  %v53_v41 = vrot.slane %v48_v38, %v52_v36  ;;  %v61_v42 = vrot.slane %v48_v38, %v60_v37  ;;  %v57_v43 = vrot.slane %v48_v38, %v56_v39 }
  0x10   :  { %238 = vmatprep.subr.bf16.mxu0 %v395_v17  ;;  %279 = vmatprep.subr.bf16.mxu1 %v397_v18  ;;  %v65_v44 = vrot.slane %v48_v38, %v64_v40 }
  0x13   :  { %239 = vmatpush1.bf16.msra.mxu0 %v399_v19  ;;  %280 = vmatpush1.bf16.msra.mxu1 %v400_v20 }
  0x14   :  { %240 = vmatprep.subr.bf16.mxu0 %v401_v21  ;;  %281 = vmatprep.subr.bf16.mxu1 %v403_v22 }
  0x17   :  { %241 = vmatpush1.bf16.msra.mxu0 %v405_v23  ;;  %282 = vmatpush1.bf16.msra.mxu1 %v406_v24 }
  0x18   :  { %242 = vmatprep.subr.bf16.mxu0 %v407_v25  ;;  %283 = vmatprep.subr.bf16.mxu1 %v409_v26 }
  0x1b   :  { %243 = vmatpush1.bf16.msra.mxu0 %v411_v27  ;;  %284 = vmatpush1.bf16.msra.mxu1 %v412_v28 }
  0x1c   :  { %244 = vmatprep.subr.bf16.mxu0 %v413_v29  ;;  %285 = vmatprep.subr.bf16.mxu1 %v415_v30 }
  0x1f   :  { %245 = vmatpush1.bf16.msra.mxu0 %v417_v31  ;;  %286 = vmatpush1.bf16.msra.mxu1 %v418_v32 }
  0x22   :  { %263 = vmatmul.mubr.bf16.vlgmr.msra.gmra.mrb[0].mxu0 %v15_v33  ;;  %304 = vmatmul.mubr.bf16.vlgmr.msra.gmra.mrb[0].mxu1 %v15_v33 }
  0xf5   :  { %v264_v45 = vpop.f32.mrb[0].mxu0  ;;  %v305_v46 = vpop.f32.mrb[0].mxu1 }
  0xf6   :  { %v265_v47 = vadd.f32 %v264_v45, %v53_v41  ;;  %v306_v48 = vadd.f32 %v305_v46, %v61_v42  ;;  %v266_v49 = vpop.f32.mrb[1].mxu0  ;;  %v307_v50 = vpop.f32.mrb[1].mxu1 }
  0xf7   :  { %v267_v51 = vadd.f32 %v266_v49, %v57_v43  ;;  %v308_v52 = vadd.f32 %v307_v50, %v65_v44  ;;  %v268_v53 = vpop.f32.mrb[2].mxu0  ;;  %v309_v54 = vpop.f32.mrb[2].mxu1 }
  0xf8   :  { %v269_v55 = vpop.f32.mrb[3].mxu0  ;;  %v310_v56 = vpop.f32.mrb[3].mxu1 }
  0xf9   :  { %v368_v57 = vpack.c.bf16 %v267_v51, %v265_v47  ;;  %v369_v58 = vpack.c.bf16 %v308_v52, %v306_v48 }
  0xfb   :  { %328 = vst [vmem:[%s551_s3] sm:$0xff] %v368_v57  ;;  %329 = vst [vmem:[%s551_s3 + $0x8] sm:$0xff] %v369_v58 }

// kernel: _lambda_.50
= control target key start
LH: loop header
LB: loop body
LE: loop exit
PB: predicated region body
PF: predicated region fallthrough
CT: control target
= control target key end

     0   :  { %v221_v1 = vmov 0   ;;  %v34_v18 = vlaneseq  ;;  %s299_s1 = inlined_call_operand.vmem [shape: bf16[128,256], index: 1, kind: input, shape index: {}]   ;;  %s300_s0 = inlined_call_operand.vmem [shape: bf16[8,128], index: 0, kind: input, shape index: {}]   ;;  %s301_s2 = inlined_call_operand.vmem [shape: f32[1,256], index: 2, kind: input, shape index: {}]   ;;  %s302_s3 = inlined_call_operand.vmem [shape: bf16[8,256], index: 3, kind: output, shape index: {}]  }
   0x1   :  { %v197_v0 = vld [vmem:[%s299_s1 + $0x4] ss:$8 sps:$4 sm:$0xff]   ;;  %156 = vmatprep.mubr.bf16.mxu0 %v221_v1  ;;  %v199_v2 = vld [vmem:[%s299_s1] ss:$8 sps:$4 sm:$0xff]   ;;  %v200_v3 = vld [vmem:[%s299_s1 + $0x14] ss:$8 sps:$4 sm:$0xff]  }
   0x2   :  { %124 = vmatprep.subr.bf16.mxu0 %v197_v0  ;;  %v202_v4 = vld [vmem:[%s299_s1 + $0x10] ss:$8 sps:$4 sm:$0xff]   ;;  %v203_v5 = vld [vmem:[%s299_s1 + $0x24] ss:$8 sps:$4 sm:$0xff]   ;;  %v205_v6 = vld [vmem:[%s299_s1 + $0x20] ss:$8 sps:$4 sm:$0xff]  }
   0x3   :  { %125 = vmatpush1.bf16.msra.mxu0 %v199_v2  ;;  %v206_v7 = vld [vmem:[%s299_s1 + $0x34] ss:$8 sps:$4 sm:$0xff]   ;;  %v208_v8 = vld [vmem:[%s299_s1 + $0x30] ss:$8 sps:$4 sm:$0xff]   ;;  %v209_v9 = vld [vmem:[%s299_s1 + $0x44] ss:$8 sps:$4 sm:$0xff]  }
   0x4   :  { %126 = vmatprep.subr.bf16.mxu0 %v200_v3  ;;  %v211_v10 = vld [vmem:[%s299_s1 + $0x40] ss:$8 sps:$4 sm:$0xff]   ;;  %v212_v11 = vld [vmem:[%s299_s1 + $0x54] ss:$8 sps:$4 sm:$0xff]   ;;  %v214_v12 = vld [vmem:[%s299_s1 + $0x50] ss:$8 sps:$4 sm:$0xff]  }
   0x5   :  { %v215_v13 = vld [vmem:[%s299_s1 + $0x64] ss:$8 sps:$4 sm:$0xff]   ;;  %v217_v14 = vld [vmem:[%s299_s1 + $0x60] ss:$8 sps:$4 sm:$0xff]   ;;  %v218_v15 = vld [vmem:[%s299_s1 + $0x74] ss:$8 sps:$4 sm:$0xff]  }
   0x6   :  { %v220_v16 = vld [vmem:[%s299_s1 + $0x70] ss:$8 sps:$4 sm:$0xff]   ;;  %v15_v17 = vld [vmem:[%s300_s0] sm:$0xf]  ;;  %v35_v19 = vshrl.u32 %v34_v18, 7 }
   0x7   :  { %127 = vmatpush1.bf16.msra.mxu0 %v202_v4  ;;  %v32_v21 = vld [vmem:[%s301_s2] sm:$0x3] }
   0x8   :  { %128 = vmatprep.subr.bf16.mxu0 %v203_v5  ;;  %v36_v20 = vsub.s32 0, %v35_v19  ;;  %v40_v22 = vsub.s32 1, %v35_v19 }
   0xa   :  { %v37_v23 = vrot.slane %v32_v21, %v36_v20  ;;  %v41_v24 = vrot.slane %v32_v21, %v40_v22 }
   0xb   :  { %129 = vmatpush1.bf16.msra.mxu0 %v205_v6 }
   0xc   :  { %130 = vmatprep.subr.bf16.mxu0 %v206_v7 }
   0xf   :  { %131 = vmatpush1.bf16.msra.mxu0 %v208_v8 }
  0x10   :  { %132 = vmatprep.subr.bf16.mxu0 %v209_v9 }
  0x13   :  { %133 = vmatpush1.bf16.msra.mxu0 %v211_v10 }
  0x14   :  { %134 = vmatprep.subr.bf16.mxu0 %v212_v11 }
  0x17   :  { %135 = vmatpush1.bf16.msra.mxu0 %v214_v12 }
  0x18   :  { %136 = vmatprep.subr.bf16.mxu0 %v215_v13 }
  0x1b   :  { %137 = vmatpush1.bf16.msra.mxu0 %v217_v14 }
  0x1c   :  { %138 = vmatprep.subr.bf16.mxu0 %v218_v15 }
  0x1f   :  { %139 = vmatpush1.bf16.msra.mxu0 %v220_v16 }
  0x22   :  { %157 = vmatmul.mubr.bf16.vlgmr.msra.gmra.mrb[0].mxu0 %v15_v17 }
  0xf5   :  { %v158_v25 = vpop.f32.mrb[0].mxu0 }
  0xf6   :  { %v159_v26 = vadd.f32 %v158_v25, %v37_v23  ;;  %v160_v27 = vpop.f32.mrb[1].mxu0 }
  0xf7   :  { %v161_v28 = vadd.f32 %v160_v27, %v41_v24  ;;  %v162_v29 = vpop.f32.mrb[2].mxu0 }
  0xf8   :  { %v163_v30 = vpop.f32.mrb[3].mxu0 }
  0xf9   :  { %v195_v31 = vpack.c.bf16 %v161_v28, %v159_v26 }
  0xfb   :  { %173 = vst [vmem:[%s302_s3] sm:$0xff] %v195_v31 }

// kernel: _lambda_.51
= control target key start
LH: loop header
LB: loop body
LE: loop exit
PB: predicated region body
PF: predicated region fallthrough
CT: control target
= control target key end

     0   :  { %vm23_vm0 = vcmask 519168   ;;  %s87_s0 = inlined_call_operand.vmem [shape: bf16[32,64], index: 0, kind: input, shape index: {}]   ;;  %s88_s1 = inlined_call_operand.vmem [shape: bf16[32,64], index: 1, kind: input, shape index: {}]   ;;  %s89_s2 = inlined_call_operand.vmem [shape: bf16[32,64], index: 2, kind: output, shape index: {}]  }
   0x1   :  { %v11_v0 = vld [vmem:[%s87_s0] sm:$0xf]  ;;  %v12_v2 = vld [vmem:[%s87_s0 + $0x4] sm:$0xf]  ;;  %v13_v5 = vld [vmem:[%s87_s0 + $0x8] sm:$0xf] }
   0x2   :  { %v15_v1 = vld [vmem:[%s88_s1] sm:$0xf]  ;;  %v16_v4 = vld [vmem:[%s88_s1 + $0x4] sm:$0xf]  ;;  %v17_v6 = vld [vmem:[%s88_s1 + $0x8] sm:$0xf] }
   0x3   :  { %v19_v3 = vadd.bf16 %v15_v1, %v11_v0  ;;  %v20_v7 = vadd.bf16 %v16_v4, %v12_v2  ;;  %v21_v8 = vadd.bf16 %v17_v6, %v13_v5  ;;  %v14_v9 = vld [vmem:[%s87_s0 + $0xc] sm:$0xf] }
   0x4   :  { %v18_v10 = vld [vmem:[%s88_s1 + $0xc] sm:$0xf] }
   0x5   :  { %24 = vst.msk [vmem:[%s89_s2] sm:$0xf] %vm23_vm0, %v19_v3  ;;  %v22_v11 = vadd.bf16 %v18_v10, %v14_v9  ;;  %25 = vst.msk [vmem:[%s89_s2 + $0x4] sm:$0xf] %vm23_vm0, %v20_v7 }
   0x6   :  { %26 = vst.msk [vmem:[%s89_s2 + $0x8] sm:$0xf] %vm23_vm0, %v21_v8 }
   0x7   :  { %27 = vst.msk [vmem:[%s89_s2 + $0xc] sm:$0xf] %vm23_vm0, %v22_v11 }

// kernel: _lambda_.61
= control target key start
LH: loop header
LB: loop body
LE: loop exit
PB: predicated region body
PF: predicated region fallthrough
CT: control target
= control target key end

     0   :  { %vm71_vm0 = vcmask 523264   ;;  %s282_s1 = inlined_call_operand.vmem [shape: bf16[64,128], index: 1, kind: input, shape index: {}]   ;;  %s283_s0 = inlined_call_operand.vmem [shape: bf16[32,64], index: 0, kind: input, shape index: {}]   ;;  %s284_s2 = inlined_call_operand.vmem [shape: f32[1,128], index: 2, kind: input, shape index: {}]   ;;  %s285_s3 = inlined_call_operand.vmem [shape: bf16[32,128], index: 3, kind: input, shape index: {}]   ;;  %s286_s4 = inlined_call_operand.vmem [shape: bf16[32,128], index: 4, kind: output, shape index: {}]  }
   0x1   :  { %v218_v0 = vld [vmem:[%s282_s1] sm:$0xff]   ;;  %v219_v1 = vld [vmem:[%s282_s1 + $0x8] sm:$0xff]   ;;  %v220_v2 = vld [vmem:[%s282_s1 + $0x10] sm:$0xff]  }
   0x2   :  { %206 = vmatprep.subr.bf16.mxu0 %v218_v0  ;;  %v222_v3 = vld [vmem:[%s283_s0] sm:$0xff]   ;;  %v221_v4 = vld [vmem:[%s282_s1 + $0x18] sm:$0xff]   ;;  %v223_v5 = vld [vmem:[%s283_s0 + $0x8] sm:$0xff]  }
   0x3   :  { %207 = vmatpush3.bf16.msra.mxu0 %v218_v0  ;;  %214 = vmatprep.mubr.msk.bf16.mxu0 %vm71_vm0, %v222_v3  ;;  %v163_v6 = vld [vmem:[%s284_s2] ss:$0 sm:$0xff]  ;;  %v198_v7 = vld [vmem:[%s285_s3 + $0x8] sm:$0xff]  }
   0x4   :  { %208 = vmatprep.subr.bf16.mxu0 %v219_v1  ;;  %v181_v8 = vld [vmem:[%s285_s3] sm:$0xff]   ;;  %v186_v11 = vunpack.c.l.bf16 %v198_v7  ;;  %v187_v13 = vunpack.c.h.bf16 %v198_v7 }
   0x5   :  { %v182_v15 = vunpack.c.l.bf16 %v181_v8  ;;  %v183_v17 = vunpack.c.h.bf16 %v181_v8 }
   0x7   :  { %209 = vmatpush3.bf16.msra.mxu0 %v219_v1 }
   0x8   :  { %210 = vmatprep.subr.bf16.mxu0 %v220_v2 }
   0xb   :  { %211 = vmatpush3.bf16.msra.mxu0 %v220_v2 }
   0xc   :  { %212 = vmatprep.subr.bf16.mxu0 %v221_v4 }
   0xf   :  { %213 = vmatpush3.bf16.msra.mxu0 %v221_v4 }
  0x12   :  { %215 = vmatmul.mubr.msk.bf16.vlgmr.msra.gmra.mrb[0].mxu0 %vm71_vm0, %v223_v5 }
  0xe5   :  { %v216_v9 = vpop.f32.mrb[0].mxu0 }
  0xe6   :  { %v121_v10 = vadd.f32 %v216_v9, %v163_v6  ;;  %v112_v12 = vpop.f32.mrb[1].mxu0 }
  0xe7   :  { %v113_v14 = vadd.f32 %v163_v6, %v112_v12  ;;  %v217_v16 = vpop.f32.mrb[2].mxu0 }
  0xe8   :  { %v124_v18 = vadd.f32 %v217_v16, %v163_v6  ;;  %v115_v19 = vpop.f32.mrb[3].mxu0  ;;  %v137_v21 = vadd.f32 %v186_v11, %v121_v10 }
  0xe9   :  { %v116_v20 = vadd.f32 %v163_v6, %v115_v19  ;;  %v135_v23 = vadd.f32 %v182_v15, %v113_v14 }
  0xea   :  { %v138_v22 = vadd.f32 %v187_v13, %v124_v18 }
  0xeb   :  { %v136_v24 = vadd.f32 %v183_v17, %v116_v20 }
  0xec   :  { %v196_v25 = vpack.c.bf16 %v138_v22, %v137_v21 }
  0xed   :  { %v191_v26 = vpack.c.bf16 %v136_v24, %v135_v23 }
  0xee   :  { %199 = vst [vmem:[%s286_s4 + $0x8] sm:$0xff] %v196_v25  }
  0xef   :  { %192 = vst [vmem:[%s286_s4] sm:$0xff] %v191_v26  }

// kernel: _lambda_.62
= control target key start
LH: loop header
LB: loop body
LE: loop exit
PB: predicated region body
PF: predicated region fallthrough
CT: control target
= control target key end

     0   :  { %v512_v1 = vmov 0   ;;  %v53_v35 = vlaneseq  ;;  %s666_s1 = inlined_call_operand.vmem [shape: bf16[128,512], index: 1, kind: input, shape index: {}]   ;;  %s667_s0 = inlined_call_operand.vmem [shape: bf16[32,128], index: 0, kind: input, shape index: {}]   ;;  %s668_s2 = inlined_call_operand.vmem [shape: f32[1,512], index: 2, kind: input, shape index: {}]   ;;  %s669_s3 = inlined_call_operand.vmem [shape: bf16[32,512], index: 3, kind: output, shape index: {}]  }
   0x1   :  { %v462_v0 = vld [vmem:[%s666_s1 + $0x4] ss:$16 sps:$4 sm:$0xff]   ;;  %277 = vmatprep.mubr.bf16.mxu0 %v512_v1  ;;  %330 = vmatprep.mubr.bf16.mxu1 %v512_v1  ;;  %v464_v2 = vld [vmem:[%s666_s1 + $0xc] ss:$16 sps:$4 sm:$0xff]   ;;  %v466_v3 = vld [vmem:[%s666_s1] ss:$16 sps:$4 sm:$0xff]  }
   0x2   :  { %245 = vmatprep.subr.bf16.mxu0 %v462_v0  ;;  %v467_v4 = vld [vmem:[%s666_s1 + $0x8] ss:$16 sps:$4 sm:$0xff]   ;;  %298 = vmatprep.subr.bf16.mxu1 %v464_v2  ;;  %v468_v5 = vld [vmem:[%s666_s1 + $0x24] ss:$16 sps:$4 sm:$0xff]   ;;  %v470_v6 = vld [vmem:[%s666_s1 + $0x2c] ss:$16 sps:$4 sm:$0xff]  }
   0x3   :  { %246 = vmatpush1.bf16.msra.mxu0 %v466_v3  ;;  %299 = vmatpush1.bf16.msra.mxu1 %v467_v4  ;;  %v472_v7 = vld [vmem:[%s666_s1 + $0x20] ss:$16 sps:$4 sm:$0xff]   ;;  %v473_v8 = vld [vmem:[%s666_s1 + $0x28] ss:$16 sps:$4 sm:$0xff]   ;;  %v474_v9 = vld [vmem:[%s666_s1 + $0x44] ss:$16 sps:$4 sm:$0xff]  }
   0x4   :  { %247 = vmatprep.subr.bf16.mxu0 %v468_v5  ;;  %300 = vmatprep.subr.bf16.mxu1 %v470_v6  ;;  %v476_v10 = vld [vmem:[%s666_s1 + $0x4c] ss:$16 sps:$4 sm:$0xff]   ;;  %v478_v11 = vld [vmem:[%s666_s1 + $0x40] ss:$16 sps:$4 sm:$0xff]   ;;  %v479_v12 = vld [vmem:[%s666_s1 + $0x48] ss:$16 sps:$4 sm:$0xff]  }
   0x5   :  { %v480_v13 = vld [vmem:[%s666_s1 + $0x64] ss:$16 sps:$4 sm:$0xff]   ;;  %v482_v14 = vld [vmem:[%s666_s1 + $0x6c] ss:$16 sps:$4 sm:$0xff]   ;;  %v484_v15 = vld [vmem:[%s666_s1 + $0x60] ss:$16 sps:$4 sm:$0xff]  }
   0x6   :  { %v485_v16 = vld [vmem:[%s666_s1 + $0x68] ss:$16 sps:$4 sm:$0xff]   ;;  %v486_v17 = vld [vmem:[%s666_s1 + $0x84] ss:$16 sps:$4 sm:$0xff]   ;;  %v488_v18 = vld [vmem:[%s666_s1 + $0x8c] ss:$16 sps:$4 sm:$0xff]  }
   0x7   :  { %248 = vmatpush1.bf16.msra.mxu0 %v472_v7  ;;  %301 = vmatpush1.bf16.msra.mxu1 %v473_v8  ;;  %v490_v19 = vld [vmem:[%s666_s1 + $0x80] ss:$16 sps:$4 sm:$0xff]   ;;  %v491_v20 = vld [vmem:[%s666_s1 + $0x88] ss:$16 sps:$4 sm:$0xff]   ;;  %v492_v21 = vld [vmem:[%s666_s1 + $0xa4] ss:$16 sps:$4 sm:$0xff]  }
   0x8   :  { %249 = vmatprep.subr.bf16.mxu0 %v474_v9  ;;  %302 = vmatprep.subr.bf16.mxu1 %v476_v10  ;;  %v494_v22 = vld [vmem:[%s666_s1 + $0xac] ss:$16 sps:$4 sm:$0xff]   ;;  %v496_v23 = vld [vmem:[%s666_s1 + $0xa0] ss:$16 sps:$4 sm:$0xff]   ;;  %v497_v24 = vld [vmem:[%s666_s1 + $0xa8] ss:$16 sps:$4 sm:$0xff]  }
   0x9   :  { %v498_v25 = vld [vmem:[%s666_s1 + $0xc4] ss:$16 sps:$4 sm:$0xff]   ;;  %v500_v26 = vld [vmem:[%s666_s1 + $0xcc] ss:$16 sps:$4 sm:$0xff]   ;;  %v502_v27 = vld [vmem:[%s666_s1 + $0xc0] ss:$16 sps:$4 sm:$0xff]  }
   0xa   :  { %v503_v28 = vld [vmem:[%s666_s1 + $0xc8] ss:$16 sps:$4 sm:$0xff]   ;;  %v504_v29 = vld [vmem:[%s666_s1 + $0xe4] ss:$16 sps:$4 sm:$0xff]   ;;  %v506_v30 = vld [vmem:[%s666_s1 + $0xec] ss:$16 sps:$4 sm:$0xff]  }
   0xb   :  { %250 = vmatpush1.bf16.msra.mxu0 %v478_v11  ;;  %303 = vmatpush1.bf16.msra.mxu1 %v479_v12  ;;  %v508_v31 = vld [vmem:[%s666_s1 + $0xe0] ss:$16 sps:$4 sm:$0xff]   ;;  %v509_v32 = vld [vmem:[%s666_s1 + $0xe8] ss:$16 sps:$4 sm:$0xff]   ;;  %v54_v36 = vshrl.u32 %v53_v35, 7 }
   0xc   :  { %251 = vmatprep.subr.bf16.mxu0 %v480_v13  ;;  %304 = vmatprep.subr.bf16.mxu1 %v482_v14  ;;  %v510_v33 = vld [vmem:[%s667_s0] sm:$0xff]   ;;  %v511_v34 = vld [vmem:[%s667_s0 + $0x8] sm:$0xff]  }
   0xd   :  { %v55_v37 = vsub.s32 0, %v54_v36  ;;  %v63_v38 = vsub.s32 2, %v54_v36  ;;  %v51_v39 = vld [vmem:[%s668_s2] sm:$0xf]  ;;  %v59_v40 = vsub.s32 1, %v54_v36  ;;  %v67_v41 = vsub.s32 3, %v54_v36 }
   0xf   :  { %252 = vmatpush1.bf16.msra.mxu0 %v484_v15  ;;  %305 = vmatpush1.bf16.msra.mxu1 %v485_v16  ;;  %v56_v42 = vrot.slane %v51_v39, %v55_v37  ;;  %v64_v43 = vrot.slane %v51_v39, %v63_v38  ;;  %v60_v44 = vrot.slane %v51_v39, %v59_v40 }
  0x10   :  { %253 = vmatprep.subr.bf16.mxu0 %v486_v17  ;;  %306 = vmatprep.subr.bf16.mxu1 %v488_v18  ;;  %v68_v45 = vrot.slane %v51_v39, %v67_v41 }
  0x13   :  { %254 = vmatpush1.bf16.msra.mxu0 %v490_v19  ;;  %307 = vmatpush1.bf16.msra.mxu1 %v491_v20 }
  0x14   :  { %255 = vmatprep.subr.bf16.mxu0 %v492_v21  ;;  %308 = vmatprep.subr.bf16.mxu1 %v494_v22 }
  0x17   :  { %256 = vmatpush1.bf16.msra.mxu0 %v496_v23  ;;  %309 = vmatpush1.bf16.msra.mxu1 %v497_v24 }
  0x18   :  { %257 = vmatprep.subr.bf16.mxu0 %v498_v25  ;;  %310 = vmatprep.subr.bf16.mxu1 %v500_v26 }
  0x1b   :  { %258 = vmatpush1.bf16.msra.mxu0 %v502_v27  ;;  %311 = vmatpush1.bf16.msra.mxu1 %v503_v28 }
  0x1c   :  { %259 = vmatprep.subr.bf16.mxu0 %v504_v29  ;;  %312 = vmatprep.subr.bf16.mxu1 %v506_v30 }
  0x1f   :  { %260 = vmatpush1.bf16.msra.mxu0 %v508_v31  ;;  %313 = vmatpush1.bf16.msra.mxu1 %v509_v32 }
  0x22   :  { %278 = vmatmul.mubr.bf16.vlgmr.msra.gmra.mrb[0].mxu0 %v510_v33  ;;  %331 = vmatmul.mubr.bf16.vlgmr.msra.gmra.mrb[0].mxu1 %v510_v33 }
  0x23   :  { %287 = vmatprep.mubr.bf16.mxu0 %v512_v1  ;;  %340 = vmatprep.mubr.bf16.mxu1 %v512_v1 }
  0x2a   :  { %288 = vmatmul.mubr.bf16.gmra.mrb[4].mxu0 %v511_v34  ;;  %341 = vmatmul.mubr.bf16.gmra.mrb[4].mxu1 %v511_v34 }
  0xf5   :  { %v279_v46 = vpop.f32.mrb[0].mxu0  ;;  %v332_v47 = vpop.f32.mrb[0].mxu1 }
  0xf6   :  { %v280_v48 = vadd.f32 %v279_v46, %v56_v42  ;;  %v333_v49 = vadd.f32 %v332_v47, %v64_v43  ;;  %v281_v50 = vpop.f32.mrb[1].mxu0  ;;  %v334_v51 = vpop.f32.mrb[1].mxu1 }
  0xf7   :  { %v282_v52 = vadd.f32 %v281_v50, %v60_v44  ;;  %v335_v53 = vadd.f32 %v334_v51, %v68_v45  ;;  %v283_v54 = vpop.f32.mrb[2].mxu0  ;;  %v336_v55 = vpop.f32.mrb[2].mxu1 }
  0xf8   :  { %v284_v56 = vadd.f32 %v283_v54, %v56_v42  ;;  %v337_v57 = vadd.f32 %v336_v55, %v64_v43  ;;  %v285_v58 = vpop.f32.mrb[3].mxu0  ;;  %v338_v59 = vpop.f32.mrb[3].mxu1 }
  0xf9   :  { %v453_v60 = vpack.c.bf16 %v282_v52, %v280_v48  ;;  %v454_v61 = vpack.c.bf16 %v335_v53, %v333_v49  ;;  %v286_v62 = vadd.f32 %v285_v58, %v60_v44  ;;  %v339_v63 = vadd.f32 %v338_v59, %v68_v45 }
  0xfb   :  { %399 = vst [vmem:[%s669_s3] sm:$0xff] %v453_v60  ;;  %400 = vst [vmem:[%s669_s3 + $0x8] sm:$0xff] %v454_v61  ;;  %v455_v0 = vpack.c.bf16 %v286_v62, %v284_v56  ;;  %v456_v1 = vpack.c.bf16 %v339_v63, %v337_v57 }
  0xfd   :  { %401 = vst [vmem:[%s669_s3 + $0x10] sm:$0xff] %v455_v0  ;;  %402 = vst [vmem:[%s669_s3 + $0x18] sm:$0xff] %v456_v1  ;;  %v289_v2 = vpop.f32.mrb[4].mxu0  ;;  %v342_v3 = vpop.f32.mrb[4].mxu1 }
  0xfe   :  { %v290_v4 = vadd.f32 %v289_v2, %v56_v42  ;;  %v343_v5 = vadd.f32 %v342_v3, %v64_v43  ;;  %v291_v6 = vpop.f32.mrb[5].mxu0  ;;  %v344_v7 = vpop.f32.mrb[5].mxu1 }
  0xff   :  { %v292_v8 = vadd.f32 %v291_v6, %v60_v44  ;;  %v345_v9 = vadd.f32 %v344_v7, %v68_v45  ;;  %v293_v10 = vpop.f32.mrb[6].mxu0  ;;  %v346_v11 = vpop.f32.mrb[6].mxu1 }
 0x100   :  { %v294_v12 = vadd.f32 %v293_v10, %v56_v42  ;;  %v347_v13 = vadd.f32 %v346_v11, %v64_v43  ;;  %v295_v14 = vpop.f32.mrb[7].mxu0  ;;  %v348_v15 = vpop.f32.mrb[7].mxu1 }
 0x101   :  { %v457_v16 = vpack.c.bf16 %v292_v8, %v290_v4  ;;  %v458_v17 = vpack.c.bf16 %v345_v9, %v343_v5  ;;  %v296_v18 = vadd.f32 %v295_v14, %v60_v44  ;;  %v349_v19 = vadd.f32 %v348_v15, %v68_v45 }
 0x103   :  { %403 = vst [vmem:[%s669_s3 + $0x20] sm:$0xff] %v457_v16  ;;  %404 = vst [vmem:[%s669_s3 + $0x28] sm:$0xff] %v458_v17  ;;  %v459_v20 = vpack.c.bf16 %v296_v18, %v294_v12  ;;  %v460_v21 = vpack.c.bf16 %v349_v19, %v347_v13 }
 0x105   :  { %405 = vst [vmem:[%s669_s3 + $0x30] sm:$0xff] %v459_v20  ;;  %406 = vst [vmem:[%s669_s3 + $0x38] sm:$0xff] %v460_v21 }

// kernel: _lambda_.63
= control target key start
LH: loop header
LB: loop body
LE: loop exit
PB: predicated region body
PF: predicated region fallthrough
CT: control target
= control target key end

     0   :  { %vm97_vm0 = vcmask 261120   ;;  %s664_s1 = inlined_call_operand.vmem [shape: bf16[32,128], index: 1, kind: input, shape index: {}]   ;;  %s665_s0 = inlined_call_operand.vmem [shape: bf16[128,32], index: 0, kind: input, shape index: {}]   ;;  %s666_s3 = inlined_call_operand.vmem [shape: bf16[128,128], index: 3, kind: input, shape index: {}]   ;;  %s667_s2 = inlined_call_operand.vmem [shape: f32[1,128], index: 2, kind: input, shape index: {}]   ;;  %s668_s4 = inlined_call_operand.vmem [shape: bf16[128,128], index: 4, kind: output, shape index: {}]  }
   0x1   :  { %v522_v0 = vld [vmem:[%s664_s1] sm:$0xff]   ;;  %v523_v1 = vld [vmem:[%s664_s1 + $0x8] sm:$0xff]   ;;  %v528_v6 = vld [vmem:[%s665_s0 + $0x10] sm:$0xff]  }
   0x2   :  { %498 = vmatprep.subr.bf16.mxu0 %v522_v0  ;;  %518 = vmatprep.subr.bf16.mxu1 %v522_v0  ;;  %v524_v2 = vld [vmem:[%s665_s0] sm:$0xff]   ;;  %v526_v4 = vld [vmem:[%s665_s0 + $0x8] sm:$0xff]   ;;  %v529_v7 = vld [vmem:[%s665_s0 + $0x30] sm:$0xff]  }
   0x3   :  { %499 = vmatpush3.bf16.msra.mxu0 %v522_v0  ;;  %520 = vmatpush3.bf16.msra.mxu1 %v522_v0  ;;  %v525_v3 = vld [vmem:[%s665_s0 + $0x20] sm:$0xff]   ;;  %v527_v5 = vld [vmem:[%s665_s0 + $0x28] sm:$0xff]   ;;  %v530_v8 = vld [vmem:[%s665_s0 + $0x18] sm:$0xff]  }
   0x4   :  { %500 = vmatprep.subr.bf16.mxu0 %v523_v1  ;;  %519 = vmatprep.subr.bf16.mxu1 %v523_v1  ;;  %v531_v9 = vld [vmem:[%s665_s0 + $0x38] sm:$0xff]   ;;  %v474_v10 = vld [vmem:[%s666_s3 + $0x8] sm:$0xff]   ;;  %v403_v12 = vld [vmem:[%s666_s3] sm:$0xff]  }
   0x5   :  { %502 = vmatprep.mubr.msk.bf16.mxu0 %vm97_vm0, %v524_v2  ;;  %510 = vmatprep.mubr.msk.bf16.mxu1 %vm97_vm0, %v525_v3  ;;  %v478_v11 = vld [vmem:[%s666_s3 + $0x28] sm:$0xff]   ;;  %v477_v13 = vld [vmem:[%s666_s3 + $0x20] sm:$0xff]   ;;  %v408_v16 = vunpack.c.l.bf16 %v474_v10  ;;  %v404_v19 = vunpack.c.l.bf16 %v403_v12  ;;  %v409_v25 = vunpack.c.h.bf16 %v474_v10  ;;  %v405_v31 = vunpack.c.h.bf16 %v403_v12  ;;  %v476_v39 = vld [vmem:[%s666_s3 + $0x18] sm:$0xff]  }
   0x6   :  { %v610_v14 = vld [vmem:[%s667_s2] ss:$0 sm:$0xff]  ;;  %v424_v18 = vunpack.c.l.bf16 %v478_v11  ;;  %v420_v20 = vunpack.c.l.bf16 %v477_v13  ;;  %v425_v26 = vunpack.c.h.bf16 %v478_v11  ;;  %v421_v32 = vunpack.c.h.bf16 %v477_v13  ;;  %v480_v40 = vld [vmem:[%s666_s3 + $0x38] sm:$0xff]   ;;  %v475_v45 = vld [vmem:[%s666_s3 + $0x10] sm:$0xff]  }
   0x7   :  { %501 = vmatpush3.bf16.msra.mxu0 %v523_v1  ;;  %521 = vmatpush3.bf16.msra.mxu1 %v523_v1  ;;  %v479_v46 = vld [vmem:[%s666_s3 + $0x30] sm:$0xff]   ;;  %v416_v53 = vunpack.c.l.bf16 %v476_v39  ;;  %v432_v54 = vunpack.c.l.bf16 %v480_v40  ;;  %v412_v59 = vunpack.c.l.bf16 %v475_v45  ;;  %v417_v1 = vunpack.c.h.bf16 %v476_v39 }
   0x8   :  { %v428_v60 = vunpack.c.l.bf16 %v479_v46  ;;  %v433_v2 = vunpack.c.h.bf16 %v480_v40 }
   0xa   :  { %503 = vmatmul.mubr.msk.bf16.vlgmr.msra.gmra.mrb[0].mxu0 %vm97_vm0, %v526_v4  ;;  %511 = vmatmul.mubr.msk.bf16.vlgmr.msra.gmra.mrb[0].mxu1 %vm97_vm0, %v527_v5 }
   0xb   :  { %506 = vmatprep.mubr.msk.bf16.mxu0 %vm97_vm0, %v528_v6  ;;  %514 = vmatprep.mubr.msk.bf16.mxu1 %vm97_vm0, %v529_v7  ;;  %v413_v7 = vunpack.c.h.bf16 %v475_v45 }
  0x12   :  { %507 = vmatmul.mubr.msk.bf16.gmra.mrb[4].mxu0 %vm97_vm0, %v530_v8  ;;  %515 = vmatmul.mubr.msk.bf16.gmra.mrb[4].mxu1 %vm97_vm0, %v531_v9  ;;  %v429_v8 = vunpack.c.h.bf16 %v479_v46 }
  0xdd   :  { %v504_v15 = vpop.f32.mrb[0].mxu0  ;;  %v512_v17 = vpop.f32.mrb[0].mxu1 }
  0xde   :  { %v165_v21 = vadd.f32 %v504_v15, %v610_v14  ;;  %v197_v22 = vadd.f32 %v512_v17, %v610_v14  ;;  %v156_v23 = vpop.f32.mrb[1].mxu0  ;;  %v188_v24 = vpop.f32.mrb[1].mxu1 }
  0xdf   :  { %v157_v27 = vadd.f32 %v610_v14, %v156_v23  ;;  %v189_v28 = vadd.f32 %v610_v14, %v188_v24  ;;  %v505_v29 = vpop.f32.mrb[2].mxu0  ;;  %v513_v30 = vpop.f32.mrb[2].mxu1 }
  0xe0   :  { %v168_v33 = vadd.f32 %v505_v29, %v610_v14  ;;  %v200_v34 = vadd.f32 %v513_v30, %v610_v14  ;;  %v159_v35 = vpop.f32.mrb[3].mxu0  ;;  %v191_v36 = vpop.f32.mrb[3].mxu1  ;;  %v253_v41 = vadd.f32 %v408_v16, %v165_v21  ;;  %v261_v42 = vadd.f32 %v424_v18, %v197_v22 }
  0xe1   :  { %v160_v37 = vadd.f32 %v610_v14, %v159_v35  ;;  %v192_v38 = vadd.f32 %v610_v14, %v191_v36  ;;  %v251_v47 = vadd.f32 %v404_v19, %v157_v27  ;;  %v259_v48 = vadd.f32 %v420_v20, %v189_v28 }
  0xe2   :  { %v254_v43 = vadd.f32 %v409_v25, %v168_v33  ;;  %v262_v44 = vadd.f32 %v425_v26, %v200_v34 }
  0xe3   :  { %v252_v49 = vadd.f32 %v405_v31, %v160_v37  ;;  %v260_v50 = vadd.f32 %v421_v32, %v192_v38 }
  0xe4   :  { %v442_v51 = vpack.c.bf16 %v254_v43, %v253_v41  ;;  %v462_v52 = vpack.c.bf16 %v262_v44, %v261_v42 }
  0xe5   :  { %v437_v55 = vpack.c.bf16 %v252_v49, %v251_v47  ;;  %v457_v56 = vpack.c.bf16 %v260_v50, %v259_v48  ;;  %v508_v57 = vpop.f32.mrb[4].mxu0  ;;  %v516_v58 = vpop.f32.mrb[4].mxu1 }
  0xe6   :  { %481 = vst [vmem:[%s668_s4 + $0x8] sm:$0xff] %v442_v51   ;;  %485 = vst [vmem:[%s668_s4 + $0x28] sm:$0xff] %v462_v52   ;;  %v181_v61 = vadd.f32 %v508_v57, %v610_v14  ;;  %v213_v62 = vadd.f32 %v516_v58, %v610_v14  ;;  %v172_v63 = vpop.f32.mrb[5].mxu0  ;;  %v204_v0 = vpop.f32.mrb[5].mxu1 }
  0xe7   :  { %438 = vst [vmem:[%s668_s4] sm:$0xff] %v437_v55   ;;  %484 = vst [vmem:[%s668_s4 + $0x20] sm:$0xff] %v457_v56   ;;  %v173_v3 = vadd.f32 %v610_v14, %v172_v63  ;;  %v205_v4 = vadd.f32 %v610_v14, %v204_v0  ;;  %v509_v5 = vpop.f32.mrb[6].mxu0  ;;  %v517_v6 = vpop.f32.mrb[6].mxu1 }
  0xe8   :  { %v184_v9 = vadd.f32 %v509_v5, %v610_v14  ;;  %v216_v10 = vadd.f32 %v517_v6, %v610_v14  ;;  %v175_v11 = vpop.f32.mrb[7].mxu0  ;;  %v207_v12 = vpop.f32.mrb[7].mxu1  ;;  %v257_v16 = vadd.f32 %v416_v53, %v181_v61  ;;  %v265_v17 = vadd.f32 %v432_v54, %v213_v62 }
  0xe9   :  { %v176_v13 = vadd.f32 %v610_v14, %v175_v11  ;;  %v208_v15 = vadd.f32 %v610_v14, %v207_v12  ;;  %v255_v20 = vadd.f32 %v412_v59, %v173_v3  ;;  %v263_v21 = vadd.f32 %v428_v60, %v205_v4 }
  0xea   :  { %v258_v18 = vadd.f32 %v417_v1, %v184_v9  ;;  %v266_v19 = vadd.f32 %v433_v2, %v216_v10 }
  0xeb   :  { %v256_v22 = vadd.f32 %v413_v7, %v176_v13  ;;  %v264_v23 = vadd.f32 %v429_v8, %v208_v15 }
  0xec   :  { %v452_v24 = vpack.c.bf16 %v258_v18, %v257_v16  ;;  %v472_v25 = vpack.c.bf16 %v266_v19, %v265_v17 }
  0xed   :  { %v447_v26 = vpack.c.bf16 %v256_v22, %v255_v20  ;;  %v467_v27 = vpack.c.bf16 %v264_v23, %v263_v21 }
  0xee   :  { %483 = vst [vmem:[%s668_s4 + $0x18] sm:$0xff] %v452_v24   ;;  %487 = vst [vmem:[%s668_s4 + $0x38] sm:$0xff] %v472_v25  }
  0xef   :  { %482 = vst [vmem:[%s668_s4 + $0x10] sm:$0xff] %v447_v26   ;;  %486 = vst [vmem:[%s668_s4 + $0x30] sm:$0xff] %v467_v27  }

</bundles_post_ra>
